<compile_context>
chip_gen: v6e
topology: v6e:2x2x1
jax: 0.10.0
libtpu: 0.0.40
codegen_flags: <defaults>
</compile_context>

<pallas_src>
import functools

import jax
import jax.numpy as jnp
from jax.experimental import pallas as pl
from jax.experimental.pallas import tpu as pltpu


def _attention2d_kernel(x_ref, wqkv_ref, wo_ref, bo_ref, out_ref, attn_ref, *,
                        num_heads, head_dim):
    """One grid step == one batch element.

    x_ref    : (1, dim_in, HW)                 VMEM  (positions on lanes)
    wqkv_ref : (num_heads*3*head_dim, dim_in)  VMEM  (heads-major fused QKV)
    wo_ref   : (dim_out, dim_out)              VMEM
    bo_ref   : (dim_out, 1)                    VMEM  (f32)
    out_ref  : (1, dim_out, HW)                VMEM  (== NCHW layout)
    attn_ref : (1, num_heads, HW, HW)          VMEM
    """
    cd = x_ref.dtype                      # MXU operand dtype (bf16 on v6e/v7x)
    x = x_ref[0]                          # (dim_in, HW)
    hw = x.shape[-1]
    dim_out = num_heads * head_dim

    # Fused QKV projection: one MXU matmul, f32 accumulation.
    qkv = jnp.dot(wqkv_ref[...], x, preferred_element_type=jnp.float32)
    # -> (heads, 3*head_dim, HW): leading-dim reshape only, lane dim untouched.
    qkv = qkv.reshape(num_heads, 3 * head_dim, hw)
    q = qkv[:, :head_dim, :]              # (h, d, p)  tile-aligned sublane slice
    k = qkv[:, head_dim:2 * head_dim, :]
    v = qkv[:, 2 * head_dim:, :]

    # Attention logits for all heads at once.
    # (No 1/sqrt(head_dim) scaling — this matches the PyTorch module.)
    dots = jnp.einsum('hdi,hdj->hij', q.astype(cd), k.astype(cd),
                      preferred_element_type=jnp.float32)       # (h, HW, HW)

    # Softmax over keys, in f32; division via the EUP reciprocal.
    m = jnp.max(dots, axis=-1, keepdims=True)
    e = jnp.exp(dots - m)
    attn = e * pl.reciprocal(jnp.sum(e, axis=-1, keepdims=True), approx=True)
    attn_ref[0] = attn.astype(attn_ref.dtype)

    # Per-head context, produced directly in (h, d, p) layout (no transpose).
    o = jnp.einsum('hdj,hij->hdi', v.astype(cd), attn.astype(cd),
                   preferred_element_type=jnp.float32)          # (h, d, HW)
    o = o.reshape(dim_out, hw)            # heads-major channel "concat" (free)

    # Output 1x1 conv: Wo @ o + b  -> (dim_out, HW), i.e. NCHW layout already.
    out = jnp.dot(wo_ref[...], o.astype(wo_ref.dtype),
                  preferred_element_type=jnp.float32) + bo_ref[...]
    out_ref[0] = out.astype(out_ref.dtype)


def attention2d_pallas(x_nchw, wq, wk, wv, wo, bo, *, num_heads,
                       mxu_dtype=None, attn_dtype=jnp.float32):
    """x_nchw: (B, dim_in, H, W); conv weights in PyTorch (out, in) layout.

    mxu_dtype : optional narrower dtype (e.g. jnp.bfloat16) for MXU operands
                on v6e/v7x; accumulation and softmax stay f32.
    attn_dtype: dtype of the returned attention map.
    """
    # TODO(synk): optional attention `mask` (masked_fill) is not implemented;
    #             this covers the forward(x, mask=None) path only.
    B, dim_in, H, W = x_nchw.shape
    dim_out = wq.shape[0]
    assert dim_out % num_heads == 0
    head_dim = dim_out // num_heads
    HW = H * W

    # NCHW -> (B, C, HW): pure reshape, no transpose.
    x_seq = x_nchw.reshape(B, dim_in, HW)

    # Fused, heads-major QKV weight: rows ordered (head, [q|k|v], head_dim).
    def _heads(w):
        return w.reshape(num_heads, head_dim, dim_in)
    w_qkv = jnp.concatenate([_heads(wq), _heads(wk), _heads(wv)], axis=1)
    w_qkv = w_qkv.reshape(num_heads * 3 * head_dim, dim_in)

    wo_in = wo
    if mxu_dtype is not None:
        x_seq = x_seq.astype(mxu_dtype)
        w_qkv = w_qkv.astype(mxu_dtype)
        wo_in = wo.astype(mxu_dtype)

    bo2 = bo.reshape(dim_out, 1).astype(jnp.float32)

    kernel = functools.partial(_attention2d_kernel,
                               num_heads=num_heads, head_dim=head_dim)

    out_seq, attn = pl.pallas_call(
        kernel,
        out_shape=(
            jax.ShapeDtypeStruct((B, dim_out, HW), x_nchw.dtype),
            jax.ShapeDtypeStruct((B, num_heads, HW, HW), attn_dtype),
        ),
        grid=(B,),
        in_specs=[
            pl.BlockSpec((1, dim_in, HW), lambda b: (b, 0, 0)),
            pl.BlockSpec((3 * dim_out, dim_in), lambda b: (0, 0)),
            pl.BlockSpec((dim_out, dim_out), lambda b: (0, 0)),
            pl.BlockSpec((dim_out, 1), lambda b: (0, 0)),
        ],
        out_specs=(
            pl.BlockSpec((1, dim_out, HW), lambda b: (b, 0, 0)),
            pl.BlockSpec((1, num_heads, HW, HW), lambda b: (b, 0, 0, 0)),
        ),
        compiler_params=pltpu.CompilerParams(
            dimension_semantics=("parallel",)),
    )(x_seq, w_qkv, wo_in, bo2)

    # (B, dim_out, HW) is already channel-major: final reshape is free.
    out_nchw = out_seq.reshape(B, dim_out, H, W)
    return out_nchw, attn


def attention2d_reference(x, wq, wk, wv, wo, bo, *, num_heads):
    """Plain-JAX replica of the PyTorch forward (for verification)."""
    B, C, H, W = x.shape
    dim_out = wq.shape[0]
    e = dim_out // num_heads

    def conv1x1(t, w, b=None):
        y = jnp.einsum('bchw,oc->bohw', t, w)
        if b is not None:
            y = y + b[None, :, None, None]
        return y

    q, k, v = conv1x1(x, wq), conv1x1(x, wk), conv1x1(x, wv)

    def split(t):  # 'b (n e) h w -> b n (h w) e'
        return t.reshape(B, num_heads, e, H * W).transpose(0, 1, 3, 2)

    qs, ks, vs = split(q), split(k), split(v)
    dots = jnp.einsum('bnid,bnjd->bnij', qs, ks)
    attn = jax.nn.softmax(dots, axis=-1)
    o = jnp.einsum('bnij,bnjd->bnid', attn, vs)
    o = o.transpose(0, 1, 3, 2).reshape(B, dim_out, H, W)
    out = conv1x1(o, wo, bo)
    return out, attn


if __name__ == "__main__":
    # Small, TPU-friendly shapes consistent with the module (img_size=16).
    B, dim_in, dim_out, num_heads, img = 2, 64, 128, 4, 16
    HW = img * img

    key = jax.random.PRNGKey(0)
    kx, kq, kk, kv, ko, kb = jax.random.split(key, 6)
    x = jax.random.normal(kx, (B, dim_in, img, img), dtype=jnp.float32)
    wq = 0.1 * jax.random.normal(kq, (dim_out, dim_in), dtype=jnp.float32)
    wk = 0.1 * jax.random.normal(kk, (dim_out, dim_in), dtype=jnp.float32)
    wv = 0.1 * jax.random.normal(kv, (dim_out, dim_in), dtype=jnp.float32)
    wo = 0.1 * jax.random.normal(ko, (dim_out, dim_out), dtype=jnp.float32)
    bo = 0.1 * jax.random.normal(kb, (dim_out,), dtype=jnp.float32)

    # Default f32 path (v5e-friendly); verified against the plain-JAX reference.
    out, attn = attention2d_pallas(x, wq, wk, wv, wo, bo, num_heads=num_heads)
    out = jax.block_until_ready(out)
    attn = jax.block_until_ready(attn)

    out_ref, attn_ref = attention2d_reference(x, wq, wk, wv, wo, bo,
                                              num_heads=num_heads)
    assert out.shape == (B, dim_out, img, img)
    assert attn.shape == (B, num_heads, HW, HW)
    assert jnp.allclose(out, out_ref, rtol=1e-2, atol=1e-2)
    assert jnp.allclose(attn, attn_ref, rtol=1e-2, atol=1e-2)

    # v6e/v7x fast path: bf16 MXU operands + bf16 attention write-back
    # (accumulation and softmax stay f32).  Shape/run check only.
    out_bf, attn_bf = attention2d_pallas(x, wq, wk, wv, wo, bo,
                                         num_heads=num_heads,
                                         mxu_dtype=jnp.bfloat16,
                                         attn_dtype=jnp.bfloat16)
    out_bf = jax.block_until_ready(out_bf)
    attn_bf = jax.block_until_ready(attn_bf)
    assert out_bf.shape == out.shape
    assert attn_bf.shape == attn.shape and attn_bf.dtype == jnp.bfloat16

    print("KERNEL_OK")
</pallas_src>

<mosaic_0001>
module attributes {stable_mosaic.version = 11 : i64} {
  func.func @_attention2d_kernel(%arg0: i32, %arg1: memref<1x64x256xf32, #tpu.memory_space<vmem>>, %arg2: memref<384x64xf32, #tpu.memory_space<vmem>>, %arg3: memref<128x128xf32, #tpu.memory_space<vmem>>, %arg4: memref<128x1xf32, #tpu.memory_space<vmem>>, %arg5: memref<1x128x256xf32, #tpu.memory_space<vmem>>, %arg6: memref<1x4x256x256xf32, #tpu.memory_space<vmem>>) attributes {dimension_semantics = [#tpu.dimension_semantics<parallel>], iteration_bounds = array<i64: 2>, scalar_prefetch = 0 : i64, scratch_operands = 0 : i64, tpu.core_type = #tpu.core_type<tc>, window_params = [{transform_indices = @transform_0, window_bounds = array<i64: 1, 64, 256>}, {pipeline_mode = #tpu.pipeline_mode<synchronous>, transform_indices = @transform_1, window_bounds = array<i64: 384, 64>}, {pipeline_mode = #tpu.pipeline_mode<synchronous>, transform_indices = @transform_2, window_bounds = array<i64: 128, 128>}, {pipeline_mode = #tpu.pipeline_mode<synchronous>, transform_indices = @transform_3, window_bounds = array<i64: 128, 1>}, {transform_indices = @transform_4, window_bounds = array<i64: 1, 128, 256>}, {transform_indices = @transform_5, window_bounds = array<i64: 1, 4, 256, 256>}]} {
    %c0 = arith.constant 0 : index
    %c0_0 = arith.constant 0 : index
    %c0_1 = arith.constant 0 : index
    %0 = vector.load %arg1[%c0, %c0_0, %c0_1] : memref<1x64x256xf32, #tpu.memory_space<vmem>>, vector<1x64x256xf32>
    %1 = vector.shape_cast %0 : vector<1x64x256xf32> to vector<64x256xf32>
    %c0_2 = arith.constant 0 : index
    %c0_3 = arith.constant 0 : index
    %2 = vector.load %arg2[%c0_2, %c0_3] : memref<384x64xf32, #tpu.memory_space<vmem>>, vector<384x64xf32>
    %cst = arith.constant dense<0.000000e+00> : vector<384x256xf32>
    %3 = tpu.matmul %2, %1, %cst {dimension_numbers = #tpu.dot_dimension_numbers<[1], [0], [0], [1], [0, 0, 1, 1], [], []>} : vector<384x64xf32>, vector<64x256xf32>, vector<384x256xf32> -> vector<384x256xf32>
    %4 = vector.shape_cast %3 : vector<384x256xf32> to vector<4x96x256xf32>
    %5 = vector.extract_strided_slice %4 {offsets = [0, 0, 0], sizes = [4, 32, 256], strides = [1, 1, 1]} : vector<4x96x256xf32> to vector<4x32x256xf32>
    %6 = vector.extract_strided_slice %4 {offsets = [0, 32, 0], sizes = [4, 32, 256], strides = [1, 1, 1]} : vector<4x96x256xf32> to vector<4x32x256xf32>
    %7 = vector.extract_strided_slice %4 {offsets = [0, 64, 0], sizes = [4, 32, 256], strides = [1, 1, 1]} : vector<4x96x256xf32> to vector<4x32x256xf32>
    "tpu.trace_start"() <{level = 10 : i32, message = "hdi,hdj->hij"}> : () -> ()
    %cst_4 = arith.constant dense<0.000000e+00> : vector<4x256x256xf32>
    %8 = tpu.matmul %5, %6, %cst_4 {dimension_numbers = #tpu.dot_dimension_numbers<[1], [1], [2], [2], [0, 0, 0, 2, 1, 2], [0], [0]>} : vector<4x32x256xf32>, vector<4x32x256xf32>, vector<4x256x256xf32> -> vector<4x256x256xf32>
    "tpu.trace_stop"() : () -> ()
    %cst_5 = arith.constant dense<0xFF800000> : vector<4x256xf32>
    %9 = vector.multi_reduction <maximumf>, %8, %cst_5 [2] : vector<4x256x256xf32> to vector<4x256xf32>
    %10 = vector.shape_cast %9 : vector<4x256xf32> to vector<4x256x1xf32>
    %11 = vector.broadcast %10 : vector<4x256x1xf32> to vector<4x256x256xf32>
    %12 = arith.subf %8, %11 : vector<4x256x256xf32>
    %13 = math.exp %12 : vector<4x256x256xf32>
    %cst_6 = arith.constant dense<0.000000e+00> : vector<4x256xf32>
    %14 = vector.multi_reduction <add>, %13, %cst_6 [2] : vector<4x256x256xf32> to vector<4x256xf32>
    %15 = vector.shape_cast %14 : vector<4x256xf32> to vector<4x256x1xf32>
    %16 = tpu.reciprocal %15 {approx = true} : vector<4x256x1xf32> -> vector<4x256x1xf32>
    %17 = vector.broadcast %16 : vector<4x256x1xf32> to vector<4x256x256xf32>
    %18 = arith.mulf %13, %17 : vector<4x256x256xf32>
    %c0_7 = arith.constant 0 : index
    %c0_8 = arith.constant 0 : index
    %c0_9 = arith.constant 0 : index
    %c0_10 = arith.constant 0 : index
    %19 = vector.load %arg6[%c0_7, %c0_8, %c0_9, %c0_10] : memref<1x4x256x256xf32, #tpu.memory_space<vmem>>, vector<1x4x256x256xf32>
    %20 = vector.shape_cast %19 : vector<1x4x256x256xf32> to vector<4x256x256xf32>
    %21 = vector.shape_cast %18 : vector<4x256x256xf32> to vector<1x4x256x256xf32>
    tpu.vector_store %arg6[%c0_7, %c0_8, %c0_9, %c0_10], %21 {strides = array<i32>} : memref<1x4x256x256xf32, #tpu.memory_space<vmem>>, vector<1x4x256x256xf32>,
    "tpu.trace_start"() <{level = 10 : i32, message = "hdj,hij->hdi"}> : () -> ()
    %cst_11 = arith.constant dense<0.000000e+00> : vector<4x32x256xf32>
    %22 = tpu.matmul %7, %18, %cst_11 {dimension_numbers = #tpu.dot_dimension_numbers<[2], [2], [1], [1], [0, 0, 0, 1, 1, 1], [0], [0]>} : vector<4x32x256xf32>, vector<4x256x256xf32>, vector<4x32x256xf32> -> vector<4x32x256xf32>
    "tpu.trace_stop"() : () -> ()
    %23 = vector.shape_cast %22 : vector<4x32x256xf32> to vector<128x256xf32>
    %c0_12 = arith.constant 0 : index
    %c0_13 = arith.constant 0 : index
    %24 = vector.load %arg3[%c0_12, %c0_13] : memref<128x128xf32, #tpu.memory_space<vmem>>, vector<128x128xf32>
    %cst_14 = arith.constant dense<0.000000e+00> : vector<128x256xf32>
    %25 = tpu.matmul %24, %23, %cst_14 {dimension_numbers = #tpu.dot_dimension_numbers<[1], [0], [0], [1], [0, 0, 1, 1], [], []>} : vector<128x128xf32>, vector<128x256xf32>, vector<128x256xf32> -> vector<128x256xf32>
    %c0_15 = arith.constant 0 : index
    %c0_16 = arith.constant 0 : index
    %26 = vector.load %arg4[%c0_15, %c0_16] : memref<128x1xf32, #tpu.memory_space<vmem>>, vector<128x1xf32>
    %27 = vector.broadcast %26 : vector<128x1xf32> to vector<128x256xf32>
    %28 = arith.addf %25, %27 : vector<128x256xf32>
    %c0_17 = arith.constant 0 : index
    %c0_18 = arith.constant 0 : index
    %c0_19 = arith.constant 0 : index
    %29 = vector.load %arg5[%c0_17, %c0_18, %c0_19] : memref<1x128x256xf32, #tpu.memory_space<vmem>>, vector<1x128x256xf32>
    %30 = vector.shape_cast %29 : vector<1x128x256xf32> to vector<128x256xf32>
    %31 = vector.shape_cast %28 : vector<128x256xf32> to vector<1x128x256xf32>
    tpu.vector_store %arg5[%c0_17, %c0_18, %c0_19], %31 {strides = array<i32>} : memref<1x128x256xf32, #tpu.memory_space<vmem>>, vector<1x128x256xf32>,
    return
  }
  func.func @transform_0(%arg0: i32) -> (i32, i32, i32) {
    %c0_i32 = arith.constant 0 : i32
    %c0_i32_0 = arith.constant 0 : i32
    %c0_i32_1 = arith.constant 0 : i32
    return %arg0, %c0_i32, %c0_i32_0 : i32, i32, i32
  }
  func.func @transform_1(%arg0: i32) -> (i32, i32) {
    %c0_i32 = arith.constant 0 : i32
    %c0_i32_0 = arith.constant 0 : i32
    %c0_i32_1 = arith.constant 0 : i32
    return %c0_i32, %c0_i32_0 : i32, i32
  }
  func.func @transform_2(%arg0: i32) -> (i32, i32) {
    %c0_i32 = arith.constant 0 : i32
    %c0_i32_0 = arith.constant 0 : i32
    %c0_i32_1 = arith.constant 0 : i32
    return %c0_i32, %c0_i32_0 : i32, i32
  }
  func.func @transform_3(%arg0: i32) -> (i32, i32) {
    %c0_i32 = arith.constant 0 : i32
    %c0_i32_0 = arith.constant 0 : i32
    %c0_i32_1 = arith.constant 0 : i32
    return %c0_i32, %c0_i32_0 : i32, i32
  }
  func.func @transform_4(%arg0: i32) -> (i32, i32, i32) {
    %c0_i32 = arith.constant 0 : i32
    %c0_i32_0 = arith.constant 0 : i32
    %c0_i32_1 = arith.constant 0 : i32
    return %arg0, %c0_i32, %c0_i32_0 : i32, i32, i32
  }
  func.func @transform_5(%arg0: i32) -> (i32, i32, i32, i32) {
    %c0_i32 = arith.constant 0 : i32
    %c0_i32_0 = arith.constant 0 : i32
    %c0_i32_1 = arith.constant 0 : i32
    %c0_i32_2 = arith.constant 0 : i32
    return %arg0, %c0_i32, %c0_i32_0, %c0_i32_1 : i32, i32, i32, i32
  }
}

</mosaic_0001>

<bundles_post_ra>
// kernel: tpu_custom_call.1
= control target key start
LH: loop header
LB: loop body
LE: loop exit
PB: predicated region body
PF: predicated region fallthrough
CT: control target
= control target key end

     0   :  { %11 = vsyncpa [#allocation3], 0  ;;  %s11015_s0 = inlined_call_operand.hbm [shape: f32[2,64,256], index: 0, kind: input, shape index: {}]   ;;  %s11016_s1 = inlined_call_operand.vmem [shape: f32[384,64], index: 1, kind: input, shape index: {}]   ;;  %s11017_s2 = inlined_call_operand.hbm [shape: f32[128,128], index: 2, kind: input, shape index: {}]   ;;  %s11018_s3 = inlined_call_operand.vmem [shape: f32[128,1], index: 3, kind: input, shape index: {}]   ;;  %s11019_s4 = inlined_call_operand.hbm [shape: f32[2,128,256], index: 4, kind: output, shape index: {0}]   ;;  %s11020_s5 = inlined_call_operand.hbm [shape: f32[2,4,256,256], index: 5, kind: output, shape index: {1}]  }
   0x1   :  { %13 = vsyncpa [#allocation3 + $0x1], 0 }
   0x2   :  { %14 = vsyncpa [#allocation6], 0 }
   0x3   :  { %15 = vsyncpa [#allocation4], 0 }
   0x4   :  { %17 = vsyncpa [#allocation4 + $0x1], 0 }
   0x5   :  { %18 = vsyncpa [#allocation9], 0 }
   0x6   :  { %20 = vsyncpa [#allocation9 + $0x1], 0  ;;  %s6771_s18 = smov 0   ;;  %s6773_s19 = smov 0  }
   0x7   :  { %s6775_s20 = smov 0   ;;  %s6777_s21 = smov 0  }
   0x8 LB: > { %s6792_s22 = sadd.s32 4294967295, %s6727_s21   ;;  %s5487_s23 = sadd.s32 4294967294, %s6727_s21   ;;  %s6727_s21 = sphi %s6777_s21, %s12421_s21   ;;  %s6723_s20 = sphi %s6775_s20, %s12420_s20   ;;  %s6719_s19 = sphi %s6773_s19, %s12419_s19   ;;  %s6715_s18 = sphi %s6771_s18, %s12418_s18  }
   0x9   : > { %p46_p0 = scmp.ne.s32.totalorder %s6719_s19, %s6715_s18  ;;  %p11021_p1 = scmp.eq.s32.totalorder %s6792_s22, 0 }
   0xa   : > { %p139_p3 = scmp.eq.s32.totalorder %s5487_s23, 1  ;;  %p5488_p5 = scmp.ge.s32.totalorder %s6727_s21, 1 }
   0xb   : > { %p6801_p4 = por %p11021_p1, %p46_p0  ;;  %p172_p7 = scmp.lt.s32.totalorder %s6727_s21, 3 }
   0xc   : > { %p6806_p6 = por %p139_p3, %p46_p0  ;;  %s6729_s27 = smov [#allocation5]  }
   0xd   : > { %s11455_s24 = scalar_select %p6801_p4, 1, 0 }
   0xe   : > { %s11456_s25 = scalar_select %p6806_p6, 1, 0 }
   0xf   : > { %p6811_p8 = pnand %p5488_p5, %p172_p7  ;;  %s187_s28 = sshll.u32 %s6729_s27, 4  ;;  %s188_s28 = int_to_ptr.vmem [resolvable:$true] %s187_s28 }
  0x10   : > { %s6825_s30 = sadd.s32 1, %s6727_s21   ;;  %s33_s6 = sadd.s32 1, %s6723_s20 }
  0x11   : > { %s11457_s26 = scalar_select %p6811_p8, 1, 0 }
  0x12   : > { %p5712_p9 = pneg %p6811_p8  ;;  %s30_s7 = ssub.s32 %s6727_s21, %s6825_s30 }
  0x13   : > { %s6586_s8 = scalar_lea.vmem %s188_s28, 2048  ;;  %p6594_p5 = scmp.lt.s32.totalorder %s188_s28, %s188_s28 }
  0x14   : > { %p6820_p11 = pnand %p5712_p9, %p11021_p1  ;;  %p6587_p13 = scmp.ne.s32.totalorder %s188_s28, %s6586_s8 }
  0x15   : > { %p6595_p7 = scmp.lt.s32.totalorder %s6586_s8, %s6586_s8 }
  0x16   : > { %p6577_p12 = pneg %p6820_p11 }
  0x17   : > { %p6596_p10 = por %p6595_p7, %p6594_p5 }
  0x18   : > { %p6589_p0 = pnand %p6587_p13, %p6577_p12 }
  0x1a   : > { %p6590_p3 = pneg %p6589_p0 }
  0x1c   : > { %p6597_p2 = pnand %p6596_p10, %p6590_p3 }
  0x1e   : > { %6600 = shalt.err (!%p6597_p2)
}
  0x1f   : > { %s6730_s9 = smov 128   ;;  %s6731_s10 = smov 8  }
  0x20   : > { %5715 = dma.hbm_to_vmem [thread:$0]  (!%p6820_p11), %s11017_s2, 2048, %s188_s28, [#allocation6], %s6730_s9, %s6730_s9, %s6731_s10  }
  0x21   : > { %p31_p9 = scmp.eq.s32.totalorder %s30_s7, 0  ;;  %p40_p12 = scmp.ne.s32.totalorder %s6723_s20, %s6719_s19 }
  0x22   : > { %p41_p10 = scmp.eq.s32.totalorder %s6727_s21, 0  ;;  %p5728_p2 = scmp.lt.s32.totalorder %s6727_s21, 2 }
  0x23   : > { %s6842_s13 = scalar_select %p31_p9, %s6723_s20, %s33_s6  }
  0x24   : > { %p42_p13 = por %p41_p10, %p40_p12  ;;  %p11459_p0 = scmp.eq.s32.totalorder %s6792_s22, 1 }
  0x25   : > { %s204_s15 = sand.u32 1, %s6723_s20   ;;  %s5683_s16 = sshll.u32 %s6727_s21, 11 }
  0x26   : > { %p6846_p3 = por %p11459_p0, %p40_p12  ;;  %s5491_s17 = sshll.u32 %s204_s15, 7 }
  0x27   : > { %s6855_s29 = scalar_lea.hbm %s11015_s0, %s5683_s16  ;;  %s208_s28 = scalar_lea.vmem [#allocation2], %s5491_s17 }
  0x28   : > { %s11460_s14 = scalar_select %p6846_p3, 1, 0 }
  0x29   : > { %s215_s6 = sshll.u32 %s208_s28, 4  ;;  %p6857_p11 = pnand %p5728_p2, %p42_p13  ;;  %s6861_s6 = int_to_ptr.vmem [resolvable:$true] %s215_s6 }
  0x2a   : > { %s6863_s8 = scalar_lea.sflag [#allocation3], %s204_s15  ;;  %s6601_s9 = scalar_lea.hbm %s6855_s29, 2048 }
  0x2b   : > { %p6602_p5 = scmp.ne.s32.totalorder %s6855_s29, %s6601_s9  ;;  %p6603_p7 = pneg %p6857_p11 }
  0x2c   : > { %s6606_s12 = scalar_lea.hbm %s11015_s0, 4096  ;;  %p6607_p10 = scmp.lt.s32.totalorder %s6855_s29, %s11015_s0 }
  0x2d   : > { %p6604_p9 = pnand %p6603_p7, %p6602_p5  ;;  %p6608_p2 = scmp.lt.s32.totalorder %s6606_s12, %s6601_s9 }
  0x2f   : > { %p6605_p12 = pneg %p6604_p9  ;;  %p6609_p13 = por %p6608_p2, %p6607_p10 }
  0x31   : > { %p6610_p0 = pnand %p6609_p13, %p6605_p12 }
  0x33   : > { %6613 = shalt.err (!%p6610_p0)
}
  0x34   : > { %s6614_s15 = scalar_lea.vmem %s6861_s6, 2048  ;;  %s6732_s23 = smov [#allocation2]  }
  0x35   : > { %p6615_p1 = scmp.ne.s32.totalorder %s6861_s6, %s6614_s15  ;;  %s6619_s27 = sshll.u32 %s6732_s23, 4  ;;  %s6620_s27 = int_to_ptr.vmem [resolvable:$false] %s6619_s27 }
  0x36   : > { %s6621_s28 = scalar_lea.vmem %s6620_s27, 4096  ;;  %p6622_p9 = scmp.lt.s32.totalorder %s6861_s6, %s6620_s27 }
  0x37   : > { %p6617_p6 = pnand %p6615_p1, %p6603_p7  ;;  %p6623_p3 = scmp.lt.s32.totalorder %s6621_s28, %s6614_s15 }
  0x39   : > { %p6618_p5 = pneg %p6617_p6  ;;  %p6624_p4 = por %p6623_p3, %p6622_p9 }
  0x3b   : > { %p6625_p8 = pnand %p6624_p4, %p6618_p5 }
  0x3d   : > { %6628 = shalt.err (!%p6625_p8)
}
  0x3e   : > { %s6733_s9 = smov 256   ;;  %s6734_s10 = smov 16  }
  0x3f   : > { %5719 = dma.hbm_to_vmem [thread:$0]  (!%p6857_p11), %s6855_s29, 2048, %s6861_s6, %s6863_s8, %s6733_s9, %s6733_s9, %s6734_s10  }
  0x40   : > { %p11462_p1 = scmp.ne.s32.totalorder %s11457_s26, 0 }
  0x42   : > { %227 = sbr.rel (%p11462_p1) target bundleno = 2009 (0x7d9), region = 36 }
  0x47   : > { %s6887_s11 = sand.u32 1, %s6719_s19   ;;  %p11463_p4 = scmp.ne.s32.totalorder %s11455_s24, 0 }
  0x48   : > { %s5495_s12 = sshll.u32 %s6887_s11, 7  ;;  %s230_s16 = scalar_lea.sflag [#allocation3], %s6887_s11 }
  0x49   : > { %s6891_s17 = scalar_lea.vmem [#allocation2], %s5495_s12 }
  0x4a   : > { %6698 = dma.done.wait (%p11463_p4), %s230_s16, 2048  }
  0x4b   : > { %6700 = vsyncadd (%p11463_p4), %s230_s16, 4294965248  ;;  %p11464_p6 = scmp.eq.s32.totalorder %s6792_s22, 0 }
  0x4d   : > { %6702 = dma.done.wait (%p11464_p6), [#allocation6], 2048   ;;  %p11465_p8 = pmov %p11464_p6 }
  0x4e   : > { %v11093_v0 = vmov 0.0   ;;  %v284_v1 = vld [vmem:[%s6891_s17 + $0x78] sm:$0xff]  ;;  %v283_v2 = vld [vmem:[%s6891_s17 + $0x70] sm:$0xff]  ;;  %v282_v3 = vld [vmem:[%s6891_s17 + $0x68] sm:$0xff]  ;;  %vm333_vm0 = vcmask 523264   ;;  %vm895_vm1 = vcmask 261120  }
  0x4f   : > { %6704 = vsyncadd (%p11465_p8), [#allocation6], 4294965248  ;;  %542 = vmatprep.mubr.f32.mxu0 %v11093_v0  ;;  %818 = vmatprep.mubr.f32.mxu1 %v11093_v0  ;;  %v281_v4 = vld [vmem:[%s6891_s17 + $0x60] sm:$0xff]  ;;  %v280_v5 = vld [vmem:[%s6891_s17 + $0x58] sm:$0xff]  ;;  %s5498_s15 = sshll.u32 %s6887_s11, 11  ;;  %s5685_s12 = sshll.u32 %s6792_s22, 15 }
  0x50   : > { %494 = vmatprep.subr.mxu0 %v284_v1  ;;  %5686 = vmatprep.subr.mxu1 %v284_v1  ;;  %v279_v6 = vld [vmem:[%s6891_s17 + $0x50] sm:$0xff]  ;;  %v278_v7 = vld [vmem:[%s6891_s17 + $0x48] sm:$0xff]  ;;  %v277_v8 = vld [vmem:[%s6891_s17 + $0x40] sm:$0xff]  ;;  %s8755_s23 = scalar_lea.vmem [#allocation8], %s5498_s15  ;;  %s10899_s26 = scalar_lea.hbm %s11020_s5, %s5685_s12 }
  0x51   : > { %495 = vmatpush1.msra.mxu0 %v283_v2  ;;  %5694 = vmatpush1.msra.mxu1 %v283_v2  ;;  %v276_v9 = vld [vmem:[%s6891_s17 + $0x38] sm:$0xff]  ;;  %v275_v10 = vld [vmem:[%s6891_s17 + $0x30] sm:$0xff]  ;;  %v274_v11 = vld [vmem:[%s6891_s17 + $0x28] sm:$0xff]  ;;  %s5372_s16 = sshll.u32 %s8755_s23, 4  ;;  %s5343_s29 = scalar_lea.sflag [#allocation9], %s6887_s11  ;;  %s10901_s16 = int_to_ptr.vmem [resolvable:$true] %s5372_s16 }
  0x52   : > { %496 = vmatprep.subr.mxu0 %v282_v3  ;;  %5687 = vmatprep.subr.mxu1 %v282_v3  ;;  %v273_v12 = vld [vmem:[%s6891_s17 + $0x20] sm:$0xff]  ;;  %v272_v13 = vld [vmem:[%s6891_s17 + $0x18] sm:$0xff]  ;;  %v271_v14 = vld [vmem:[%s6891_s17 + $0x10] sm:$0xff]  ;;  %s6629_s6 = scalar_lea.vmem %s10901_s16, 32768  ;;  %p12415_p11 = scmp.ne.s32.totalorder %s11460_s14, 0 }
  0x53   : > { %497 = vmatpush1.msra.mxu0 %v281_v4  ;;  %5695 = vmatpush1.msra.mxu1 %v281_v4  ;;  %v270_v15 = vld [vmem:[%s6891_s17 + $0x8] sm:$0xff]  ;;  %v269_v16 = vld [vmem:[%s6891_s17] sm:$0xff]  ;;  %v287_v19 = vld [vmem:[%s11016_s1 + $0x10] sm:$0xff]  ;;  %p6630_p3 = scmp.ne.s32.totalorder %s10901_s16, %s6629_s6  ;;  %s6737_s7 = smov [#allocation8]  }
  0x54   : > { %498 = vmatprep.subr.mxu0 %v280_v5  ;;  %5688 = vmatprep.subr.mxu1 %v280_v5  ;;  %v285_v17 = vld [vmem:[%s11016_s1] sm:$0xff]  ;;  %v286_v18 = vld [vmem:[%s11016_s1 + $0x8] sm:$0xff]  ;;  %v288_v20 = vld [vmem:[%s11016_s1 + $0x18] sm:$0xff]  ;;  %s6633_s8 = sshll.u32 %s6737_s7, 4  ;;  %s6634_s8 = int_to_ptr.vmem [resolvable:$false] %s6633_s8 }
  0x55   : > { %499 = vmatpush1.msra.mxu0 %v279_v6  ;;  %5696 = vmatpush1.msra.mxu1 %v279_v6  ;;  %v289_v21 = vld [vmem:[%s11016_s1 + $0x20] sm:$0xff]  ;;  %v290_v22 = vld [vmem:[%s11016_s1 + $0x28] sm:$0xff]  ;;  %v291_v23 = vld [vmem:[%s11016_s1 + $0x30] sm:$0xff]  ;;  %p6631_p7 = pnand %p6630_p3, %p12415_p11  ;;  %p6636_p10 = scmp.lt.s32.totalorder %s10901_s16, %s6634_s8 }
  0x56   : > { %500 = vmatprep.subr.mxu0 %v278_v7  ;;  %5689 = vmatprep.subr.mxu1 %v278_v7  ;;  %v292_v24 = vld [vmem:[%s11016_s1 + $0x38] sm:$0xff]  ;;  %v293_v25 = vld [vmem:[%s11016_s1 + $0x40] sm:$0xff]  ;;  %v294_v26 = vld [vmem:[%s11016_s1 + $0x48] sm:$0xff] }
  0x57   : > { %501 = vmatpush1.msra.mxu0 %v277_v8  ;;  %5697 = vmatpush1.msra.mxu1 %v277_v8  ;;  %v295_v27 = vld [vmem:[%s11016_s1 + $0x50] sm:$0xff]  ;;  %v296_v28 = vld [vmem:[%s11016_s1 + $0x58] sm:$0xff]  ;;  %v297_v29 = vld [vmem:[%s11016_s1 + $0x60] sm:$0xff]  ;;  %p6632_p12 = pneg %p6631_p7 }
  0x58   : > { %502 = vmatprep.subr.mxu0 %v276_v9  ;;  %5690 = vmatprep.subr.mxu1 %v276_v9  ;;  %v298_v30 = vld [vmem:[%s11016_s1 + $0x68] sm:$0xff]  ;;  %v299_v31 = vld [vmem:[%s11016_s1 + $0x70] sm:$0xff]  ;;  %v300_v32 = vld [vmem:[%s11016_s1 + $0x78] sm:$0xff] }
  0x59   : > { %503 = vmatpush1.msra.mxu0 %v275_v10  ;;  %5698 = vmatpush1.msra.mxu1 %v275_v10  ;;  %v301_v33 = vld [vmem:[%s11016_s1 + $0x80] sm:$0xff]  ;;  %v302_v34 = vld [vmem:[%s11016_s1 + $0x88] sm:$0xff]  ;;  %v303_v35 = vld [vmem:[%s11016_s1 + $0x90] sm:$0xff] }
  0x5a   : > { %504 = vmatprep.subr.mxu0 %v274_v11  ;;  %5691 = vmatprep.subr.mxu1 %v274_v11  ;;  %v304_v36 = vld [vmem:[%s11016_s1 + $0x98] sm:$0xff]  ;;  %v305_v37 = vld [vmem:[%s11016_s1 + $0xa0] sm:$0xff]  ;;  %v306_v38 = vld [vmem:[%s11016_s1 + $0xa8] sm:$0xff] }
  0x5b   : > { %505 = vmatpush1.msra.mxu0 %v273_v12  ;;  %5699 = vmatpush1.msra.mxu1 %v273_v12  ;;  %v307_v39 = vld [vmem:[%s11016_s1 + $0xb0] sm:$0xff]  ;;  %v308_v40 = vld [vmem:[%s11016_s1 + $0xb8] sm:$0xff]  ;;  %v309_v41 = vld [vmem:[%s11016_s1 + $0xc0] sm:$0xff] }
  0x5c   : > { %506 = vmatprep.subr.mxu0 %v272_v13  ;;  %5692 = vmatprep.subr.mxu1 %v272_v13  ;;  %v331_v42 = vld [vmem:[%s11016_s1 + $0x170] sm:$0xff]  ;;  %v310_v43 = vld [vmem:[%s11016_s1 + $0xc8] sm:$0xff]  ;;  %v312_v45 = vld [vmem:[%s11016_s1 + $0xd8] sm:$0xff] }
  0x5d   : > { %507 = vmatpush1.msra.mxu0 %v271_v14  ;;  %5700 = vmatpush1.msra.mxu1 %v271_v14  ;;  %v311_v44 = vld [vmem:[%s11016_s1 + $0xd0] sm:$0xff]  ;;  %v313_v46 = vld [vmem:[%s11016_s1 + $0xe0] sm:$0xff]  ;;  %v314_v47 = vld [vmem:[%s11016_s1 + $0xe8] sm:$0xff] }
  0x5e   : > { %508 = vmatprep.subr.mxu0 %v270_v15  ;;  %5693 = vmatprep.subr.mxu1 %v270_v15  ;;  %v315_v48 = vld [vmem:[%s11016_s1 + $0xf0] sm:$0xff]  ;;  %v316_v49 = vld [vmem:[%s11016_s1 + $0xf8] sm:$0xff]  ;;  %v317_v50 = vld [vmem:[%s11016_s1 + $0x100] sm:$0xff] }
  0x5f   : > { %509 = vmatpush1.msra.mxu0 %v269_v16  ;;  %5701 = vmatpush1.msra.mxu1 %v269_v16  ;;  %v318_v51 = vld [vmem:[%s11016_s1 + $0x108] sm:$0xff]  ;;  %v319_v52 = vld [vmem:[%s11016_s1 + $0x110] sm:$0xff]  ;;  %v320_v53 = vld [vmem:[%s11016_s1 + $0x118] sm:$0xff] }
  0x60   : > { %5499 = vmatmul.mubr.msk.f32.vlgmr.msra.gmra.mxu0 %vm333_vm0, %v285_v17  ;;  %5545 = vmatmul.mubr.msk.f32.vlgmr.msra.gmra.mxu1 %vm333_vm0, %v331_v42  ;;  %v321_v54 = vld [vmem:[%s11016_s1 + $0x120] sm:$0xff]  ;;  %v322_v55 = vld [vmem:[%s11016_s1 + $0x128] sm:$0xff]  ;;  %v323_v56 = vld [vmem:[%s11016_s1 + $0x130] sm:$0xff] }
  0x61   : > { %548 = vmatprep.mubr.f32.mxu0 %v11093_v0  ;;  %824 = vmatprep.mubr.f32.mxu1 %v11093_v0  ;;  %v324_v57 = vld [vmem:[%s11016_s1 + $0x138] sm:$0xff]  ;;  %v325_v58 = vld [vmem:[%s11016_s1 + $0x140] sm:$0xff]  ;;  %v326_v59 = vld [vmem:[%s11016_s1 + $0x148] sm:$0xff] }
  0x62   : > { %v327_v60 = vld [vmem:[%s11016_s1 + $0x150] sm:$0xff]  ;;  %v328_v61 = vld [vmem:[%s11016_s1 + $0x158] sm:$0xff] }
  0x63   : > { %v332_v62 = vld [vmem:[%s11016_s1 + $0x178] sm:$0xff] }
  0x64   : > { %5500 = vmatmul.mubr.msk.f32.gmra.mxu0 %vm333_vm0, %v286_v18  ;;  %5546 = vmatmul.mubr.msk.f32.gmra.mxu1 %vm333_vm0, %v332_v62 }
  0x65   : > { %554 = vmatprep.mubr.f32.mxu0 %v11093_v0  ;;  %1056 = vmatprep.mubr.f32.mxu1 %v11093_v0 }
  0x68   : > { %5501 = vmatmul.mubr.msk.f32.gmra.mxu0 %vm333_vm0, %v287_v19 }
  0x69   : > { %560 = vmatprep.mubr.f32.mxu0 %v11093_v0 }
  0x6c   : > { %5502 = vmatmul.mubr.msk.f32.gmra.mxu0 %vm333_vm0, %v288_v20 }
  0x6d   : > { %566 = vmatprep.mubr.f32.mxu0 %v11093_v0 }
  0x70   : > { %5503 = vmatmul.mubr.msk.f32.gmra.mxu0 %vm333_vm0, %v289_v21 }
  0x71   : > { %572 = vmatprep.mubr.f32.mxu0 %v11093_v0 }
  0x74   : > { %5504 = vmatmul.mubr.msk.f32.gmra.mxu0 %vm333_vm0, %v290_v22 }
  0x75   : > { %578 = vmatprep.mubr.f32.mxu0 %v11093_v0 }
  0x78   : > { %5505 = vmatmul.mubr.msk.f32.gmra.mxu0 %vm333_vm0, %v291_v23 }
  0x79   : > { %584 = vmatprep.mubr.f32.mxu0 %v11093_v0 }
  0x7c   : > { %5506 = vmatmul.mubr.msk.f32.gmra.mxu0 %vm333_vm0, %v292_v24 }
  0x7d   : > { %590 = vmatprep.mubr.f32.mxu0 %v11093_v0 }
  0x80   : > { %5507 = vmatmul.mubr.msk.f32.gmra.mxu0 %vm333_vm0, %v293_v25 }
  0x81   : > { %596 = vmatprep.mubr.f32.mxu0 %v11093_v0 }
  0x84   : > { %5508 = vmatmul.mubr.msk.f32.gmra.mxu0 %vm333_vm0, %v294_v26 }
  0x85   : > { %602 = vmatprep.mubr.f32.mxu0 %v11093_v0 }
  0x88   : > { %5509 = vmatmul.mubr.msk.f32.gmra.mxu0 %vm333_vm0, %v295_v27 }
  0x89   : > { %608 = vmatprep.mubr.f32.mxu0 %v11093_v0 }
  0x8c   : > { %5510 = vmatmul.mubr.msk.f32.gmra.mxu0 %vm333_vm0, %v296_v28 }
  0x8d   : > { %614 = vmatprep.mubr.f32.mxu0 %v11093_v0 }
  0x90   : > { %5511 = vmatmul.mubr.msk.f32.gmra.mxu0 %vm333_vm0, %v297_v29 }
  0x91   : > { %620 = vmatprep.mubr.f32.mxu0 %v11093_v0 }
  0x94   : > { %5512 = vmatmul.mubr.msk.f32.gmra.mxu0 %vm333_vm0, %v298_v30 }
  0x95   : > { %626 = vmatprep.mubr.f32.mxu0 %v11093_v0 }
  0x98   : > { %5513 = vmatmul.mubr.msk.f32.gmra.mxu0 %vm333_vm0, %v299_v31 }
  0x99   : > { %632 = vmatprep.mubr.f32.mxu0 %v11093_v0 }
  0x9c   : > { %5514 = vmatmul.mubr.msk.f32.gmra.mxu0 %vm333_vm0, %v300_v32 }
  0x9d   : > { %638 = vmatprep.mubr.f32.mxu0 %v11093_v0 }
  0xa0   : > { %5515 = vmatmul.mubr.msk.f32.gmra.mxu0 %vm333_vm0, %v301_v33 }
  0xa1   : > { %644 = vmatprep.mubr.f32.mxu0 %v11093_v0 }
  0xa4   : > { %5516 = vmatmul.mubr.msk.f32.gmra.mxu0 %vm333_vm0, %v302_v34 }
  0xa5   : > { %650 = vmatprep.mubr.f32.mxu0 %v11093_v0 }
  0xa8   : > { %5517 = vmatmul.mubr.msk.f32.gmra.mxu0 %vm333_vm0, %v303_v35 }
  0xa9   : > { %656 = vmatprep.mubr.f32.mxu0 %v11093_v0 }
  0xac   : > { %5518 = vmatmul.mubr.msk.f32.gmra.mxu0 %vm333_vm0, %v304_v36 }
  0xad   : > { %662 = vmatprep.mubr.f32.mxu0 %v11093_v0 }
  0xb0   : > { %5519 = vmatmul.mubr.msk.f32.gmra.mxu0 %vm333_vm0, %v305_v37 }
  0xb1   : > { %668 = vmatprep.mubr.f32.mxu0 %v11093_v0 }
  0xb4   : > { %5520 = vmatmul.mubr.msk.f32.gmra.mxu0 %vm333_vm0, %v306_v38 }
  0xb5   : > { %674 = vmatprep.mubr.f32.mxu0 %v11093_v0 }
  0xb8   : > { %5521 = vmatmul.mubr.msk.f32.gmra.mxu0 %vm333_vm0, %v307_v39 }
  0xb9   : > { %680 = vmatprep.mubr.f32.mxu0 %v11093_v0 }
  0xbc   : > { %5522 = vmatmul.mubr.msk.f32.gmra.mxu0 %vm333_vm0, %v308_v40 }
  0xbd   : > { %686 = vmatprep.mubr.f32.mxu0 %v11093_v0 }
  0xc0   : > { %5523 = vmatmul.mubr.msk.f32.gmra.mxu0 %vm333_vm0, %v309_v41 }
  0xc1   : > { %692 = vmatprep.mubr.f32.mxu0 %v11093_v0 }
  0xc4   : > { %5524 = vmatmul.mubr.msk.f32.gmra.mxu0 %vm333_vm0, %v310_v43 }
  0xc5   : > { %698 = vmatprep.mubr.f32.mxu0 %v11093_v0 }
  0xc8   : > { %5525 = vmatmul.mubr.msk.f32.gmra.mxu0 %vm333_vm0, %v311_v44 }
  0xc9   : > { %704 = vmatprep.mubr.f32.mxu0 %v11093_v0 }
  0xcc   : > { %5526 = vmatmul.mubr.msk.f32.gmra.mxu0 %vm333_vm0, %v312_v45 }
  0xcd   : > { %710 = vmatprep.mubr.f32.mxu0 %v11093_v0 }
  0xd0   : > { %5527 = vmatmul.mubr.msk.f32.gmra.mxu0 %vm333_vm0, %v313_v46 }
  0xd1   : > { %716 = vmatprep.mubr.f32.mxu0 %v11093_v0 }
  0xd4   : > { %5528 = vmatmul.mubr.msk.f32.gmra.mxu0 %vm333_vm0, %v314_v47 }
  0xd5   : > { %722 = vmatprep.mubr.f32.mxu0 %v11093_v0 }
  0xd8   : > { %5529 = vmatmul.mubr.msk.f32.gmra.mxu0 %vm333_vm0, %v315_v48 }
  0xd9   : > { %728 = vmatprep.mubr.f32.mxu0 %v11093_v0 }
  0xdc   : > { %5530 = vmatmul.mubr.msk.f32.gmra.mxu0 %vm333_vm0, %v316_v49 }
  0xdd   : > { %734 = vmatprep.mubr.f32.mxu0 %v11093_v0 }
  0xe0   : > { %5531 = vmatmul.mubr.msk.f32.gmra.mxu0 %vm333_vm0, %v317_v50 }
  0xe1   : > { %740 = vmatprep.mubr.f32.mxu0 %v11093_v0 }
  0xe4   : > { %5532 = vmatmul.mubr.msk.f32.gmra.mxu0 %vm333_vm0, %v318_v51 }
  0xe5   : > { %746 = vmatprep.mubr.f32.mxu0 %v11093_v0 }
  0xe8   : > { %5533 = vmatmul.mubr.msk.f32.gmra.mxu0 %vm333_vm0, %v319_v52 }
  0xe9   : > { %752 = vmatprep.mubr.f32.mxu0 %v11093_v0 }
  0xec   : > { %5534 = vmatmul.mubr.msk.f32.gmra.mxu0 %vm333_vm0, %v320_v53 }
  0xed   : > { %758 = vmatprep.mubr.f32.mxu0 %v11093_v0 }
  0xf0   : > { %5535 = vmatmul.mubr.msk.f32.gmra.mxu0 %vm333_vm0, %v321_v54 }
  0xf1   : > { %764 = vmatprep.mubr.f32.mxu0 %v11093_v0 }
  0xf4   : > { %5536 = vmatmul.mubr.msk.f32.gmra.mxu0 %vm333_vm0, %v322_v55 }
  0xf5   : > { %770 = vmatprep.mubr.f32.mxu0 %v11093_v0 }
  0xf8   : > { %5537 = vmatmul.mubr.msk.f32.gmra.mxu0 %vm333_vm0, %v323_v56 }
  0xf9   : > { %776 = vmatprep.mubr.f32.mxu0 %v11093_v0 }
  0xfc   : > { %5538 = vmatmul.mubr.msk.f32.gmra.mxu0 %vm333_vm0, %v324_v57 }
  0xfd   : > { %782 = vmatprep.mubr.f32.mxu0 %v11093_v0 }
 0x100   : > { %5539 = vmatmul.mubr.msk.f32.gmra.mxu0 %vm333_vm0, %v325_v58 }
 0x101   : > { %788 = vmatprep.mubr.f32.mxu0 %v11093_v0 }
 0x104   : > { %5540 = vmatmul.mubr.msk.f32.gmra.mxu0 %vm333_vm0, %v326_v59 }
 0x105   : > { %794 = vmatprep.mubr.f32.mxu0 %v11093_v0 }
 0x108   : > { %5541 = vmatmul.mubr.msk.f32.gmra.mxu0 %vm333_vm0, %v327_v60  ;;  %v329_v60 = vld [vmem:[%s11016_s1 + $0x160] sm:$0xff] }
 0x109   : > { %800 = vmatprep.mubr.f32.mxu0 %v11093_v0 }
 0x10c   : > { %5542 = vmatmul.mubr.msk.f32.gmra.mxu0 %vm333_vm0, %v328_v61 }
 0x10d   : > { %806 = vmatprep.mubr.f32.mxu0 %v11093_v0 }
 0x110   : > { %5543 = vmatmul.mubr.msk.f32.gmra.mxu0 %vm333_vm0, %v329_v60 }
 0x111   : > { %812 = vmatprep.mubr.f32.mxu0 %v11093_v0 }
 0x120   : > { %v544_v63 = vpop.f32.mrf.mxu0 }
 0x121   : > { %831 = vxpose.xlu0.b32.start [1/4] (short) %v544_v63, 128  ;;  %v330_v63 = vld [vmem:[%s11016_s1 + $0x168] sm:$0xff] }
 0x122   : > { %v546_v1 = vpop.f32.mrf.mxu0  ;;  %5544 = vmatmul.mubr.msk.f32.gmra.mxu0 %vm333_vm0, %v330_v63 }
 0x123   : > { %863 = vxpose.xlu1.b32.start [1/4] (short) %v546_v1, 128  ;;  %1890 = vmatprep.mubr.f32.mxu0 %v11093_v0 }
 0x124   : > { %v550_v2 = vpop.f32.mrf.mxu0 }
 0x125   : > { %832 = vxpose.xlu0.b32.cont [2/4] (short) %v550_v2, 128 }
 0x126   : > { %v552_v3 = vpop.f32.mrf.mxu0 }
 0x127   : > { %864 = vxpose.xlu1.b32.cont [2/4] (short) %v552_v3, 128 }
 0x128   : > { %v556_v4 = vpop.f32.mrf.mxu0 }
 0x129   : > { %833 = vxpose.xlu0.b32.cont [3/4] (short) %v556_v4, 128 }
 0x12a   : > { %v558_v5 = vpop.f32.mrf.mxu0 }
 0x12b   : > { %865 = vxpose.xlu1.b32.cont [3/4] (short) %v558_v5, 128 }
 0x12c   : > { %v562_v6 = vpop.f32.mrf.mxu0 }
 0x12d   : > { %834 = vxpose.xlu0.b32.end [4/4] (short) %v562_v6, 128 }
 0x12e   : > { %v564_v7 = vpop.f32.mrf.mxu0 }
 0x12f   : > { %866 = vxpose.xlu1.b32.end [4/4] (short) %v564_v7, 128 }
 0x130   : > { %v568_v8 = vpop.f32.mrf.mxu0 }
 0x132   : > { %v570_v9 = vpop.f32.mrf.mxu0 }
 0x134   : > { %v574_v10 = vpop.f32.mrf.mxu0 }
 0x136   : > { %v576_v11 = vpop.f32.mrf.mxu0 }
 0x138   : > { %v580_v12 = vpop.f32.mrf.mxu0 }
 0x13a   : > { %v582_v13 = vpop.f32.mrf.mxu0 }
 0x13c   : > { %v586_v14 = vpop.f32.mrf.mxu0 }
 0x13e   : > { %v588_v15 = vpop.f32.mrf.mxu0 }
 0x13f   : > { %1016 = vmatprep.subr.mxu1 %v588_v15 }
 0x140   : > { %v7149_v16 = vpop.f32.mrf.mxu0  ;;  %1017 = vmatpush1.msra.mxu1 %v586_v14 }
 0x141   : > { %11466 = vst [vmem:[#allocation14_spill] sm:$0xff] %v7149_v16  ;;  %1018 = vmatprep.subr.mxu1 %v582_v13 }
 0x142   : > { %v7151_v17 = vpop.f32.mrf.mxu0  ;;  %1019 = vmatpush1.msra.mxu1 %v580_v12 }
 0x143   : > { %1020 = vmatprep.subr.mxu1 %v576_v11 }
 0x144   : > { %v7153_v18 = vpop.f32.mrf.mxu0  ;;  %1021 = vmatpush1.msra.mxu1 %v574_v10 }
 0x145   : > { %11467 = vst [vmem:[#allocation15_spill] sm:$0xff] %v7153_v18  ;;  %1022 = vmatprep.subr.mxu1 %v570_v9 }
 0x146   : > { %v7155_v19 = vpop.f32.mrf.mxu0  ;;  %1023 = vmatpush1.msra.mxu1 %v568_v8 }
 0x147   : > { %11468 = vst [vmem:[#allocation16_spill] sm:$0xff] %v7155_v19 }
 0x148   : > { %v7157_v20 = vpop.f32.mrf.mxu0 }
 0x149   : > { %11469 = vst [vmem:[#allocation17_spill] sm:$0xff] %v7157_v20 }
 0x14a   : > { %v7159_v21 = vpop.f32.mrf.mxu0 }
 0x14b   : > { %11470 = vst [vmem:[#allocation18_spill] sm:$0xff] %v7159_v21 }
 0x14c   : > { %v7161_v22 = vpop.f32.mrf.mxu0 }
 0x14d   : > { %11471 = vst [vmem:[#allocation19_spill] sm:$0xff] %v7161_v22 }
 0x14e   : > { %v7163_v23 = vpop.f32.mrf.mxu0 }
 0x14f   : > { %11472 = vst [vmem:[#allocation20_spill] sm:$0xff] %v7163_v23 }
 0x150   : > { %v616_v24 = vpop.f32.mrf.mxu0 }
 0x152   : > { %v618_v25 = vpop.f32.mrf.mxu0 }
 0x154   : > { %v622_v26 = vpop.f32.mrf.mxu0 }
 0x156   : > { %v624_v27 = vpop.f32.mrf.mxu0 }
 0x158   : > { %v628_v28 = vpop.f32.mrf.mxu0 }
 0x15a   : > { %v630_v29 = vpop.f32.mrf.mxu0 }
 0x15c   : > { %v634_v30 = vpop.f32.mrf.mxu0 }
 0x15e   : > { %1249 = vxpose.xlu0.b32.start [1/4] (short) %v616_v24, 128  ;;  %v636_v31 = vpop.f32.mrf.mxu0 }
 0x160   : > { %1281 = vxpose.xlu1.b32.start [1/4] (short) %v618_v25, 128  ;;  %v7165_v32 = vpop.f32.mrf.mxu0 }
 0x162   : > { %1250 = vxpose.xlu0.b32.cont [2/4] (short) %v622_v26, 128  ;;  %v7167_v33 = vpop.f32.mrf.mxu0 }
 0x164   : > { %1282 = vxpose.xlu1.b32.cont [2/4] (short) %v624_v27, 128  ;;  %v646_v34 = vpop.f32.mrf.mxu0 }
 0x166   : > { %1251 = vxpose.xlu0.b32.cont [3/4] (short) %v628_v28, 128  ;;  %v648_v35 = vpop.f32.mrf.mxu0 }
 0x168   : > { %1283 = vxpose.xlu1.b32.cont [3/4] (short) %v630_v29, 128  ;;  %v652_v36 = vpop.f32.mrf.mxu0 }
 0x16a   : > { %1252 = vxpose.xlu0.b32.end [4/4] (short) %v634_v30, 128  ;;  %v654_v37 = vpop.f32.mrf.mxu0 }
 0x16c   : > { %1284 = vxpose.xlu1.b32.end [4/4] (short) %v636_v31, 128  ;;  %v658_v38 = vpop.f32.mrf.mxu0 }
 0x16e   : > { %v660_v39 = vpop.f32.mrf.mxu0 }
 0x16f   : > { %1433 = vmatprep.subr.mxu1 %v660_v39 }
 0x170   : > { %v7169_v40 = vpop.f32.mrf.mxu0 }
 0x171   : > { %11473 = vst [vmem:[#allocation21_spill] sm:$0xff] %v7169_v40 }
 0x172   : > { %v7171_v41 = vpop.f32.mrf.mxu0 }
 0x174   : > { %v7173_v42 = vpop.f32.mrf.mxu0 }
 0x175   : > { %11474 = vst [vmem:[#allocation22_spill] sm:$0xff] %v7173_v42 }
 0x176   : > { %v7175_v43 = vpop.f32.mrf.mxu0 }
 0x177   : > { %11475 = vst [vmem:[#allocation23_spill] sm:$0xff] %v7175_v43 }
 0x178   : > { %v7177_v44 = vpop.f32.mrf.mxu0 }
 0x179   : > { %11476 = vst [vmem:[#allocation24_spill] sm:$0xff] %v7177_v44 }
 0x17a   : > { %v7179_v45 = vpop.f32.mrf.mxu0 }
 0x17b   : > { %11477 = vst [vmem:[#allocation25_spill] sm:$0xff] %v7179_v45 }
 0x17c   : > { %v7181_v46 = vpop.f32.mrf.mxu0 }
 0x17d   : > { %11478 = vst [vmem:[#allocation26_spill] sm:$0xff] %v7181_v46 }
 0x17e   : > { %v7183_v47 = vpop.f32.mrf.mxu0 }
 0x17f   : > { %11479 = vst [vmem:[#allocation27_spill] sm:$0xff] %v7183_v47 }
 0x180   : > { %v688_v48 = vpop.f32.mrf.mxu0 }
 0x182   : > { %v7185_v49 = vpop.f32.mrf.mxu0 }
 0x184   : > { %v694_v50 = vpop.f32.mrf.mxu0 }
 0x186   : > { %v7187_v51 = vpop.f32.mrf.mxu0 }
 0x188   : > { %v700_v52 = vpop.f32.mrf.mxu0 }
 0x18a   : > { %v7189_v53 = vpop.f32.mrf.mxu0 }
 0x18c   : > { %v706_v54 = vpop.f32.mrf.mxu0 }
 0x18e   : > { %v7191_v55 = vpop.f32.mrf.mxu0 }
 0x190   : > { %v712_v56 = vpop.f32.mrf.mxu0 }
 0x192   : > { %v714_v57 = vpop.f32.mrf.mxu0 }
 0x194   : > { %v718_v58 = vpop.f32.mrf.mxu0 }
 0x196   : > { %v720_v59 = vpop.f32.mrf.mxu0 }
 0x198   : > { %v724_v61 = vpop.f32.mrf.mxu0 }
 0x19a   : > { %v726_v62 = vpop.f32.mrf.mxu0 }
 0x19c   : > { %v730_v1 = vpop.f32.mrf.mxu0 }
 0x19d   : > { %v847_v2 = vpop.trf.xlu0  ;;  %1666 = vxpose.xlu1.b32.start [1/4] (short) %v688_v48, 128 }
 0x19e   : > { %v732_v3 = vpop.f32.mrf.mxu0  ;;  %5547 = vmatmul.mubr.msk.f32.vlgmr.msra.gmra.mxu1 %vm895_vm1, %v847_v2 }
 0x19f   : > { %1434 = vmatpush1.msra.mxu1 %v658_v38  ;;  %v7204_v4 = vpop.trf.xlu1  ;;  %1850 = vmatprep.subr.mxu0 %v732_v3 }
 0x1a0   : > { %1435 = vmatprep.subr.mxu1 %v654_v37  ;;  %1851 = vmatpush1.msra.mxu0 %v730_v1  ;;  %v7206_v5 = vpop.f32.mrf.mxu0 }
 0x1a1   : > { %11480 = vst [vmem:[#allocation28_spill] sm:$0xff] %v7206_v5  ;;  %1436 = vmatpush1.msra.mxu1 %v652_v36  ;;  %v848_v6 = vpop.trf.xlu0  ;;  %1062 = vmatprep.mubr.f32.mxu1 %v11093_v0 }
 0x1a2   : > { %1437 = vmatprep.subr.mxu1 %v648_v35  ;;  %1667 = vxpose.xlu1.b32.cont [2/4] (short) %v694_v50, 128  ;;  %v7209_v7 = vpop.f32.mrf.mxu0 }
 0x1a3   : > { %11481 = vst [vmem:[#allocation29_spill] sm:$0xff] %v7209_v7  ;;  %1852 = vmatprep.subr.mxu0 %v726_v62  ;;  %5548 = vmatmul.mubr.msk.f32.gmra.mxu1 %vm895_vm1, %v848_v6  ;;  %v7212_v8 = vpop.trf.xlu1 }
 0x1a4   : > { %1438 = vmatpush1.msra.mxu1 %v646_v34  ;;  %1853 = vmatpush1.msra.mxu0 %v724_v61  ;;  %v7214_v9 = vpop.f32.mrf.mxu0 }
 0x1a5   : > { %11482 = vst [vmem:[#allocation30_spill] sm:$0xff] %v7214_v9  ;;  %1439 = vmatprep.subr.mxu1 %v7167_v33  ;;  %1854 = vmatprep.subr.mxu0 %v720_v59  ;;  %v849_v10 = vpop.trf.xlu0 }
 0x1a6   : > { %1440 = vmatpush1.msra.mxu1 %v7165_v32  ;;  %1855 = vmatpush1.msra.mxu0 %v718_v58  ;;  %v7218_v11 = vpop.f32.mrf.mxu0 }
 0x1a7   : > { %11483 = vst [vmem:[#allocation31_spill] sm:$0xff] %v7218_v11  ;;  %1068 = vmatprep.mubr.f32.mxu1 %v11093_v0  ;;  %1668 = vxpose.xlu1.b32.cont [3/4] (short) %v700_v52, 128  ;;  %v7221_v12 = vpop.trf.xlu1 }
 0x1a8   : > { %1856 = vmatprep.subr.mxu0 %v714_v57  ;;  %5549 = vmatmul.mubr.msk.f32.gmra.mxu1 %vm895_vm1, %v849_v10  ;;  %v7224_v13 = vpop.f32.mrf.mxu0 }
 0x1a9   : > { %11484 = vst [vmem:[#allocation32_spill] sm:$0xff] %v7224_v13  ;;  %1857 = vmatpush1.msra.mxu0 %v712_v56  ;;  %v850_v14 = vpop.trf.xlu0  ;;  %1074 = vmatprep.mubr.f32.mxu1 %v11093_v0 }
 0x1aa   : > { %v7227_v15 = vpop.f32.mrf.mxu0 }
 0x1ab   : > { %11485 = vst [vmem:[#allocation33_spill] sm:$0xff] %v7227_v15  ;;  %1669 = vxpose.xlu1.b32.end [4/4] (short) %v706_v54, 128  ;;  %v7229_v24 = vpop.trf.xlu1 }
 0x1ac   : > { %5550 = vmatmul.mubr.msk.f32.gmra.mxu1 %vm895_vm1, %v850_v14  ;;  %v7232_v25 = vpop.f32.mrf.mxu0 }
 0x1ad   : > { %11486 = vst [vmem:[#allocation34_spill] sm:$0xff] %v7232_v25  ;;  %v851_v26 = vpop.trf.xlu0  ;;  %1080 = vmatprep.mubr.f32.mxu1 %v11093_v0 }
 0x1ae   : > { %v7235_v27 = vpop.f32.mrf.mxu0 }
 0x1af   : > { %11487 = vst [vmem:[#allocation35_spill] sm:$0xff] %v7235_v27  ;;  %v7237_v28 = vpop.trf.xlu1 }
 0x1b0   : > { %5551 = vmatmul.mubr.msk.f32.gmra.mxu1 %vm895_vm1, %v851_v26  ;;  %v760_v29 = vpop.f32.mrf.mxu0 }
 0x1b1   : > { %v852_v30 = vpop.trf.xlu0  ;;  %1086 = vmatprep.mubr.f32.mxu1 %v11093_v0  ;;  %2083 = vxpose.xlu0.b32.start [1/4] (short) %v760_v29, 128 }
 0x1b2   : > { %v7241_v31 = vpop.f32.mrf.mxu0 }
 0x1b3   : > { %v7243_v32 = vpop.trf.xlu1 }
 0x1b4   : > { %5552 = vmatmul.mubr.msk.f32.gmra.mxu1 %vm895_vm1, %v852_v30  ;;  %v766_v33 = vpop.f32.mrf.mxu0 }
 0x1b5   : > { %v853_v34 = vpop.trf.xlu0  ;;  %1092 = vmatprep.mubr.f32.mxu1 %v11093_v0  ;;  %2084 = vxpose.xlu0.b32.cont [2/4] (short) %v766_v33, 128 }
 0x1b6   : > { %v7247_v35 = vpop.f32.mrf.mxu0 }
 0x1b7   : > { %v7249_v36 = vpop.trf.xlu1 }
 0x1b8   : > { %5553 = vmatmul.mubr.msk.f32.gmra.mxu1 %vm895_vm1, %v853_v34  ;;  %v772_v37 = vpop.f32.mrf.mxu0 }
 0x1b9   : > { %v854_v38 = vpop.trf.xlu0  ;;  %1098 = vmatprep.mubr.f32.mxu1 %v11093_v0  ;;  %2085 = vxpose.xlu0.b32.cont [3/4] (short) %v772_v37, 128 }
 0x1ba   : > { %v7253_v39 = vpop.f32.mrf.mxu0 }
 0x1bb   : > { %v7255_v48 = vpop.trf.xlu1 }
 0x1bc   : > { %5554 = vmatmul.mubr.msk.f32.gmra.mxu1 %vm895_vm1, %v854_v38  ;;  %v778_v50 = vpop.f32.mrf.mxu0 }
 0x1bd   : > { %v855_v52 = vpop.trf.xlu0  ;;  %1104 = vmatprep.mubr.f32.mxu1 %v11093_v0  ;;  %2086 = vxpose.xlu0.b32.end [4/4] (short) %v778_v50, 128 }
 0x1be   : > { %v7259_v54 = vpop.f32.mrf.mxu0 }
 0x1bf   : > { %v7261_v56 = vpop.trf.xlu1 }
 0x1c0   : > { %5555 = vmatmul.mubr.msk.f32.gmra.mxu1 %vm895_vm1, %v855_v52  ;;  %v7264_v57 = vpop.f32.mrf.mxu0 }
 0x1c1   : > { %v856_v58 = vpop.trf.xlu0  ;;  %1110 = vmatprep.mubr.f32.mxu1 %v11093_v0 }
 0x1c2   : > { %v7267_v59 = vpop.f32.mrf.mxu0 }
 0x1c3   : > { %v7269_v60 = vpop.trf.xlu1 }
 0x1c4   : > { %5556 = vmatmul.mubr.msk.f32.gmra.mxu1 %vm895_vm1, %v856_v58  ;;  %v7272_v61 = vpop.f32.mrf.mxu0 }
 0x1c5   : > { %v857_v62 = vpop.trf.xlu0  ;;  %1116 = vmatprep.mubr.f32.mxu1 %v11093_v0 }
 0x1c6   : > { %v7275_v63 = vpop.f32.mrf.mxu0 }
 0x1c7   : > { %v7277_v1 = vpop.trf.xlu1 }
 0x1c8   : > { %5557 = vmatmul.mubr.msk.f32.gmra.mxu1 %vm895_vm1, %v857_v62  ;;  %v7280_v2 = vpop.f32.mrf.mxu0 }
 0x1c9   : > { %v858_v3 = vpop.trf.xlu0  ;;  %1122 = vmatprep.mubr.f32.mxu1 %v11093_v0 }
 0x1ca   : > { %v7283_v6 = vpop.f32.mrf.mxu0 }
 0x1cb   : > { %v7285_v10 = vpop.trf.xlu1 }
 0x1cc   : > { %5558 = vmatmul.mubr.msk.f32.gmra.mxu1 %vm895_vm1, %v858_v3  ;;  %v7288_v14 = vpop.f32.mrf.mxu0 }
 0x1cd   : > { %v859_v26 = vpop.trf.xlu0  ;;  %1128 = vmatprep.mubr.f32.mxu1 %v11093_v0 }
 0x1ce   : > { %v804_v29 = vpop.f32.mrf.mxu0 }
 0x1cf   : > { %v7291_v30 = vpop.trf.xlu1  ;;  %2267 = vmatprep.subr.mxu1 %v804_v29 }
 0x1d0   : > { %5559 = vmatmul.mubr.msk.f32.gmra.mxu1 %vm895_vm1, %v859_v26 }
 0x1d1   : > { %v860_v33 = vpop.trf.xlu0  ;;  %1134 = vmatprep.mubr.f32.mxu1 %v11093_v0 }
 0x1d3   : > { %v7295_v34 = vpop.trf.xlu1 }
 0x1d4   : > { %5560 = vmatmul.mubr.msk.f32.gmra.mxu1 %vm895_vm1, %v860_v33 }
 0x1d5   : > { %v861_v37 = vpop.trf.xlu0  ;;  %1140 = vmatprep.mubr.f32.mxu1 %v11093_v0 }
 0x1d7   : > { %v7299_v38 = vpop.trf.xlu1 }
 0x1d8   : > { %5561 = vmatmul.mubr.msk.f32.gmra.mxu1 %vm895_vm1, %v861_v37 }
 0x1d9   : > { %v862_v50 = vpop.trf.xlu0  ;;  %1146 = vmatprep.mubr.f32.mxu1 %v11093_v0 }
 0x1db   : > { %v7303_v52 = vpop.trf.xlu1 }
 0x1dc   : > { %5562 = vmatmul.mubr.msk.f32.gmra.mxu1 %vm895_vm1, %v862_v50  ;;  %1698 = vxpose.xlu1.b32.start [1/4] (short) %v7185_v49, 128 }
 0x1dd   : > { %1152 = vmatprep.mubr.f32.mxu1 %v11093_v0  ;;  %v7308_v58 = vpop.trf.xlu0 }
 0x1df   : > { %v7310_v62 = vpop.trf.xlu1 }
 0x1e0   : > { %5563 = vmatmul.mubr.msk.f32.gmra.mxu1 %vm895_vm1, %v7204_v4  ;;  %1699 = vxpose.xlu1.b32.cont [2/4] (short) %v7187_v51, 128 }
 0x1e1   : > { %1158 = vmatprep.mubr.f32.mxu1 %v11093_v0  ;;  %v7316_v3 = vpop.trf.xlu0 }
 0x1e3   : > { %v7318_v26 = vpop.trf.xlu1 }
 0x1e4   : > { %5564 = vmatmul.mubr.msk.f32.gmra.mxu1 %vm895_vm1, %v7212_v8  ;;  %1700 = vxpose.xlu1.b32.cont [3/4] (short) %v7189_v53, 128 }
 0x1e5   : > { %1164 = vmatprep.mubr.f32.mxu1 %v11093_v0  ;;  %v7324_v49 = vpop.trf.xlu0 }
 0x1e7   : > { %v7326_v29 = vpop.trf.xlu1 }
 0x1e8   : > { %5565 = vmatmul.mubr.msk.f32.gmra.mxu1 %vm895_vm1, %v7221_v12  ;;  %1701 = vxpose.xlu1.b32.end [4/4] (short) %v7191_v55, 128 }
 0x1e9   : > { %1170 = vmatprep.mubr.f32.mxu1 %v11093_v0  ;;  %v7332_v51 = vpop.trf.xlu0 }
 0x1eb   : > { %v7334_v4 = vpop.trf.xlu1 }
 0x1ec   : > { %5566 = vmatmul.mubr.msk.f32.gmra.mxu1 %vm895_vm1, %v7229_v24 }
 0x1ed   : > { %1176 = vmatprep.mubr.f32.mxu1 %v11093_v0  ;;  %v7339_v53 = vpop.trf.xlu0 }
 0x1ee   : > { %2115 = vxpose.xlu0.b32.start [1/4] (short) %v7241_v31, 128 }
 0x1ef   : > { %v7342_v8 = vpop.trf.xlu1 }
 0x1f0   : > { %5567 = vmatmul.mubr.msk.f32.gmra.mxu1 %vm895_vm1, %v7237_v28 }
 0x1f1   : > { %1182 = vmatprep.mubr.f32.mxu1 %v11093_v0  ;;  %v7347_v55 = vpop.trf.xlu0 }
 0x1f2   : > { %2116 = vxpose.xlu0.b32.cont [2/4] (short) %v7247_v35, 128 }
 0x1f3   : > { %v7350_v12 = vpop.trf.xlu1 }
 0x1f4   : > { %5568 = vmatmul.mubr.msk.f32.gmra.mxu1 %vm895_vm1, %v7243_v32 }
 0x1f5   : > { %1188 = vmatprep.mubr.f32.mxu1 %v11093_v0  ;;  %v7355_v24 = vpop.trf.xlu0 }
 0x1f6   : > { %2117 = vxpose.xlu0.b32.cont [3/4] (short) %v7253_v39, 128 }
 0x1f7   : > { %v7358_v31 = vpop.trf.xlu1 }
 0x1f8   : > { %5569 = vmatmul.mubr.msk.f32.gmra.mxu1 %vm895_vm1, %v7249_v36 }
 0x1f9   : > { %1194 = vmatprep.mubr.f32.mxu1 %v11093_v0  ;;  %v7363_v28 = vpop.trf.xlu0 }
 0x1fa   : > { %2118 = vxpose.xlu0.b32.end [4/4] (short) %v7259_v54, 128 }
 0x1fb   : > { %v7366_v35 = vpop.trf.xlu1 }
 0x1fc   : > { %5570 = vmatmul.mubr.msk.f32.gmra.mxu1 %vm895_vm1, %v7255_v48 }
 0x1fd   : > { %1200 = vmatprep.mubr.f32.mxu1 %v11093_v0  ;;  %v7373_v39 = vpop.trf.xlu0 }
 0x1ff   : > { %v7371_v32 = vpop.trf.xlu1 }
 0x200   : > { %5571 = vmatmul.mubr.msk.f32.gmra.mxu1 %vm895_vm1, %v7261_v56 }
 0x201   : > { %1206 = vmatprep.mubr.f32.mxu1 %v11093_v0  ;;  %v7383_v54 = vpop.trf.xlu0 }
 0x203   : > { %v7378_v36 = vpop.trf.xlu1 }
 0x204   : > { %5572 = vmatmul.mubr.msk.f32.gmra.mxu1 %vm895_vm1, %v7269_v60 }
 0x205   : > { %1212 = vmatprep.mubr.f32.mxu1 %v11093_v0  ;;  %v7392_v56 = vpop.trf.xlu0 }
 0x207   : > { %v7385_v48 = vpop.trf.xlu1 }
 0x208   : > { %5573 = vmatmul.mubr.msk.f32.gmra.mxu1 %vm895_vm1, %v7277_v1 }
 0x209   : > { %1218 = vmatprep.mubr.f32.mxu1 %v11093_v0  ;;  %v7402_v37 = vpop.trf.xlu0 }
 0x20b   : > { %v7390_v33 = vpop.trf.xlu1 }
 0x20c   : > { %5574 = vmatmul.mubr.msk.f32.gmra.mxu1 %vm895_vm1, %v7285_v10 }
 0x20d   : > { %1224 = vmatprep.mubr.f32.mxu1 %v11093_v0  ;;  %v7411_v10 = vpop.trf.xlu0 }
 0x20f   : > { %v7397_v60 = vpop.trf.xlu1 }
 0x210   : > { %5575 = vmatmul.mubr.msk.f32.gmra.mxu1 %vm895_vm1, %v7291_v30 }
 0x211   : > { %1230 = vmatprep.mubr.f32.mxu1 %v11093_v0  ;;  %v7421_v25 = vpop.trf.xlu0 }
 0x213   : > { %v7404_v1 = vpop.trf.xlu1 }
 0x214   : > { %5576 = vmatmul.mubr.msk.f32.gmra.mxu1 %vm895_vm1, %v7295_v34 }
 0x215   : > { %1236 = vmatprep.mubr.f32.mxu1 %v11093_v0 }
 0x217   : > { %v7409_v50 = vpop.trf.xlu1 }
 0x218   : > { %5577 = vmatmul.mubr.msk.f32.gmra.mxu1 %vm895_vm1, %v7299_v38 }
 0x219   : > { %1242 = vmatprep.mubr.f32.mxu1 %v11093_v0 }
 0x21b   : > { %v7416_v30 = vpop.trf.xlu1 }
 0x21c   : > { %5578 = vmatmul.mubr.msk.f32.gmra.mxu1 %vm895_vm1, %v7303_v52  ;;  %v7430_v52 = vpop.trf.xlu0 }
 0x21d   : > { %1473 = vmatprep.mubr.f32.mxu1 %v11093_v0 }
 0x21f   : > { %v1682_v34 = vpop.trf.xlu1 }
 0x220   : > { %5579 = vmatmul.mubr.msk.f32.vlgmr.msra.gmra.mxu1 %vm895_vm1, %v7308_v58  ;;  %5611 = vmatmul.mubr.msk.f32.vlgmr.msra.gmra.mxu0 %vm895_vm1, %v1682_v34 }
 0x221   : > { %1479 = vmatprep.mubr.f32.mxu1 %v11093_v0  ;;  %1896 = vmatprep.mubr.f32.mxu0 %v11093_v0 }
 0x222   : > { %2268 = vmatpush1.msra.mxu1 %v7288_v14 }
 0x223   : > { %v1683_v38 = vpop.trf.xlu1  ;;  %2269 = vmatprep.subr.mxu1 %v7283_v6  ;;  %v7444_v6 = vpop.trf.xlu0 }
 0x224   : > { %5580 = vmatmul.mubr.msk.f32.gmra.mxu1 %vm895_vm1, %v7316_v3  ;;  %5612 = vmatmul.mubr.msk.f32.gmra.mxu0 %vm895_vm1, %v1683_v38 }
 0x225   : > { %1485 = vmatprep.mubr.f32.mxu1 %v11093_v0  ;;  %1902 = vmatprep.mubr.f32.mxu0 %v11093_v0 }
 0x226   : > { %2270 = vmatpush1.msra.mxu1 %v7280_v2 }
 0x227   : > { %v1684_v58 = vpop.trf.xlu1  ;;  %2271 = vmatprep.subr.mxu1 %v7275_v63 }
 0x228   : > { %5581 = vmatmul.mubr.msk.f32.gmra.mxu1 %vm895_vm1, %v7324_v49  ;;  %5613 = vmatmul.mubr.msk.f32.gmra.mxu0 %vm895_vm1, %v1684_v58 }
 0x229   : > { %1491 = vmatprep.mubr.f32.mxu1 %v11093_v0  ;;  %1908 = vmatprep.mubr.f32.mxu0 %v11093_v0 }
 0x22a   : > { %2272 = vmatpush1.msra.mxu1 %v7272_v61 }
 0x22b   : > { %v1685_v14 = vpop.trf.xlu1  ;;  %2273 = vmatprep.subr.mxu1 %v7267_v59 }
 0x22c   : > { %5582 = vmatmul.mubr.msk.f32.gmra.mxu1 %vm895_vm1, %v7332_v51  ;;  %5614 = vmatmul.mubr.msk.f32.gmra.mxu0 %vm895_vm1, %v1685_v14 }
 0x22d   : > { %1497 = vmatprep.mubr.f32.mxu1 %v11093_v0  ;;  %1914 = vmatprep.mubr.f32.mxu0 %v11093_v0  ;;  %v7453_v63 = vpop.trf.xlu0 }
 0x22e   : > { %2274 = vmatpush1.msra.mxu1 %v7264_v57 }
 0x22f   : > { %v1686_v2 = vpop.trf.xlu1 }
 0x230   : > { %5583 = vmatmul.mubr.msk.f32.gmra.mxu1 %vm895_vm1, %v7339_v53  ;;  %5615 = vmatmul.mubr.msk.f32.gmra.mxu0 %vm895_vm1, %v1686_v2 }
 0x231   : > { %1503 = vmatprep.mubr.f32.mxu1 %v11093_v0  ;;  %1920 = vmatprep.mubr.f32.mxu0 %v11093_v0  ;;  %v7461_v59 = vpop.trf.xlu0 }
 0x233   : > { %v1687_v61 = vpop.trf.xlu1 }
 0x234   : > { %5584 = vmatmul.mubr.msk.f32.gmra.mxu1 %vm895_vm1, %v7347_v55  ;;  %5616 = vmatmul.mubr.msk.f32.gmra.mxu0 %vm895_vm1, %v1687_v61 }
 0x235   : > { %1509 = vmatprep.mubr.f32.mxu1 %v11093_v0  ;;  %1926 = vmatprep.mubr.f32.mxu0 %v11093_v0  ;;  %v7468_v3 = vpop.trf.xlu0 }
 0x237   : > { %v1688_v57 = vpop.trf.xlu1 }
 0x238   : > { %5585 = vmatmul.mubr.msk.f32.gmra.mxu1 %vm895_vm1, %v7355_v24  ;;  %5617 = vmatmul.mubr.msk.f32.gmra.mxu0 %vm895_vm1, %v1688_v57 }
 0x239   : > { %1515 = vmatprep.mubr.f32.mxu1 %v11093_v0  ;;  %1932 = vmatprep.mubr.f32.mxu0 %v11093_v0  ;;  %v7480_v51 = vpop.trf.xlu0 }
 0x23b   : > { %v1689_v49 = vpop.trf.xlu1 }
 0x23c   : > { %5586 = vmatmul.mubr.msk.f32.gmra.mxu1 %vm895_vm1, %v7363_v28  ;;  %5618 = vmatmul.mubr.msk.f32.gmra.mxu0 %vm895_vm1, %v1689_v49 }
 0x23d   : > { %1521 = vmatprep.mubr.f32.mxu1 %v11093_v0  ;;  %1938 = vmatprep.mubr.f32.mxu0 %v11093_v0  ;;  %v7487_v24 = vpop.trf.xlu0 }
 0x23f   : > { %v1690_v53 = vpop.trf.xlu1 }
 0x240   : > { %5587 = vmatmul.mubr.msk.f32.gmra.mxu1 %vm895_vm1, %v7373_v39  ;;  %5619 = vmatmul.mubr.msk.f32.gmra.mxu0 %vm895_vm1, %v1690_v53 }
 0x241   : > { %1527 = vmatprep.mubr.f32.mxu1 %v11093_v0  ;;  %1944 = vmatprep.mubr.f32.mxu0 %v11093_v0  ;;  %v7499_v39 = vpop.trf.xlu0 }
 0x243   : > { %v1691_v55 = vpop.trf.xlu1 }
 0x244   : > { %5588 = vmatmul.mubr.msk.f32.gmra.mxu1 %vm895_vm1, %v7383_v54  ;;  %5620 = vmatmul.mubr.msk.f32.gmra.mxu0 %vm895_vm1, %v1691_v55  ;;  %v7506_v54 = vpop.f32.mrf.mxu1 }
 0x245   : > { %1533 = vmatprep.mubr.f32.mxu1 %v11093_v0  ;;  %1950 = vmatprep.mubr.f32.mxu0 %v11093_v0  ;;  %11488 = vst [vmem:[#allocation36_spill] sm:$0xff] %v7506_v54  ;;  %v7508_v38 = vpop.trf.xlu0 }
 0x247   : > { %v1692_v28 = vpop.trf.xlu1 }
 0x248   : > { %5589 = vmatmul.mubr.msk.f32.gmra.mxu1 %vm895_vm1, %v7392_v56  ;;  %5621 = vmatmul.mubr.msk.f32.gmra.mxu0 %vm895_vm1, %v1692_v28 }
 0x249   : > { %1539 = vmatprep.mubr.f32.mxu1 %v11093_v0  ;;  %1956 = vmatprep.mubr.f32.mxu0 %v11093_v0  ;;  %v7522_v14 = vpop.trf.xlu0 }
 0x24b   : > { %v1693_v34 = vpop.trf.xlu1 }
 0x24c   : > { %5590 = vmatmul.mubr.msk.f32.gmra.mxu1 %vm895_vm1, %v7402_v37  ;;  %5622 = vmatmul.mubr.msk.f32.gmra.mxu0 %vm895_vm1, %v1693_v34  ;;  %v7515_v37 = vpop.f32.mrf.mxu1 }
 0x24d   : > { %1545 = vmatprep.mubr.f32.mxu1 %v11093_v0  ;;  %1962 = vmatprep.mubr.f32.mxu0 %v11093_v0  ;;  %11489 = vst [vmem:[#allocation37_spill] sm:$0xff] %v7515_v37  ;;  %v7533_v57 = vpop.trf.xlu0 }
 0x24f   : > { %v1694_v56 = vpop.trf.xlu1 }
 0x250   : > { %5591 = vmatmul.mubr.msk.f32.gmra.mxu1 %vm895_vm1, %v7411_v10  ;;  %5623 = vmatmul.mubr.msk.f32.gmra.mxu0 %vm895_vm1, %v1694_v56  ;;  %v7524_v10 = vpop.f32.mrf.mxu1 }
 0x251   : > { %1551 = vmatprep.mubr.f32.mxu1 %v11093_v0  ;;  %1968 = vmatprep.mubr.f32.mxu0 %v11093_v0  ;;  %11490 = vst [vmem:[#allocation38_spill] sm:$0xff] %v7524_v10 }
 0x253   : > { %v1695_v58 = vpop.trf.xlu1 }
 0x254   : > { %5592 = vmatmul.mubr.msk.f32.gmra.mxu1 %vm895_vm1, %v7421_v25  ;;  %5624 = vmatmul.mubr.msk.f32.gmra.mxu0 %vm895_vm1, %v1695_v58  ;;  %v7531_v25 = vpop.f32.mrf.mxu1 }
 0x255   : > { %1557 = vmatprep.mubr.f32.mxu1 %v11093_v0  ;;  %1974 = vmatprep.mubr.f32.mxu0 %v11093_v0  ;;  %11491 = vst [vmem:[#allocation39_spill] sm:$0xff] %v7531_v25 }
 0x257   : > { %v1696_v2 = vpop.trf.xlu1 }
 0x258   : > { %5593 = vmatmul.mubr.msk.f32.gmra.mxu1 %vm895_vm1, %v7430_v52  ;;  %5625 = vmatmul.mubr.msk.f32.gmra.mxu0 %vm895_vm1, %v1696_v2 }
 0x259   : > { %1563 = vmatprep.mubr.f32.mxu1 %v11093_v0  ;;  %1980 = vmatprep.mubr.f32.mxu0 %v11093_v0 }
 0x25b   : > { %v1697_v61 = vpop.trf.xlu1 }
 0x25c   : > { %5594 = vmatmul.mubr.msk.f32.gmra.mxu1 %vm895_vm1, %v7444_v6  ;;  %5626 = vmatmul.mubr.msk.f32.gmra.mxu0 %vm895_vm1, %v1697_v61  ;;  %v7551_v6 = vpop.trf.xlu0 }
 0x25d   : > { %1569 = vmatprep.mubr.f32.mxu1 %v11093_v0  ;;  %1986 = vmatprep.mubr.f32.mxu0 %v11093_v0 }
 0x25e   : > { %v7540_v52 = vpop.f32.mrf.mxu1 }
 0x25f   : > { %v1714_v49 = vpop.trf.xlu1 }
 0x260   : > { %5595 = vmatmul.mubr.msk.f32.gmra.mxu1 %vm895_vm1, %v7310_v62  ;;  %v7544_v53 = vpop.f32.mrf.mxu1  ;;  %5627 = vmatmul.mubr.msk.f32.gmra.mxu0 %vm895_vm1, %v1714_v49  ;;  %v7564_v2 = vpop.trf.xlu0 }
 0x261   : > { %v2500_v55 = vmax.f32 %v7540_v52, %v7544_v53  ;;  %1575 = vmatprep.mubr.f32.mxu1 %v11093_v0  ;;  %1992 = vmatprep.mubr.f32.mxu0 %v11093_v0 }
 0x263   : > { %v7553_v28 = vpop.f32.mrf.mxu1  ;;  %v1715_v34 = vpop.trf.xlu1  ;;  %2501 = vmax.xlane.f32.xlu0 %v2500_v55 }
 0x264   : > { %5596 = vmatmul.mubr.msk.f32.gmra.mxu1 %vm895_vm1, %v7318_v26  ;;  %5628 = vmatmul.mubr.msk.f32.gmra.mxu0 %vm895_vm1, %v1715_v34 }
 0x265   : > { %v7558_v62 = vpop.f32.mrf.mxu1  ;;  %1581 = vmatprep.mubr.f32.mxu1 %v11093_v0  ;;  %1998 = vmatprep.mubr.f32.mxu0 %v11093_v0 }
 0x266   : > { %v2503_v56 = vmax.f32 %v7553_v28, %v7558_v62 }
 0x267   : > { %v1716_v58 = vpop.trf.xlu1 }
 0x268   : > { %v7566_v61 = vpop.f32.mrf.mxu1  ;;  %5597 = vmatmul.mubr.msk.f32.gmra.mxu1 %vm895_vm1, %v7326_v29  ;;  %2504 = vmax.xlane.f32.xlu0 %v2503_v56  ;;  %v7582_v29 = vpop.trf.xlu0 }
 0x269   : > { %5629 = vmatmul.mubr.msk.f32.gmra.mxu0 %vm895_vm1, %v1716_v58  ;;  %1587 = vmatprep.mubr.f32.mxu1 %v11093_v0 }
 0x26a   : > { %v7572_v26 = vpop.f32.mrf.mxu1  ;;  %2004 = vmatprep.mubr.f32.mxu0 %v11093_v0 }
 0x26b   : > { %v2506_v49 = vmax.f32 %v7566_v61, %v7572_v26  ;;  %v1717_v55 = vpop.trf.xlu1 }
 0x26c   : > { %v7577_v34 = vpop.f32.mrf.mxu1  ;;  %5598 = vmatmul.mubr.msk.f32.gmra.mxu1 %vm895_vm1, %v7334_v4  ;;  %v7601_v15 = vpop.trf.xlu0 }
 0x26d   : > { %2507 = vmax.xlane.f32.xlu0 %v2506_v49  ;;  %5630 = vmatmul.mubr.msk.f32.gmra.mxu0 %vm895_vm1, %v1717_v55 }
 0x26e   : > { %v7584_v56 = vpop.f32.mrf.mxu1  ;;  %1593 = vmatprep.mubr.f32.mxu1 %v11093_v0  ;;  %2010 = vmatprep.mubr.f32.mxu0 %v11093_v0 }
 0x26f   : > { %v2509_v58 = vmax.f32 %v7577_v34, %v7584_v56  ;;  %v1718_v27 = vpop.trf.xlu1 }
 0x270   : > { %v7590_v13 = vpop.f32.mrf.mxu1  ;;  %5599 = vmatmul.mubr.msk.f32.gmra.mxu1 %vm895_vm1, %v7342_v8 }
 0x271   : > { %2510 = vmax.xlane.f32.xlu0 %v2509_v58  ;;  %5631 = vmatmul.mubr.msk.f32.gmra.mxu0 %vm895_vm1, %v1718_v27 }
 0x272   : > { %v7595_v4 = vpop.f32.mrf.mxu1  ;;  %1599 = vmatprep.mubr.f32.mxu1 %v11093_v0  ;;  %2016 = vmatprep.mubr.f32.mxu0 %v11093_v0 }
 0x273   : > { %v2512_v49 = vmax.f32 %v7590_v13, %v7595_v4  ;;  %v1719_v55 = vpop.trf.xlu1 }
 0x274   : > { %v7603_v9 = vpop.f32.mrf.mxu1  ;;  %5600 = vmatmul.mubr.msk.f32.gmra.mxu1 %vm895_vm1, %v7350_v12  ;;  %v7619_v12 = vpop.trf.xlu0 }
 0x275   : > { %2513 = vmax.xlane.f32.xlu0 %v2512_v49  ;;  %5632 = vmatmul.mubr.msk.f32.gmra.mxu0 %vm895_vm1, %v1719_v55 }
 0x276   : > { %v7608_v27 = vpop.f32.mrf.mxu1  ;;  %1605 = vmatprep.mubr.f32.mxu1 %v11093_v0  ;;  %2022 = vmatprep.mubr.f32.mxu0 %v11093_v0 }
 0x277   : > { %v2515_v8 = vmax.f32 %v7603_v9, %v7608_v27  ;;  %v1720_v58 = vpop.trf.xlu1 }
 0x278   : > { %v7614_v11 = vpop.f32.mrf.mxu1  ;;  %5601 = vmatmul.mubr.msk.f32.gmra.mxu1 %vm895_vm1, %v7358_v31  ;;  %v7638_v25 = vpop.trf.xlu0 }
 0x279   : > { %2516 = vmax.xlane.f32.xlu0 %v2515_v8  ;;  %5633 = vmatmul.mubr.msk.f32.gmra.mxu0 %vm895_vm1, %v1720_v58 }
 0x27a   : > { %v7621_v49 = vpop.f32.mrf.mxu1  ;;  %1611 = vmatprep.mubr.f32.mxu1 %v11093_v0  ;;  %2028 = vmatprep.mubr.f32.mxu0 %v11093_v0 }
 0x27b   : > { %v2518_v55 = vmax.f32 %v7614_v11, %v7621_v49  ;;  %v1721_v5 = vpop.trf.xlu1 }
 0x27c   : > { %v7627_v10 = vpop.f32.mrf.mxu1  ;;  %5602 = vmatmul.mubr.msk.f32.gmra.mxu1 %vm895_vm1, %v7366_v35 }
 0x27d   : > { %2519 = vmax.xlane.f32.xlu0 %v2518_v55  ;;  %5634 = vmatmul.mubr.msk.f32.gmra.mxu0 %vm895_vm1, %v1721_v5 }
 0x27e   : > { %v7632_v31 = vpop.f32.mrf.mxu1  ;;  %1617 = vmatprep.mubr.f32.mxu1 %v11093_v0  ;;  %2034 = vmatprep.mubr.f32.mxu0 %v11093_v0 }
 0x27f   : > { %v2521_v8 = vmax.f32 %v7627_v10, %v7632_v31  ;;  %v1722_v58 = vpop.trf.xlu1 }
 0x280   : > { %v7640_v54 = vpop.f32.mrf.mxu1  ;;  %5603 = vmatmul.mubr.msk.f32.gmra.mxu1 %vm895_vm1, %v7371_v32  ;;  %v7656_v32 = vpop.trf.xlu0 }
 0x281   : > { %2522 = vmax.xlane.f32.xlu0 %v2521_v8  ;;  %5635 = vmatmul.mubr.msk.f32.gmra.mxu0 %vm895_vm1, %v1722_v58 }
 0x282   : > { %v7645_v5 = vpop.f32.mrf.mxu1  ;;  %1623 = vmatprep.mubr.f32.mxu1 %v11093_v0  ;;  %2040 = vmatprep.mubr.f32.mxu0 %v11093_v0 }
 0x283   : > { %v2524_v35 = vmax.f32 %v7640_v54, %v7645_v5  ;;  %v1723_v55 = vpop.trf.xlu1 }
 0x284   : > { %v7651_v37 = vpop.f32.mrf.mxu1  ;;  %5604 = vmatmul.mubr.msk.f32.gmra.mxu1 %vm895_vm1, %v7378_v36  ;;  %v7675_v44 = vpop.trf.xlu0 }
 0x285   : > { %2525 = vmax.xlane.f32.xlu0 %v2524_v35  ;;  %5636 = vmatmul.mubr.msk.f32.gmra.mxu0 %vm895_vm1, %v1723_v55 }
 0x286   : > { %v7658_v8 = vpop.f32.mrf.mxu1  ;;  %1629 = vmatprep.mubr.f32.mxu1 %v11093_v0  ;;  %2046 = vmatprep.mubr.f32.mxu0 %v11093_v0 }
 0x287   : > { %v2527_v58 = vmax.f32 %v7651_v37, %v7658_v8  ;;  %v1724_v46 = vpop.trf.xlu1 }
 0x288   : > { %v7664_v47 = vpop.f32.mrf.mxu1  ;;  %5605 = vmatmul.mubr.msk.f32.gmra.mxu1 %vm895_vm1, %v7385_v48 }
 0x289   : > { %2528 = vmax.xlane.f32.xlu0 %v2527_v58  ;;  %5637 = vmatmul.mubr.msk.f32.gmra.mxu0 %vm895_vm1, %v1724_v46 }
 0x28a   : > { %v7669_v36 = vpop.f32.mrf.mxu1  ;;  %1635 = vmatprep.mubr.f32.mxu1 %v11093_v0  ;;  %2052 = vmatprep.mubr.f32.mxu0 %v11093_v0 }
 0x28b   : > { %v2530_v35 = vmax.f32 %v7664_v47, %v7669_v36  ;;  %v1725_v55 = vpop.trf.xlu1 }
 0x28c   : > { %v7677_v45 = vpop.f32.mrf.mxu1  ;;  %5606 = vmatmul.mubr.msk.f32.gmra.mxu1 %vm895_vm1, %v7390_v33  ;;  %v7693_v33 = vpop.trf.xlu0 }
 0x28d   : > { %2531 = vmax.xlane.f32.xlu0 %v2530_v35  ;;  %5638 = vmatmul.mubr.msk.f32.gmra.mxu0 %vm895_vm1, %v1725_v55 }
 0x28e   : > { %v7682_v46 = vpop.f32.mrf.mxu1  ;;  %1641 = vmatprep.mubr.f32.mxu1 %v11093_v0  ;;  %2058 = vmatprep.mubr.f32.mxu0 %v11093_v0 }
 0x28f   : > { %v2533_v48 = vmax.f32 %v7677_v45, %v7682_v46  ;;  %v1726_v58 = vpop.trf.xlu1 }
 0x290   : > { %v7688_v42 = vpop.f32.mrf.mxu1  ;;  %5607 = vmatmul.mubr.msk.f32.gmra.mxu1 %vm895_vm1, %v7397_v60  ;;  %v7712_v7 = vpop.trf.xlu0 }
 0x291   : > { %2534 = vmax.xlane.f32.xlu0 %v2533_v48  ;;  %5639 = vmatmul.mubr.msk.f32.gmra.mxu0 %vm895_vm1, %v1726_v58 }
 0x292   : > { %v7695_v35 = vpop.f32.mrf.mxu1  ;;  %1647 = vmatprep.mubr.f32.mxu1 %v11093_v0  ;;  %2064 = vmatprep.mubr.f32.mxu0 %v11093_v0 }
 0x293   : > { %v2536_v55 = vmax.f32 %v7688_v42, %v7695_v35  ;;  %v1727_v43 = vpop.trf.xlu1 }
 0x294   : > { %v7701_v40 = vpop.f32.mrf.mxu1  ;;  %5608 = vmatmul.mubr.msk.f32.gmra.mxu1 %vm895_vm1, %v7404_v1 }
 0x295   : > { %2537 = vmax.xlane.f32.xlu0 %v2536_v55  ;;  %5640 = vmatmul.mubr.msk.f32.gmra.mxu0 %vm895_vm1, %v1727_v43 }
 0x296   : > { %v7706_v60 = vpop.f32.mrf.mxu1  ;;  %1653 = vmatprep.mubr.f32.mxu1 %v11093_v0  ;;  %2070 = vmatprep.mubr.f32.mxu0 %v11093_v0 }
 0x297   : > { %v2539_v48 = vmax.f32 %v7701_v40, %v7706_v60  ;;  %v1728_v58 = vpop.trf.xlu1 }
 0x298   : > { %v7714_v22 = vpop.f32.mrf.mxu1  ;;  %5609 = vmatmul.mubr.msk.f32.gmra.mxu1 %vm895_vm1, %v7409_v50  ;;  %v7730_v50 = vpop.trf.xlu0 }
 0x299   : > { %11492 = vst [vmem:[#allocation40_spill] sm:$0xff] %v7714_v22  ;;  %2540 = vmax.xlane.f32.xlu0 %v2539_v48  ;;  %5641 = vmatmul.mubr.msk.f32.gmra.mxu0 %vm895_vm1, %v1728_v58 }
 0x29a   : > { %v7719_v43 = vpop.f32.mrf.mxu1  ;;  %1659 = vmatprep.mubr.f32.mxu1 %v11093_v0  ;;  %2076 = vmatprep.mubr.f32.mxu0 %v11093_v0 }
 0x29b   : > { %11493 = vst [vmem:[#allocation41_spill] sm:$0xff] %v7719_v43  ;;  %v2542_v1 = vmax.f32 %v7714_v22, %v7719_v43  ;;  %v1729_v55 = vpop.trf.xlu1  ;;  %v11581_v43 = vmov 0.0  }
 0x29c   : > { %v7725_v23 = vpop.f32.mrf.mxu1  ;;  %5610 = vmatmul.mubr.msk.f32.gmra.mxu1 %vm895_vm1, %v7416_v30 }
 0x29d   : > { %11494 = vst [vmem:[#allocation42_spill] sm:$0xff] %v7725_v23  ;;  %2543 = vmax.xlane.f32.xlu0 %v2542_v1  ;;  %5642 = vmatmul.mubr.msk.f32.gmra.mxu0 %vm895_vm1, %v1729_v55  ;;  %v7747_v55 = vpop.trf.xlu0 }
 0x29e   : > { %v7732_v48 = vpop.f32.mrf.mxu1  ;;  %2307 = vmatprep.mubr.f32.mxu1 %v11093_v0  ;;  %4740 = vmatprep.mubr.f32.mxu0 %v7151_v17 }
 0x29f   : > { %11495 = vst [vmem:[#allocation43_spill] sm:$0xff] %v7732_v48  ;;  %v2545_v58 = vmax.f32 %v7725_v23, %v7732_v48 }
 0x2a0   : > { %v7738_v20 = vpop.f32.mrf.mxu1  ;;  %5643 = vmatmul.mubr.msk.f32.vlgmr.msra.gmra.mxu1 %vm895_vm1, %v7453_v63 }
 0x2a1   : > { %11496 = vst [vmem:[#allocation44_spill] sm:$0xff] %v7738_v20  ;;  %2546 = vmax.xlane.f32.xlu1 %v2545_v58  ;;  %2313 = vmatprep.mubr.f32.mxu1 %v11093_v0  ;;  %v7763_v18 = vpop.trf.xlu0 }
 0x2a2   : > { %v7743_v30 = vpop.f32.mrf.mxu1 }
 0x2a3   : > { %11497 = vst [vmem:[#allocation45_spill] sm:$0xff] %v7743_v30  ;;  %v2548_v1 = vmax.f32 %v7738_v20, %v7743_v30 }
 0x2a4   : > { %v7749_v21 = vpop.f32.mrf.mxu1  ;;  %5644 = vmatmul.mubr.msk.f32.gmra.mxu1 %vm895_vm1, %v7461_v59 }
 0x2a5   : > { %11498 = vst [vmem:[#allocation46_spill] sm:$0xff] %v7749_v21  ;;  %2549 = vmax.xlane.f32.xlu0 %v2548_v1  ;;  %2319 = vmatprep.mubr.f32.mxu1 %v11093_v0 }
 0x2a6   : > { %v7754_v17 = vpop.f32.mrf.mxu1 }
 0x2a7   : > { %11499 = vst [vmem:[#allocation47_spill] sm:$0xff] %v7754_v17  ;;  %v2551_v63 = vmax.f32 %v7749_v21, %v7754_v17 }
 0x2a8   : > { %v7758_v58 = vpop.f32.mrf.mxu1  ;;  %5645 = vmatmul.mubr.msk.f32.gmra.mxu1 %vm895_vm1, %v7468_v3 }
 0x2a9   : > { %11500 = vst [vmem:[#allocation48_spill] sm:$0xff] %v7758_v58  ;;  %2552 = vmax.xlane.f32.xlu0 %v2551_v63  ;;  %2325 = vmatprep.mubr.f32.mxu1 %v11093_v0  ;;  %v7778_v63 = vpop.trf.xlu0 }
 0x2aa   : > { %v7765_v19 = vpop.f32.mrf.mxu1 }
 0x2ab   : > { %11501 = vst [vmem:[#allocation49_spill] sm:$0xff] %v7765_v19  ;;  %v2554_v59 = vmax.f32 %v7758_v58, %v7765_v19 }
 0x2ac   : > { %v7769_v1 = vpop.f32.mrf.mxu1  ;;  %5646 = vmatmul.mubr.msk.f32.gmra.mxu1 %vm895_vm1, %v7480_v51 }
 0x2ad   : > { %11502 = vst [vmem:[#allocation50_spill] sm:$0xff] %v7769_v1  ;;  %2555 = vmax.xlane.f32.xlu0 %v2554_v59  ;;  %2331 = vmatprep.mubr.f32.mxu1 %v11093_v0  ;;  %v7794_v17 = vpop.trf.xlu0 }
 0x2ae   : > { %v7774_v16 = vpop.f32.mrf.mxu1 }
 0x2af   : > { %11503 = vst [vmem:[#allocation51_spill] sm:$0xff] %v7774_v16  ;;  %v2557_v3 = vmax.f32 %v7769_v1, %v7774_v16 }
 0x2b0   : > { %v7780_v30 = vpop.f32.mrf.mxu1  ;;  %5647 = vmatmul.mubr.msk.f32.gmra.mxu1 %vm895_vm1, %v7487_v24 }
 0x2b1   : > { %11504 = vst [vmem:[#allocation52_spill] sm:$0xff] %v7780_v30  ;;  %2558 = vmax.xlane.f32.xlu0 %v2557_v3  ;;  %2337 = vmatprep.mubr.f32.mxu1 %v11093_v0 }
 0x2b2   : > { %v7785_v20 = vpop.f32.mrf.mxu1 }
 0x2b3   : > { %11505 = vst [vmem:[#allocation53_spill] sm:$0xff] %v7785_v20  ;;  %v2560_v51 = vmax.f32 %v7780_v30, %v7785_v20 }
 0x2b4   : > { %v7789_v59 = vpop.f32.mrf.mxu1  ;;  %5648 = vmatmul.mubr.msk.f32.gmra.mxu1 %vm895_vm1, %v7499_v39 }
 0x2b5   : > { %11506 = vst [vmem:[#allocation54_spill] sm:$0xff] %v7789_v59  ;;  %2561 = vmax.xlane.f32.xlu0 %v2560_v51  ;;  %2343 = vmatprep.mubr.f32.mxu1 %v11093_v0  ;;  %v7809_v51 = vpop.trf.xlu0 }
 0x2b6   : > { %v7796_v21 = vpop.f32.mrf.mxu1 }
 0x2b7   : > { %11507 = vst [vmem:[#allocation55_spill] sm:$0xff] %v7796_v21  ;;  %v2563_v24 = vmax.f32 %v7789_v59, %v7796_v21 }
 0x2b8   : > { %v7800_v3 = vpop.f32.mrf.mxu1  ;;  %5649 = vmatmul.mubr.msk.f32.gmra.mxu1 %vm895_vm1, %v7508_v38 }
 0x2b9   : > { %11508 = vst [vmem:[#allocation56_spill] sm:$0xff] %v7800_v3  ;;  %2564 = vmax.xlane.f32.xlu0 %v2563_v24  ;;  %2349 = vmatprep.mubr.f32.mxu1 %v11093_v0  ;;  %v7825_v20 = vpop.trf.xlu0 }
 0x2ba   : > { %v7805_v16 = vpop.f32.mrf.mxu1 }
 0x2bb   : > { %11509 = vst [vmem:[#allocation57_spill] sm:$0xff] %v7805_v16  ;;  %v2566_v39 = vmax.f32 %v7800_v3, %v7805_v16 }
 0x2bc   : > { %v7811_v1 = vpop.f32.mrf.mxu1  ;;  %5650 = vmatmul.mubr.msk.f32.gmra.mxu1 %vm895_vm1, %v7522_v14 }
 0x2bd   : > { %11510 = vst [vmem:[#allocation58_spill] sm:$0xff] %v7811_v1  ;;  %2567 = vmax.xlane.f32.xlu0 %v2566_v39  ;;  %2355 = vmatprep.mubr.f32.mxu1 %v11093_v0 }
 0x2be   : > { %v7816_v19 = vpop.f32.mrf.mxu1 }
 0x2bf   : > { %11511 = vst [vmem:[#allocation59_spill] sm:$0xff] %v7816_v19  ;;  %v2569_v38 = vmax.f32 %v7811_v1, %v7816_v19 }
 0x2c0   : > { %v7820_v24 = vpop.f32.mrf.mxu1  ;;  %5651 = vmatmul.mubr.msk.f32.gmra.mxu1 %vm895_vm1, %v7533_v57 }
 0x2c1   : > { %11512 = vst [vmem:[#allocation60_spill] sm:$0xff] %v7820_v24  ;;  %2570 = vmax.xlane.f32.xlu0 %v2569_v38  ;;  %2361 = vmatprep.mubr.f32.mxu1 %v11093_v0  ;;  %v7840_v38 = vpop.trf.xlu0 }
 0x2c2   : > { %v7827_v30 = vpop.f32.mrf.mxu1 }
 0x2c3   : > { %11513 = vst [vmem:[#allocation61_spill] sm:$0xff] %v7827_v30  ;;  %v2572_v14 = vmax.f32 %v7820_v24, %v7827_v30 }
 0x2c4   : > { %v7831_v39 = vpop.f32.mrf.mxu1  ;;  %5652 = vmatmul.mubr.msk.f32.gmra.mxu1 %vm895_vm1, %v7551_v6 }
 0x2c5   : > { %11514 = vst [vmem:[#allocation62_spill] sm:$0xff] %v7831_v39  ;;  %2573 = vmax.xlane.f32.xlu0 %v2572_v14  ;;  %2367 = vmatprep.mubr.f32.mxu1 %v11093_v0  ;;  %v7856_v16 = vpop.trf.xlu0 }
 0x2c6   : > { %v7836_v58 = vpop.f32.mrf.mxu1 }
 0x2c7   : > { %11515 = vst [vmem:[#allocation63_spill] sm:$0xff] %v7836_v58  ;;  %v2575_v57 = vmax.f32 %v7831_v39, %v7836_v58 }
 0x2c8   : > { %v7842_v21 = vpop.f32.mrf.mxu1  ;;  %5653 = vmatmul.mubr.msk.f32.gmra.mxu1 %vm895_vm1, %v7564_v2 }
 0x2c9   : > { %11516 = vst [vmem:[#allocation64_spill] sm:$0xff] %v7842_v21  ;;  %2576 = vmax.xlane.f32.xlu0 %v2575_v57  ;;  %2373 = vmatprep.mubr.f32.mxu1 %v11093_v0  ;;  %v7873_v1 = vpop.trf.xlu0 }
 0x2ca   : > { %v7847_v59 = vpop.f32.mrf.mxu1 }
 0x2cb   : > { %11517 = vst [vmem:[#allocation65_spill] sm:$0xff] %v7847_v59  ;;  %v2578_v6 = vmax.f32 %v7842_v21, %v7847_v59 }
 0x2cc   : > { %v7851_v14 = vpop.f32.mrf.mxu1  ;;  %5654 = vmatmul.mubr.msk.f32.gmra.mxu1 %vm895_vm1, %v7582_v29  ;;  %v7869_v29 = vpop.f32.mrf.mxu0 }
 0x2cd   : > { %11518 = vst [vmem:[#allocation66_spill] sm:$0xff] %v7851_v14  ;;  %2579 = vmax.xlane.f32.xlu1 %v2578_v6  ;;  %2379 = vmatprep.mubr.f32.mxu1 %v11093_v0  ;;  %11522 = vst [vmem:[#allocation70_spill] sm:$0xff] %v7869_v29  ;;  %v7891_v58 = vpop.trf.xlu0 }
 0x2ce   : > { %v7858_v3 = vpop.f32.mrf.mxu1 }
 0x2cf   : > { %11519 = vst [vmem:[#allocation67_spill] sm:$0xff] %v7858_v3  ;;  %v2581_v2 = vmax.f32 %v7851_v14, %v7858_v3 }
 0x2d0   : > { %v7862_v57 = vpop.f32.mrf.mxu1  ;;  %5655 = vmatmul.mubr.msk.f32.gmra.mxu1 %vm895_vm1, %v7601_v15 }
 0x2d1   : > { %11520 = vst [vmem:[#allocation68_spill] sm:$0xff] %v7862_v57  ;;  %2582 = vmax.xlane.f32.xlu0 %v2581_v2  ;;  %2385 = vmatprep.mubr.f32.mxu1 %v11093_v0  ;;  %v7882_v2 = vpop.f32.mrf.mxu0  ;;  %v7910_v21 = vpop.trf.xlu0 }
 0x2d2   : > { %v7867_v19 = vpop.f32.mrf.mxu1  ;;  %11525 = vst [vmem:[#allocation73_spill] sm:$0xff] %v7882_v2 }
 0x2d3   : > { %11521 = vst [vmem:[#allocation69_spill] sm:$0xff] %v7867_v19  ;;  %v2584_v6 = vmax.f32 %v7862_v57, %v7867_v19 }
 0x2d4   : > { %v7875_v30 = vpop.f32.mrf.mxu1  ;;  %5656 = vmatmul.mubr.msk.f32.gmra.mxu1 %vm895_vm1, %v7619_v12 }
 0x2d5   : > { %11523 = vst [vmem:[#allocation71_spill] sm:$0xff] %v7875_v30  ;;  %2585 = vmax.xlane.f32.xlu0 %v2584_v6  ;;  %2391 = vmatprep.mubr.f32.mxu1 %v11093_v0  ;;  %v7895_v6 = vpop.f32.mrf.mxu0 }
 0x2d6   : > { %v7880_v15 = vpop.f32.mrf.mxu1  ;;  %11528 = vst [vmem:[#allocation76_spill] sm:$0xff] %v7895_v6 }
 0x2d7   : > { %11524 = vst [vmem:[#allocation72_spill] sm:$0xff] %v7880_v15  ;;  %v2587_v29 = vmax.f32 %v7875_v30, %v7880_v15 }
 0x2d8   : > { %v7886_v24 = vpop.f32.mrf.mxu1  ;;  %5657 = vmatmul.mubr.msk.f32.gmra.mxu1 %vm895_vm1, %v7638_v25 }
 0x2d9   : > { %11526 = vst [vmem:[#allocation74_spill] sm:$0xff] %v7886_v24  ;;  %2588 = vmax.xlane.f32.xlu0 %v2587_v29  ;;  %2397 = vmatprep.mubr.f32.mxu1 %v11093_v0  ;;  %v7906_v29 = vpop.f32.mrf.mxu0 }
 0x2da   : > { %v7893_v12 = vpop.f32.mrf.mxu1  ;;  %11531 = vst [vmem:[#allocation79_spill] sm:$0xff] %v7906_v29 }
 0x2db   : > { %11527 = vst [vmem:[#allocation75_spill] sm:$0xff] %v7893_v12  ;;  %v2590_v2 = vmax.f32 %v7886_v24, %v7893_v12 }
 0x2dc   : > { %v7899_v39 = vpop.f32.mrf.mxu1  ;;  %5658 = vmatmul.mubr.msk.f32.gmra.mxu1 %vm895_vm1, %v7656_v32 }
 0x2dd   : > { %11529 = vst [vmem:[#allocation77_spill] sm:$0xff] %v7899_v39  ;;  %2591 = vmax.xlane.f32.xlu0 %v2590_v2  ;;  %2403 = vmatprep.mubr.f32.mxu1 %v11093_v0 }
 0x2de   : > { %v7904_v25 = vpop.f32.mrf.mxu1 }
 0x2df   : > { %11530 = vst [vmem:[#allocation78_spill] sm:$0xff] %v7904_v25  ;;  %v2593_v59 = vmax.f32 %v7899_v39, %v7904_v25 }
 0x2e0   : > { %v7912_v6 = vpop.f32.mrf.mxu1  ;;  %5659 = vmatmul.mubr.msk.f32.gmra.mxu1 %vm895_vm1, %v7675_v44  ;;  %v7916_v3 = vpop.f32.mrf.mxu0 }
 0x2e1   : > { %11532 = vst [vmem:[#allocation80_spill] sm:$0xff] %v7912_v6  ;;  %11533 = vst [vmem:[#allocation81_spill] sm:$0xff] %v7916_v3  ;;  %2594 = vmax.xlane.f32.xlu0 %v2593_v59  ;;  %2409 = vmatprep.mubr.f32.mxu1 %v11093_v0  ;;  %v7932_v44 = vpop.trf.xlu0 }
 0x2e2   : > { %v7919_v32 = vpop.f32.mrf.mxu1  ;;  %v7921_v2 = vpop.f32.mrf.mxu0 }
 0x2e3   : > { %11534 = vst [vmem:[#allocation82_spill] sm:$0xff] %v7919_v32  ;;  %11535 = vst [vmem:[#allocation83_spill] sm:$0xff] %v7921_v2  ;;  %v2596_v29 = vmax.f32 %v7912_v6, %v7919_v32 }
 0x2e4   : > { %v7925_v14 = vpop.f32.mrf.mxu1  ;;  %5660 = vmatmul.mubr.msk.f32.gmra.mxu1 %vm895_vm1, %v7693_v33  ;;  %v7929_v25 = vpop.f32.mrf.mxu0 }
 0x2e5   : > { %11536 = vst [vmem:[#allocation84_spill] sm:$0xff] %v7925_v14  ;;  %11537 = vst [vmem:[#allocation85_spill] sm:$0xff] %v7929_v25  ;;  %2597 = vmax.xlane.f32.xlu1 %v2596_v29  ;;  %2415 = vmatprep.mubr.f32.mxu1 %v11093_v0 }
 0x2e6   : > { %v7934_v59 = vpop.f32.mrf.mxu1  ;;  %v7936_v3 = vpop.f32.mrf.mxu0 }
 0x2e7   : > { %11538 = vst [vmem:[#allocation86_spill] sm:$0xff] %v7934_v59  ;;  %11539 = vst [vmem:[#allocation87_spill] sm:$0xff] %v7936_v3  ;;  %v2599_v2 = vmax.f32 %v7925_v14, %v7934_v59 }
 0x2e8   : > { %v7940_v39 = vpop.f32.mrf.mxu1  ;;  %5661 = vmatmul.mubr.msk.f32.gmra.mxu1 %vm895_vm1, %v7712_v7  ;;  %v7944_v33 = vpop.f32.mrf.mxu0 }
 0x2e9   : > { %11540 = vst [vmem:[#allocation88_spill] sm:$0xff] %v7940_v39  ;;  %11541 = vst [vmem:[#allocation89_spill] sm:$0xff] %v7944_v33  ;;  %2600 = vmax.xlane.f32.xlu1 %v2599_v2  ;;  %2421 = vmatprep.mubr.f32.mxu1 %v11093_v0 }
 0x2ea   : > { %v7947_v29 = vpop.f32.mrf.mxu1  ;;  %v7949_v25 = vpop.f32.mrf.mxu0 }
 0x2eb   : > { %11542 = vst [vmem:[#allocation90_spill] sm:$0xff] %v7947_v29  ;;  %11543 = vst [vmem:[#allocation91_spill] sm:$0xff] %v7949_v25  ;;  %v2602_v3 = vmax.f32 %v7940_v39, %v7947_v29 }
 0x2ec   : > { %v7953_v12 = vpop.f32.mrf.mxu1  ;;  %5662 = vmatmul.mubr.msk.f32.gmra.mxu1 %vm895_vm1, %v7730_v50  ;;  %v7957_v59 = vpop.xlane.xlu0 %2501 }
 0x2ed   : > { %11544 = vst [vmem:[#allocation92_spill] sm:$0xff] %v7953_v12  ;;  %2603 = vmax.xlane.f32.xlu1 %v2602_v3  ;;  %v7959_v7 = vpop.f32.mrf.mxu0  ;;  %2427 = vmatprep.mubr.f32.mxu1 %v11093_v0 }
 0x2ee   : > { %11545 = vst [vmem:[#allocation93_spill] sm:$0xff] %v7959_v7  ;;  %v7962_v2 = vpop.f32.mrf.mxu1 }
 0x2ef   : > { %11546 = vst [vmem:[#allocation94_spill] sm:$0xff] %v7962_v2  ;;  %v2605_v33 = vmax.f32 %v7953_v12, %v7962_v2  ;;  %v7966_v25 = vpop.f32.mrf.mxu0 }
 0x2f0   : > { %11547 = vst [vmem:[#allocation95_spill] sm:$0xff] %v7966_v25  ;;  %v7968_v29 = vpop.f32.mrf.mxu1  ;;  %5663 = vmatmul.mubr.msk.f32.gmra.mxu1 %vm895_vm1, %v7747_v55 }
 0x2f1   : > { %11548 = vst [vmem:[#allocation96_spill] sm:$0xff] %v7968_v29  ;;  %2606 = vmax.xlane.f32.xlu1 %v2605_v33  ;;  %v7972_v50 = vpop.xlane.xlu0 %2504  ;;  %v7974_v3 = vpop.f32.mrf.mxu0  ;;  %2433 = vmatprep.mubr.f32.mxu1 %v11093_v0 }
 0x2f2   : > { %11549 = vst [vmem:[#allocation97_spill] sm:$0xff] %v7974_v3  ;;  %v7977_v7 = vpop.f32.mrf.mxu1 }
 0x2f3   : > { %11550 = vst [vmem:[#allocation98_spill] sm:$0xff] %v7977_v7  ;;  %v2608_v39 = vmax.f32 %v7968_v29, %v7977_v7  ;;  %v7981_v2 = vpop.f32.mrf.mxu0 }
 0x2f4   : > { %11551 = vst [vmem:[#allocation99_spill] sm:$0xff] %v7981_v2  ;;  %v7983_v25 = vpop.f32.mrf.mxu1  ;;  %5664 = vmatmul.mubr.msk.f32.gmra.mxu1 %vm895_vm1, %v7763_v18 }
 0x2f5   : > { %11552 = vst [vmem:[#allocation100_spill] sm:$0xff] %v7983_v25  ;;  %2609 = vmax.xlane.f32.xlu1 %v2608_v39  ;;  %v7987_v55 = vpop.f32.mrf.mxu0  ;;  %2439 = vmatprep.mubr.f32.mxu1 %v11093_v0 }
 0x2f6   : > { %11553 = vst [vmem:[#allocation101_spill] sm:$0xff] %v7987_v55  ;;  %v7990_v33 = vpop.f32.mrf.mxu1  ;;  %v7992_v3 = vpop.xlane.xlu0 %2507 }
 0x2f7   : > { %11554 = vst [vmem:[#allocation102_spill] sm:$0xff] %v7990_v33  ;;  %v2611_v12 = vmax.f32 %v7983_v25, %v7990_v33  ;;  %v7996_v7 = vpop.f32.mrf.mxu0 }
 0x2f8   : > { %11555 = vst [vmem:[#allocation103_spill] sm:$0xff] %v7996_v7  ;;  %v7998_v2 = vpop.f32.mrf.mxu1  ;;  %5665 = vmatmul.mubr.msk.f32.gmra.mxu1 %vm895_vm1, %v7778_v63 }
 0x2f9   : > { %11556 = vst [vmem:[#allocation104_spill] sm:$0xff] %v7998_v2  ;;  %2612 = vmax.xlane.f32.xlu1 %v2611_v12  ;;  %v8002_v18 = vpop.f32.mrf.mxu0  ;;  %2445 = vmatprep.mubr.f32.mxu1 %v11093_v0 }
 0x2fa   : > { %11557 = vst [vmem:[#allocation105_spill] sm:$0xff] %v8002_v18  ;;  %v8005_v39 = vpop.f32.mrf.mxu1  ;;  %v2511_v55 = vpop.xlane.xlu0 %2510 }
 0x2fb   : > { %11558 = vst [vmem:[#allocation106_spill] sm:$0xff] %v8005_v39  ;;  %v2614_v29 = vmax.f32 %v7998_v2, %v8005_v39  ;;  %v8009_v14 = vpop.f32.mrf.mxu0  ;;  %v2890_v19 = vsub.f32 %v7577_v34, %v2511_v55  ;;  %v2891_v57 = vsub.f32 %v7584_v56, %v2511_v55 }
 0x2fc   : > { %11559 = vst [vmem:[#allocation107_spill] sm:$0xff] %v8009_v14  ;;  %v8011_v33 = vpop.f32.mrf.mxu1  ;;  %5666 = vmatmul.mubr.msk.f32.gmra.mxu1 %vm895_vm1, %v7794_v17 }
 0x2fd   : > { %11560 = vst [vmem:[#allocation108_spill] sm:$0xff] %v8011_v33  ;;  %2615 = vmax.xlane.f32.xlu1 %v2614_v29  ;;  %v8015_v63 = vpop.f32.mrf.mxu0  ;;  %2451 = vmatprep.mubr.f32.mxu1 %v11093_v0  ;;  %v3152_v23 = vmul.f32 1.442695, %v2890_v19 }
 0x2fe   : > { %11561 = vst [vmem:[#allocation109_spill] sm:$0xff] %v8015_v63  ;;  %v8018_v12 = vpop.f32.mrf.mxu1  ;;  %v2514_v7 = vpop.xlane.xlu0 %2513 }
 0x2ff   : > { %11562 = vst [vmem:[#allocation110_spill] sm:$0xff] %v8018_v12  ;;  %v2617_v25 = vmax.f32 %v8011_v33, %v8018_v12  ;;  %v8022_v24 = vpop.f32.mrf.mxu0  ;;  %5774 = vpow2.f32 %v3152_v23 }
 0x300   : > { %11563 = vst [vmem:[#allocation111_spill] sm:$0xff] %v8022_v24  ;;  %v8024_v39 = vpop.f32.mrf.mxu1  ;;  %5667 = vmatmul.mubr.msk.f32.gmra.mxu1 %vm895_vm1, %v7809_v51 }
 0x301   : > { %11564 = vst [vmem:[#allocation112_spill] sm:$0xff] %v8024_v39  ;;  %2618 = vmax.xlane.f32.xlu1 %v2617_v25  ;;  %v8028_v17 = vpop.f32.mrf.mxu0  ;;  %2457 = vmatprep.mubr.f32.mxu1 %v11093_v0 }
 0x302   : > { %11565 = vst [vmem:[#allocation113_spill] sm:$0xff] %v8028_v17  ;;  %v8031_v29 = vpop.f32.mrf.mxu1  ;;  %v8033_v2 = vpop.xlane.xlu0 %2516 }
 0x303   : > { %11566 = vst [vmem:[#allocation114_spill] sm:$0xff] %v8031_v29  ;;  %v2620_v15 = vmax.f32 %v8024_v39, %v8031_v29  ;;  %v8037_v12 = vpop.f32.mrf.mxu0 }
 0x304   : > { %11567 = vst [vmem:[#allocation115_spill] sm:$0xff] %v8037_v12  ;;  %v8039_v33 = vpop.f32.mrf.mxu1  ;;  %5668 = vmatmul.mubr.msk.f32.gmra.mxu1 %vm895_vm1, %v7825_v20 }
 0x305   : > { %11568 = vst [vmem:[#allocation116_spill] sm:$0xff] %v8039_v33  ;;  %2621 = vmax.xlane.f32.xlu1 %v2620_v15  ;;  %v8043_v51 = vpop.f32.mrf.mxu0  ;;  %2463 = vmatprep.mubr.f32.mxu1 %v11093_v0 }
 0x306   : > { %11569 = vst [vmem:[#allocation117_spill] sm:$0xff] %v8043_v51  ;;  %v8046_v25 = vpop.f32.mrf.mxu1  ;;  %v8048_v32 = vpop.xlane.xlu0 %2519 }
 0x307   : > { %11570 = vst [vmem:[#allocation118_spill] sm:$0xff] %v8046_v25  ;;  %v2623_v6 = vmax.f32 %v8039_v33, %v8046_v25  ;;  %v8052_v29 = vpop.f32.mrf.mxu0 }
 0x308   : > { %11571 = vst [vmem:[#allocation119_spill] sm:$0xff] %v8052_v29  ;;  %v8054_v39 = vpop.f32.mrf.mxu1  ;;  %5669 = vmatmul.mubr.msk.f32.gmra.mxu1 %vm895_vm1, %v7840_v38 }
 0x309   : > { %11572 = vst [vmem:[#allocation120_spill] sm:$0xff] %v8054_v39  ;;  %2624 = vmax.xlane.f32.xlu1 %v2623_v6  ;;  %v8058_v20 = vpop.f32.mrf.mxu0  ;;  %2469 = vmatprep.mubr.f32.mxu1 %v11093_v0 }
 0x30a   : > { %11573 = vst [vmem:[#allocation121_spill] sm:$0xff] %v8058_v20  ;;  %v8061_v15 = vpop.f32.mrf.mxu1  ;;  %v8063_v30 = vpop.xlane.xlu0 %2522 }
 0x30b   : > { %11574 = vst [vmem:[#allocation122_spill] sm:$0xff] %v8061_v15  ;;  %v2626_v25 = vmax.f32 %v8054_v39, %v8061_v15  ;;  %v8068_v33 = vpop.f32.mrf.mxu0  ;;  %v2892_v15 = vsub.f32 %v7590_v13, %v2514_v7  ;;  %v3154_v39 = vmul.f32 1.442695, %v2891_v57  ;;  %v2894_v57 = vsub.f32 %v7603_v9, %v8033_v2 }
 0x30c   : > { %11575 = vst [vmem:[#allocation123_spill] sm:$0xff] %v8068_v33  ;;  %v8071_v48 = vpop.f32.mrf.mxu1  ;;  %5670 = vmatmul.mubr.msk.f32.gmra.mxu1 %vm895_vm1, %v7856_v16  ;;  %v2893_v16 = vsub.f32 %v7595_v4, %v2514_v7 }
 0x30d   : > { %11576 = vst [vmem:[#allocation124_spill] sm:$0xff] %v8071_v48  ;;  %2627 = vmax.xlane.f32.xlu1 %v2626_v25  ;;  %v8075_v38 = vpop.f32.mrf.mxu0  ;;  %2475 = vmatprep.mubr.f32.mxu1 %v11093_v0  ;;  %5776 = vpow2.f32 %v3154_v39 }
 0x30e   : > { %11577 = vst [vmem:[#allocation125_spill] sm:$0xff] %v8075_v38  ;;  %v8078_v6 = vpop.f32.mrf.mxu1  ;;  %v8080_v34 = vpop.xlane.xlu0 %2525 }
 0x30f   : > { %11578 = vst [vmem:[#allocation126_spill] sm:$0xff] %v8078_v6  ;;  %v2629_v56 = vmax.f32 %v8071_v48, %v8078_v6  ;;  %v8085_v55 = vpop.f32.mrf.mxu0  ;;  %v3156_v6 = vmul.f32 1.442695, %v2892_v15 }
 0x310   : > { %11579 = vst [vmem:[#allocation127_spill] sm:$0xff] %v8085_v55  ;;  %v8088_v25 = vpop.f32.mrf.mxu1  ;;  %5671 = vmatmul.mubr.msk.f32.gmra.mxu1 %vm895_vm1, %v7873_v1  ;;  %v3158_v1 = vmul.f32 1.442695, %v2893_v16 }
 0x311   : > { %2630 = vmax.xlane.f32.xlu1 %v2629_v56  ;;  %v8092_v0 = vpop.f32.mrf.mxu0  ;;  %2481 = vmatprep.mubr.f32.mxu1 %v11581_v43  ;;  %v2895_v56 = vsub.f32 %v7608_v27, %v8033_v2  ;;  %5778 = vpow2.f32 %v3156_v6  ;;  %v3160_v27 = vmul.f32 1.442695, %v2894_v57  ;;  %v2896_v2 = vsub.f32 %v7614_v11, %v8048_v32 }
 0x312   : > { %11580 = vst [vmem:[#allocation128_spill] sm:$0xff] %v8092_v0  ;;  %v8095_v19 = vpop.f32.mrf.mxu1  ;;  %v8097_v13 = vpop.xlane.xlu0 %2528  ;;  %5780 = vpow2.f32 %v3158_v1 }
 0x313   : > { %v2632_v4 = vmax.f32 %v8088_v25, %v8095_v19  ;;  %v8103_v7 = vpop.f32.mrf.mxu0  ;;  %5782 = vpow2.f32 %v3160_v27 }
 0x314   : > { %11582 = vst [vmem:[#allocation129_spill] sm:$0xff] %v8103_v7  ;;  %v8107_v48 = vpop.f32.mrf.mxu1  ;;  %v2728_v22 = vmax.f32 %v8092_v0, %v8103_v7  ;;  %5672 = vmatmul.mubr.msk.f32.gmra.mxu1 %vm895_vm1, %v7891_v58  ;;  %v3162_v58 = vmul.f32 1.442695, %v2895_v56 }
 0x315   : > { %2633 = vmax.xlane.f32.xlu1 %v2632_v4  ;;  %v8113_v23 = vpop.f32.mrf.mxu0  ;;  %2487 = vmatprep.mubr.f32.mxu1 %v11581_v43  ;;  %v2897_v4 = vsub.f32 %v7621_v49, %v8048_v32  ;;  %v3164_v49 = vmul.f32 1.442695, %v2896_v2  ;;  %v2898_v32 = vsub.f32 %v7627_v10, %v8063_v30 }
 0x316   : > { %11583 = vst [vmem:[#allocation130_spill] sm:$0xff] %v8113_v23  ;;  %v8116_v9 = vpop.f32.mrf.mxu1  ;;  %v8118_v39 = vpop.xlane.xlu0 %2531  ;;  %2729 = vmax.xlane.f32.xlu0 %v2728_v22  ;;  %5784 = vpow2.f32 %v3162_v58 }
 0x317   : > { %v2635_v15 = vmax.f32 %v8107_v48, %v8116_v9  ;;  %v8124_v16 = vpop.f32.mrf.mxu0  ;;  %5786 = vpow2.f32 %v3164_v49  ;;  %v8164_v58 = vpop.eup %5774  ;;  %v2888_v49 = vsub.f32 %v7566_v61, %v7992_v3 }
 0x318   : > { %11584 = vst [vmem:[#allocation131_spill] sm:$0xff] %v8124_v16  ;;  %v8128_v7 = vpop.f32.mrf.mxu1  ;;  %v2731_v22 = vmax.f32 %v8113_v23, %v8124_v16  ;;  %5673 = vmatmul.mubr.msk.f32.gmra.mxu1 %vm895_vm1, %v7910_v21  ;;  %v3166_v21 = vmul.f32 1.442695, %v2897_v4 }
 0x319   : > { %2636 = vmax.xlane.f32.xlu1 %v2635_v15  ;;  %v8134_v11 = vpop.f32.mrf.mxu0  ;;  %2493 = vmatprep.mubr.f32.mxu1 %v11581_v43  ;;  %v2899_v15 = vsub.f32 %v7632_v31, %v8063_v30  ;;  %v3168_v31 = vmul.f32 1.442695, %v2898_v32 }
 0x31a   : > { %11585 = vst [vmem:[#allocation132_spill] sm:$0xff] %v8134_v11  ;;  %v8137_v6 = vpop.f32.mrf.mxu1  ;;  %v8139_v57 = vpop.xlane.xlu0 %2534  ;;  %2732 = vmax.xlane.f32.xlu0 %v2731_v22  ;;  %5788 = vpow2.f32 %v3166_v21  ;;  %v2889_v21 = vsub.f32 %v7572_v26, %v7992_v3 }
 0x31b   : > { %v2638_v1 = vmax.f32 %v8128_v7, %v8137_v6  ;;  %v8145_v56 = vpop.f32.mrf.mxu0  ;;  %v3170_v4 = vmul.f32 1.442695, %v2899_v15  ;;  %5790 = vpow2.f32 %v3168_v31  ;;  %v3148_v31 = vmul.f32 1.442695, %v2888_v49 }
 0x31c   : > { %11586 = vst [vmem:[#allocation133_spill] sm:$0xff] %v8145_v56  ;;  %v8149_v43 = vpop.f32.mrf.mxu1  ;;  %v2734_v22 = vmax.f32 %v8134_v11, %v8145_v56  ;;  %5674 = vmatmul.mubr.msk.f32.gmra.mxu1 %vm895_vm1, %v7932_v44  ;;  %v8170_v44 = vpop.eup %5776  ;;  %v3150_v26 = vmul.f32 1.442695, %v2889_v21  ;;  %v2886_v49 = vsub.f32 %v7553_v28, %v7972_v50 }
 0x31d   : > { %2639 = vmax.xlane.f32.xlu1 %v2638_v1  ;;  %4829 = vmatprep.mubr.f32.mxu1 %v7171_v41  ;;  %v8156_v10 = vpop.f32.mrf.mxu0  ;;  %5792 = vpow2.f32 %v3170_v4 }
 0x31e   : > { %11587 = vst [vmem:[#allocation134_spill] sm:$0xff] %v8156_v10  ;;  %v8158_v27 = vpop.f32.mrf.mxu1  ;;  %v8160_v2 = vpop.xlane.xlu0 %2537  ;;  %2735 = vmax.xlane.f32.xlu0 %v2734_v22  ;;  %5794 = vpow2.f32 %v3148_v31  ;;  %v3144_v31 = vmul.f32 1.442695, %v2886_v49  ;;  %v2884_v49 = vsub.f32 %v7540_v52, %v7957_v59 }
 0x31f   : > { %v8162_v30 = vpop.f32.mrf.mxu0  ;;  %v8178_v22 = vpop.eup %5778  ;;  %5796 = vpow2.f32 %v3150_v26 }
 0x320   : > { %11588 = vst [vmem:[#allocation135_spill] sm:$0xff] %v8162_v30  ;;  %v8166_v0 = vpop.f32.mrf.mxu1  ;;  %v2737_v41 = vmax.f32 %v8156_v10, %v8162_v30  ;;  %v8188_v23 = vpop.eup %5780  ;;  %5798 = vpow2.f32 %v3144_v31  ;;  %v3140_v52 = vmul.f32 1.442695, %v2884_v49 }
 0x321   : > { %11589 = vst [vmem:[#allocation136_spill] sm:$0xff] %v8166_v0  ;;  %v3664_v4 = vadd.f32 %v8188_v23, %v8178_v22 }
 0x322   : > { %v8172_v1 = vpop.f32.mrf.mxu1  ;;  %2738 = vmax.xlane.f32.xlu0 %v2737_v41  ;;  %v8182_v15 = vpop.xlane.xlu0 %2540  ;;  %v3661_v41 = vadd.f32 %v8170_v44, %v8164_v58 }
 0x323   : > { %11590 = vst [vmem:[#allocation137_spill] sm:$0xff] %v8172_v1  ;;  %v2644_v32 = vmax.f32 %v8166_v0, %v8172_v1  ;;  %v8194_v0 = vpop.eup %5782 }
 0x324   : > { %v8184_v16 = vpop.f32.mrf.mxu1  ;;  %11593 = vst [vmem:[#allocation140_spill] sm:$0xff] %v8194_v0  ;;  %v8200_v56 = vpop.eup %5784 }
 0x325   : > { %11591 = vst [vmem:[#allocation138_spill] sm:$0xff] %v8184_v16  ;;  %2645 = vmax.xlane.f32.xlu1 %v2644_v32 }
 0x326   : > { %v8190_v61 = vpop.f32.mrf.mxu1  ;;  %3662 = vadd.xlane.f32.xlu0 %v3661_v41  ;;  %v8202_v11 = vpop.xlane.xlu0 %2543 }
 0x327   : > { %11592 = vst [vmem:[#allocation139_spill] sm:$0xff] %v8190_v61  ;;  %v2647_v1 = vmax.f32 %v8184_v16, %v8190_v61  ;;  %v8210_v41 = vpop.eup %5786  ;;  %v2887_v61 = vsub.f32 %v7558_v62, %v7972_v50 }
 0x328   : > { %v8196_v3 = vpop.f32.mrf.mxu1  ;;  %v8218_v30 = vpop.eup %5788 }
 0x329   : > { %11594 = vst [vmem:[#allocation141_spill] sm:$0xff] %v8196_v3  ;;  %2648 = vmax.xlane.f32.xlu1 %v2647_v1  ;;  %v3667_v1 = vadd.f32 %v8200_v56, %v8194_v0  ;;  %v3146_v62 = vmul.f32 1.442695, %v2887_v61  ;;  %v3670_v26 = vadd.f32 %v8218_v30, %v8210_v41 }
 0x32a   : > { %v8204_v32 = vpop.f32.mrf.mxu1  ;;  %3665 = vadd.xlane.f32.xlu0 %v3664_v4 }
 0x32b   : > { %11595 = vst [vmem:[#allocation142_spill] sm:$0xff] %v8204_v32  ;;  %v2650_v21 = vmax.f32 %v8196_v3, %v8204_v32  ;;  %v8226_v32 = vpop.eup %5790  ;;  %5800 = vpow2.f32 %v3146_v62 }
 0x32c   : > { %v8214_v16 = vpop.f32.mrf.mxu1  ;;  %v8232_v3 = vpop.eup %5792  ;;  %5802 = vpow2.f32 %v3140_v52  ;;  %v2725_v52 = vmax.f32 %v8075_v38, %v8085_v55  ;;  %v2900_v55 = vsub.f32 %v7640_v54, %v8080_v34 }
 0x32d   : > { %2651 = vmax.xlane.f32.xlu1 %v2650_v21 }
 0x32e   : > { %v8220_v4 = vpop.f32.mrf.mxu1  ;;  %v8222_v28 = vpop.xlane.xlu0 %2549  ;;  %3668 = vadd.xlane.f32.xlu0 %v3667_v1  ;;  %v2885_v1 = vsub.f32 %v7544_v53, %v7957_v59  ;;  %v2641_v53 = vmax.f32 %v8149_v43, %v8158_v27  ;;  %v3172_v54 = vmul.f32 1.442695, %v2900_v55  ;;  %v2904_v55 = vsub.f32 %v7664_v47, %v8118_v39 }
 0x32f   : > { %11596 = vst [vmem:[#allocation143_spill] sm:$0xff] %v8220_v4  ;;  %11597 = vst [vmem:[#allocation144_spill] sm:$0xff] %v8222_v28  ;;  %v2653_v10 = vmax.f32 %v8214_v16, %v8220_v4 }
 0x330   : > { %v8228_v50 = vpop.f32.mrf.mxu1  ;;  %v3180_v47 = vmul.f32 1.442695, %v2904_v55 }
 0x331   : > { %11598 = vst [vmem:[#allocation145_spill] sm:$0xff] %v8228_v50  ;;  %2654 = vmax.xlane.f32.xlu1 %v2653_v10  ;;  %v3673_v10 = vadd.f32 %v8232_v3, %v8226_v32 }
 0x332   : > { %v8234_v21 = vpop.f32.mrf.mxu1  ;;  %v8236_v0 = vpop.xlane.xlu0 %2552  ;;  %3671 = vadd.xlane.f32.xlu0 %v3670_v26 }
 0x333   : > { %11599 = vst [vmem:[#allocation146_spill] sm:$0xff] %v8234_v21  ;;  %11600 = vst [vmem:[#allocation147_spill] sm:$0xff] %v8236_v0  ;;  %v2656_v61 = vmax.f32 %v8228_v50, %v8234_v21  ;;  %v8254_v0 = vpop.eup %5794  ;;  %v3142_v21 = vmul.f32 1.442695, %v2885_v1 }
 0x334   : > { %v8244_v28 = vpop.f32.mrf.mxu1  ;;  %v8260_v62 = vpop.eup %5796 }
 0x335   : > { %11601 = vst [vmem:[#allocation148_spill] sm:$0xff] %v8244_v28  ;;  %2657 = vmax.xlane.f32.xlu1 %v2656_v61  ;;  %5804 = vpow2.f32 %v3142_v21  ;;  %v3658_v1 = vadd.f32 %v8260_v62, %v8254_v0 }
 0x336   : > { %v8248_v4 = vpop.f32.mrf.mxu1  ;;  %v8250_v26 = vpop.xlane.xlu0 %2555  ;;  %3674 = vadd.xlane.f32.xlu0 %v3673_v10  ;;  %5806 = vpow2.f32 %v3172_v54  ;;  %v2906_v54 = vsub.f32 %v7677_v45, %v8139_v57  ;;  %v2908_v45 = vsub.f32 %v7688_v42, %v8160_v2 }
 0x337   : > { %11602 = vst [vmem:[#allocation149_spill] sm:$0xff] %v8248_v4  ;;  %11603 = vst [vmem:[#allocation150_spill] sm:$0xff] %v8250_v26  ;;  %v2659_v31 = vmax.f32 %v8244_v28, %v8248_v4 }
 0x338   : > { %v8258_v59 = vpop.f32.mrf.mxu1  ;;  %v3188_v42 = vmul.f32 1.442695, %v2908_v45 }
 0x339   : > { %11604 = vst [vmem:[#allocation151_spill] sm:$0xff] %v8258_v59  ;;  %2660 = vmax.xlane.f32.xlu1 %v2659_v31 }
 0x33a   : > { %v8262_v61 = vpop.f32.mrf.mxu1  ;;  %v8264_v50 = vpop.xlane.xlu0 %2558  ;;  %2642 = vmax.xlane.f32.xlu0 %v2641_v53 }
 0x33b   : > { %11605 = vst [vmem:[#allocation152_spill] sm:$0xff] %v8262_v61  ;;  %11606 = vst [vmem:[#allocation153_spill] sm:$0xff] %v8264_v50  ;;  %v2662_v49 = vmax.f32 %v8258_v59, %v8262_v61  ;;  %v8278_v53 = vpop.eup %5798 }
 0x33c   : > { %v8268_v10 = vpop.f32.mrf.mxu1  ;;  %v8284_v50 = vpop.eup %5800 }
 0x33d   : > { %11607 = vst [vmem:[#allocation154_spill] sm:$0xff] %v8268_v10  ;;  %2663 = vmax.xlane.f32.xlu1 %v2662_v49  ;;  %v8302_v38 = vpop.eup %5802 }
 0x33e   : > { %v8272_v26 = vpop.f32.mrf.mxu1  ;;  %v8274_v4 = vpop.xlane.xlu0 %2561  ;;  %3659 = vadd.xlane.f32.xlu0 %v3658_v1  ;;  %v3655_v1 = vadd.f32 %v8284_v50, %v8278_v53  ;;  %11616 = vst [vmem:[#allocation163_spill] sm:$0xff] %v8302_v38 }
 0x33f   : > { %11608 = vst [vmem:[#allocation155_spill] sm:$0xff] %v8272_v26  ;;  %11609 = vst [vmem:[#allocation156_spill] sm:$0xff] %v8274_v4  ;;  %v2665_v31 = vmax.f32 %v8268_v10, %v8272_v26 }
 0x340   : > { %v8282_v21 = vpop.f32.mrf.mxu1 }
 0x341   : > { %11610 = vst [vmem:[#allocation157_spill] sm:$0xff] %v8282_v21  ;;  %2666 = vmax.xlane.f32.xlu1 %v2665_v31 }
 0x342   : > { %v8286_v61 = vpop.f32.mrf.mxu1  ;;  %v8288_v49 = vpop.xlane.xlu0 %2564  ;;  %2726 = vmax.xlane.f32.xlu0 %v2725_v52  ;;  %v2722_v52 = vmax.f32 %v8058_v20, %v8068_v33  ;;  %v2905_v20 = vsub.f32 %v7669_v36, %v8118_v39  ;;  %v2907_v39 = vsub.f32 %v7682_v46, %v8139_v57  ;;  %v2909_v57 = vsub.f32 %v7695_v35, %v8160_v2 }
 0x343   : > { %11611 = vst [vmem:[#allocation158_spill] sm:$0xff] %v8286_v61  ;;  %11612 = vst [vmem:[#allocation159_spill] sm:$0xff] %v8288_v49  ;;  %v2901_v49 = vsub.f32 %v7645_v5, %v8080_v34  ;;  %v8310_v28 = vpop.eup %5804  ;;  %v2903_v5 = vsub.f32 %v7658_v8, %v8097_v13  ;;  %v2719_v8 = vmax.f32 %v8043_v51, %v8052_v29 }
 0x344   : > { %v8290_v4 = vpop.f32.mrf.mxu1  ;;  %11618 = vst [vmem:[#allocation165_spill] sm:$0xff] %v8310_v28  ;;  %v3182_v36 = vmul.f32 1.442695, %v2905_v20  ;;  %v2713_v20 = vmax.f32 %v8015_v63, %v8022_v24  ;;  %v3186_v46 = vmul.f32 1.442695, %v2907_v39  ;;  %v2710_v35 = vmax.f32 %v8002_v18, %v8009_v14  ;;  %v2547_v14 = vpop.xlane.xlu1 %2546 }
 0x345   : > { %11613 = vst [vmem:[#allocation160_spill] sm:$0xff] %v8290_v4  ;;  %v3174_v33 = vmul.f32 1.442695, %v2901_v49  ;;  %v3190_v2 = vmul.f32 1.442695, %v2909_v57  ;;  %v2911_v39 = vsub.f32 %v7706_v60, %v8182_v15 }
 0x346   : > { %v8294_v26 = vpop.f32.mrf.mxu1  ;;  %v8296_v10 = vpop.xlane.xlu0 %2567  ;;  %3656 = vadd.xlane.f32.xlu0 %v3655_v1 }
 0x347   : > { %11614 = vst [vmem:[#allocation161_spill] sm:$0xff] %v8294_v26  ;;  %11615 = vst [vmem:[#allocation162_spill] sm:$0xff] %v8296_v10  ;;  %v2671_v31 = vmax.f32 %v8290_v4, %v8294_v26  ;;  %v2902_v26 = vsub.f32 %v7651_v37, %v8097_v13  ;;  %5808 = vpow2.f32 %v3174_v33  ;;  %v3178_v13 = vmul.f32 1.442695, %v2903_v5 }
 0x348   : > { %v8308_v59 = vpop.f32.mrf.mxu1  ;;  %v2716_v5 = vmax.f32 %v8028_v17, %v8037_v12  ;;  %v3194_v60 = vmul.f32 1.442695, %v2911_v39 }
 0x349   : > { %11617 = vst [vmem:[#allocation164_spill] sm:$0xff] %v8308_v59  ;;  %2672 = vmax.xlane.f32.xlu1 %v2671_v31  ;;  %v3652_v31 = vadd.f32 %v8310_v28, %v8302_v38  ;;  %v3176_v37 = vmul.f32 1.442695, %v2902_v26 }
 0x34a   : > { %v8312_v1 = vpop.f32.mrf.mxu1  ;;  %2723 = vmax.xlane.f32.xlu0 %v2722_v52  ;;  %v8318_v10 = vpop.xlane.xlu0 %2570 }
 0x34b   : > { %11619 = vst [vmem:[#allocation166_spill] sm:$0xff] %v8312_v1  ;;  %v2674_v4 = vmax.f32 %v8308_v59, %v8312_v1  ;;  %5810 = vpow2.f32 %v3176_v37  ;;  %v3184_v37 = vmul.f32 1.442695, %v2906_v54  ;;  %v2910_v54 = vsub.f32 %v7701_v40, %v8182_v15  ;;  %v11634_v15 = vld [vmem:[#allocation41_spill] sm:$0xff] }
 0x34c   : > { %v8322_v34 = vpop.f32.mrf.mxu1  ;;  %5812 = vpow2.f32 %v3178_v13  ;;  %v2913_v63 = vsub.f32 %v11634_v15, %v8202_v11  ;;  %v11640_v15 = vld [vmem:[#allocation43_spill] sm:$0xff] }
 0x34d   : > { %11620 = vst [vmem:[#allocation167_spill] sm:$0xff] %v8322_v34  ;;  %2675 = vmax.xlane.f32.xlu1 %v2674_v4  ;;  %5814 = vpow2.f32 %v3180_v47  ;;  %v2915_v17 = vsub.f32 %v11640_v15, %v2547_v14  ;;  %v11647_v15 = vld [vmem:[#allocation68_spill] sm:$0xff] }
 0x34e   : > { %v8326_v52 = vpop.f32.mrf.mxu1  ;;  %3653 = vadd.xlane.f32.xlu0 %v3652_v31  ;;  %v8338_v1 = vpop.xlane.xlu0 %2573  ;;  %5816 = vpow2.f32 %v3182_v36 }
 0x34f   : > { %11621 = vst [vmem:[#allocation168_spill] sm:$0xff] %v8326_v52  ;;  %v2677_v49 = vmax.f32 %v8322_v34, %v8326_v52  ;;  %5818 = vpow2.f32 %v3184_v37  ;;  %v8374_v36 = vpop.eup %5806  ;;  %v11656_v34 = vld [vmem:[#allocation82_spill] sm:$0xff] }
 0x350   : > { %v8336_v4 = vpop.f32.mrf.mxu1  ;;  %11628 = vst [vmem:[#allocation175_spill] sm:$0xff] %v8374_v36  ;;  %5820 = vpow2.f32 %v3186_v46 }
 0x351   : > { %11622 = vst [vmem:[#allocation169_spill] sm:$0xff] %v8336_v4  ;;  %2678 = vmax.xlane.f32.xlu1 %v2677_v49  ;;  %5822 = vpow2.f32 %v3188_v42 }
 0x352   : > { %v8340_v26 = vpop.f32.mrf.mxu1  ;;  %2720 = vmax.xlane.f32.xlu0 %v2719_v8  ;;  %v8356_v55 = vpop.xlane.xlu0 %2576  ;;  %5824 = vpow2.f32 %v3190_v2  ;;  %v11638_v2 = vld [vmem:[#allocation42_spill] sm:$0xff] }
 0x353   : > { %11623 = vst [vmem:[#allocation170_spill] sm:$0xff] %v8340_v26  ;;  %v2680_v33 = vmax.f32 %v8336_v4, %v8340_v26  ;;  %v2914_v39 = vsub.f32 %v11638_v2, %v2547_v14  ;;  %v11653_v4 = vld [vmem:[#allocation71_spill] sm:$0xff] }
 0x354   : > { %v8350_v31 = vpop.f32.mrf.mxu1  ;;  %v8382_v45 = vpop.eup %5808 }
 0x355   : > { %11624 = vst [vmem:[#allocation171_spill] sm:$0xff] %v8350_v31  ;;  %2681 = vmax.xlane.f32.xlu1 %v2680_v33  ;;  %11630 = vst [vmem:[#allocation177_spill] sm:$0xff] %v8382_v45  ;;  %v3676_v42 = vadd.f32 %v8382_v45, %v8374_v36 }
 0x356   : > { %v8352_v49 = vpop.f32.mrf.mxu1  ;;  %2717 = vmax.xlane.f32.xlu0 %v2716_v5 }
 0x357   : > { %11625 = vst [vmem:[#allocation172_spill] sm:$0xff] %v8352_v49  ;;  %v2683_v8 = vmax.f32 %v8350_v31, %v8352_v49 }
 0x358   : > { %v8364_v13 = vpop.f32.mrf.mxu1  ;;  %v8390_v57 = vpop.eup %5810 }
 0x359   : > { %11626 = vst [vmem:[#allocation173_spill] sm:$0xff] %v8364_v13  ;;  %2684 = vmax.xlane.f32.xlu1 %v2683_v8  ;;  %v3192_v8 = vmul.f32 1.442695, %v2910_v54  ;;  %v8398_v54 = vpop.eup %5812 }
 0x35a   : > { %v8366_v47 = vpop.f32.mrf.mxu1  ;;  %2714 = vmax.xlane.f32.xlu0 %v2713_v20  ;;  %v8372_v5 = vpop.xlane.xlu0 %2582  ;;  %v11632_v20 = vld [vmem:[#allocation40_spill] sm:$0xff]  ;;  %11636 = vst [vmem:[#allocation179_spill] sm:$0xff] %v8398_v54  ;;  %v3679_v51 = vadd.f32 %v8398_v54, %v8390_v57 }
 0x35b   : > { %11627 = vst [vmem:[#allocation174_spill] sm:$0xff] %v8366_v47  ;;  %v2686_v33 = vmax.f32 %v8364_v13, %v8366_v47  ;;  %v2912_v24 = vsub.f32 %v11632_v20, %v8202_v11  ;;  %11633 = vst [vmem:[#allocation40_spill] sm:$0xff] %v8390_v57  ;;  %5826 = vpow2.f32 %v3192_v8  ;;  %v8403_v12 = vpop.eup %5814  ;;  %v3198_v11 = vmul.f32 1.442695, %v2913_v63  ;;  %v8423_v47 = vpop.xlane.xlu1 %2579  ;;  %v11648_v13 = vld [vmem:[#allocation69_spill] sm:$0xff] }
 0x35c   : > { %v8380_v37 = vpop.f32.mrf.mxu1  ;;  %11639 = vst [vmem:[#allocation42_spill] sm:$0xff] %v8403_v12  ;;  %5828 = vpow2.f32 %v3194_v60  ;;  %v3202_v60 = vmul.f32 1.442695, %v2915_v17 }
 0x35d   : > { %11629 = vst [vmem:[#allocation176_spill] sm:$0xff] %v8380_v37  ;;  %2687 = vmax.xlane.f32.xlu1 %v2686_v33  ;;  %v3196_v18 = vmul.f32 1.442695, %v2912_v24  ;;  %v3200_v24 = vmul.f32 1.442695, %v2914_v39 }
 0x35e   : > { %v8384_v40 = vpop.f32.mrf.mxu1  ;;  %2711 = vmax.xlane.f32.xlu0 %v2710_v35  ;;  %v2586_v35 = vpop.xlane.xlu0 %2585 }
 0x35f   : > { %11631 = vst [vmem:[#allocation178_spill] sm:$0xff] %v8384_v40  ;;  %v2689_v46 = vmax.f32 %v8380_v37, %v8384_v40  ;;  %v8410_v40 = vpop.eup %5816  ;;  %5830 = vpow2.f32 %v3196_v18  ;;  %v2940_v37 = vsub.f32 %v11647_v15, %v2586_v35 }
 0x360   : > { %v8394_v33 = vpop.f32.mrf.mxu1  ;;  %11642 = vst [vmem:[#allocation181_spill] sm:$0xff] %v8410_v40  ;;  %5832 = vpow2.f32 %v3198_v11  ;;  %v3682_v14 = vadd.f32 %v8410_v40, %v8403_v12  ;;  %v11658_v12 = vld [vmem:[#allocation72_spill] sm:$0xff] }
 0x361   : > { %11635 = vst [vmem:[#allocation41_spill] sm:$0xff] %v8394_v33  ;;  %2690 = vmax.xlane.f32.xlu1 %v2689_v46  ;;  %5834 = vpow2.f32 %v3200_v24  ;;  %v3252_v31 = vmul.f32 1.442695, %v2940_v37  ;;  %v11655_v24 = vld [vmem:[#allocation80_spill] sm:$0xff] }
 0x362   : > { %v8400_v20 = vpop.f32.mrf.mxu1  ;;  %3677 = vadd.xlane.f32.xlu0 %v3676_v42  ;;  %v2589_v8 = vpop.xlane.xlu0 %2588  ;;  %5836 = vpow2.f32 %v3202_v60 }
 0x363   : > { %11637 = vst [vmem:[#allocation180_spill] sm:$0xff] %v8400_v20  ;;  %v8414_v42 = vpop.eup %5818  ;;  %v2942_v52 = vsub.f32 %v11653_v4, %v2589_v8  ;;  %v2943_v40 = vsub.f32 %v11658_v12, %v2589_v8  ;;  %5838 = vpow2.f32 %v3252_v31  ;;  %v11661_v4 = vld [vmem:[#allocation74_spill] sm:$0xff]  ;;  %v11663_v12 = vld [vmem:[#allocation84_spill] sm:$0xff] }
 0x364   : > { %v8406_v29 = vpop.f32.mrf.mxu1  ;;  %11644 = vst [vmem:[#allocation183_spill] sm:$0xff] %v8414_v42  ;;  %v8420_v2 = vpop.eup %5820 }
 0x365   : > { %11641 = vst [vmem:[#allocation43_spill] sm:$0xff] %v8406_v29  ;;  %11646 = vst [vmem:[#allocation185_spill] sm:$0xff] %v8420_v2  ;;  %v8428_v39 = vpop.eup %5822  ;;  %v3685_v11 = vadd.f32 %v8420_v2, %v8414_v42  ;;  %v3258_v31 = vmul.f32 1.442695, %v2943_v40  ;;  %v11670_v40 = vld [vmem:[#allocation77_spill] sm:$0xff] }
 0x366   : > { %v8412_v46 = vpop.f32.mrf.mxu1  ;;  %3680 = vadd.xlane.f32.xlu0 %v3679_v51  ;;  %v2941_v51 = vsub.f32 %v11648_v13, %v2586_v35  ;;  %11650 = vst [vmem:[#allocation69_spill] sm:$0xff] %v8428_v39  ;;  %v8434_v49 = vpop.eup %5824 }
 0x367   : > { %11643 = vst [vmem:[#allocation182_spill] sm:$0xff] %v8412_v46  ;;  %11652 = vst [vmem:[#allocation187_spill] sm:$0xff] %v8434_v49  ;;  %v2592_v15 = vpop.xlane.xlu0 %2591  ;;  %v3688_v37 = vadd.f32 %v8434_v49, %v8428_v39 }
 0x368   : > { %v8416_v63 = vpop.f32.mrf.mxu1  ;;  %v3254_v26 = vmul.f32 1.442695, %v2941_v51  ;;  %v8441_v59 = vpop.eup %5826  ;;  %v2944_v2 = vsub.f32 %v11661_v4, %v2592_v15  ;;  %v11666_v4 = vld [vmem:[#allocation75_spill] sm:$0xff] }
 0x369   : > { %11645 = vst [vmem:[#allocation184_spill] sm:$0xff] %v8416_v63  ;;  %11657 = vst [vmem:[#allocation80_spill] sm:$0xff] %v8441_v59  ;;  %v8448_v51 = vpop.eup %5828 }
 0x36a   : > { %v8426_v18 = vpop.f32.mrf.mxu1  ;;  %3683 = vadd.xlane.f32.xlu0 %v3682_v14  ;;  %11660 = vst [vmem:[#allocation72_spill] sm:$0xff] %v8448_v51  ;;  %5840 = vpow2.f32 %v3254_v26  ;;  %v3691_v26 = vadd.f32 %v8448_v51, %v8441_v59  ;;  %v11672_v59 = vld [vmem:[#allocation78_spill] sm:$0xff] }
 0x36b   : > { %11649 = vst [vmem:[#allocation68_spill] sm:$0xff] %v8426_v18 }
 0x36c   : > { %v8430_v17 = vpop.f32.mrf.mxu1  ;;  %v8457_v49 = vpop.eup %5830 }
 0x36d   : > { %11651 = vst [vmem:[#allocation186_spill] sm:$0xff] %v8430_v17  ;;  %11665 = vst [vmem:[#allocation84_spill] sm:$0xff] %v8457_v49 }
 0x36e   : > { %v2598_v13 = vpop.xlane.xlu1 %2597  ;;  %v8437_v35 = vpop.f32.mrf.mxu1  ;;  %3686 = vadd.xlane.f32.xlu0 %v3685_v11 }
 0x36f   : > { %11654 = vst [vmem:[#allocation71_spill] sm:$0xff] %v8437_v35  ;;  %v2948_v14 = vsub.f32 %v11655_v24, %v2598_v13  ;;  %v2949_v60 = vsub.f32 %v11656_v34, %v2598_v13  ;;  %v3256_v24 = vmul.f32 1.442695, %v2942_v52  ;;  %v11664_v13 = vld [vmem:[#allocation86_spill] sm:$0xff] }
 0x370   : > { %v8444_v42 = vpop.f32.mrf.mxu1 }
 0x371   : > { %11659 = vst [vmem:[#allocation82_spill] sm:$0xff] %v8444_v42  ;;  %v3268_v57 = vmul.f32 1.442695, %v2948_v14  ;;  %v3270_v11 = vmul.f32 1.442695, %v2949_v60  ;;  %v2945_v14 = vsub.f32 %v11666_v4, %v2592_v15  ;;  %v2595_v60 = vpop.xlane.xlu0 %2594 }
 0x372   : > { %v2601_v54 = vpop.xlane.xlu1 %2600  ;;  %v8451_v34 = vpop.f32.mrf.mxu1  ;;  %3689 = vadd.xlane.f32.xlu0 %v3688_v37  ;;  %v3260_v37 = vmul.f32 1.442695, %v2944_v2  ;;  %v2947_v51 = vsub.f32 %v11672_v59, %v2595_v60 }
 0x373   : > { %11662 = vst [vmem:[#allocation74_spill] sm:$0xff] %v8451_v34  ;;  %5842 = vpow2.f32 %v3268_v57  ;;  %v2950_v8 = vsub.f32 %v11663_v12, %v2601_v54  ;;  %v2951_v36 = vsub.f32 %v11664_v13, %v2601_v54  ;;  %v2800_v39 = vmax.f32 %v8444_v42, %v8451_v34  ;;  %v8464_v57 = vpop.eup %5832 }
 0x374   : > { %5844 = vpow2.f32 %v3270_v11  ;;  %v8460_v52 = vpop.f32.mrf.mxu1  ;;  %11668 = vst [vmem:[#allocation75_spill] sm:$0xff] %v8464_v57  ;;  %v2946_v34 = vsub.f32 %v11670_v40, %v2595_v60  ;;  %v8471_v4 = vpop.eup %5834  ;;  %v3262_v42 = vmul.f32 1.442695, %v2945_v14  ;;  %v11677_v14 = vld [vmem:[#allocation90_spill] sm:$0xff] }
 0x375   : > { %11667 = vst [vmem:[#allocation86_spill] sm:$0xff] %v8460_v52  ;;  %2801 = vmax.xlane.f32.xlu1 %v2800_v39  ;;  %v3272_v54 = vmul.f32 1.442695, %v2950_v8  ;;  %5846 = vpow2.f32 %v3256_v24  ;;  %v3274_v15 = vmul.f32 1.442695, %v2951_v36  ;;  %11671 = vst [vmem:[#allocation77_spill] sm:$0xff] %v8471_v4  ;;  %v3694_v39 = vadd.f32 %v8464_v57, %v8457_v49  ;;  %v8478_v8 = vpop.eup %5836 }
 0x376   : > { %v2604_v12 = vpop.xlane.xlu1 %2603  ;;  %v8466_v13 = vpop.f32.mrf.mxu1  ;;  %3692 = vadd.xlane.f32.xlu0 %v3691_v26  ;;  %5848 = vpow2.f32 %v3258_v31  ;;  %11674 = vst [vmem:[#allocation189_spill] sm:$0xff] %v8478_v8  ;;  %v11675_v36 = vld [vmem:[#allocation88_spill] sm:$0xff]  ;;  %v3264_v31 = vmul.f32 1.442695, %v2946_v34 }
 0x377   : > { %11669 = vst [vmem:[#allocation188_spill] sm:$0xff] %v8466_v13  ;;  %v2803_v11 = vmax.f32 %v8460_v52, %v8466_v13  ;;  %5850 = vpow2.f32 %v3260_v37  ;;  %v2952_v24 = vsub.f32 %v11675_v36, %v2604_v12  ;;  %v2953_v59 = vsub.f32 %v11677_v14, %v2604_v12 }
 0x378   : > { %v8474_v2 = vpop.f32.mrf.mxu1  ;;  %5852 = vpow2.f32 %v3272_v54  ;;  %v3266_v13 = vmul.f32 1.442695, %v2947_v51  ;;  %v3697_v37 = vadd.f32 %v8478_v8, %v8471_v4  ;;  %v8490_v54 = vpop.eup %5838 }
 0x379   : > { %11673 = vst [vmem:[#allocation78_spill] sm:$0xff] %v8474_v2  ;;  %2804 = vmax.xlane.f32.xlu1 %v2803_v11  ;;  %5854 = vpow2.f32 %v3274_v15  ;;  %11679 = vst [vmem:[#allocation190_spill] sm:$0xff] %v8490_v54  ;;  %v3276_v11 = vmul.f32 1.442695, %v2952_v24  ;;  %v8494_v34 = vpop.eup %5840  ;;  %v3278_v12 = vmul.f32 1.442695, %v2953_v59  ;;  %v2668_v15 = vmax.f32 %v8282_v21, %v8286_v61 }
 0x37a   : > { %v2607_v26 = vpop.xlane.xlu1 %2606  ;;  %v8481_v40 = vpop.f32.mrf.mxu1  ;;  %3695 = vadd.xlane.f32.xlu0 %v3694_v39  ;;  %5856 = vpow2.f32 %v3262_v42  ;;  %11681 = vst [vmem:[#allocation192_spill] sm:$0xff] %v8494_v34  ;;  %v11687_v59 = vld [vmem:[#allocation94_spill] sm:$0xff] }
 0x37b   : > { %11676 = vst [vmem:[#allocation88_spill] sm:$0xff] %v8481_v40  ;;  %v2806_v60 = vmax.f32 %v8474_v2, %v8481_v40  ;;  %5858 = vpow2.f32 %v3264_v31  ;;  %v2955_v2 = vsub.f32 %v11687_v59, %v2607_v26 }
 0x37c   : > { %v8486_v52 = vpop.f32.mrf.mxu1  ;;  %5860 = vpow2.f32 %v3266_v13 }
 0x37d   : > { %11678 = vst [vmem:[#allocation90_spill] sm:$0xff] %v8486_v52  ;;  %2807 = vmax.xlane.f32.xlu1 %v2806_v60  ;;  %5862 = vpow2.f32 %v3276_v11  ;;  %v11685_v60 = vld [vmem:[#allocation92_spill] sm:$0xff]  ;;  %v3282_v59 = vmul.f32 1.442695, %v2955_v2 }
 0x37e   : > { %v2610_v36 = vpop.xlane.xlu1 %2609  ;;  %v8492_v39 = vpop.f32.mrf.mxu1  ;;  %3698 = vadd.xlane.f32.xlu0 %v3697_v37  ;;  %v2954_v37 = vsub.f32 %v11685_v60, %v2607_v26  ;;  %5864 = vpow2.f32 %v3278_v12 }
 0x37f   : > { %11680 = vst [vmem:[#allocation191_spill] sm:$0xff] %v8492_v39  ;;  %v2809_v42 = vmax.f32 %v8486_v52, %v8492_v39  ;;  %v3736_v52 = vadd.f32 %v8494_v34, %v8490_v54 }
 0x380   : > { %v8498_v51 = vpop.eup %5842  ;;  %v8502_v14 = vpop.f32.mrf.mxu1 }
 0x381   : > { %11682 = vst [vmem:[#allocation193_spill] sm:$0xff] %v8498_v51  ;;  %11683 = vst [vmem:[#allocation194_spill] sm:$0xff] %v8502_v14  ;;  %v8504_v24 = vpop.eup %5844  ;;  %2810 = vmax.xlane.f32.xlu1 %v2809_v42 }
 0x382   : > { %11684 = vst [vmem:[#allocation195_spill] sm:$0xff] %v8504_v24  ;;  %v8507_v40 = vpop.xlane.xlu1 %2612  ;;  %2669 = vmax.xlane.f32.xlu0 %v2668_v15  ;;  %v8509_v31 = vpop.f32.mrf.mxu1  ;;  %v3748_v39 = vadd.f32 %v8504_v24, %v8498_v51  ;;  %v3280_v15 = vmul.f32 1.442695, %v2954_v37 }
 0x383   : > { %11686 = vst [vmem:[#allocation92_spill] sm:$0xff] %v8509_v31  ;;  %v8514_v13 = vpop.eup %5846  ;;  %v2812_v51 = vmax.f32 %v8502_v14, %v8509_v31  ;;  %v11699_v31 = vld [vmem:[#allocation98_spill] sm:$0xff] }
 0x384   : > { %11688 = vst [vmem:[#allocation94_spill] sm:$0xff] %v8514_v13  ;;  %v8518_v42 = vpop.f32.mrf.mxu1  ;;  %v8520_v11 = vpop.eup %5848  ;;  %5866 = vpow2.f32 %v3280_v15  ;;  %v2957_v14 = vsub.f32 %v11699_v31, %v2610_v36 }
 0x385   : > { %11689 = vst [vmem:[#allocation196_spill] sm:$0xff] %v8518_v42  ;;  %11690 = vst [vmem:[#allocation197_spill] sm:$0xff] %v8520_v11  ;;  %3749 = vadd.xlane.f32.xlu1 %v3748_v39  ;;  %v8522_v60 = vpop.eup %5850  ;;  %v3739_v34 = vadd.f32 %v8520_v11, %v8514_v13  ;;  %5868 = vpow2.f32 %v3282_v59  ;;  %v8548_v13 = vpop.f32.mrf.mxu0 }
 0x386   : > { %11691 = vst [vmem:[#allocation198_spill] sm:$0xff] %v8522_v60  ;;  %v8524_v4 = vpop.xlane.xlu1 %2615  ;;  %3737 = vadd.xlane.f32.xlu0 %v3736_v52  ;;  %v8526_v26 = vpop.f32.mrf.mxu1  ;;  %v11697_v52 = vld [vmem:[#allocation96_spill] sm:$0xff]  ;;  %11700 = vst [vmem:[#allocation98_spill] sm:$0xff] %v8548_v13  ;;  %v3286_v59 = vmul.f32 1.442695, %v2957_v14 }
 0x387   : > { %11692 = vst [vmem:[#allocation199_spill] sm:$0xff] %v8526_v26  ;;  %v8528_v12 = vpop.eup %5852  ;;  %v2956_v37 = vsub.f32 %v11697_v52, %v2610_v36  ;;  %v2815_v13 = vmax.f32 %v8518_v42, %v8526_v26 }
 0x388   : > { %11693 = vst [vmem:[#allocation200_spill] sm:$0xff] %v8528_v12  ;;  %v8532_v54 = vpop.eup %5854  ;;  %v8536_v39 = vpop.f32.mrf.mxu1 }
 0x389   : > { %11694 = vst [vmem:[#allocation201_spill] sm:$0xff] %v8532_v54  ;;  %11695 = vst [vmem:[#allocation202_spill] sm:$0xff] %v8536_v39  ;;  %v8538_v24 = vpop.eup %5856  ;;  %2813 = vmax.xlane.f32.xlu1 %v2812_v51  ;;  %v3751_v49 = vadd.f32 %v8532_v54, %v8528_v12  ;;  %v8566_v12 = vpop.f32.mrf.mxu0 }
 0x38a   : > { %11696 = vst [vmem:[#allocation203_spill] sm:$0xff] %v8538_v24  ;;  %v8541_v8 = vpop.xlane.xlu1 %2618  ;;  %3740 = vadd.xlane.f32.xlu0 %v3739_v34  ;;  %v8543_v2 = vpop.f32.mrf.mxu1  ;;  %v3742_v51 = vadd.f32 %v8538_v24, %v8522_v60  ;;  %v3284_v34 = vmul.f32 1.442695, %v2956_v37  ;;  %11706 = vst [vmem:[#allocation209_spill] sm:$0xff] %v8566_v12  ;;  %v11709_v37 = vld [vmem:[#allocation100_spill] sm:$0xff]  ;;  %v11711_v12 = vld [vmem:[#allocation102_spill] sm:$0xff] }
 0x38b   : > { %11698 = vst [vmem:[#allocation96_spill] sm:$0xff] %v8543_v2  ;;  %v8550_v11 = vpop.eup %5858  ;;  %v2959_v26 = vsub.f32 %v11711_v12, %v8507_v40 }
 0x38c   : > { %11701 = vst [vmem:[#allocation204_spill] sm:$0xff] %v8550_v11  ;;  %v8554_v15 = vpop.f32.mrf.mxu1  ;;  %v8556_v52 = vpop.eup %5860  ;;  %5870 = vpow2.f32 %v3284_v34 }
 0x38d   : > { %11702 = vst [vmem:[#allocation205_spill] sm:$0xff] %v8554_v15  ;;  %11703 = vst [vmem:[#allocation206_spill] sm:$0xff] %v8556_v52  ;;  %3752 = vadd.xlane.f32.xlu1 %v3751_v49  ;;  %v8562_v31 = vpop.eup %5862  ;;  %v3745_v24 = vadd.f32 %v8556_v52, %v8550_v11  ;;  %5872 = vpow2.f32 %v3286_v59  ;;  %v8584_v11 = vpop.f32.mrf.mxu0  ;;  %v3290_v61 = vmul.f32 1.442695, %v2959_v26  ;;  %v2818_v59 = vmax.f32 %v8536_v39, %v8543_v2  ;;  %v11721_v26 = vld [vmem:[#allocation106_spill] sm:$0xff] }
 0x38e   : > { %v8558_v57 = vpop.xlane.xlu1 %2621  ;;  %3743 = vadd.xlane.f32.xlu0 %v3742_v51  ;;  %v8560_v36 = vpop.f32.mrf.mxu1  ;;  %11705 = vst [vmem:[#allocation208_spill] sm:$0xff] %v8562_v31  ;;  %v2958_v51 = vsub.f32 %v11709_v37, %v8507_v40  ;;  %11712 = vst [vmem:[#allocation102_spill] sm:$0xff] %v8584_v11  ;;  %v2961_v21 = vsub.f32 %v11721_v26, %v8524_v4 }
 0x38f   : > { %11704 = vst [vmem:[#allocation207_spill] sm:$0xff] %v8560_v36  ;;  %v8568_v60 = vpop.eup %5864  ;;  %v8596_v40 = vpop.f32.mrf.mxu0 }
 0x390   : > { %11707 = vst [vmem:[#allocation210_spill] sm:$0xff] %v8568_v60  ;;  %v8572_v49 = vpop.f32.mrf.mxu1  ;;  %v3754_v42 = vadd.f32 %v8568_v60, %v8562_v31  ;;  %11716 = vst [vmem:[#allocation215_spill] sm:$0xff] %v8596_v40  ;;  %v3294_v38 = vmul.f32 1.442695, %v2961_v21  ;;  %v11732_v21 = vld [vmem:[#allocation110_spill] sm:$0xff] }
 0x391   : > { %11708 = vst [vmem:[#allocation211_spill] sm:$0xff] %v8572_v49  ;;  %2816 = vmax.xlane.f32.xlu1 %v2815_v13  ;;  %v3288_v13 = vmul.f32 1.442695, %v2958_v51  ;;  %v8612_v2 = vpop.f32.mrf.mxu0  ;;  %v2963_v28 = vsub.f32 %v11732_v21, %v8541_v8 }
 0x392   : > { %v8576_v54 = vpop.xlane.xlu1 %2624  ;;  %3746 = vadd.xlane.f32.xlu0 %v3745_v24  ;;  %v8578_v14 = vpop.f32.mrf.mxu1  ;;  %11722 = vst [vmem:[#allocation106_spill] sm:$0xff] %v8612_v2 }
 0x393   : > { %11710 = vst [vmem:[#allocation100_spill] sm:$0xff] %v8578_v14  ;;  %v8592_v24 = vpop.eup %5866  ;;  %5874 = vpow2.f32 %v3288_v13  ;;  %v8626_v26 = vpop.f32.mrf.mxu0 }
 0x394   : > { %v8586_v52 = vpop.f32.mrf.mxu1  ;;  %11715 = vst [vmem:[#allocation214_spill] sm:$0xff] %v8592_v24  ;;  %v8598_v12 = vpop.eup %5868  ;;  %5876 = vpow2.f32 %v3290_v61  ;;  %v2821_v61 = vmax.f32 %v8554_v15, %v8560_v36  ;;  %11727 = vst [vmem:[#allocation222_spill] sm:$0xff] %v8626_v26 }
 0x395   : > { %11713 = vst [vmem:[#allocation212_spill] sm:$0xff] %v8586_v52  ;;  %3755 = vadd.xlane.f32.xlu1 %v3754_v42  ;;  %11717 = vst [vmem:[#allocation216_spill] sm:$0xff] %v8598_v12  ;;  %v11719_v42 = vld [vmem:[#allocation104_spill] sm:$0xff]  ;;  %v3757_v40 = vadd.f32 %v8598_v12, %v8592_v24  ;;  %v8642_v15 = vpop.f32.mrf.mxu0 }
 0x396   : > { %v8588_v34 = vpop.xlane.xlu1 %2627  ;;  %v8590_v37 = vpop.f32.mrf.mxu1  ;;  %v2960_v51 = vsub.f32 %v11719_v42, %v8524_v4  ;;  %11734 = vst [vmem:[#allocation225_spill] sm:$0xff] %v8642_v15 }
 0x397   : > { %11714 = vst [vmem:[#allocation213_spill] sm:$0xff] %v8590_v37 }
 0x398   : > { %v8600_v31 = vpop.f32.mrf.mxu1  ;;  %v3292_v13 = vmul.f32 1.442695, %v2960_v51 }
 0x399   : > { %11718 = vst [vmem:[#allocation217_spill] sm:$0xff] %v8600_v31  ;;  %2819 = vmax.xlane.f32.xlu1 %v2818_v59  ;;  %v8620_v45 = vpop.eup %5870 }
 0x39a   : > { %v8604_v11 = vpop.xlane.xlu1 %2630  ;;  %v8606_v60 = vpop.f32.mrf.mxu1  ;;  %11725 = vst [vmem:[#allocation220_spill] sm:$0xff] %v8620_v45  ;;  %5878 = vpow2.f32 %v3292_v13 }
 0x39b   : > { %11720 = vst [vmem:[#allocation104_spill] sm:$0xff] %v8606_v60  ;;  %v8628_v24 = vpop.eup %5872  ;;  %5880 = vpow2.f32 %v3294_v38  ;;  %v3298_v38 = vmul.f32 1.442695, %v2963_v28  ;;  %v11744_v28 = vld [vmem:[#allocation114_spill] sm:$0xff] }
 0x39c   : > { %v8614_v39 = vpop.f32.mrf.mxu1  ;;  %11728 = vst [vmem:[#allocation223_spill] sm:$0xff] %v8628_v24  ;;  %v3760_v26 = vadd.f32 %v8628_v24, %v8620_v45 }
 0x39d   : > { %11723 = vst [vmem:[#allocation218_spill] sm:$0xff] %v8614_v39  ;;  %3758 = vadd.xlane.f32.xlu1 %v3757_v40  ;;  %v11730_v40 = vld [vmem:[#allocation108_spill] sm:$0xff] }
 0x39e   : > { %v8616_v59 = vpop.xlane.xlu1 %2633  ;;  %v8618_v42 = vpop.f32.mrf.mxu1  ;;  %v2962_v51 = vsub.f32 %v11730_v40, %v8541_v8  ;;  %v2824_v8 = vmax.f32 %v8572_v49, %v8578_v14  ;;  %v2965_v14 = vsub.f32 %v11744_v28, %v8558_v57 }
 0x39f   : > { %11724 = vst [vmem:[#allocation219_spill] sm:$0xff] %v8618_v42  ;;  %v8624_v4 = vpop.xlane.xlu0 %2729 }
 0x3a0   : > { %11726 = vst [vmem:[#allocation221_spill] sm:$0xff] %v8624_v4  ;;  %v8630_v2 = vpop.f32.mrf.mxu1  ;;  %v3296_v13 = vmul.f32 1.442695, %v2962_v51 }
 0x3a1   : > { %11729 = vst [vmem:[#allocation224_spill] sm:$0xff] %v8630_v2  ;;  %2822 = vmax.xlane.f32.xlu1 %v2821_v61  ;;  %v8650_v2 = vpop.eup %5874 }
 0x3a2   : > { %v8634_v12 = vpop.f32.mrf.mxu1  ;;  %v8644_v4 = vpop.xlane.xlu1 %2636  ;;  %11737 = vst [vmem:[#allocation228_spill] sm:$0xff] %v8650_v2  ;;  %5882 = vpow2.f32 %v3296_v13  ;;  %v11747_v13 = vld [vmem:[#allocation116_spill] sm:$0xff] }
 0x3a3   : > { %11731 = vst [vmem:[#allocation108_spill] sm:$0xff] %v8634_v12  ;;  %v8638_v36 = vpop.xlane.xlu0 %2732  ;;  %v8656_v12 = vpop.f32.mrf.mxu0  ;;  %5884 = vpow2.f32 %v3298_v38 }
 0x3a4   : > { %11733 = vst [vmem:[#allocation110_spill] sm:$0xff] %v8638_v36  ;;  %v8646_v61 = vpop.f32.mrf.mxu1  ;;  %11739 = vst [vmem:[#allocation230_spill] sm:$0xff] %v8656_v12  ;;  %v8658_v45 = vpop.eup %5876 }
 0x3a5   : > { %11735 = vst [vmem:[#allocation226_spill] sm:$0xff] %v8646_v61  ;;  %3761 = vadd.xlane.f32.xlu1 %v3760_v26  ;;  %11740 = vst [vmem:[#allocation231_spill] sm:$0xff] %v8658_v45  ;;  %v11742_v61 = vld [vmem:[#allocation112_spill] sm:$0xff]  ;;  %v3763_v12 = vadd.f32 %v8658_v45, %v8650_v2  ;;  %v8674_v24 = vpop.f32.mrf.mxu0  ;;  %v2827_v2 = vmax.f32 %v8586_v52, %v8590_v37 }
 0x3a6   : > { %v8648_v40 = vpop.f32.mrf.mxu1  ;;  %v2964_v26 = vsub.f32 %v11742_v61, %v8558_v57  ;;  %v8664_v51 = vpop.xlane.xlu1 %2639  ;;  %11745 = vst [vmem:[#allocation114_spill] sm:$0xff] %v8674_v24  ;;  %v11750_v57 = vld [vmem:[#allocation118_spill] sm:$0xff] }
 0x3a7   : > { %11736 = vst [vmem:[#allocation227_spill] sm:$0xff] %v8648_v40  ;;  %v8654_v21 = vpop.xlane.xlu0 %2735  ;;  %v8682_v38 = vpop.eup %5878  ;;  %v2967_v28 = vsub.f32 %v11750_v57, %v8576_v54  ;;  %v11755_v57 = vld [vmem:[#allocation122_spill] sm:$0xff] }
 0x3a8   : > { %11738 = vst [vmem:[#allocation229_spill] sm:$0xff] %v8654_v21  ;;  %v8660_v15 = vpop.f32.mrf.mxu1  ;;  %v3300_v61 = vmul.f32 1.442695, %v2964_v26  ;;  %11749 = vst [vmem:[#allocation234_spill] sm:$0xff] %v8682_v38  ;;  %v8688_v24 = vpop.f32.mrf.mxu0  ;;  %v2969_v37 = vsub.f32 %v11755_v57, %v8588_v34 }
 0x3a9   : > { %11741 = vst [vmem:[#allocation232_spill] sm:$0xff] %v8660_v15  ;;  %2825 = vmax.xlane.f32.xlu1 %v2824_v8  ;;  %v2966_v8 = vsub.f32 %v11747_v13, %v8576_v54  ;;  %11751 = vst [vmem:[#allocation118_spill] sm:$0xff] %v8688_v24  ;;  %v11754_v13 = vld [vmem:[#allocation120_spill] sm:$0xff]  ;;  %v3306_v54 = vmul.f32 1.442695, %v2967_v28 }
 0x3aa   : > { %v8666_v40 = vpop.f32.mrf.mxu1  ;;  %5886 = vpow2.f32 %v3300_v61  ;;  %v8702_v21 = vpop.f32.mrf.mxu0 }
 0x3ab   : > { %11743 = vst [vmem:[#allocation112_spill] sm:$0xff] %v8666_v40  ;;  %v8670_v49 = vpop.xlane.xlu0 %2738  ;;  %v3302_v40 = vmul.f32 1.442695, %v2965_v14  ;;  %v3304_v26 = vmul.f32 1.442695, %v2966_v8  ;;  %11756 = vst [vmem:[#allocation120_spill] sm:$0xff] %v8702_v21 }
 0x3ac   : > { %v8676_v15 = vpop.f32.mrf.mxu1  ;;  %v11805_v21 = vld [vmem:[#allocation143_spill] sm:$0xff] }
 0x3ad   : > { %11746 = vst [vmem:[#allocation233_spill] sm:$0xff] %v8676_v15  ;;  %3764 = vadd.xlane.f32.xlu1 %v3763_v12  ;;  %v8690_v15 = vpop.eup %5880 }
 0x3ae   : > { %v8680_v36 = vpop.xlane.xlu1 %2645  ;;  %11752 = vst [vmem:[#allocation235_spill] sm:$0xff] %v8690_v15  ;;  %v8692_v12 = vpop.f32.mrf.mxu1  ;;  %v3766_v24 = vadd.f32 %v8690_v15, %v8682_v38  ;;  %v11900_v15 = vld [vmem:[#allocation161_spill] sm:$0xff] }
 0x3af   : > { %11748 = vst [vmem:[#allocation116_spill] sm:$0xff] %v8680_v36  ;;  %v3663_v45 = vpop.xlane.xlu0 %3662  ;;  %11753 = vst [vmem:[#allocation236_spill] sm:$0xff] %v8692_v12  ;;  %v2968_v36 = vsub.f32 %v11754_v13, %v8588_v34  ;;  %v8710_v28 = vpop.eup %5882  ;;  %v3310_v34 = vmul.f32 1.442695, %v2969_v37  ;;  %v11760_v13 = vld [vmem:[#allocation126_spill] sm:$0xff]  ;;  %v2830_v12 = vmax.f32 %v8600_v31, %v8606_v60  ;;  %v2972_v37 = vsub.f32 %v8088_v25, %v8616_v59 }
 0x3b0   : > { %5888 = vrcp.f32 %v3663_v45  ;;  %v8704_v61 = vpop.f32.mrf.mxu1  ;;  %v11758_v45 = vld [vmem:[#allocation124_spill] sm:$0xff]  ;;  %v2971_v57 = vsub.f32 %v11760_v13, %v8604_v11 }
 0x3b1   : > { %2828 = vmax.xlane.f32.xlu1 %v2827_v2  ;;  %5890 = vpow2.f32 %v3302_v40  ;;  %11757 = vst [vmem:[#allocation122_spill] sm:$0xff] %v8704_v61  ;;  %v3308_v2 = vmul.f32 1.442695, %v2968_v36  ;;  %v2970_v8 = vsub.f32 %v11758_v45, %v8604_v11  ;;  %11759 = vst [vmem:[#allocation124_spill] sm:$0xff] %v8710_v28  ;;  %v8718_v36 = vpop.eup %5884  ;;  %v2973_v45 = vsub.f32 %v8095_v19, %v8616_v59 }
 0x3b2   : > { %v8696_v14 = vpop.xlane.xlu1 %2648  ;;  %11762 = vst [vmem:[#allocation237_spill] sm:$0xff] %v8718_v36  ;;  %v3314_v11 = vmul.f32 1.442695, %v2971_v57  ;;  %v3769_v60 = vadd.f32 %v8718_v36, %v8710_v28  ;;  %v3316_v25 = vmul.f32 1.442695, %v2972_v37  ;;  %v2975_v59 = vsub.f32 %v8116_v9, %v8644_v4 }
 0x3b3   : > { %v3666_v52 = vpop.xlane.xlu0 %3665  ;;  %v3318_v19 = vmul.f32 1.442695, %v2973_v45 }
 0x3b4   : > { %5892 = vrcp.f32 %v3666_v52  ;;  %v8716_v52 = vpop.f32.mrf.mxu0 }
 0x3b5   : > { %3767 = vadd.xlane.f32.xlu1 %v3766_v24  ;;  %5894 = vpow2.f32 %v3304_v26  ;;  %11761 = vst [vmem:[#allocation126_spill] sm:$0xff] %v8716_v52  ;;  %v8720_v24 = vpop.f32.mrf.mxu1  ;;  %v3312_v26 = vmul.f32 1.442695, %v2970_v8 }
 0x3b6   : > { %v8708_v40 = vpop.xlane.xlu1 %2651  ;;  %5896 = vpow2.f32 %v3306_v54  ;;  %11763 = vst [vmem:[#allocation238_spill] sm:$0xff] %v8720_v24  ;;  %v8730_v31 = vpop.f32.mrf.mxu0 }
 0x3b7   : > { %v3669_v61 = vpop.xlane.xlu0 %3668  ;;  %11764 = vst [vmem:[#allocation239_spill] sm:$0xff] %v8730_v31  ;;  %v11894_v31 = vld [vmem:[#allocation51_spill] sm:$0xff] }
 0x3b8   : > { %5898 = vrcp.f32 %v3669_v61  ;;  %v8732_v61 = vpop.f32.mrf.mxu1  ;;  %v8743_v24 = vpop.f32.mrf.mxu0 }
 0x3b9   : > { %2831 = vmax.xlane.f32.xlu1 %v2830_v12  ;;  %5900 = vpow2.f32 %v3308_v2  ;;  %11765 = vst [vmem:[#allocation240_spill] sm:$0xff] %v8732_v61  ;;  %v8735_v12 = vpop.eup %5886  ;;  %v2974_v2 = vsub.f32 %v8107_v48, %v8644_v4  ;;  %11767 = vst [vmem:[#allocation242_spill] sm:$0xff] %v8743_v24 }
 0x3ba   : > { %v8724_v54 = vpop.xlane.xlu1 %2654  ;;  %5902 = vpow2.f32 %v3310_v34  ;;  %11766 = vst [vmem:[#allocation241_spill] sm:$0xff] %v8735_v12  ;;  %v2833_v34 = vmax.f32 %v8614_v39, %v8618_v42  ;;  %v8751_v48 = vpop.f32.mrf.mxu1 }
 0x3bb   : > { %v3672_v13 = vpop.xlane.xlu0 %3671  ;;  %11769 = vst [vmem:[#allocation244_spill] sm:$0xff] %v8751_v48  ;;  %v3320_v4 = vmul.f32 1.442695, %v2974_v2  ;;  %v11803_v48 = vld [vmem:[#allocation63_spill] sm:$0xff]  ;;  %v2987_v52 = vsub.f32 %v11805_v21, %v8724_v54 }
 0x3bc   : > { %5904 = vrcp.f32 %v3672_v13  ;;  %v3322_v13 = vmul.f32 1.442695, %v2975_v59 }
 0x3bd   : > { %3770 = vadd.xlane.f32.xlu1 %v3769_v60  ;;  %5906 = vpow2.f32 %v3312_v26  ;;  %v5889_v8 = vpop.eup %5888  ;;  %v2976_v26 = vsub.f32 %v8128_v7, %v8664_v51 }
 0x3be   : > { %5908 = vpow2.f32 %v3314_v11  ;;  %v8745_v60 = vpop.eup %5890  ;;  %v8749_v37 = vpop.xlane.xlu1 %2657  ;;  %v4171_v11 = vmul.f32 %v5889_v8, %v8170_v44  ;;  %v4170_v45 = vmul.f32 %v5889_v8, %v8164_v58  ;;  %v2977_v44 = vsub.f32 %v8137_v6, %v8664_v51 }
 0x3bf   : > { %v3675_v57 = vpop.xlane.xlu0 %3674  ;;  %11768 = vst [vmem:[#allocation243_spill] sm:$0xff] %v8745_v60  ;;  %v3772_v58 = vadd.f32 %v8745_v60, %v8735_v12  ;;  %v3324_v8 = vmul.f32 1.442695, %v2976_v26  ;;  %v2935_v12 = vsub.f32 %v11803_v48, %v8356_v55 }
 0x3c0   : > { %5910 = vrcp.f32 %v3675_v57  ;;  %4427 = vst [vmem:[%s8755_s23 + $0x38] sm:$0xff] %v4171_v11  ;;  %4426 = vst [vmem:[%s8755_s23 + $0x30] sm:$0xff] %v4170_v45  ;;  %v8771_v11 = vpop.f32.mrf.mxu1 }
 0x3c1   : > { %2834 = vmax.xlane.f32.xlu1 %v2833_v34  ;;  %v5893_v9 = vpop.eup %5892  ;;  %5912 = vpow2.f32 %v3316_v25  ;;  %v8765_v25 = vpop.f32.mrf.mxu0  ;;  %11773 = vst [vmem:[#allocation248_spill] sm:$0xff] %v8771_v11 }
 0x3c2   : > { %v8759_v7 = vpop.eup %5894  ;;  %5914 = vpow2.f32 %v3318_v19  ;;  %11771 = vst [vmem:[#allocation246_spill] sm:$0xff] %v8765_v25  ;;  %v4173_v19 = vmul.f32 %v5893_v9, %v8188_v23  ;;  %v4172_v6 = vmul.f32 %v5893_v9, %v8178_v22  ;;  %v8775_v59 = vpop.xlane.xlu1 %2660 }
 0x3c3   : > { %11770 = vst [vmem:[#allocation245_spill] sm:$0xff] %v8759_v7  ;;  %v2643_v42 = vpop.xlane.xlu0 %2642  ;;  %v8767_v2 = vpop.eup %5896  ;;  %5916 = vpow2.f32 %v3320_v4 }
 0x3c4   : > { %11772 = vst [vmem:[#allocation247_spill] sm:$0xff] %v8767_v2  ;;  %v2978_v34 = vsub.f32 %v8149_v43, %v2643_v42  ;;  %v2979_v57 = vsub.f32 %v8158_v27, %v2643_v42  ;;  %4429 = vst [vmem:[%s8755_s23 + $0x48] sm:$0xff] %v4173_v19  ;;  %v11775_v43 = vld [vmem:[#allocation66_spill] sm:$0xff]  ;;  %5918 = vpow2.f32 %v3322_v13  ;;  %v3326_v42 = vmul.f32 1.442695, %v2977_v44  ;;  %v8784_v9 = vpop.f32.mrf.mxu0  ;;  %v11780_v19 = vld [vmem:[#allocation140_spill] sm:$0xff] }
 0x3c5   : > { %3773 = vadd.xlane.f32.xlu1 %v3772_v58  ;;  %v5899_v51 = vpop.eup %5898  ;;  %v2938_v27 = vsub.f32 %v11775_v43, %v8372_v5  ;;  %v3775_v22 = vadd.f32 %v8767_v2, %v8759_v7  ;;  %11776 = vst [vmem:[#allocation66_spill] sm:$0xff] %v8784_v9  ;;  %4428 = vst [vmem:[%s8755_s23 + $0x40] sm:$0xff] %v4172_v6  ;;  %v11778_v58 = vld [vmem:[#allocation67_spill] sm:$0xff]  ;;  %5920 = vpow2.f32 %v3324_v8 }
 0x3c6   : > { %v3328_v45 = vmul.f32 1.442695, %v2978_v34  ;;  %v3330_v39 = vmul.f32 1.442695, %v2979_v57  ;;  %v8778_v26 = vpop.eup %5900  ;;  %v2939_v34 = vsub.f32 %v11778_v58, %v8372_v5  ;;  %v8791_v57 = vpop.f32.mrf.mxu1  ;;  %v4175_v13 = vmul.f32 %v5899_v51, %v8200_v56  ;;  %v11785_v58 = vld [vmem:[#allocation64_spill] sm:$0xff] }
 0x3c7   : > { %11774 = vst [vmem:[#allocation249_spill] sm:$0xff] %v8778_v26  ;;  %v3660_v23 = vpop.xlane.xlu0 %3659  ;;  %v8787_v4 = vpop.eup %5902  ;;  %11779 = vst [vmem:[#allocation67_spill] sm:$0xff] %v8791_v57  ;;  %v4174_v44 = vmul.f32 %v5899_v51, %v11780_v19  ;;  %v3248_v6 = vmul.f32 1.442695, %v2938_v27 }
 0x3c8   : > { %11777 = vst [vmem:[#allocation250_spill] sm:$0xff] %v8787_v4  ;;  %5922 = vpow2.f32 %v3328_v45  ;;  %4431 = vst [vmem:[%s8755_s23 + $0x58] sm:$0xff] %v4175_v13  ;;  %v3778_v5 = vadd.f32 %v8787_v4, %v8778_v26  ;;  %v8803_v8 = vpop.f32.mrf.mxu0  ;;  %v3250_v51 = vmul.f32 1.442695, %v2939_v34  ;;  %v8807_v45 = vpop.xlane.xlu1 %2663  ;;  %v2936_v13 = vsub.f32 %v11785_v58, %v8423_v47 }
 0x3c9   : > { %3776 = vadd.xlane.f32.xlu1 %v3775_v22  ;;  %v5905_v43 = vpop.eup %5904  ;;  %5924 = vpow2.f32 %v3330_v39  ;;  %4430 = vst [vmem:[%s8755_s23 + $0x50] sm:$0xff] %v4174_v44  ;;  %11782 = vst [vmem:[#allocation251_spill] sm:$0xff] %v8803_v8  ;;  %v8809_v39 = vpop.f32.mrf.mxu1 }
 0x3ca   : > { %v8797_v7 = vpop.eup %5906  ;;  %5926 = vpow2.f32 %v3326_v42  ;;  %11784 = vst [vmem:[#allocation253_spill] sm:$0xff] %v8809_v39  ;;  %v4177_v22 = vmul.f32 %v5905_v43, %v8218_v30  ;;  %v4176_v27 = vmul.f32 %v5905_v43, %v8210_v41  ;;  %v8820_v26 = vpop.f32.mrf.mxu0  ;;  %v11789_v43 = vld [vmem:[#allocation65_spill] sm:$0xff] }
 0x3cb   : > { %11781 = vst [vmem:[#allocation140_spill] sm:$0xff] %v8797_v7  ;;  %v8799_v2 = vpop.xlane.xlu0 %2726  ;;  %v8805_v56 = vpop.eup %5908  ;;  %5928 = vrcp.f32 %v3660_v23  ;;  %11787 = vst [vmem:[#allocation254_spill] sm:$0xff] %v8820_v26 }
 0x3cc   : > { %11783 = vst [vmem:[#allocation252_spill] sm:$0xff] %v8805_v56  ;;  %4433 = vst [vmem:[%s8755_s23 + $0x68] sm:$0xff] %v4177_v22  ;;  %5930 = vpow2.f32 %v3248_v6  ;;  %v3781_v44 = vadd.f32 %v8805_v56, %v8797_v7  ;;  %v8829_v22 = vpop.f32.mrf.mxu1  ;;  %v8833_v6 = vpop.xlane.xlu1 %2666  ;;  %v3244_v7 = vmul.f32 1.442695, %v2936_v13 }
 0x3cd   : > { %3779 = vadd.xlane.f32.xlu1 %v3778_v5  ;;  %v5911_v42 = vpop.eup %5910  ;;  %4432 = vst [vmem:[%s8755_s23 + $0x60] sm:$0xff] %v4176_v27  ;;  %v2937_v5 = vsub.f32 %v11789_v43, %v8423_v47  ;;  %5932 = vpow2.f32 %v3250_v51  ;;  %11790 = vst [vmem:[#allocation65_spill] sm:$0xff] %v8829_v22  ;;  %v8841_v27 = vpop.f32.mrf.mxu0  ;;  %v11794_v51 = vld [vmem:[#allocation62_spill] sm:$0xff] }
 0x3ce   : > { %v8816_v19 = vpop.eup %5912  ;;  %v4179_v30 = vmul.f32 %v5911_v42, %v8232_v3  ;;  %v4178_v41 = vmul.f32 %v5911_v42, %v8226_v32  ;;  %11792 = vst [vmem:[#allocation257_spill] sm:$0xff] %v8841_v27  ;;  %v2934_v42 = vsub.f32 %v11794_v51, %v8356_v55 }
 0x3cf   : > { %11786 = vst [vmem:[#allocation64_spill] sm:$0xff] %v8816_v19  ;;  %v3657_v34 = vpop.xlane.xlu0 %3656  ;;  %v8825_v23 = vpop.eup %5914 }
 0x3d0   : > { %11788 = vst [vmem:[#allocation255_spill] sm:$0xff] %v8825_v23  ;;  %4435 = vst [vmem:[%s8755_s23 + $0x78] sm:$0xff] %v4179_v30  ;;  %v8835_v58 = vpop.eup %5916  ;;  %5934 = vrcp.f32 %v3657_v34  ;;  %v3784_v32 = vadd.f32 %v8825_v23, %v8816_v19  ;;  %v8847_v30 = vpop.f32.mrf.mxu1  ;;  %v11798_v34 = vld [vmem:[#allocation141_spill] sm:$0xff]  ;;  %v11800_v23 = vld [vmem:[#allocation142_spill] sm:$0xff] }
 0x3d1   : > { %3782 = vadd.xlane.f32.xlu1 %v3781_v44  ;;  %4434 = vst [vmem:[%s8755_s23 + $0x70] sm:$0xff] %v4178_v41  ;;  %11791 = vst [vmem:[#allocation256_spill] sm:$0xff] %v8835_v58  ;;  %v8843_v47 = vpop.eup %5918  ;;  %v3246_v44 = vmul.f32 1.442695, %v2937_v5  ;;  %v2984_v43 = vsub.f32 %v11798_v34, %v8708_v40  ;;  %5936 = vpow2.f32 %v3244_v7  ;;  %v2985_v4 = vsub.f32 %v11800_v23, %v8708_v40  ;;  %v8863_v61 = vpop.f32.mrf.mxu0 }
 0x3d2   : > { %11793 = vst [vmem:[#allocation258_spill] sm:$0xff] %v8843_v47  ;;  %11795 = vst [vmem:[#allocation62_spill] sm:$0xff] %v8847_v30  ;;  %v8849_v41 = vpop.eup %5920  ;;  %v8855_v56 = vpop.xlane.xlu1 %2672  ;;  %v3787_v5 = vadd.f32 %v8843_v47, %v8835_v58  ;;  %v3240_v34 = vmul.f32 1.442695, %v2934_v42  ;;  %v2986_v58 = vsub.f32 %v8214_v16, %v8724_v54  ;;  %v3242_v16 = vmul.f32 1.442695, %v2935_v12 }
 0x3d3   : > { %v8837_v3 = vpop.xlane.xlu0 %2723  ;;  %11796 = vst [vmem:[#allocation259_spill] sm:$0xff] %v8849_v41  ;;  %11801 = vst [vmem:[#allocation142_spill] sm:$0xff] %v8863_v61  ;;  %5938 = vpow2.f32 %v3246_v44  ;;  %v8871_v7 = vpop.f32.mrf.mxu1  ;;  %v3340_v23 = vmul.f32 1.442695, %v2984_v43  ;;  %v3342_v47 = vmul.f32 1.442695, %v2985_v4 }
 0x3d4   : > { %11804 = vst [vmem:[#allocation63_spill] sm:$0xff] %v8871_v7  ;;  %v8881_v48 = vpop.f32.mrf.mxu0  ;;  %v11808_v44 = vld [vmem:[#allocation103_spill] sm:$0xff]  ;;  %5940 = vpow2.f32 %v3240_v34  ;;  %v11813_v12 = vld [vmem:[#allocation145_spill] sm:$0xff] }
 0x3d5   : > { %3785 = vadd.xlane.f32.xlu1 %v3784_v32  ;;  %v8851_v13 = vpop.eup %5922  ;;  %v8889_v4 = vpop.f32.mrf.mxu1  ;;  %v2988_v34 = vsub.f32 %v11813_v12, %v8749_v37 }
 0x3d6   : > { %11797 = vst [vmem:[#allocation260_spill] sm:$0xff] %v8851_v13  ;;  %v8857_v19 = vpop.eup %5924  ;;  %11810 = vst [vmem:[#allocation263_spill] sm:$0xff] %v8889_v4 }
 0x3d7   : > { %11799 = vst [vmem:[#allocation141_spill] sm:$0xff] %v8857_v19  ;;  %v3654_v51 = vpop.xlane.xlu0 %3653  ;;  %v8865_v32 = vpop.eup %5926  ;;  %v3793_v60 = vadd.f32 %v8857_v19, %v8851_v13  ;;  %v3344_v19 = vmul.f32 1.442695, %v2986_v58  ;;  %v11816_v58 = vld [vmem:[#allocation61_spill] sm:$0xff] }
 0x3d8   : > { %11802 = vst [vmem:[#allocation261_spill] sm:$0xff] %v8865_v32  ;;  %v5929_v40 = vpop.eup %5928  ;;  %v3790_v55 = vadd.f32 %v8865_v32, %v8849_v41  ;;  %v11812_v41 = vld [vmem:[#allocation60_spill] sm:$0xff]  ;;  %5942 = vrcp.f32 %v3654_v51  ;;  %v8906_v51 = vpop.f32.mrf.mxu0 }
 0x3d9   : > { %3788 = vadd.xlane.f32.xlu1 %v3787_v5  ;;  %3794 = vadd.xlane.f32.xlu0 %v3793_v60  ;;  %v8883_v42 = vpop.eup %5930  ;;  %v11809_v5 = vld [vmem:[#allocation101_spill] sm:$0xff]  ;;  %v8887_v60 = vpop.xlane.xlu1 %2675  ;;  %v4169_v21 = vmul.f32 %v5929_v40, %v8260_v62  ;;  %v2932_v32 = vsub.f32 %v11812_v41, %v8338_v1  ;;  %v4168_v13 = vmul.f32 %v5929_v40, %v8254_v0  ;;  %5944 = vpow2.f32 %v3340_v23 }
 0x3da   : > { %11807 = vst [vmem:[#allocation262_spill] sm:$0xff] %v8883_v42  ;;  %v2707_v43 = vmax.f32 %v11809_v5, %v11808_v44  ;;  %v8892_v54 = vpop.eup %5932  ;;  %v2797_v62 = vmax.f32 %v8430_v17, %v8437_v35  ;;  %5946 = vpow2.f32 %v3342_v47  ;;  %v3346_v44 = vmul.f32 1.442695, %v2987_v52  ;;  %v11814_v5 = vld [vmem:[#allocation146_spill] sm:$0xff] }
 0x3db   : > { %v8877_v11 = vpop.xlane.xlu0 %2720  ;;  %11811 = vst [vmem:[#allocation264_spill] sm:$0xff] %v8892_v54  ;;  %4425 = vst [vmem:[%s8755_s23 + $0x28] sm:$0xff] %v4169_v21  ;;  %v2989_v57 = vsub.f32 %v11814_v5, %v8749_v37  ;;  %v2933_v40 = vsub.f32 %v11816_v58, %v8338_v1  ;;  %5948 = vpow2.f32 %v3242_v16  ;;  %v3733_v23 = vadd.f32 %v8892_v54, %v8883_v42  ;;  %v8923_v21 = vpop.f32.mrf.mxu0  ;;  %v11839_v54 = vld [vmem:[#allocation163_spill] sm:$0xff] }
 0x3dc   : > { %11806 = vst [vmem:[#allocation143_spill] sm:$0xff] %v8877_v11  ;;  %4424 = vst [vmem:[%s8755_s23 + $0x20] sm:$0xff] %v4168_v13  ;;  %v3236_v52 = vmul.f32 1.442695, %v2932_v32  ;;  %5950 = vpow2.f32 %v3344_v19  ;;  %v3348_v47 = vmul.f32 1.442695, %v2988_v34  ;;  %v2794_v1 = vmax.f32 %v8416_v63, %v8426_v18 }
 0x3dd   : > { %3791 = vadd.xlane.f32.xlu1 %v3790_v55  ;;  %2708 = vmax.xlane.f32.xlu0 %v2707_v43  ;;  %v5935_v0 = vpop.eup %5934  ;;  %v8913_v55 = vpop.f32.mrf.mxu1  ;;  %5952 = vpow2.f32 %v3346_v44  ;;  %v3350_v43 = vmul.f32 1.442695, %v2989_v57  ;;  %v11821_v19 = vld [vmem:[#allocation97_spill] sm:$0xff]  ;;  %v3238_v34 = vmul.f32 1.442695, %v2933_v40  ;;  %v11825_v57 = vld [vmem:[#allocation148_spill] sm:$0xff] }
 0x3de   : > { %11817 = vst [vmem:[#allocation145_spill] sm:$0xff] %v8913_v55  ;;  %v4167_v37 = vmul.f32 %v5935_v0, %v8284_v50  ;;  %v8916_v5 = vpop.xlane.xlu1 %2678  ;;  %v4166_v13 = vmul.f32 %v5935_v0, %v8278_v53  ;;  %v8926_v32 = vpop.eup %5936  ;;  %v11820_v50 = vld [vmem:[#allocation99_spill] sm:$0xff]  ;;  %v11824_v0 = vld [vmem:[#allocation58_spill] sm:$0xff]  ;;  %5954 = vpow2.f32 %v3236_v52  ;;  %v2990_v58 = vsub.f32 %v11825_v57, %v8775_v59  ;;  %v11826_v40 = vld [vmem:[#allocation149_spill] sm:$0xff] }
 0x3df   : > { %v8904_v41 = vpop.xlane.xlu0 %2717  ;;  %11819 = vst [vmem:[#allocation61_spill] sm:$0xff] %v8926_v32  ;;  %v2704_v12 = vmax.f32 %v11821_v19, %v11820_v50  ;;  %v2930_v44 = vsub.f32 %v11824_v0, %v8318_v10  ;;  %5956 = vpow2.f32 %v3348_v47  ;;  %v8945_v18 = vpop.f32.mrf.mxu0  ;;  %v11828_v0 = vld [vmem:[#allocation59_spill] sm:$0xff]  ;;  %v11833_v63 = vld [vmem:[#allocation56_spill] sm:$0xff] }
 0x3e0   : > { %11815 = vst [vmem:[#allocation60_spill] sm:$0xff] %v8904_v41  ;;  %4423 = vst [vmem:[%s8755_s23 + $0x18] sm:$0xff] %v4167_v37  ;;  %v8933_v53 = vpop.eup %5938  ;;  %5958 = vpow2.f32 %v3350_v43  ;;  %v2991_v37 = vsub.f32 %v11826_v40, %v8775_v59  ;;  %v2931_v52 = vsub.f32 %v11828_v0, %v8318_v10  ;;  %v3352_v40 = vmul.f32 1.442695, %v2990_v58  ;;  %v11836_v58 = vld [vmem:[#allocation95_spill] sm:$0xff]  ;;  %v11888_v41 = vld [vmem:[#allocation153_spill] sm:$0xff] }
 0x3e1   : > { %2798 = vmax.xlane.f32.xlu1 %v2797_v62  ;;  %3734 = vadd.xlane.f32.xlu0 %v3733_v23  ;;  %v8930_v62 = vpop.f32.mrf.mxu1  ;;  %4422 = vst [vmem:[%s8755_s23 + $0x10] sm:$0xff] %v4166_v13  ;;  %11823 = vst [vmem:[#allocation266_spill] sm:$0xff] %v8933_v53  ;;  %v2791_v23 = vmax.f32 %v8406_v29, %v8412_v46  ;;  %5960 = vpow2.f32 %v3238_v34  ;;  %v8955_v57 = vpop.eup %5940  ;;  %v3232_v43 = vmul.f32 1.442695, %v2930_v44  ;;  %v11832_v29 = vld [vmem:[#allocation162_spill] sm:$0xff] }
 0x3e2   : > { %11822 = vst [vmem:[#allocation265_spill] sm:$0xff] %v8930_v62  ;;  %v8949_v47 = vpop.xlane.xlu1 %2681  ;;  %11830 = vst [vmem:[#allocation149_spill] sm:$0xff] %v8955_v57  ;;  %v2928_v10 = vsub.f32 %v11833_v63, %v11832_v29  ;;  %v2788_v34 = vmax.f32 %v8394_v33, %v8400_v20  ;;  %v3354_v0 = vmul.f32 1.442695, %v2991_v37  ;;  %v8963_v17 = vpop.f32.mrf.mxu0  ;;  %v11841_v37 = vld [vmem:[#allocation57_spill] sm:$0xff]  ;;  %v2923_v24 = vsub.f32 %v11894_v31, %v11888_v41 }
 0x3e3   : > { %v8921_v16 = vpop.xlane.xlu0 %2714  ;;  %v2929_v20 = vsub.f32 %v11841_v37, %v11832_v29  ;;  %5962 = vpow2.f32 %v3232_v43  ;;  %v11850_v37 = vld [vmem:[#allocation54_spill] sm:$0xff]  ;;  %v11898_v31 = vld [vmem:[#allocation185_spill] sm:$0xff] }
 0x3e4   : > { %11818 = vst [vmem:[#allocation146_spill] sm:$0xff] %v8921_v16  ;;  %v3234_v16 = vmul.f32 1.442695, %v2931_v52  ;;  %5964 = vpow2.f32 %v3352_v40  ;;  %v8989_v43 = vpop.f32.mrf.mxu0 }
 0x3e5   : > { %2795 = vmax.xlane.f32.xlu1 %v2794_v1  ;;  %2705 = vmax.xlane.f32.xlu0 %v2704_v12  ;;  %v8951_v1 = vpop.f32.mrf.mxu1  ;;  %v3730_v12 = vadd.f32 %v8933_v53, %v8926_v32  ;;  %v5943_v59 = vpop.eup %5942  ;;  %v11834_v32 = vld [vmem:[#allocation165_spill] sm:$0xff]  ;;  %5966 = vpow2.f32 %v3354_v0 }
 0x3e6   : > { %11829 = vst [vmem:[#allocation148_spill] sm:$0xff] %v8951_v1  ;;  %v8957_v46 = vpop.eup %5944  ;;  %v4165_v44 = vmul.f32 %v5943_v59, %v11834_v32  ;;  %v4164_v63 = vmul.f32 %v5943_v59, %v11839_v54  ;;  %v11842_v32 = vld [vmem:[#allocation151_spill] sm:$0xff]  ;;  %v8980_v19 = vpop.xlane.xlu1 %2684  ;;  %v11844_v54 = vld [vmem:[#allocation152_spill] sm:$0xff]  ;;  %5968 = vpow2.f32 %v3234_v16 }
 0x3e7   : > { %v8943_v13 = vpop.xlane.xlu0 %2711  ;;  %11831 = vst [vmem:[#allocation59_spill] sm:$0xff] %v8957_v46  ;;  %v8970_v42 = vpop.f32.mrf.mxu1  ;;  %v2992_v33 = vsub.f32 %v11842_v32, %v8807_v45  ;;  %v2993_v59 = vsub.f32 %v11844_v54, %v8807_v45 }
 0x3e8   : > { %11827 = vst [vmem:[#allocation58_spill] sm:$0xff] %v8943_v13  ;;  %11838 = vst [vmem:[#allocation56_spill] sm:$0xff] %v8970_v42 }
 0x3e9   : > { %2792 = vmax.xlane.f32.xlu1 %v2791_v23  ;;  %3731 = vadd.xlane.f32.xlu0 %v3730_v12  ;;  %v8966_v23 = vpop.eup %5946  ;;  %v11837_v12 = vld [vmem:[#allocation93_spill] sm:$0xff]  ;;  %4421 = vst [vmem:[%s8755_s23 + $0x8] sm:$0xff] %v4165_v44  ;;  %4420 = vst [vmem:[%s8755_s23] sm:$0xff] %v4164_v63  ;;  %v3230_v44 = vmul.f32 1.442695, %v2929_v20  ;;  %v3356_v45 = vmul.f32 1.442695, %v2992_v33 }
 0x3ea   : > { %11835 = vst [vmem:[#allocation162_spill] sm:$0xff] %v8966_v23  ;;  %v2701_v53 = vmax.f32 %v11837_v12, %v11836_v58  ;;  %v8973_v50 = vpop.eup %5948  ;;  %v3228_v58 = vmul.f32 1.442695, %v2928_v10  ;;  %v3802_v29 = vadd.f32 %v8966_v23, %v8957_v46  ;;  %v11849_v63 = vld [vmem:[#allocation159_spill] sm:$0xff]  ;;  %v3358_v16 = vmul.f32 1.442695, %v2993_v59 }
 0x3eb   : > { %v3678_v35 = vpop.xlane.xlu0 %3677  ;;  %11840 = vst [vmem:[#allocation165_spill] sm:$0xff] %v8973_v50  ;;  %v8983_v52 = vpop.eup %5950  ;;  %v2926_v32 = vsub.f32 %v11850_v37, %v11849_v63  ;;  %v11857_v37 = vld [vmem:[#allocation154_spill] sm:$0xff]  ;;  %v11858_v23 = vld [vmem:[#allocation155_spill] sm:$0xff] }
 0x3ec   : > { %11843 = vst [vmem:[#allocation163_spill] sm:$0xff] %v8983_v52  ;;  %v8991_v40 = vpop.eup %5952  ;;  %5970 = vrcp.f32 %v3678_v35  ;;  %v11852_v35 = vld [vmem:[#allocation91_spill] sm:$0xff] }
 0x3ed   : > { %2789 = vmax.xlane.f32.xlu1 %v2788_v34  ;;  %2702 = vmax.xlane.f32.xlu0 %v2701_v53  ;;  %11845 = vst [vmem:[#allocation57_spill] sm:$0xff] %v8991_v40  ;;  %v8993_v34 = vpop.f32.mrf.mxu1  ;;  %v3727_v53 = vadd.f32 %v8973_v50, %v8955_v57  ;;  %v8997_v10 = vpop.eup %5954  ;;  %v3805_v46 = vadd.f32 %v8991_v40, %v8983_v52  ;;  %v3224_v40 = vmul.f32 1.442695, %v2926_v32 }
 0x3ee   : > { %11846 = vst [vmem:[#allocation151_spill] sm:$0xff] %v8993_v34  ;;  %11847 = vst [vmem:[#allocation152_spill] sm:$0xff] %v8997_v10  ;;  %v8999_v0 = vpop.eup %5956  ;;  %v9005_v57 = vpop.f32.mrf.mxu0  ;;  %v2994_v52 = vsub.f32 %v11857_v37, %v8833_v6  ;;  %v11866_v37 = vld [vmem:[#allocation85_spill] sm:$0xff] }
 0x3ef   : > { %v3681_v12 = vpop.xlane.xlu0 %3680  ;;  %11848 = vst [vmem:[#allocation267_spill] sm:$0xff] %v8999_v0  ;;  %v9007_v20 = vpop.eup %5958 }
 0x3f0   : > { %5972 = vrcp.f32 %v3681_v12  ;;  %11851 = vst [vmem:[#allocation159_spill] sm:$0xff] %v9007_v20  ;;  %v9011_v12 = vpop.xlane.xlu1 %2687  ;;  %v9015_v50 = vpop.eup %5960 }
 0x3f1   : > { %3803 = vadd.xlane.f32.xlu1 %v3802_v29  ;;  %3728 = vadd.xlane.f32.xlu0 %v3727_v53  ;;  %5974 = vpow2.f32 %v3228_v58  ;;  %v11853_v29 = vld [vmem:[#allocation89_spill] sm:$0xff]  ;;  %v9013_v53 = vpop.f32.mrf.mxu1  ;;  %11855 = vst [vmem:[#allocation268_spill] sm:$0xff] %v9015_v50  ;;  %v11856_v58 = vld [vmem:[#allocation55_spill] sm:$0xff]  ;;  %v9025_v13 = vpop.f32.mrf.mxu0 }
 0x3f2   : > { %v2698_v33 = vmax.f32 %v11853_v29, %v11852_v35  ;;  %11854 = vst [vmem:[#allocation54_spill] sm:$0xff] %v9013_v53  ;;  %v2927_v59 = vsub.f32 %v11856_v58, %v11849_v63  ;;  %v2995_v35 = vsub.f32 %v11858_v23, %v8833_v6  ;;  %11859 = vst [vmem:[#allocation55_spill] sm:$0xff] %v9025_v13  ;;  %v3360_v63 = vmul.f32 1.442695, %v2994_v52 }
 0x3f3   : > { %v3684_v54 = vpop.xlane.xlu0 %3683  ;;  %v9027_v39 = vpop.f32.mrf.mxu1 }
 0x3f4   : > { %5976 = vrcp.f32 %v3684_v54  ;;  %v3808_v54 = vadd.f32 %v9007_v20, %v8999_v0  ;;  %11860 = vst [vmem:[#allocation154_spill] sm:$0xff] %v9027_v39  ;;  %v9033_v32 = vpop.xlane.xlu1 %2690  ;;  %v3362_v23 = vmul.f32 1.442695, %v2995_v35  ;;  %v11869_v35 = vld [vmem:[#allocation150_spill] sm:$0xff]  ;;  %v11873_v20 = vld [vmem:[#allocation53_spill] sm:$0xff] }
 0x3f5   : > { %5978 = vpow2.f32 %v3230_v44  ;;  %3806 = vadd.xlane.f32.xlu1 %v3805_v46  ;;  %2699 = vmax.xlane.f32.xlu0 %v2698_v33  ;;  %v3724_v46 = vadd.f32 %v9015_v50, %v8997_v10  ;;  %v3226_v44 = vmul.f32 1.442695, %v2927_v59  ;;  %v11865_v59 = vld [vmem:[#allocation87_spill] sm:$0xff]  ;;  %v9045_v10 = vpop.f32.mrf.mxu1 }
 0x3f6   : > { %5980 = vpow2.f32 %v3356_v45  ;;  %v9031_v45 = vpop.eup %5962  ;;  %11867 = vst [vmem:[#allocation272_spill] sm:$0xff] %v9045_v10 }
 0x3f7   : > { %5982 = vpow2.f32 %v3358_v16  ;;  %v3687_v29 = vpop.xlane.xlu0 %3686  ;;  %11861 = vst [vmem:[#allocation155_spill] sm:$0xff] %v9031_v45  ;;  %v9035_v6 = vpop.eup %5964  ;;  %v2872_v16 = vmax.f32 %v9013_v53, %v9027_v39  ;;  %v11871_v39 = vld [vmem:[#allocation156_spill] sm:$0xff] }
 0x3f8   : > { %5984 = vrcp.f32 %v3687_v29  ;;  %11862 = vst [vmem:[#allocation269_spill] sm:$0xff] %v9035_v6  ;;  %v9039_v29 = vpop.f32.mrf.mxu0  ;;  %v9041_v58 = vpop.eup %5966  ;;  %v11872_v53 = vld [vmem:[#allocation52_spill] sm:$0xff]  ;;  %v2925_v22 = vsub.f32 %v11873_v20, %v11871_v39 }
 0x3f9   : > { %3809 = vadd.xlane.f32.xlu1 %v3808_v54  ;;  %3725 = vadd.xlane.f32.xlu0 %v3724_v46  ;;  %5986 = vpow2.f32 %v3224_v40  ;;  %11863 = vst [vmem:[#allocation270_spill] sm:$0xff] %v9039_v29  ;;  %11864 = vst [vmem:[#allocation271_spill] sm:$0xff] %v9041_v58  ;;  %v2695_v54 = vmax.f32 %v11866_v37, %v11865_v59  ;;  %v9047_v52 = vpop.eup %5968  ;;  %v11870_v46 = vld [vmem:[#allocation48_spill] sm:$0xff]  ;;  %v2924_v0 = vsub.f32 %v11872_v53, %v11871_v39  ;;  %v11877_v53 = vld [vmem:[#allocation175_spill] sm:$0xff]  ;;  %v9069_v20 = vpop.f32.mrf.mxu1 }
 0x3fa   : > { %11868 = vst [vmem:[#allocation273_spill] sm:$0xff] %v9047_v52  ;;  %v5971_v40 = vpop.eup %5970  ;;  %v2920_v50 = vsub.f32 %v11870_v46, %v11869_v35  ;;  %v9059_v37 = vpop.f32.mrf.mxu0  ;;  %v11876_v46 = vld [vmem:[#allocation177_spill] sm:$0xff]  ;;  %11879 = vst [vmem:[#allocation52_spill] sm:$0xff] %v9069_v20  ;;  %v3222_v4 = vmul.f32 1.442695, %v2925_v22 }
 0x3fb   : > { %v3690_v33 = vpop.xlane.xlu0 %3689  ;;  %11875 = vst [vmem:[#allocation48_spill] sm:$0xff] %v9059_v37  ;;  %v9062_v28 = vmul.f32 %v5971_v40, %v11876_v46  ;;  %v9065_v36 = vmul.f32 %v5971_v40, %v11877_v53  ;;  %v9113_v55 = vpop.f32.mrf.mxu1 }
 0x3fc   : > { %5988 = vrcp.f32 %v3690_v33 }
 0x3fd   : > { %5990 = vpow2.f32 %v3226_v44  ;;  %2873 = vmax.xlane.f32.xlu1 %v2872_v16  ;;  %2696 = vmax.xlane.f32.xlu0 %v2695_v54  ;;  %v5973_v33 = vpop.eup %5972  ;;  %v3811_v16 = vadd.f32 %v9041_v58, %v9035_v6  ;;  %v11881_v6 = vld [vmem:[#allocation40_spill] sm:$0xff]  ;;  %4437 = vst [vmem:[%s8755_s23 + $0x88] sm:$0xff] %v9062_v28  ;;  %4436 = vst [vmem:[%s8755_s23 + $0x80] sm:$0xff] %v9065_v36 }
 0x3fe   : > { %5992 = vpow2.f32 %v3360_v63  ;;  %v9055_v59 = vpop.xlane.xlu1 %2801  ;;  %v9067_v39 = vpop.eup %5974  ;;  %v3721_v63 = vadd.f32 %v9047_v52, %v9031_v45  ;;  %v9077_v58 = vmul.f32 %v5973_v33, %v11881_v6  ;;  %v11886_v6 = vld [vmem:[#allocation42_spill] sm:$0xff] }
 0x3ff   : > { %11874 = vst [vmem:[#allocation150_spill] sm:$0xff] %v9055_v59  ;;  %5994 = vpow2.f32 %v3362_v23  ;;  %v3693_v44 = vpop.xlane.xlu0 %3692  ;;  %11878 = vst [vmem:[#allocation156_spill] sm:$0xff] %v9067_v39  ;;  %v11880_v23 = vld [vmem:[#allocation179_spill] sm:$0xff]  ;;  %v3212_v59 = vmul.f32 1.442695, %v2920_v50 }
 0x400   : > { %5996 = vrcp.f32 %v3693_v44  ;;  %v9074_v54 = vmul.f32 %v5973_v33, %v11880_v23  ;;  %v11883_v44 = vld [vmem:[#allocation49_spill] sm:$0xff]  ;;  %4438 = vst [vmem:[%s8755_s23 + $0x90] sm:$0xff] %v9077_v58 }
 0x401   : > { %v5977_v46 = vpop.eup %5976  ;;  %3812 = vadd.xlane.f32.xlu1 %v3811_v16  ;;  %v2921_v53 = vsub.f32 %v11883_v44, %v11869_v35  ;;  %3722 = vadd.xlane.f32.xlu0 %v3721_v63  ;;  %v11885_v23 = vld [vmem:[#allocation181_spill] sm:$0xff]  ;;  %v11889_v35 = vld [vmem:[#allocation50_spill] sm:$0xff]  ;;  %v3220_v63 = vmul.f32 1.442695, %v2924_v0  ;;  %v2875_v44 = vmax.f32 %v9045_v10, %v9069_v20  ;;  %11895 = vst [vmem:[#allocation49_spill] sm:$0xff] %v9113_v55 }
 0x402   : > { %v9083_v40 = vpop.eup %5978  ;;  %v9087_v45 = vpop.xlane.xlu1 %2804  ;;  %v9090_v52 = vmul.f32 %v5977_v46, %v11885_v23  ;;  %v9093_v33 = vmul.f32 %v5977_v46, %v11886_v6  ;;  %4439 = vst [vmem:[%s8755_s23 + $0x98] sm:$0xff] %v9074_v54  ;;  %v2922_v50 = vsub.f32 %v11889_v35, %v11888_v41  ;;  %v11892_v46 = vld [vmem:[#allocation83_spill] sm:$0xff]  ;;  %v11893_v6 = vld [vmem:[#allocation81_spill] sm:$0xff]  ;;  %v11896_v35 = vld [vmem:[#allocation160_spill] sm:$0xff] }
 0x403   : > { %11882 = vst [vmem:[#allocation53_spill] sm:$0xff] %v9083_v40  ;;  %11884 = vst [vmem:[#allocation177_spill] sm:$0xff] %v9087_v45  ;;  %v9099_v16 = vpop.eup %5980  ;;  %v3696_v45 = vpop.xlane.xlu0 %3695  ;;  %v2692_v7 = vmax.f32 %v11893_v6, %v11892_v46  ;;  %v2998_v20 = vsub.f32 %v11896_v35, %v8855_v56  ;;  %v3214_v10 = vmul.f32 1.442695, %v2921_v53  ;;  %v11899_v41 = vld [vmem:[#allocation183_spill] sm:$0xff]  ;;  %v2999_v35 = vsub.f32 %v11900_v15, %v8855_v56 }
 0x404   : > { %11887 = vst [vmem:[#allocation175_spill] sm:$0xff] %v9099_v16  ;;  %v9105_v23 = vpop.f32.mrf.mxu0  ;;  %v9107_v30 = vpop.eup %5982  ;;  %4441 = vst [vmem:[%s8755_s23 + $0xa8] sm:$0xff] %v9090_v52  ;;  %5998 = vrcp.f32 %v3696_v45  ;;  %v3216_v38 = vmul.f32 1.442695, %v2922_v50  ;;  %v3718_v50 = vadd.f32 %v9083_v40, %v9067_v39  ;;  %v11908_v39 = vld [vmem:[#allocation69_spill] sm:$0xff] }
 0x405   : > { %11890 = vst [vmem:[#allocation179_spill] sm:$0xff] %v9105_v23  ;;  %11891 = vst [vmem:[#allocation40_spill] sm:$0xff] %v9107_v30  ;;  %v5985_v0 = vpop.eup %5984  ;;  %2876 = vmax.xlane.f32.xlu1 %v2875_v44  ;;  %6000 = vpow2.f32 %v3212_v59  ;;  %2693 = vmax.xlane.f32.xlu0 %v2692_v7  ;;  %v3814_v59 = vadd.f32 %v9107_v30, %v9099_v16  ;;  %v3218_v44 = vmul.f32 1.442695, %v2923_v24  ;;  %v3368_v56 = vmul.f32 1.442695, %v2998_v20 }
 0x406   : > { %4440 = vst [vmem:[%s8755_s23 + $0xa0] sm:$0xff] %v9093_v33  ;;  %v9121_v46 = vpop.xlane.xlu1 %2807  ;;  %v9124_v22 = vmul.f32 %v5985_v0, %v11898_v31  ;;  %v9127_v6 = vmul.f32 %v5985_v0, %v11899_v41  ;;  %6002 = vpow2.f32 %v3220_v63  ;;  %v9133_v7 = vpop.f32.mrf.mxu0  ;;  %v11903_v31 = vld [vmem:[#allocation164_spill] sm:$0xff]  ;;  %v11907_v41 = vld [vmem:[#allocation187_spill] sm:$0xff] }
 0x407   : > { %11897 = vst [vmem:[#allocation181_spill] sm:$0xff] %v9121_v46  ;;  %v3699_v45 = vpop.xlane.xlu0 %3698  ;;  %11901 = vst [vmem:[#allocation42_spill] sm:$0xff] %v9133_v7  ;;  %v9135_v53 = vpop.eup %5986  ;;  %6004 = vpow2.f32 %v3222_v4  ;;  %v3000_v46 = vsub.f32 %v11903_v31, %v8887_v60  ;;  %v2785_v4 = vmax.f32 %v9105_v23, %v9133_v7  ;;  %v11912_v7 = vld [vmem:[#allocation157_spill] sm:$0xff]  ;;  %v11913_v23 = vld [vmem:[#allocation158_spill] sm:$0xff] }
 0x408   : > { %11902 = vst [vmem:[#allocation153_spill] sm:$0xff] %v9135_v53  ;;  %v9139_v0 = vpop.f32.mrf.mxu1  ;;  %4443 = vst [vmem:[%s8755_s23 + $0xb8] sm:$0xff] %v9124_v22  ;;  %6006 = vrcp.f32 %v3699_v45  ;;  %v3370_v45 = vmul.f32 1.442695, %v2999_v35 }
 0x409   : > { %11904 = vst [vmem:[#allocation50_spill] sm:$0xff] %v9139_v0  ;;  %4442 = vst [vmem:[%s8755_s23 + $0xb0] sm:$0xff] %v9127_v6  ;;  %v5989_v15 = vpop.eup %5988  ;;  %3815 = vadd.xlane.f32.xlu1 %v3814_v59  ;;  %6008 = vpow2.f32 %v3214_v10  ;;  %3719 = vadd.xlane.f32.xlu0 %v3718_v50  ;;  %v2878_v10 = vmax.f32 %v9113_v55, %v9139_v0  ;;  %v3372_v16 = vmul.f32 1.442695, %v3000_v46  ;;  %v11915_v0 = vld [vmem:[#allocation72_spill] sm:$0xff] }
 0x40a   : > { %v9147_v63 = vpop.eup %5990  ;;  %v9149_v24 = vpop.xlane.xlu1 %2810  ;;  %v9154_v31 = vmul.f32 %v5989_v15, %v11907_v41  ;;  %v9157_v40 = vmul.f32 %v5989_v15, %v11908_v39  ;;  %6010 = vpow2.f32 %v3216_v38  ;;  %v11914_v39 = vld [vmem:[#allocation166_spill] sm:$0xff] }
 0x40b   : > { %11905 = vst [vmem:[#allocation51_spill] sm:$0xff] %v9147_v63  ;;  %11906 = vst [vmem:[#allocation160_spill] sm:$0xff] %v9149_v24  ;;  %v9159_v20 = vpop.eup %5992  ;;  %v2670_v59 = vpop.xlane.xlu0 %2669  ;;  %6012 = vpow2.f32 %v3218_v44  ;;  %v3001_v35 = vsub.f32 %v11914_v39, %v8887_v60  ;;  %v11917_v60 = vld [vmem:[#allocation167_spill] sm:$0xff] }
 0x40c   : > { %11909 = vst [vmem:[#allocation185_spill] sm:$0xff] %v9159_v20  ;;  %v9163_v50 = vpop.eup %5994  ;;  %v9165_v30 = vpop.f32.mrf.mxu1  ;;  %v2996_v41 = vsub.f32 %v11912_v7, %v2670_v59  ;;  %v2997_v24 = vsub.f32 %v11913_v23, %v2670_v59  ;;  %4445 = vst [vmem:[%s8755_s23 + $0xc8] sm:$0xff] %v9154_v31  ;;  %6014 = vpow2.f32 %v3368_v56  ;;  %v11916_v23 = vld [vmem:[#allocation80_spill] sm:$0xff]  ;;  %v3002_v39 = vsub.f32 %v11917_v60, %v8916_v5 }
 0x40d   : > { %11910 = vst [vmem:[#allocation183_spill] sm:$0xff] %v9163_v50  ;;  %11911 = vst [vmem:[#allocation161_spill] sm:$0xff] %v9165_v30  ;;  %v5997_v38 = vpop.eup %5996  ;;  %2879 = vmax.xlane.f32.xlu1 %v2878_v10  ;;  %2786 = vmax.xlane.f32.xlu0 %v2785_v4  ;;  %6016 = vpow2.f32 %v3370_v45  ;;  %v3817_v56 = vadd.f32 %v9163_v50, %v9159_v20  ;;  %v3374_v4 = vmul.f32 1.442695, %v3001_v35  ;;  %v11926_v50 = vld [vmem:[#allocation147_spill] sm:$0xff] }
 0x40e   : > { %4444 = vst [vmem:[%s8755_s23 + $0xc0] sm:$0xff] %v9157_v40  ;;  %v3364_v44 = vmul.f32 1.442695, %v2996_v41  ;;  %v3366_v46 = vmul.f32 1.442695, %v2997_v24  ;;  %v3750_v15 = vpop.xlane.xlu1 %3749  ;;  %v9176_v7 = vmul.f32 %v5997_v38, %v11915_v0  ;;  %v9179_v59 = vmul.f32 %v5997_v38, %v11916_v23  ;;  %v9185_v10 = vpop.f32.mrf.mxu1  ;;  %v11921_v38 = vld [vmem:[#allocation168_spill] sm:$0xff] }
 0x40f   : > { %v3738_v55 = vpop.xlane.xlu0 %3737  ;;  %6018 = vpow2.f32 %v3372_v16  ;;  %11918 = vst [vmem:[#allocation164_spill] sm:$0xff] %v9185_v10  ;;  %v3715_v24 = vadd.f32 %v9147_v63, %v9135_v53  ;;  %v2782_v45 = vmax.f32 %v9039_v29, %v9059_v37  ;;  %v3003_v23 = vsub.f32 %v11921_v38, %v8916_v5  ;;  %v11927_v37 = vld [vmem:[#allocation46_spill] sm:$0xff] }
 0x410   : > { %4447 = vst [vmem:[%s8755_s23 + $0xd8] sm:$0xff] %v9176_v7  ;;  %4446 = vst [vmem:[%s8755_s23 + $0xd0] sm:$0xff] %v9179_v59  ;;  %6020 = vpow2.f32 %v3364_v44  ;;  %v2881_v60 = vmax.f32 %v9165_v30, %v9185_v10  ;;  %v2918_v29 = vsub.f32 %v11927_v37, %v11926_v50  ;;  %v11932_v10 = vld [vmem:[#allocation77_spill] sm:$0xff] }
 0x411   : > { %3818 = vadd.xlane.f32.xlu1 %v3817_v56  ;;  %v5999_v0 = vpop.eup %5998  ;;  %6022 = vpow2.f32 %v3366_v46  ;;  %3716 = vadd.xlane.f32.xlu0 %v3715_v24  ;;  %v11922_v56 = vld [vmem:[#allocation75_spill] sm:$0xff]  ;;  %v3376_v46 = vmul.f32 1.442695, %v3002_v39  ;;  %v11924_v24 = vld [vmem:[#allocation84_spill] sm:$0xff]  ;;  %v3378_v39 = vmul.f32 1.442695, %v3003_v23 }
 0x412   : > { %v9195_v16 = vpop.xlane.xlu1 %2813  ;;  %v9197_v41 = vpop.eup %6000  ;;  %6024 = vrcp.f32 %v3750_v15  ;;  %v4193_v35 = vmul.f32 %v5999_v0, %v11922_v56  ;;  %v4192_v63 = vmul.f32 %v5999_v0, %v11924_v24  ;;  %v11928_v15 = vld [vmem:[#allocation47_spill] sm:$0xff]  ;;  %v11930_v0 = vld [vmem:[#allocation169_spill] sm:$0xff]  ;;  %v3208_v23 = vmul.f32 1.442695, %v2918_v29  ;;  %v11937_v29 = vld [vmem:[#allocation44_spill] sm:$0xff] }
 0x413   : > { %11919 = vst [vmem:[#allocation187_spill] sm:$0xff] %v9195_v16  ;;  %11920 = vst [vmem:[#allocation69_spill] sm:$0xff] %v9197_v41  ;;  %v3741_v44 = vpop.xlane.xlu0 %3740  ;;  %v9204_v53 = vpop.eup %6002  ;;  %6026 = vrcp.f32 %v3738_v55  ;;  %v2919_v38 = vsub.f32 %v11928_v15, %v11926_v50  ;;  %v3004_v24 = vsub.f32 %v11930_v0, %v8949_v47  ;;  %v11934_v50 = vld [vmem:[#allocation170_spill] sm:$0xff] }
 0x414   : > { %11923 = vst [vmem:[#allocation157_spill] sm:$0xff] %v9204_v53  ;;  %v9207_v20 = vpop.eup %6004  ;;  %6028 = vrcp.f32 %v3741_v44  ;;  %4449 = vst [vmem:[%s8755_s23 + $0xe8] sm:$0xff] %v4193_v35  ;;  %v11931_v44 = vld [vmem:[#allocation189_spill] sm:$0xff] }
 0x415   : > { %11925 = vst [vmem:[#allocation158_spill] sm:$0xff] %v9207_v20  ;;  %2882 = vmax.xlane.f32.xlu1 %v2881_v60  ;;  %v6007_v5 = vpop.eup %6006  ;;  %6030 = vpow2.f32 %v3374_v4  ;;  %2783 = vmax.xlane.f32.xlu0 %v2782_v45  ;;  %4448 = vst [vmem:[%s8755_s23 + $0xe0] sm:$0xff] %v4192_v63  ;;  %v3005_v4 = vsub.f32 %v11934_v50, %v8949_v47  ;;  %v3712_v45 = vadd.f32 %v9207_v20, %v9204_v53  ;;  %v11936_v50 = vld [vmem:[#allocation144_spill] sm:$0xff] }
 0x416   : > { %v3753_v56 = vpop.xlane.xlu1 %3752  ;;  %v9215_v55 = vpop.eup %6008  ;;  %v4195_v60 = vmul.f32 %v6007_v5, %v11931_v44  ;;  %v4194_v30 = vmul.f32 %v6007_v5, %v11932_v10  ;;  %6032 = vpow2.f32 %v3376_v46  ;;  %v3210_v44 = vmul.f32 1.442695, %v2919_v38  ;;  %v11935_v10 = vld [vmem:[#allocation171_spill] sm:$0xff] }
 0x417   : > { %11929 = vst [vmem:[#allocation166_spill] sm:$0xff] %v9215_v55  ;;  %v3744_v37 = vpop.xlane.xlu0 %3743  ;;  %v9221_v16 = vpop.eup %6010  ;;  %6034 = vrcp.f32 %v3753_v56  ;;  %v3006_v5 = vsub.f32 %v11935_v10, %v8980_v19  ;;  %v2779_v46 = vmax.f32 %v9005_v57, %v9025_v13  ;;  %v2916_v56 = vsub.f32 %v11937_v29, %v11936_v50  ;;  %v11938_v10 = vld [vmem:[#allocation172_spill] sm:$0xff] }
 0x418   : > { %11933 = vst [vmem:[#allocation72_spill] sm:$0xff] %v9221_v16  ;;  %v9227_v15 = vpop.eup %6012  ;;  %4451 = vst [vmem:[%s8755_s23 + $0xf8] sm:$0xff] %v4195_v60  ;;  %4676 = vmatprep.subr.mxu0 %v4195_v60  ;;  %6036 = vrcp.f32 %v3744_v37  ;;  %v3380_v60 = vmul.f32 1.442695, %v3004_v24  ;;  %v3382_v38 = vmul.f32 1.442695, %v3005_v4  ;;  %v3007_v11 = vsub.f32 %v11938_v10, %v8980_v19 }
 0x419   : > { %4450 = vst [vmem:[%s8755_s23 + $0xf0] sm:$0xff] %v4194_v30  ;;  %v9231_v0 = vpop.eup %6014  ;;  %3713 = vadd.xlane.f32.xlu0 %v3712_v45  ;;  %4677 = vmatpush1.xpose.msra.mxu0 %v4194_v30  ;;  %6038 = vpow2.f32 %v3378_v39  ;;  %v11939_v37 = vld [vmem:[#allocation45_spill] sm:$0xff]  ;;  %v3384_v39 = vmul.f32 1.442695, %v3006_v5  ;;  %v3204_v4 = vmul.f32 1.442695, %v2916_v56 }
 0x41a   : > { %v9237_v47 = vpop.xlane.xlu1 %2816  ;;  %4678 = vmatprep.subr.mxu0 %v4193_v35  ;;  %v9241_v20 = vpop.eup %6016  ;;  %v2917_v45 = vsub.f32 %v11939_v37, %v11936_v50  ;;  %v11940_v19 = vld [vmem:[#allocation173_spill] sm:$0xff]  ;;  %v3709_v50 = vadd.f32 %v9227_v15, %v9221_v16  ;;  %v3386_v29 = vmul.f32 1.442695, %v3007_v11  ;;  %v2776_v11 = vmax.f32 %v8963_v17, %v8989_v43  ;;  %v11948_v16 = vld [vmem:[#allocation94_spill] sm:$0xff] }
 0x41b   : > { %v3747_v53 = vpop.xlane.xlu0 %3746  ;;  %v11943_v37 = vld [vmem:[#allocation193_spill] sm:$0xff] }
 0x41c   : > { %6040 = vrcp.f32 %v3747_v53  ;;  %v9245_v13 = vpop.eup %6018  ;;  %v3008_v53 = vsub.f32 %v11940_v19, %v9011_v12  ;;  %v3206_v56 = vmul.f32 1.442695, %v2917_v45  ;;  %v11945_v45 = vld [vmem:[#allocation190_spill] sm:$0xff] }
 0x41d   : > { %6042 = vpow2.f32 %v3208_v23  ;;  %v9249_v30 = vpop.eup %6020  ;;  %2780 = vmax.xlane.f32.xlu0 %v2779_v46  ;;  %4679 = vmatpush1.xpose.msra.mxu0 %v4192_v63 }
 0x41e   : > { %6044 = vpow2.f32 %v3210_v44  ;;  %v3756_v35 = vpop.xlane.xlu1 %3755  ;;  %v9251_v24 = vpop.eup %6022  ;;  %4680 = vmatprep.subr.mxu0 %v9176_v7  ;;  %v11941_v44 = vld [vmem:[#allocation174_spill] sm:$0xff] }
 0x41f   : > { %6046 = vpow2.f32 %v3380_v60  ;;  %v6025_v23 = vpop.eup %6024  ;;  %v3009_v5 = vsub.f32 %v11941_v44, %v9011_v12  ;;  %v3820_v63 = vadd.f32 %v9251_v24, %v9249_v30  ;;  %v11942_v60 = vld [vmem:[#allocation195_spill] sm:$0xff] }
 0x420   : > { %6048 = vpow2.f32 %v3382_v38  ;;  %v6027_v46 = vpop.eup %6026  ;;  %v4229_v10 = vmul.f32 %v6025_v23, %v11942_v60  ;;  %v4228_v7 = vmul.f32 %v6025_v23, %v11943_v37  ;;  %v11944_v38 = vld [vmem:[#allocation192_spill] sm:$0xff]  ;;  %v3388_v23 = vmul.f32 1.442695, %v3008_v53 }
 0x421   : > { %6050 = vrcp.f32 %v3756_v35  ;;  %v6029_v19 = vpop.eup %6028  ;;  %3821 = vadd.xlane.f32.xlu1 %v3820_v63  ;;  %3710 = vadd.xlane.f32.xlu0 %v3709_v50  ;;  %v9269_v44 = vmul.f32 %v6027_v46, %v11944_v38  ;;  %v9272_v35 = vmul.f32 %v6027_v46, %v11945_v45  ;;  %v11947_v50 = vld [vmem:[#allocation197_spill] sm:$0xff]  ;;  %v3390_v46 = vmul.f32 1.442695, %v3009_v5  ;;  %v11949_v45 = vld [vmem:[#allocation178_spill] sm:$0xff]  ;;  %v11952_v5 = vld [vmem:[#allocation135_spill] sm:$0xff] }
 0x422   : > { %6052 = vpow2.f32 %v3384_v39  ;;  %v9266_v12 = vpop.xlane.xlu1 %2819  ;;  %v9274_v60 = vpop.eup %6030  ;;  %v11946_v39 = vld [vmem:[#allocation176_spill] sm:$0xff]  ;;  %4681 = vmatpush1.xpose.msra.mxu0 %v9179_v59  ;;  %v9280_v63 = vmul.f32 %v6029_v19, %v11947_v50  ;;  %v9283_v38 = vmul.f32 %v6029_v19, %v11948_v16  ;;  %4485 = vst [vmem:[%s8755_s23 + $0x208] sm:$0xff] %v4229_v10  ;;  %4484 = vst [vmem:[%s8755_s23 + $0x200] sm:$0xff] %v4228_v7 }
 0x423   : > { %v3010_v37 = vsub.f32 %v11946_v39, %v9033_v32  ;;  %6054 = vpow2.f32 %v3386_v29  ;;  %v3011_v53 = vsub.f32 %v11949_v45, %v9033_v32  ;;  %4682 = vmatprep.subr.mxu0 %v9154_v31  ;;  %v3823_v39 = vadd.f32 %v9241_v20, %v9231_v0  ;;  %4477 = vst [vmem:[%s8755_s23 + $0x1c8] sm:$0xff] %v9269_v44  ;;  %v9296_v59 = vpop.eup %6032  ;;  %v11951_v31 = vld [vmem:[#allocation134_spill] sm:$0xff] }
 0x424   : > { %4476 = vst [vmem:[%s8755_s23 + $0x1c0] sm:$0xff] %v9272_v35  ;;  %11950 = vst [vmem:[#allocation80_spill] sm:$0xff] %v9296_v59  ;;  %6056 = vpow2.f32 %v3204_v4  ;;  %v3706_v16 = vadd.f32 %v9215_v55, %v9197_v41  ;;  %v6035_v32 = vpop.eup %6034  ;;  %v3042_v29 = vsub.f32 %v11951_v31, %v8670_v49  ;;  %v3043_v10 = vsub.f32 %v11952_v5, %v8670_v49  ;;  %v11954_v41 = vld [vmem:[#allocation200_spill] sm:$0xff]  ;;  %v11957_v5 = vld [vmem:[#allocation198_spill] sm:$0xff] }
 0x425   : > { %4479 = vst [vmem:[%s8755_s23 + $0x1d8] sm:$0xff] %v9280_v63  ;;  %4478 = vst [vmem:[%s8755_s23 + $0x1d0] sm:$0xff] %v9283_v38  ;;  %6058 = vpow2.f32 %v3206_v56  ;;  %3824 = vadd.xlane.f32.xlu1 %v3823_v39  ;;  %2777 = vmax.xlane.f32.xlu0 %v2776_v11  ;;  %v3826_v4 = vadd.f32 %v9274_v60, %v9245_v13  ;;  %v6037_v19 = vpop.eup %6036  ;;  %v3392_v50 = vmul.f32 1.442695, %v3010_v37  ;;  %v11953_v56 = vld [vmem:[#allocation201_spill] sm:$0xff]  ;;  %v11956_v11 = vld [vmem:[#allocation203_spill] sm:$0xff] }
 0x426   : > { %v3759_v7 = vpop.xlane.xlu1 %3758  ;;  %6060 = vpow2.f32 %v3388_v23  ;;  %4683 = vmatpush1.xpose.msra.mxu0 %v9157_v40  ;;  %v4231_v45 = vmul.f32 %v6035_v32, %v11953_v56  ;;  %v4230_v31 = vmul.f32 %v6035_v32, %v11954_v41  ;;  %v9313_v55 = vpop.eup %6038  ;;  %v3394_v49 = vmul.f32 1.442695, %v3011_v53 }
 0x427   : > { %11955 = vst [vmem:[#allocation167_spill] sm:$0xff] %v9313_v55  ;;  %6062 = vpow2.f32 %v3390_v46  ;;  %4684 = vmatprep.subr.mxu0 %v9124_v22  ;;  %v9317_v39 = vmul.f32 %v6037_v19, %v11956_v11  ;;  %v9320_v23 = vmul.f32 %v6037_v19, %v11957_v5  ;;  %v11959_v46 = vld [vmem:[#allocation206_spill] sm:$0xff]  ;;  %v11960_v22 = vld [vmem:[#allocation204_spill] sm:$0xff]  ;;  %v3456_v19 = vmul.f32 1.442695, %v3042_v29  ;;  %v11964_v11 = vld [vmem:[#allocation139_spill] sm:$0xff] }
 0x428   : > { %6064 = vrcp.f32 %v3759_v7  ;;  %4487 = vst [vmem:[%s8755_s23 + $0x218] sm:$0xff] %v4231_v45  ;;  %4486 = vst [vmem:[%s8755_s23 + $0x210] sm:$0xff] %v4230_v31  ;;  %v2773_v56 = vmax.f32 %v8923_v21, %v8945_v18  ;;  %v3458_v31 = vmul.f32 1.442695, %v3043_v10  ;;  %v2983_v5 = vsub.f32 %v11964_v11, %v8696_v14 }
 0x429   : > { %v6041_v37 = vpop.eup %6040  ;;  %3827 = vadd.xlane.f32.xlu1 %v3826_v4  ;;  %3707 = vadd.xlane.f32.xlu0 %v3706_v16  ;;  %4481 = vst [vmem:[%s8755_s23 + $0x1e8] sm:$0xff] %v9317_v39  ;;  %4480 = vst [vmem:[%s8755_s23 + $0x1e0] sm:$0xff] %v9320_v23  ;;  %v11962_v4 = vld [vmem:[#allocation138_spill] sm:$0xff]  ;;  %6066 = vpow2.f32 %v3392_v50  ;;  %v3829_v29 = vadd.f32 %v9313_v55, %v9296_v59  ;;  %v11970_v59 = vld [vmem:[#allocation208_spill] sm:$0xff] }
 0x42a   : > { %v9324_v40 = vpop.eup %6042  ;;  %v9326_v41 = vpop.xlane.xlu1 %2822  ;;  %v9329_v53 = vmul.f32 %v6041_v37, %v11959_v46  ;;  %v9332_v32 = vmul.f32 %v6041_v37, %v11960_v22  ;;  %v2982_v16 = vsub.f32 %v11962_v4, %v8696_v14  ;;  %4685 = vmatpush1.xpose.msra.mxu0 %v9127_v6  ;;  %6068 = vpow2.f32 %v3394_v49  ;;  %v11966_v6 = vld [vmem:[#allocation229_spill] sm:$0xff]  ;;  %v11967_v46 = vld [vmem:[#allocation132_spill] sm:$0xff]  ;;  %v11969_v4 = vld [vmem:[#allocation210_spill] sm:$0xff] }
 0x42b   : > { %11958 = vst [vmem:[#allocation168_spill] sm:$0xff] %v9324_v40  ;;  %v9338_v7 = vpop.eup %6044  ;;  %4686 = vmatprep.subr.mxu0 %v9090_v52  ;;  %v3040_v22 = vsub.f32 %v11967_v46, %v11966_v6  ;;  %6070 = vpow2.f32 %v3456_v19  ;;  %v11971_v46 = vld [vmem:[#allocation133_spill] sm:$0xff] }
 0x42c   : > { %11961 = vst [vmem:[#allocation75_spill] sm:$0xff] %v9338_v7  ;;  %v9345_v45 = vpop.eup %6046  ;;  %4483 = vst [vmem:[%s8755_s23 + $0x1f8] sm:$0xff] %v9329_v53  ;;  %v3703_v52 = vadd.f32 %v9338_v7, %v9324_v40  ;;  %v3336_v49 = vmul.f32 1.442695, %v2982_v16  ;;  %6072 = vpow2.f32 %v3458_v31  ;;  %v11975_v31 = vld [vmem:[#allocation116_spill] sm:$0xff] }
 0x42d   : > { %11963 = vst [vmem:[#allocation84_spill] sm:$0xff] %v9345_v45  ;;  %4482 = vst [vmem:[%s8755_s23 + $0x1f0] sm:$0xff] %v9332_v32  ;;  %v9356_v50 = vpop.eup %6048  ;;  %3830 = vadd.xlane.f32.xlu1 %v3829_v29  ;;  %2774 = vmax.xlane.f32.xlu0 %v2773_v56  ;;  %v3041_v29 = vsub.f32 %v11971_v46, %v11966_v6  ;;  %v3338_v56 = vmul.f32 1.442695, %v2983_v5  ;;  %v3452_v16 = vmul.f32 1.442695, %v3040_v22 }
 0x42e   : > { %11965 = vst [vmem:[#allocation147_spill] sm:$0xff] %v9356_v50  ;;  %v6051_v37 = vpop.eup %6050  ;;  %v3762_v14 = vpop.xlane.xlu1 %3761  ;;  %4687 = vmatpush1.xpose.msra.mxu0 %v9093_v33  ;;  %v3832_v40 = vadd.f32 %v9356_v50, %v9345_v45  ;;  %v11976_v5 = vld [vmem:[#allocation136_spill] sm:$0xff]  ;;  %v6542_v45 = vld [vmem:[%s8755_s23 + $0x78] sm:$0xff] }
 0x42f   : > { %v9362_v10 = vpop.eup %6052  ;;  %v4233_v11 = vmul.f32 %v6051_v37, %v11969_v4  ;;  %v4232_v55 = vmul.f32 %v6051_v37, %v11970_v59  ;;  %4688 = vmatprep.subr.mxu0 %v9074_v54  ;;  %6074 = vrcp.f32 %v3762_v14  ;;  %v2980_v54 = vsub.f32 %v11976_v5, %v11975_v31  ;;  %v11980_v4 = vld [vmem:[#allocation110_spill] sm:$0xff]  ;;  %v12091_v50 = vld [vmem:[#allocation256_spill] sm:$0xff] }
 0x430   : > { %11968 = vst [vmem:[#allocation46_spill] sm:$0xff] %v9362_v10  ;;  %v9372_v7 = vpop.eup %6054  ;;  %6076 = vpow2.f32 %v3336_v49  ;;  %v2770_v37 = vmax.f32 %v8881_v48, %v8906_v51 }
 0x431   : > { %11972 = vst [vmem:[#allocation47_spill] sm:$0xff] %v9372_v7  ;;  %4489 = vst [vmem:[%s8755_s23 + $0x228] sm:$0xff] %v4233_v11  ;;  %v9376_v33 = vpop.eup %6056  ;;  %3833 = vadd.xlane.f32.xlu1 %v3832_v40  ;;  %3704 = vadd.xlane.f32.xlu0 %v3703_v52  ;;  %v11978_v40 = vld [vmem:[#allocation137_spill] sm:$0xff]  ;;  %6078 = vpow2.f32 %v3338_v56  ;;  %v3835_v22 = vadd.f32 %v9372_v7, %v9362_v10  ;;  %v11981_v11 = vld [vmem:[#allocation130_spill] sm:$0xff] }
 0x432   : > { %4488 = vst [vmem:[%s8755_s23 + $0x220] sm:$0xff] %v4232_v55  ;;  %11973 = vst [vmem:[#allocation169_spill] sm:$0xff] %v9376_v33  ;;  %v9378_v59 = vpop.xlane.xlu1 %2825  ;;  %v9380_v19 = vpop.eup %6058  ;;  %4689 = vmatpush1.xpose.msra.mxu0 %v9077_v58  ;;  %v3454_v55 = vmul.f32 1.442695, %v3041_v29  ;;  %v2981_v14 = vsub.f32 %v11978_v40, %v11975_v31  ;;  %v3038_v46 = vsub.f32 %v11981_v11, %v11980_v4  ;;  %v11982_v58 = vld [vmem:[#allocation131_spill] sm:$0xff]  ;;  %6080 = vpow2.f32 %v3452_v16  ;;  %v11983_v56 = vld [vmem:[#allocation216_spill] sm:$0xff] }
 0x433   : > { %11974 = vst [vmem:[#allocation189_spill] sm:$0xff] %v9380_v19  ;;  %v9387_v6 = vpop.eup %6060  ;;  %4690 = vmatprep.subr.mxu0 %v9062_v28  ;;  %v3039_v5 = vsub.f32 %v11982_v58, %v11980_v4  ;;  %v3332_v28 = vmul.f32 1.442695, %v2980_v54  ;;  %v11984_v40 = vld [vmem:[#allocation214_spill] sm:$0xff]  ;;  %v3700_v16 = vadd.f32 %v9380_v19, %v9376_v33  ;;  %v6544_v4 = vld [vmem:[%s8755_s23 + $0x68] sm:$0xff]  ;;  %v6554_v19 = vld [vmem:[%s8755_s23 + $0x18] sm:$0xff] }
 0x434   : > { %11977 = vst [vmem:[#allocation77_spill] sm:$0xff] %v9387_v6  ;;  %v9394_v52 = vpop.eup %6062  ;;  %6082 = vpow2.f32 %v3454_v55  ;;  %v3334_v11 = vmul.f32 1.442695, %v2981_v14  ;;  %v12010_v33 = vld [vmem:[#allocation202_spill] sm:$0xff] }
 0x435   : > { %11979 = vst [vmem:[#allocation170_spill] sm:$0xff] %v9394_v52  ;;  %v6065_v49 = vpop.eup %6064  ;;  %3836 = vadd.xlane.f32.xlu1 %v3835_v22  ;;  %2771 = vmax.xlane.f32.xlu0 %v2770_v37  ;;  %v3838_v37 = vadd.f32 %v9394_v52, %v9387_v6  ;;  %v3450_v14 = vmul.f32 1.442695, %v3039_v5  ;;  %v11989_v5 = vld [vmem:[#allocation221_spill] sm:$0xff] }
 0x436   : > { %v3765_v29 = vpop.xlane.xlu1 %3764  ;;  %4691 = vmatpush1.xpose.msra.mxu0 %v9065_v36  ;;  %v4235_v31 = vmul.f32 %v6065_v49, %v11983_v56  ;;  %v4234_v10 = vmul.f32 %v6065_v49, %v11984_v40  ;;  %v9403_v7 = vpop.eup %6066  ;;  %v3448_v36 = vmul.f32 1.442695, %v3038_v46  ;;  %v2767_v49 = vmax.f32 %v8841_v27, %v8863_v61 }
 0x437   : > { %11985 = vst [vmem:[#allocation171_spill] sm:$0xff] %v9403_v7  ;;  %4692 = vmatprep.subr.mxu0 %v6542_v45  ;;  %v9410_v54 = vpop.eup %6068  ;;  %6084 = vrcp.f32 %v3765_v29  ;;  %v6543_v45 = vld [vmem:[%s8755_s23 + $0x70] sm:$0xff] }
 0x438   : > { %11986 = vst [vmem:[#allocation144_spill] sm:$0xff] %v9410_v54  ;;  %4491 = vst [vmem:[%s8755_s23 + $0x238] sm:$0xff] %v4235_v31  ;;  %6086 = vpow2.f32 %v3332_v28  ;;  %v9417_v22 = vpop.eup %6070  ;;  %v11990_v29 = vld [vmem:[#allocation128_spill] sm:$0xff]  ;;  %v11991_v31 = vld [vmem:[#allocation129_spill] sm:$0xff] }
 0x439   : > { %4490 = vst [vmem:[%s8755_s23 + $0x230] sm:$0xff] %v4234_v10  ;;  %3839 = vadd.xlane.f32.xlu1 %v3838_v37  ;;  %3701 = vadd.xlane.f32.xlu0 %v3700_v16  ;;  %11987 = vst [vmem:[#allocation44_spill] sm:$0xff] %v9417_v22  ;;  %6088 = vpow2.f32 %v3334_v11  ;;  %v3841_v10 = vadd.f32 %v9410_v54, %v9403_v7  ;;  %v9424_v46 = vpop.eup %6072  ;;  %v3036_v28 = vsub.f32 %v11990_v29, %v11989_v5  ;;  %v6545_v11 = vld [vmem:[%s8755_s23 + $0x60] sm:$0xff]  ;;  %v11992_v37 = vld [vmem:[#allocation223_spill] sm:$0xff] }
 0x43a   : > { %v9414_v55 = vpop.xlane.xlu1 %2828  ;;  %4693 = vmatpush1.xpose.msra.mxu0 %v6543_v45  ;;  %11988 = vst [vmem:[#allocation172_spill] sm:$0xff] %v9424_v46  ;;  %6090 = vpow2.f32 %v3448_v36  ;;  %v3037_v40 = vsub.f32 %v11991_v31, %v11989_v5  ;;  %v11993_v45 = vld [vmem:[#allocation220_spill] sm:$0xff]  ;;  %v2869_v36 = vmax.f32 %v8970_v42, %v8993_v34  ;;  %v12009_v54 = vld [vmem:[#allocation117_spill] sm:$0xff] }
 0x43b   : > { %4694 = vmatprep.subr.mxu0 %v6544_v4  ;;  %6092 = vpow2.f32 %v3450_v14  ;;  %v3444_v14 = vmul.f32 1.442695, %v3036_v28  ;;  %v6547_v31 = vld [vmem:[%s8755_s23 + $0x50] sm:$0xff] }
 0x43c   : > { %v6075_v58 = vpop.eup %6074  ;;  %v3446_v29 = vmul.f32 1.442695, %v3037_v40 }
 0x43d   : > { %3842 = vadd.xlane.f32.xlu1 %v3841_v10  ;;  %2768 = vmax.xlane.f32.xlu0 %v2767_v49  ;;  %v4237_v16 = vmul.f32 %v6075_v58, %v11992_v37  ;;  %v4236_v4 = vmul.f32 %v6075_v58, %v11993_v45  ;;  %v9433_v7 = vpop.eup %6076  ;;  %v6546_v10 = vld [vmem:[%s8755_s23 + $0x58] sm:$0xff]  ;;  %v3889_v49 = vadd.f32 %v9424_v46, %v9417_v22  ;;  %v6548_v45 = vld [vmem:[%s8755_s23 + $0x48] sm:$0xff] }
 0x43e   : > { %v3768_v56 = vpop.xlane.xlu1 %3767  ;;  %4695 = vmatpush1.xpose.msra.mxu0 %v6545_v11  ;;  %11994 = vst [vmem:[#allocation45_spill] sm:$0xff] %v9433_v7  ;;  %v9440_v5 = vpop.eup %6078  ;;  %v2764_v37 = vmax.f32 %v8803_v8, %v8820_v26  ;;  %v2761_v46 = vmax.f32 %v8765_v25, %v8784_v9  ;;  %v12015_v25 = vld [vmem:[#allocation96_spill] sm:$0xff] }
 0x43f   : > { %4696 = vmatprep.subr.mxu0 %v6546_v10  ;;  %11995 = vst [vmem:[#allocation173_spill] sm:$0xff] %v9440_v5  ;;  %6094 = vrcp.f32 %v3768_v56  ;;  %4493 = vst [vmem:[%s8755_s23 + $0x248] sm:$0xff] %v4237_v16  ;;  %v9447_v11 = vpop.eup %6080  ;;  %v3799_v56 = vadd.f32 %v9440_v5, %v9433_v7  ;;  %v6549_v10 = vld [vmem:[%s8755_s23 + $0x40] sm:$0xff] }
 0x440   : > { %4492 = vst [vmem:[%s8755_s23 + $0x240] sm:$0xff] %v4236_v4  ;;  %11996 = vst [vmem:[#allocation174_spill] sm:$0xff] %v9447_v11  ;;  %6096 = vpow2.f32 %v3444_v14  ;;  %v11998_v4 = vld [vmem:[#allocation125_spill] sm:$0xff]  ;;  %v12002_v14 = vld [vmem:[#allocation127_spill] sm:$0xff] }
 0x441   : > { %2870 = vmax.xlane.f32.xlu1 %v2869_v36  ;;  %3890 = vadd.xlane.f32.xlu0 %v3889_v49  ;;  %v9454_v28 = vpop.eup %6082  ;;  %6098 = vpow2.f32 %v3446_v29  ;;  %v3034_v36 = vsub.f32 %v11998_v4, %v8799_v2  ;;  %v11999_v49 = vld [vmem:[#allocation231_spill] sm:$0xff]  ;;  %v2866_v29 = vmax.f32 %v8930_v62, %v8951_v1 }
 0x442   : > { %v9444_v58 = vpop.xlane.xlu1 %2831  ;;  %4697 = vmatpush1.xpose.msra.mxu0 %v6547_v31  ;;  %11997 = vst [vmem:[#allocation195_spill] sm:$0xff] %v9454_v28  ;;  %v3886_v4 = vadd.f32 %v9454_v28, %v9447_v11  ;;  %v12007_v28 = vld [vmem:[#allocation123_spill] sm:$0xff] }
 0x443   : > { %4698 = vmatprep.subr.mxu0 %v6548_v45  ;;  %v12000_v45 = vld [vmem:[#allocation228_spill] sm:$0xff]  ;;  %v3033_v22 = vsub.f32 %v12007_v28, %v8837_v3  ;;  %v6553_v28 = vld [vmem:[%s8755_s23 + $0x20] sm:$0xff]  ;;  %v12083_v1 = vld [vmem:[#allocation255_spill] sm:$0xff] }
 0x444   : > { %v6085_v16 = vpop.eup %6084 }
 0x445   : > { %3800 = vadd.xlane.f32.xlu1 %v3799_v56  ;;  %2765 = vmax.xlane.f32.xlu0 %v2764_v37  ;;  %v9460_v31 = vmul.f32 %v6085_v16, %v11999_v49  ;;  %v9463_v7 = vmul.f32 %v6085_v16, %v12000_v45  ;;  %v9465_v5 = vpop.eup %6086  ;;  %v3035_v37 = vsub.f32 %v12002_v14, %v8799_v2  ;;  %v6550_v56 = vld [vmem:[%s8755_s23 + $0x38] sm:$0xff]  ;;  %v3440_v14 = vmul.f32 1.442695, %v3034_v36 }
 0x446   : > { %v3771_v40 = vpop.xlane.xlu1 %3770  ;;  %4699 = vmatpush1.xpose.msra.mxu0 %v6549_v10  ;;  %12001 = vst [vmem:[#allocation193_spill] sm:$0xff] %v9465_v5  ;;  %v9474_v10 = vpop.eup %6088  ;;  %v12004_v16 = vld [vmem:[#allocation121_spill] sm:$0xff] }
 0x447   : > { %4700 = vmatprep.subr.mxu0 %v6550_v56  ;;  %12003 = vst [vmem:[#allocation192_spill] sm:$0xff] %v9474_v10  ;;  %6100 = vrcp.f32 %v3771_v40  ;;  %4495 = vst [vmem:[%s8755_s23 + $0x258] sm:$0xff] %v9460_v31  ;;  %v3032_v49 = vsub.f32 %v12004_v16, %v8837_v3  ;;  %v9484_v45 = vpop.eup %6090  ;;  %v6551_v56 = vld [vmem:[%s8755_s23 + $0x30] sm:$0xff]  ;;  %v3442_v40 = vmul.f32 1.442695, %v3035_v37  ;;  %v6552_v16 = vld [vmem:[%s8755_s23 + $0x28] sm:$0xff]  ;;  %v3096_v37 = vsub.f32 %v12010_v33, %v9266_v12 }
 0x448   : > { %4494 = vst [vmem:[%s8755_s23 + $0x250] sm:$0xff] %v9463_v7  ;;  %12005 = vst [vmem:[#allocation190_spill] sm:$0xff] %v9484_v45  ;;  %v9487_v11 = vpop.eup %6092  ;;  %6102 = vpow2.f32 %v3440_v14  ;;  %v12013_v33 = vld [vmem:[#allocation145_spill] sm:$0xff]  ;;  %v3097_v14 = vsub.f32 %v12015_v25, %v9266_v12 }
 0x449   : > { %2867 = vmax.xlane.f32.xlu1 %v2866_v29  ;;  %3887 = vadd.xlane.f32.xlu0 %v3886_v4  ;;  %12006 = vst [vmem:[#allocation176_spill] sm:$0xff] %v9487_v11  ;;  %v3796_v29 = vadd.f32 %v9474_v10, %v9465_v5  ;;  %v12008_v4 = vld [vmem:[#allocation143_spill] sm:$0xff]  ;;  %6104 = vpow2.f32 %v3442_v40 }
 0x44a   : > { %v9482_v2 = vpop.xlane.xlu1 %2834  ;;  %4701 = vmatpush1.xpose.msra.mxu0 %v6551_v56  ;;  %v3030_v36 = vsub.f32 %v12009_v54, %v12008_v4  ;;  %v3436_v56 = vmul.f32 1.442695, %v3032_v49  ;;  %v12011_v5 = vld [vmem:[#allocation235_spill] sm:$0xff]  ;;  %v12012_v54 = vld [vmem:[#allocation234_spill] sm:$0xff]  ;;  %v3438_v49 = vmul.f32 1.442695, %v3033_v22 }
 0x44b   : > { %4702 = vmatprep.subr.mxu0 %v6552_v16  ;;  %v3883_v16 = vadd.f32 %v9487_v11, %v9484_v45  ;;  %v12017_v22 = vld [vmem:[#allocation205_spill] sm:$0xff]  ;;  %v12020_v40 = vld [vmem:[#allocation239_spill] sm:$0xff] }
 0x44c   : > { %v6095_v6 = vpop.eup %6094  ;;  %v3432_v11 = vmul.f32 1.442695, %v3030_v36  ;;  %v6555_v36 = vld [vmem:[%s8755_s23 + $0x10] sm:$0xff] }
 0x44d   : > { %3797 = vadd.xlane.f32.xlu1 %v3796_v29  ;;  %2762 = vmax.xlane.f32.xlu0 %v2761_v46  ;;  %v9504_v10 = vmul.f32 %v6095_v6, %v12011_v5  ;;  %v9507_v9 = vmul.f32 %v6095_v6, %v12012_v54  ;;  %v12014_v29 = vld [vmem:[#allocation263_spill] sm:$0xff]  ;;  %v3564_v6 = vmul.f32 1.442695, %v3096_v37  ;;  %v3098_v5 = vsub.f32 %v12017_v22, %v9326_v41  ;;  %v9522_v12 = vpop.eup %6096  ;;  %v12023_v54 = vld [vmem:[#allocation62_spill] sm:$0xff] }
 0x44e   : > { %v3774_v3 = vpop.xlane.xlu1 %3773  ;;  %4703 = vmatpush1.xpose.msra.mxu0 %v6553_v28  ;;  %v2863_v46 = vmax.f32 %v12014_v29, %v12013_v33  ;;  %v12016_v28 = vld [vmem:[#allocation119_spill] sm:$0xff]  ;;  %12018 = vst [vmem:[#allocation197_spill] sm:$0xff] %v9522_v12  ;;  %v12025_v29 = vld [vmem:[#allocation60_spill] sm:$0xff] }
 0x44f   : > { %4704 = vmatprep.subr.mxu0 %v6554_v19  ;;  %v3031_v45 = vsub.f32 %v12016_v28, %v12008_v4  ;;  %6106 = vrcp.f32 %v3774_v3  ;;  %4497 = vst [vmem:[%s8755_s23 + $0x268] sm:$0xff] %v9504_v10  ;;  %4496 = vst [vmem:[%s8755_s23 + $0x260] sm:$0xff] %v9507_v9  ;;  %v12019_v19 = vld [vmem:[#allocation242_spill] sm:$0xff]  ;;  %v9527_v3 = vpop.eup %6098  ;;  %v3566_v28 = vmul.f32 1.442695, %v3097_v14  ;;  %v6556_v22 = vld [vmem:[%s8755_s23 + $0x8] sm:$0xff] }
 0x450   : > { %6108 = vpow2.f32 %v3436_v56  ;;  %v2758_v4 = vmax.f32 %v12020_v40, %v12019_v19  ;;  %12021 = vst [vmem:[#allocation94_spill] sm:$0xff] %v9527_v3  ;;  %v12022_v56 = vld [vmem:[#allocation63_spill] sm:$0xff]  ;;  %v12026_v19 = vld [vmem:[#allocation113_spill] sm:$0xff] }
 0x451   : > { %2864 = vmax.xlane.f32.xlu1 %v2863_v46  ;;  %3884 = vadd.xlane.f32.xlu0 %v3883_v16  ;;  %v2860_v37 = vmax.f32 %v12023_v54, %v12022_v56  ;;  %v12024_v46 = vld [vmem:[#allocation207_spill] sm:$0xff]  ;;  %v3434_v33 = vmul.f32 1.442695, %v3031_v45  ;;  %v12028_v45 = vld [vmem:[#allocation237_spill] sm:$0xff] }
 0x452   : > { %v3777_v25 = vpop.xlane.xlu1 %3776  ;;  %4705 = vmatpush1.xpose.msra.mxu0 %v6555_v36  ;;  %v3099_v16 = vsub.f32 %v12024_v46, %v9326_v41  ;;  %v3568_v36 = vmul.f32 1.442695, %v3098_v5  ;;  %v6557_v41 = vld [vmem:[%s8755_s23] sm:$0xff]  ;;  %v12030_v5 = vld [vmem:[#allocation65_spill] sm:$0xff] }
 0x453   : > { %6110 = vrcp.f32 %v3777_v25  ;;  %4706 = vmatprep.subr.mxu0 %v6556_v22  ;;  %v3028_v25 = vsub.f32 %v12026_v19, %v12025_v29  ;;  %v12029_v19 = vld [vmem:[#allocation124_spill] sm:$0xff]  ;;  %v12031_v22 = vld [vmem:[#allocation253_spill] sm:$0xff] }
 0x454   : > { %6112 = vpow2.f32 %v3438_v49  ;;  %v6101_v40 = vpop.eup %6100  ;;  %v12027_v49 = vld [vmem:[#allocation211_spill] sm:$0xff] }
 0x455   : > { %6114 = vpow2.f32 %v3432_v11  ;;  %v3100_v52 = vsub.f32 %v12027_v49, %v9378_v59  ;;  %2861 = vmax.xlane.f32.xlu1 %v2860_v37  ;;  %2759 = vmax.xlane.f32.xlu0 %v2758_v4  ;;  %v3880_v11 = vadd.f32 %v9527_v3, %v9522_v12  ;;  %v9542_v46 = vmul.f32 %v6101_v40, %v12028_v45  ;;  %v12032_v37 = vld [vmem:[#allocation100_spill] sm:$0xff]  ;;  %v12034_v45 = vld [vmem:[#allocation213_spill] sm:$0xff] }
 0x456   : > { %6116 = vpow2.f32 %v3564_v6  ;;  %v3780_v14 = vpop.xlane.xlu1 %3779  ;;  %4707 = vmatpush1.xpose.msra.mxu0 %v6557_v41  ;;  %v9545_v6 = vmul.f32 %v6101_v40, %v12029_v19  ;;  %v2857_v49 = vmax.f32 %v12031_v22, %v12030_v5  ;;  %v3570_v4 = vmul.f32 1.442695, %v3099_v16  ;;  %v12033_v41 = vld [vmem:[#allocation212_spill] sm:$0xff]  ;;  %v12038_v19 = vld [vmem:[#allocation126_spill] sm:$0xff] }
 0x457   : > { %6118 = vrcp.f32 %v3780_v14  ;;  %v3101_v56 = vsub.f32 %v12032_v37, %v9378_v59  ;;  %4708 = vmatprep.subr.mxu0 %v9329_v53  ;;  %v3428_v14 = vmul.f32 1.442695, %v3028_v25  ;;  %v3102_v12 = vsub.f32 %v12033_v41, %v9414_v55  ;;  %4499 = vst [vmem:[%s8755_s23 + $0x278] sm:$0xff] %v9542_v46  ;;  %v9561_v53 = vpop.eup %6102  ;;  %v12036_v59 = vld [vmem:[#allocation67_spill] sm:$0xff]  ;;  %v12039_v37 = vld [vmem:[#allocation120_spill] sm:$0xff] }
 0x458   : > { %6120 = vpow2.f32 %v3566_v28  ;;  %4498 = vst [vmem:[%s8755_s23 + $0x270] sm:$0xff] %v9545_v6  ;;  %v3572_v40 = vmul.f32 1.442695, %v3100_v52  ;;  %v3103_v28 = vsub.f32 %v12034_v45, %v9414_v55  ;;  %12035 = vst [vmem:[#allocation178_spill] sm:$0xff] %v9561_v53  ;;  %v2755_v41 = vmax.f32 %v12039_v37, %v12038_v19  ;;  %v9568_v52 = vpop.eup %6104  ;;  %v12041_v55 = vld [vmem:[#allocation115_spill] sm:$0xff] }
 0x459   : > { %6122 = vpow2.f32 %v3434_v33  ;;  %2858 = vmax.xlane.f32.xlu1 %v2857_v49  ;;  %3881 = vadd.xlane.f32.xlu0 %v3880_v11  ;;  %v12037_v33 = vld [vmem:[#allocation248_spill] sm:$0xff]  ;;  %12040 = vst [vmem:[#allocation134_spill] sm:$0xff] %v9568_v52  ;;  %v3029_v11 = vsub.f32 %v12041_v55, %v12025_v29  ;;  %v3576_v49 = vmul.f32 1.442695, %v3102_v12  ;;  %v12045_v12 = vld [vmem:[#allocation241_spill] sm:$0xff] }
 0x45a   : > { %6124 = vpow2.f32 %v3568_v36  ;;  %v3783_v16 = vpop.xlane.xlu1 %3782  ;;  %4709 = vmatpush2.xpose.msra.mxu0 %v9332_v32  ;;  %v2854_v25 = vmax.f32 %v12037_v33, %v12036_v59  ;;  %v3574_v36 = vmul.f32 1.442695, %v3101_v56  ;;  %v3578_v45 = vmul.f32 1.442695, %v3103_v28  ;;  %v12047_v28 = vld [vmem:[#allocation240_spill] sm:$0xff]  ;;  %v12064_v33 = vld [vmem:[#allocation249_spill] sm:$0xff] }
 0x45b   : > { %6126 = vrcp.f32 %v3783_v16  ;;  %4710 = vmatprep.subr.mxu0 %v9317_v39  ;;  %v12042_v16 = vld [vmem:[#allocation217_spill] sm:$0xff]  ;;  %v12044_v39 = vld [vmem:[#allocation243_spill] sm:$0xff] }
 0x45c   : > { %6128 = vpow2.f32 %v3570_v4  ;;  %v6107_v32 = vpop.eup %6106  ;;  %v3104_v3 = vsub.f32 %v12042_v16, %v9444_v58  ;;  %v3430_v16 = vmul.f32 1.442695, %v3029_v11 }
 0x45d   : > { %6130 = vpow2.f32 %v3428_v14  ;;  %2855 = vmax.xlane.f32.xlu1 %v2854_v25  ;;  %2756 = vmax.xlane.f32.xlu0 %v2755_v41  ;;  %v9574_v4 = vpop.eup %6108  ;;  %v9578_v29 = vmul.f32 %v6107_v32, %v12044_v39  ;;  %v9581_v56 = vmul.f32 %v6107_v32, %v12045_v12  ;;  %v12048_v25 = vld [vmem:[#allocation104_spill] sm:$0xff]  ;;  %v12050_v39 = vld [vmem:[#allocation247_spill] sm:$0xff]  ;;  %v12051_v12 = vld [vmem:[#allocation245_spill] sm:$0xff] }
 0x45e   : > { %6132 = vpow2.f32 %v3572_v40  ;;  %v3786_v19 = vpop.xlane.xlu1 %3785  ;;  %12043 = vst [vmem:[#allocation135_spill] sm:$0xff] %v9574_v4  ;;  %4711 = vmatpush2.xpose.msra.mxu0 %v9320_v23  ;;  %v12046_v40 = vld [vmem:[#allocation244_spill] sm:$0xff]  ;;  %v3105_v41 = vsub.f32 %v12048_v25, %v9444_v58  ;;  %v3580_v58 = vmul.f32 1.442695, %v3104_v3  ;;  %v12055_v25 = vld [vmem:[#allocation114_spill] sm:$0xff] }
 0x45f   : > { %6134 = vrcp.f32 %v3786_v19  ;;  %v2851_v55 = vmax.f32 %v12047_v28, %v12046_v40  ;;  %4712 = vmatprep.subr.mxu0 %v9280_v63  ;;  %v3877_v19 = vadd.f32 %v9568_v52, %v9561_v53  ;;  %4501 = vst [vmem:[%s8755_s23 + $0x288] sm:$0xff] %v9578_v29  ;;  %4500 = vst [vmem:[%s8755_s23 + $0x280] sm:$0xff] %v9581_v56  ;;  %v12059_v40 = vld [vmem:[#allocation219_spill] sm:$0xff] }
 0x460   : > { %v6111_v14 = vpop.eup %6110  ;;  %6136 = vpow2.f32 %v3574_v36  ;;  %v3582_v52 = vmul.f32 1.442695, %v3105_v41  ;;  %v3107_v28 = vsub.f32 %v12059_v40, %v9482_v2 }
 0x461   : > { %v9590_v23 = vpop.eup %6112  ;;  %6138 = vpow2.f32 %v3576_v49  ;;  %v9593_v32 = vmul.f32 %v6111_v14, %v12050_v39  ;;  %v9596_v37 = vmul.f32 %v6111_v14, %v12051_v12  ;;  %2852 = vmax.xlane.f32.xlu1 %v2851_v55  ;;  %3878 = vadd.xlane.f32.xlu0 %v3877_v19  ;;  %v12054_v49 = vld [vmem:[#allocation118_spill] sm:$0xff] }
 0x462   : > { %12049 = vst [vmem:[#allocation201_spill] sm:$0xff] %v9590_v23  ;;  %v9602_v63 = vpop.eup %6114  ;;  %6140 = vpow2.f32 %v3578_v45  ;;  %v3789_v36 = vpop.xlane.xlu1 %3788  ;;  %v2752_v39 = vmax.f32 %v12055_v25, %v12054_v49  ;;  %v12056_v14 = vld [vmem:[#allocation218_spill] sm:$0xff]  ;;  %4713 = vmatpush2.xpose.msra.mxu0 %v9283_v38 }
 0x463   : > { %12052 = vst [vmem:[#allocation200_spill] sm:$0xff] %v9602_v63  ;;  %v9604_v11 = vpop.eup %6116  ;;  %v3106_v12 = vsub.f32 %v12056_v14, %v9482_v2  ;;  %6142 = vrcp.f32 %v3789_v36  ;;  %v3795_v53 = vpop.xlane.xlu0 %3794  ;;  %4503 = vst [vmem:[%s8755_s23 + $0x298] sm:$0xff] %v9593_v32  ;;  %v12057_v45 = vld [vmem:[#allocation238_spill] sm:$0xff]  ;;  %4714 = vmatprep.subr.mxu0 %v9269_v44  ;;  %v12062_v36 = vld [vmem:[#allocation105_spill] sm:$0xff] }
 0x464   : > { %12053 = vst [vmem:[#allocation203_spill] sm:$0xff] %v9604_v11  ;;  %4502 = vst [vmem:[%s8755_s23 + $0x290] sm:$0xff] %v9596_v37  ;;  %v6119_v3 = vpop.eup %6118  ;;  %v12058_v55 = vld [vmem:[#allocation122_spill] sm:$0xff]  ;;  %6144 = vrcp.f32 %v3795_v53  ;;  %v12067_v53 = vld [vmem:[#allocation107_spill] sm:$0xff] }
 0x465   : > { %v2848_v19 = vmax.f32 %v12058_v55, %v12057_v45  ;;  %v9620_v14 = vpop.eup %6120  ;;  %6146 = vpow2.f32 %v3430_v16  ;;  %v12061_v38 = vld [vmem:[#allocation58_spill] sm:$0xff]  ;;  %v9628_v45 = vmul.f32 %v6119_v3, %v12064_v33  ;;  %2753 = vmax.xlane.f32.xlu0 %v2752_v39  ;;  %v3584_v16 = vmul.f32 1.442695, %v3106_v12  ;;  %v12068_v39 = vld [vmem:[#allocation177_spill] sm:$0xff]  ;;  %v12073_v55 = vld [vmem:[#allocation140_spill] sm:$0xff] }
 0x466   : > { %12060 = vst [vmem:[#allocation198_spill] sm:$0xff] %v9620_v14  ;;  %v3024_v49 = vsub.f32 %v12062_v36, %v12061_v38  ;;  %v12063_v25 = vld [vmem:[#allocation250_spill] sm:$0xff]  ;;  %v9630_v41 = vpop.eup %6122  ;;  %6148 = vpow2.f32 %v3580_v58  ;;  %v3792_v44 = vpop.xlane.xlu1 %3791  ;;  %v3025_v40 = vsub.f32 %v12067_v53, %v12061_v38  ;;  %4715 = vmatpush2.xpose.msra.mxu0 %v9272_v35  ;;  %v3874_v33 = vadd.f32 %v9590_v23, %v9574_v4  ;;  %v12072_v4 = vld [vmem:[#allocation252_spill] sm:$0xff] }
 0x467   : > { %v9625_v59 = vmul.f32 %v6119_v3, %v12063_v25  ;;  %12065 = vst [vmem:[#allocation206_spill] sm:$0xff] %v9630_v41  ;;  %2849 = vmax.xlane.f32.xlu1 %v2848_v19  ;;  %v9632_v2 = vpop.eup %6124  ;;  %6150 = vrcp.f32 %v3792_v44  ;;  %v9637_v25 = vpop.xlane.xlu0 %2708  ;;  %4504 = vst [vmem:[%s8755_s23 + $0x2a0] sm:$0xff] %v9628_v45  ;;  %v12069_v3 = vld [vmem:[#allocation86_spill] sm:$0xff]  ;;  %v3586_v36 = vmul.f32 1.442695, %v3107_v28  ;;  %v3970_v12 = vadd.f32 %v9620_v14, %v9604_v11  ;;  %v12071_v44 = vld [vmem:[#allocation188_spill] sm:$0xff] }
 0x468   : > { %12066 = vst [vmem:[#allocation204_spill] sm:$0xff] %v9632_v2  ;;  %v6127_v58 = vpop.eup %6126  ;;  %v3086_v19 = vsub.f32 %v12069_v3, %v12068_v39  ;;  %6152 = vpow2.f32 %v3582_v52  ;;  %v3420_v38 = vmul.f32 1.442695, %v3024_v49  ;;  %v3087_v53 = vsub.f32 %v12071_v44, %v12068_v39  ;;  %v12076_v11 = vld [vmem:[#allocation230_spill] sm:$0xff]  ;;  %v12077_v14 = vld [vmem:[#allocation225_spill] sm:$0xff]  ;;  %v12078_v39 = vld [vmem:[#allocation196_spill] sm:$0xff] }
 0x469   : > { %4505 = vst [vmem:[%s8755_s23 + $0x2a8] sm:$0xff] %v9625_v59  ;;  %v9649_v35 = vpop.eup %6128  ;;  %v9654_v23 = vmul.f32 %v6127_v58, %v12072_v4  ;;  %v9657_v5 = vmul.f32 %v6127_v58, %v12073_v55  ;;  %3875 = vadd.xlane.f32.xlu0 %v3874_v33  ;;  %v2749_v49 = vmax.f32 %v12077_v14, %v12076_v11  ;;  %v3422_v22 = vmul.f32 1.442695, %v3025_v40  ;;  %v12079_v33 = vld [vmem:[#allocation199_spill] sm:$0xff] }
 0x46a   : > { %12070 = vst [vmem:[#allocation138_spill] sm:$0xff] %v9649_v35  ;;  %v9659_v3 = vpop.eup %6130  ;;  %v9661_v52 = vpop.xlane.xlu1 %2798  ;;  %v3094_v44 = vsub.f32 %v12078_v39, %v9237_v47  ;;  %6154 = vpow2.f32 %v3584_v16  ;;  %v3544_v58 = vmul.f32 1.442695, %v3086_v19  ;;  %v3973_v54 = vadd.f32 %v9649_v35, %v9632_v2  ;;  %v12081_v39 = vld [vmem:[#allocation160_spill] sm:$0xff]  ;;  %v12082_v16 = vld [vmem:[#allocation90_spill] sm:$0xff]  ;;  %v12085_v19 = vld [vmem:[#allocation191_spill] sm:$0xff] }
 0x46b   : > { %12074 = vst [vmem:[#allocation139_spill] sm:$0xff] %v9659_v3  ;;  %3971 = vadd.xlane.f32.xlu1 %v3970_v12  ;;  %v9663_v28 = vpop.eup %6132  ;;  %v3735_v4 = vpop.xlane.xlu0 %3734  ;;  %4507 = vst [vmem:[%s8755_s23 + $0x2b8] sm:$0xff] %v9654_v23  ;;  %v3095_v12 = vsub.f32 %v12079_v33, %v9237_v47  ;;  %6156 = vpow2.f32 %v3586_v36  ;;  %v3546_v40 = vmul.f32 1.442695, %v3087_v53  ;;  %v3090_v14 = vsub.f32 %v12082_v16, %v12081_v39  ;;  %v12087_v16 = vld [vmem:[#allocation187_spill] sm:$0xff] }
 0x46c   : > { %12075 = vst [vmem:[#allocation229_spill] sm:$0xff] %v9663_v28  ;;  %4506 = vst [vmem:[%s8755_s23 + $0x2b0] sm:$0xff] %v9657_v5  ;;  %v6135_v55 = vpop.eup %6134  ;;  %6158 = vpow2.f32 %v3420_v38  ;;  %v3091_v47 = vsub.f32 %v12085_v19, %v12081_v39  ;;  %v12086_v38 = vld [vmem:[#allocation64_spill] sm:$0xff]  ;;  %v3560_v35 = vmul.f32 1.442695, %v3094_v44  ;;  %v3871_v39 = vadd.f32 %v9630_v41, %v9602_v63 }
 0x46d   : > { %v9677_v11 = vpop.eup %6136  ;;  %v9682_v62 = vmul.f32 %v6135_v55, %v12083_v1  ;;  %6160 = vrcp.f32 %v3735_v4  ;;  %2750 = vmax.xlane.f32.xlu0 %v2749_v49  ;;  %v9691_v53 = vmul.f32 %v6135_v55, %v12086_v38  ;;  %v12088_v1 = vld [vmem:[#allocation194_spill] sm:$0xff]  ;;  %v3562_v49 = vmul.f32 1.442695, %v3095_v12  ;;  %v12089_v4 = vld [vmem:[#allocation101_spill] sm:$0xff] }
 0x46e   : > { %12080 = vst [vmem:[#allocation132_spill] sm:$0xff] %v9677_v11  ;;  %v9684_v26 = vpop.eup %6138  ;;  %v9688_v36 = vpop.xlane.xlu1 %2795  ;;  %6162 = vpow2.f32 %v3422_v22  ;;  %v3092_v2 = vsub.f32 %v12088_v1, %v12087_v16  ;;  %v3022_v55 = vsub.f32 %v12089_v4, %v9637_v25  ;;  %v3976_v19 = vadd.f32 %v9677_v11, %v9663_v28  ;;  %v12090_v38 = vld [vmem:[#allocation258_spill] sm:$0xff]  ;;  %v12093_v4 = vld [vmem:[#allocation103_spill] sm:$0xff]  ;;  %v12095_v11 = vld [vmem:[#allocation260_spill] sm:$0xff] }
 0x46f   : > { %12084 = vst [vmem:[#allocation210_spill] sm:$0xff] %v9684_v26  ;;  %3974 = vadd.xlane.f32.xlu1 %v3973_v54  ;;  %v9693_v33 = vpop.eup %6140  ;;  %v2706_v8 = vpop.xlane.xlu0 %2705  ;;  %4509 = vst [vmem:[%s8755_s23 + $0x2c8] sm:$0xff] %v9682_v62  ;;  %6164 = vpow2.f32 %v3544_v58  ;;  %v3552_v44 = vmul.f32 1.442695, %v3090_v14  ;;  %v3554_v12 = vmul.f32 1.442695, %v3091_v47  ;;  %v3023_v41 = vsub.f32 %v12093_v4, %v9637_v25 }
 0x470   : > { %v6143_v54 = vpop.eup %6142  ;;  %4508 = vst [vmem:[%s8755_s23 + $0x2c0] sm:$0xff] %v9691_v53  ;;  %6166 = vpow2.f32 %v3546_v40  ;;  %v12094_v40 = vld [vmem:[#allocation141_spill] sm:$0xff]  ;;  %v12099_v47 = vld [vmem:[#allocation92_spill] sm:$0xff]  ;;  %v3556_v27 = vmul.f32 1.442695, %v3092_v2  ;;  %v12102_v2 = vld [vmem:[#allocation99_spill] sm:$0xff] }
 0x471   : > { %v6145_v22 = vpop.eup %6144  ;;  %v4255_v1 = vmul.f32 %v6143_v54, %v12090_v38  ;;  %v9709_v63 = vmul.f32 %v6143_v54, %v12091_v50  ;;  %3872 = vadd.xlane.f32.xlu0 %v3871_v39  ;;  %v12097_v50 = vld [vmem:[#allocation222_spill] sm:$0xff]  ;;  %v3093_v61 = vsub.f32 %v12099_v47, %v12087_v16  ;;  %6168 = vpow2.f32 %v3560_v35  ;;  %v12100_v4 = vld [vmem:[#allocation97_spill] sm:$0xff] }
 0x472   : > { %v9711_v58 = vpop.eup %6146  ;;  %v9715_v28 = vpop.xlane.xlu1 %2792  ;;  %v4259_v14 = vmul.f32 %v6145_v22, %v12094_v40  ;;  %v4258_v38 = vmul.f32 %v6145_v22, %v12095_v11  ;;  %v12098_v54 = vld [vmem:[#allocation106_spill] sm:$0xff]  ;;  %6170 = vpow2.f32 %v3562_v49  ;;  %v3020_v40 = vsub.f32 %v12100_v4, %v2706_v8  ;;  %v12103_v16 = vld [vmem:[#allocation261_spill] sm:$0xff] }
 0x473   : > { %12092 = vst [vmem:[#allocation208_spill] sm:$0xff] %v9711_v58  ;;  %3977 = vadd.xlane.f32.xlu1 %v3976_v19  ;;  %v9719_v34 = vpop.eup %6148  ;;  %v2746_v42 = vmax.f32 %v12098_v54, %v12097_v50  ;;  %v3732_v25 = vpop.xlane.xlu0 %3731  ;;  %4511 = vst [vmem:[%s8755_s23 + $0x2d8] sm:$0xff] %v4255_v1  ;;  %v3416_v19 = vmul.f32 1.442695, %v3022_v55  ;;  %v3979_v11 = vadd.f32 %v9693_v33, %v9684_v26  ;;  %6172 = vpow2.f32 %v3552_v44 }
 0x474   : > { %12096 = vst [vmem:[#allocation133_spill] sm:$0xff] %v9719_v34  ;;  %4510 = vst [vmem:[%s8755_s23 + $0x2d0] sm:$0xff] %v9709_v63  ;;  %v6151_v39 = vpop.eup %6150  ;;  %4765 = vmatprep.subr.mxu1 %v4259_v14  ;;  %v3021_v35 = vsub.f32 %v12102_v2, %v2706_v8  ;;  %6174 = vpow2.f32 %v3554_v12  ;;  %v3418_v49 = vmul.f32 1.442695, %v3023_v41  ;;  %v3558_v50 = vmul.f32 1.442695, %v3093_v61 }
 0x475   : > { %4515 = vst [vmem:[%s8755_s23 + $0x2f8] sm:$0xff] %v4259_v14  ;;  %4514 = vst [vmem:[%s8755_s23 + $0x2f0] sm:$0xff] %v4258_v38  ;;  %v9733_v22 = vpop.eup %6152  ;;  %4766 = vmatpush1.xpose.msra.mxu1 %v4258_v38  ;;  %v4257_v47 = vmul.f32 %v6151_v39, %v12103_v16  ;;  %2747 = vmax.xlane.f32.xlu0 %v2746_v42  ;;  %v12104_v14 = vld [vmem:[#allocation259_spill] sm:$0xff]  ;;  %6176 = vpow2.f32 %v3556_v27  ;;  %v3412_v8 = vmul.f32 1.442695, %v3020_v40  ;;  %v12106_v38 = vld [vmem:[#allocation93_spill] sm:$0xff] }
 0x476   : > { %12101 = vst [vmem:[#allocation116_spill] sm:$0xff] %v9733_v22  ;;  %v9737_v55 = vpop.xlane.xlu1 %2789  ;;  %v4256_v4 = vmul.f32 %v6151_v39, %v12104_v14  ;;  %6178 = vpow2.f32 %v3416_v19  ;;  %v3982_v41 = vadd.f32 %v9733_v22, %v9719_v34  ;;  %v3414_v12 = vmul.f32 1.442695, %v3021_v35  ;;  %v12109_v39 = vld [vmem:[#allocation95_spill] sm:$0xff]  ;;  %v12140_v22 = vld [vmem:[#allocation82_spill] sm:$0xff] }
 0x477   : > { %3980 = vadd.xlane.f32.xlu1 %v3979_v11  ;;  %v2703_v26 = vpop.xlane.xlu0 %2702  ;;  %4513 = vst [vmem:[%s8755_s23 + $0x2e8] sm:$0xff] %v4257_v47  ;;  %4767 = vmatprep.subr.mxu1 %v4257_v47  ;;  %v9741_v44 = vpop.eup %6154  ;;  %6180 = vrcp.f32 %v3732_v25  ;;  %v3868_v61 = vadd.f32 %v9711_v58, %v9659_v3  ;;  %v12111_v47 = vld [vmem:[#allocation264_spill] sm:$0xff]  ;;  %v12127_v3 = vld [vmem:[#allocation78_spill] sm:$0xff] }
 0x478   : > { %12105 = vst [vmem:[#allocation136_spill] sm:$0xff] %v9741_v44  ;;  %v3018_v2 = vsub.f32 %v12106_v38, %v2703_v26  ;;  %4512 = vst [vmem:[%s8755_s23 + $0x2e0] sm:$0xff] %v4256_v4  ;;  %v9747_v42 = vpop.eup %6156  ;;  %6182 = vpow2.f32 %v3418_v49  ;;  %v3019_v19 = vsub.f32 %v12109_v39, %v2703_v26 }
 0x479   : > { %12107 = vst [vmem:[#allocation137_spill] sm:$0xff] %v9747_v42  ;;  %4768 = vmatpush1.xpose.msra.mxu1 %v4256_v4  ;;  %v9751_v27 = vpop.eup %6158  ;;  %6184 = vpow2.f32 %v3558_v50  ;;  %3869 = vadd.xlane.f32.xlu0 %v3868_v61  ;;  %v12112_v4 = vld [vmem:[#allocation262_spill] sm:$0xff]  ;;  %v3985_v26 = vadd.f32 %v9747_v42, %v9741_v44  ;;  %v12115_v50 = vld [vmem:[#allocation215_spill] sm:$0xff]  ;;  %v12124_v42 = vld [vmem:[#allocation109_spill] sm:$0xff] }
 0x47a   : > { %12108 = vst [vmem:[#allocation110_spill] sm:$0xff] %v9751_v27  ;;  %v3408_v40 = vmul.f32 1.442695, %v3018_v2  ;;  %4769 = vmatprep.subr.mxu1 %v4255_v1  ;;  %v3804_v11 = vpop.xlane.xlu1 %3803  ;;  %v6161_v16 = vpop.eup %6160  ;;  %6186 = vpow2.f32 %v3412_v8  ;;  %v12116_v2 = vld [vmem:[#allocation102_spill] sm:$0xff]  ;;  %v3410_v61 = vmul.f32 1.442695, %v3019_v19 }
 0x47b   : > { %3983 = vadd.xlane.f32.xlu1 %v3982_v41  ;;  %v3729_v35 = vpop.xlane.xlu0 %3728  ;;  %v9754_v25 = vpop.eup %6162  ;;  %v4219_v14 = vmul.f32 %v6161_v16, %v12111_v47  ;;  %v4218_v38 = vmul.f32 %v6161_v16, %v12112_v4  ;;  %6188 = vpow2.f32 %v3414_v12  ;;  %v2743_v41 = vmax.f32 %v12116_v2, %v12115_v50  ;;  %v12119_v16 = vld [vmem:[#allocation233_spill] sm:$0xff]  ;;  %v12121_v19 = vld [vmem:[#allocation91_spill] sm:$0xff] }
 0x47c   : > { %12110 = vst [vmem:[#allocation130_spill] sm:$0xff] %v9754_v25  ;;  %v9760_v49 = vpop.eup %6164  ;;  %6190 = vpow2.f32 %v3408_v40  ;;  %v12120_v4 = vld [vmem:[#allocation89_spill] sm:$0xff] }
 0x47d   : > { %12113 = vst [vmem:[#allocation131_spill] sm:$0xff] %v9760_v49  ;;  %4770 = vmatpush1.xpose.msra.mxu1 %v9709_v63  ;;  %v9763_v1 = vpop.eup %6166  ;;  %4475 = vst [vmem:[%s8755_s23 + $0x1b8] sm:$0xff] %v4219_v14  ;;  %4716 = vmatprep.subr.mxu0 %v4219_v14  ;;  %6192 = vrcp.f32 %v3804_v11  ;;  %v12118_v63 = vld [vmem:[#allocation236_spill] sm:$0xff] }
 0x47e   : > { %12114 = vst [vmem:[#allocation216_spill] sm:$0xff] %v9763_v1  ;;  %4474 = vst [vmem:[%s8755_s23 + $0x1b0] sm:$0xff] %v4218_v38  ;;  %v3807_v8 = vpop.xlane.xlu1 %3806  ;;  %4717 = vmatpush2.xpose.msra.mxu0 %v4218_v38  ;;  %4771 = vmatprep.subr.mxu1 %v9682_v62  ;;  %v9770_v12 = vpop.eup %6168  ;;  %v2845_v47 = vmax.f32 %v12119_v16, %v12118_v63  ;;  %6194 = vrcp.f32 %v3729_v35  ;;  %v12125_v38 = vld [vmem:[#allocation111_spill] sm:$0xff] }
 0x47f   : > { %3986 = vadd.xlane.f32.xlu1 %v3985_v26  ;;  %v2700_v39 = vpop.xlane.xlu0 %2699  ;;  %12117 = vst [vmem:[#allocation214_spill] sm:$0xff] %v9770_v12  ;;  %2744 = vmax.xlane.f32.xlu0 %v2743_v41  ;;  %v9776_v14 = vpop.eup %6170  ;;  %v12123_v26 = vld [vmem:[#allocation146_spill] sm:$0xff]  ;;  %6196 = vrcp.f32 %v3807_v8 }
 0x480   : > { %v3016_v40 = vsub.f32 %v12120_v4, %v2700_v39  ;;  %v3017_v44 = vsub.f32 %v12121_v19, %v2700_v39  ;;  %12122 = vst [vmem:[#allocation221_spill] sm:$0xff] %v9776_v14  ;;  %v3026_v11 = vsub.f32 %v12124_v42, %v12123_v26  ;;  %v3027_v62 = vsub.f32 %v12125_v38, %v12123_v26  ;;  %v9783_v34 = vpop.eup %6172  ;;  %v12126_v42 = vld [vmem:[#allocation181_spill] sm:$0xff] }
 0x481   : > { %4772 = vmatpush1.xpose.msra.mxu1 %v9691_v53  ;;  %6198 = vpow2.f32 %v3410_v61  ;;  %v3955_v39 = vadd.f32 %v9763_v1, %v9760_v49  ;;  %v9788_v19 = vpop.eup %6174  ;;  %v3088_v26 = vsub.f32 %v12127_v3, %v12126_v42  ;;  %v12129_v61 = vld [vmem:[#allocation88_spill] sm:$0xff]  ;;  %v12137_v49 = vld [vmem:[#allocation87_spill] sm:$0xff] }
 0x482   : > { %v3404_v35 = vmul.f32 1.442695, %v3016_v40  ;;  %v3406_v41 = vmul.f32 1.442695, %v3017_v44  ;;  %4773 = vmatprep.subr.mxu1 %v9654_v23  ;;  %v3810_v4 = vpop.xlane.xlu1 %3809  ;;  %v9792_v53 = vpop.eup %6176  ;;  %v3089_v40 = vsub.f32 %v12129_v61, %v12126_v42  ;;  %v3967_v23 = vadd.f32 %v9776_v14, %v9770_v12  ;;  %v12132_v61 = vld [vmem:[#allocation61_spill] sm:$0xff] }
 0x483   : > { %2846 = vmax.xlane.f32.xlu1 %v2845_v47  ;;  %6200 = vrcp.f32 %v3810_v4  ;;  %v3726_v8 = vpop.xlane.xlu0 %3725  ;;  %12128 = vst [vmem:[#allocation128_spill] sm:$0xff] %v9792_v53  ;;  %3956 = vadd.xlane.f32.xlu0 %v3955_v39  ;;  %v9798_v44 = vpop.eup %6178  ;;  %v3424_v47 = vmul.f32 1.442695, %v3026_v11  ;;  %v3426_v3 = vmul.f32 1.442695, %v3027_v62  ;;  %v3862_v4 = vadd.f32 %v9754_v25, %v9751_v27  ;;  %v12131_v11 = vld [vmem:[#allocation266_spill] sm:$0xff] }
 0x484   : > { %6202 = vpow2.f32 %v3404_v35  ;;  %12130 = vst [vmem:[#allocation129_spill] sm:$0xff] %v9798_v44  ;;  %v6181_v38 = vpop.eup %6180  ;;  %v3548_v42 = vmul.f32 1.442695, %v3088_v26  ;;  %v3550_v14 = vmul.f32 1.442695, %v3089_v40  ;;  %v12136_v27 = vld [vmem:[#allocation85_spill] sm:$0xff] }
 0x485   : > { %6204 = vpow2.f32 %v3406_v41  ;;  %4774 = vmatpush1.xpose.msra.mxu1 %v9657_v5  ;;  %v9806_v39 = vpop.eup %6182  ;;  %v4217_v41 = vmul.f32 %v6181_v38, %v12131_v11  ;;  %v4216_v5 = vmul.f32 %v6181_v38, %v12132_v61  ;;  %v12139_v26 = vld [vmem:[#allocation150_spill] sm:$0xff] }
 0x486   : > { %6206 = vrcp.f32 %v3726_v8  ;;  %4775 = vmatprep.subr.mxu1 %v9625_v59  ;;  %v9804_v35 = vpop.xlane.xlu1 %2873  ;;  %v9810_v62 = vpop.eup %6184  ;;  %v12134_v8 = vld [vmem:[#allocation112_spill] sm:$0xff]  ;;  %v3084_v11 = vsub.f32 %v12140_v22, %v12139_v26  ;;  %v12142_v22 = vld [vmem:[#allocation74_spill] sm:$0xff] }
 0x487   : > { %3968 = vadd.xlane.f32.xlu1 %v3967_v23  ;;  %v2697_v12 = vpop.xlane.xlu0 %2696  ;;  %12133 = vst [vmem:[#allocation223_spill] sm:$0xff] %v9810_v62  ;;  %v12135_v23 = vld [vmem:[#allocation232_spill] sm:$0xff]  ;;  %3863 = vadd.xlane.f32.xlu0 %v3862_v4  ;;  %v9816_v58 = vpop.eup %6186  ;;  %6208 = vpow2.f32 %v3424_v47  ;;  %4473 = vst [vmem:[%s8755_s23 + $0x1a8] sm:$0xff] %v4217_v41  ;;  %v3085_v47 = vsub.f32 %v12142_v22, %v12139_v26  ;;  %v12143_v61 = vld [vmem:[#allocation162_spill] sm:$0xff] }
 0x488   : > { %v2842_v59 = vmax.f32 %v12135_v23, %v12134_v8  ;;  %v3014_v25 = vsub.f32 %v12136_v27, %v2697_v12  ;;  %v3015_v1 = vsub.f32 %v12137_v49, %v2697_v12  ;;  %12138 = vst [vmem:[#allocation220_spill] sm:$0xff] %v9816_v58  ;;  %4718 = vmatprep.subr.mxu0 %v4217_v41  ;;  %4472 = vst [vmem:[%s8755_s23 + $0x1a0] sm:$0xff] %v4216_v5  ;;  %v9823_v38 = vpop.eup %6188 }
 0x489   : > { %4776 = vmatpush1.xpose.msra.mxu1 %v9628_v45  ;;  %12141 = vst [vmem:[#allocation125_spill] sm:$0xff] %v9823_v38  ;;  %6210 = vpow2.f32 %v3426_v3  ;;  %4719 = vmatpush2.xpose.msra.mxu0 %v4216_v5  ;;  %v3859_v27 = vadd.f32 %v9806_v39, %v9798_v44  ;;  %v9827_v12 = vpop.eup %6190  ;;  %v3540_v3 = vmul.f32 1.442695, %v3084_v11 }
 0x48a   : > { %v3400_v40 = vmul.f32 1.442695, %v3014_v25  ;;  %v3402_v4 = vmul.f32 1.442695, %v3015_v1  ;;  %v3813_v49 = vpop.xlane.xlu1 %3812  ;;  %6212 = vpow2.f32 %v3548_v42  ;;  %4777 = vmatprep.subr.mxu1 %v9593_v32  ;;  %v6193_v41 = vpop.eup %6192  ;;  %v3964_v25 = vadd.f32 %v9810_v62, %v9792_v53  ;;  %v12145_v32 = vld [vmem:[#allocation165_spill] sm:$0xff] }
 0x48b   : > { %2843 = vmax.xlane.f32.xlu1 %v2842_v59  ;;  %v3723_v45 = vpop.xlane.xlu0 %3722  ;;  %6214 = vpow2.f32 %v3550_v14  ;;  %3860 = vadd.xlane.f32.xlu0 %v3859_v27  ;;  %v6195_v1 = vpop.eup %6194  ;;  %v4265_v5 = vmul.f32 %v6193_v41, %v12143_v61  ;;  %v12144_v59 = vld [vmem:[#allocation59_spill] sm:$0xff]  ;;  %v12146_v14 = vld [vmem:[#allocation149_spill] sm:$0xff]  ;;  %v12148_v61 = vld [vmem:[#allocation226_spill] sm:$0xff] }
 0x48c   : > { %6216 = vpow2.f32 %v3400_v40  ;;  %v4264_v26 = vmul.f32 %v6193_v41, %v12144_v59  ;;  %v6197_v42 = vpop.eup %6196  ;;  %v4215_v22 = vmul.f32 %v6195_v1, %v12145_v32  ;;  %v4214_v27 = vmul.f32 %v6195_v1, %v12146_v14  ;;  %v12147_v41 = vld [vmem:[#allocation227_spill] sm:$0xff]  ;;  %v12149_v53 = vld [vmem:[#allocation57_spill] sm:$0xff] }
 0x48d   : > { %4778 = vmatpush1.xpose.msra.mxu1 %v9596_v37  ;;  %6218 = vpow2.f32 %v3402_v4  ;;  %v3856_v37 = vadd.f32 %v9823_v38, %v9816_v58  ;;  %v2839_v59 = vmax.f32 %v12148_v61, %v12147_v41  ;;  %v3542_v4 = vmul.f32 1.442695, %v3085_v47  ;;  %4521 = vst [vmem:[%s8755_s23 + $0x328] sm:$0xff] %v4265_v5  ;;  %v12151_v14 = vld [vmem:[#allocation83_spill] sm:$0xff] }
 0x48e   : > { %4779 = vmatprep.subr.mxu1 %v9578_v29  ;;  %v9842_v11 = vpop.xlane.xlu1 %2876  ;;  %v9844_v40 = vpop.eup %6198  ;;  %6220 = vrcp.f32 %v3813_v49  ;;  %v4267_v62 = vmul.f32 %v6197_v42, %v12149_v53  ;;  %4520 = vst [vmem:[%s8755_s23 + $0x320] sm:$0xff] %v4264_v26  ;;  %4471 = vst [vmem:[%s8755_s23 + $0x198] sm:$0xff] %v4215_v22  ;;  %4720 = vmatprep.subr.mxu0 %v4215_v22  ;;  %v12150_v29 = vld [vmem:[#allocation81_spill] sm:$0xff]  ;;  %v12152_v38 = vld [vmem:[#allocation163_spill] sm:$0xff] }
 0x48f   : > { %3965 = vadd.xlane.f32.xlu1 %v3964_v25  ;;  %v2694_v32 = vpop.xlane.xlu0 %2693  ;;  %6222 = vrcp.f32 %v3723_v45  ;;  %4470 = vst [vmem:[%s8755_s23 + $0x190] sm:$0xff] %v4214_v27  ;;  %3857 = vadd.xlane.f32.xlu0 %v3856_v37  ;;  %v4266_v44 = vmul.f32 %v6197_v42, %v12152_v38  ;;  %v12153_v53 = vld [vmem:[#allocation186_spill] sm:$0xff]  ;;  %v12154_v45 = vld [vmem:[#allocation159_spill] sm:$0xff] }
 0x490   : > { %v6201_v25 = vpop.eup %6200  ;;  %v3012_v1 = vsub.f32 %v12150_v29, %v2694_v32  ;;  %v3013_v58 = vsub.f32 %v12151_v14, %v2694_v32  ;;  %6224 = vpow2.f32 %v3540_v3  ;;  %v3082_v49 = vsub.f32 %v12153_v53, %v9661_v52  ;;  %4721 = vmatpush2.xpose.msra.mxu0 %v4214_v27  ;;  %v12155_v26 = vld [vmem:[#allocation267_spill] sm:$0xff]  ;;  %4523 = vst [vmem:[%s8755_s23 + $0x338] sm:$0xff] %v4267_v62 }
 0x491   : > { %v9856_v47 = vpop.eup %6202  ;;  %4780 = vmatpush1.xpose.msra.mxu1 %v9581_v56  ;;  %v4269_v5 = vmul.f32 %v6201_v25, %v12154_v45  ;;  %v4268_v22 = vmul.f32 %v6201_v25, %v12155_v26  ;;  %v12156_v38 = vld [vmem:[#allocation71_spill] sm:$0xff]  ;;  %v3853_v56 = vadd.f32 %v9844_v40, %v9827_v12  ;;  %4522 = vst [vmem:[%s8755_s23 + $0x330] sm:$0xff] %v4266_v44  ;;  %6226 = vpow2.f32 %v3542_v4  ;;  %v12157_v25 = vld [vmem:[#allocation184_spill] sm:$0xff] }
 0x492   : > { %v9864_v37 = vpop.eup %6204  ;;  %v3083_v42 = vsub.f32 %v12156_v38, %v9661_v52  ;;  %v3396_v32 = vmul.f32 1.442695, %v3012_v1  ;;  %v3398_v3 = vmul.f32 1.442695, %v3013_v58  ;;  %4781 = vmatprep.subr.mxu1 %v9542_v46  ;;  %v3816_v27 = vpop.xlane.xlu1 %3815  ;;  %v3080_v62 = vsub.f32 %v12157_v25, %v9688_v36  ;;  %v12158_v52 = vld [vmem:[#allocation68_spill] sm:$0xff] }
 0x493   : > { %2840 = vmax.xlane.f32.xlu1 %v2839_v59  ;;  %v6207_v29 = vpop.eup %6206  ;;  %v3720_v14 = vpop.xlane.xlu0 %3719  ;;  %4525 = vst [vmem:[%s8755_s23 + $0x348] sm:$0xff] %v4269_v5  ;;  %4524 = vst [vmem:[%s8755_s23 + $0x340] sm:$0xff] %v4268_v22  ;;  %v3081_v58 = vsub.f32 %v12158_v52, %v9688_v36  ;;  %3854 = vadd.xlane.f32.xlu0 %v3853_v56  ;;  %v12159_v46 = vld [vmem:[#allocation268_spill] sm:$0xff]  ;;  %v3961_v44 = vadd.f32 %v9788_v19, %v9783_v34  ;;  %v3536_v4 = vmul.f32 1.442695, %v3082_v49  ;;  %v12167_v52 = vld [vmem:[#allocation42_spill] sm:$0xff] }
 0x494   : > { %v4213_v59 = vmul.f32 %v6207_v29, %v12159_v46  ;;  %v12160_v1 = vld [vmem:[#allocation152_spill] sm:$0xff]  ;;  %6228 = vpow2.f32 %v3396_v32  ;;  %v9883_v45 = vpop.eup %6208  ;;  %v3538_v26 = vmul.f32 1.442695, %v3083_v42  ;;  %v3850_v36 = vadd.f32 %v9864_v37, %v9856_v47 }
 0x495   : > { %v4212_v53 = vmul.f32 %v6207_v29, %v12160_v1  ;;  %4782 = vmatpush1.xpose.msra.mxu1 %v9545_v6  ;;  %12161 = vst [vmem:[#allocation231_spill] sm:$0xff] %v9883_v45  ;;  %6230 = vpow2.f32 %v3398_v3  ;;  %v12163_v38 = vld [vmem:[#allocation108_spill] sm:$0xff]  ;;  %v3532_v56 = vmul.f32 1.442695, %v3080_v62  ;;  %v3534_v3 = vmul.f32 1.442695, %v3081_v58 }
 0x496   : > { %4469 = vst [vmem:[%s8755_s23 + $0x188] sm:$0xff] %v4213_v59  ;;  %4722 = vmatprep.subr.mxu0 %v4213_v59  ;;  %v9889_v5 = vpop.xlane.xlu1 %2879  ;;  %v9891_v22 = vpop.eup %6210  ;;  %v12164_v49 = vld [vmem:[#allocation224_spill] sm:$0xff]  ;;  %6232 = vrcp.f32 %v3816_v27  ;;  %4783 = vmatprep.subr.mxu1 %v9504_v10  ;;  %v12166_v29 = vld [vmem:[#allocation179_spill] sm:$0xff]  ;;  %v12171_v10 = vld [vmem:[#allocation182_spill] sm:$0xff] }
 0x497   : > { %4468 = vst [vmem:[%s8755_s23 + $0x180] sm:$0xff] %v4212_v53  ;;  %3962 = vadd.xlane.f32.xlu1 %v3961_v44  ;;  %12162 = vst [vmem:[#allocation228_spill] sm:$0xff] %v9891_v22  ;;  %v2836_v32 = vmax.f32 %v12164_v49, %v12163_v38  ;;  %4723 = vmatpush2.xpose.msra.mxu0 %v4212_v53  ;;  %v2787_v6 = vpop.xlane.xlu0 %2786  ;;  %v9896_v42 = vpop.eup %6212  ;;  %6234 = vrcp.f32 %v3720_v14  ;;  %v12169_v1 = vld [vmem:[#allocation43_spill] sm:$0xff]  ;;  %v3079_v58 = vsub.f32 %v12171_v10, %v9715_v28 }
 0x498   : > { %12165 = vst [vmem:[#allocation127_spill] sm:$0xff] %v9896_v42  ;;  %3851 = vadd.xlane.f32.xlu0 %v3850_v36  ;;  %v3074_v25 = vsub.f32 %v12166_v29, %v2787_v6  ;;  %v3075_v46 = vsub.f32 %v12167_v52, %v2787_v6  ;;  %v9900_v59 = vpop.eup %6214  ;;  %6236 = vpow2.f32 %v3536_v4  ;;  %v3078_v62 = vsub.f32 %v12169_v1, %v9715_v28  ;;  %v12172_v4 = vld [vmem:[#allocation41_spill] sm:$0xff] }
 0x499   : > { %12168 = vst [vmem:[#allocation121_spill] sm:$0xff] %v9900_v59  ;;  %4784 = vmatpush1.xpose.msra.mxu1 %v9507_v9  ;;  %v9905_v27 = vpop.eup %6216  ;;  %6238 = vpow2.f32 %v3538_v26  ;;  %v3076_v6 = vsub.f32 %v12172_v4, %v9737_v55  ;;  %v12173_v9 = vld [vmem:[#allocation180_spill] sm:$0xff]  ;;  %v12175_v1 = vld [vmem:[#allocation269_spill] sm:$0xff] }
 0x49a   : > { %12170 = vst [vmem:[#allocation123_spill] sm:$0xff] %v9905_v27  ;;  %v3520_v14 = vmul.f32 1.442695, %v3074_v25  ;;  %v3522_v53 = vmul.f32 1.442695, %v3075_v46  ;;  %4785 = vmatprep.subr.mxu1 %v9460_v31  ;;  %v3819_v44 = vpop.xlane.xlu1 %3818  ;;  %v9910_v36 = vpop.eup %6218  ;;  %6240 = vpow2.f32 %v3532_v56  ;;  %v3077_v29 = vsub.f32 %v12173_v9, %v9737_v55  ;;  %v12174_v56 = vld [vmem:[#allocation271_spill] sm:$0xff] }
 0x49b   : > { %2837 = vmax.xlane.f32.xlu1 %v2836_v32  ;;  %v3717_v52 = vpop.xlane.xlu0 %3716  ;;  %v6221_v26 = vpop.eup %6220  ;;  %6242 = vpow2.f32 %v3534_v3  ;;  %v3847_v28 = vadd.f32 %v9910_v36, %v9905_v27  ;;  %v3958_v32 = vadd.f32 %v9900_v59, %v9896_v42  ;;  %v3528_v25 = vmul.f32 1.442695, %v3078_v62  ;;  %v12177_v4 = vld [vmem:[#allocation273_spill] sm:$0xff]  ;;  %v12178_v42 = vld [vmem:[#allocation155_spill] sm:$0xff] }
 0x49c   : > { %v6223_v31 = vpop.eup %6222  ;;  %6244 = vpow2.f32 %v3520_v14  ;;  %v9922_v46 = vmul.f32 %v6221_v26, %v12174_v56  ;;  %v4270_v55 = vmul.f32 %v6221_v26, %v12175_v1  ;;  %v3530_v3 = vmul.f32 1.442695, %v3079_v58  ;;  %v6558_v56 = vld [vmem:[%s8755_s23 + $0x248] sm:$0xff] }
 0x49d   : > { %4786 = vmatpush1.xpose.msra.mxu1 %v9463_v7  ;;  %v9925_v10 = vpop.eup %6224  ;;  %6246 = vpow2.f32 %v3522_v53  ;;  %v4211_v9 = vmul.f32 %v6223_v31, %v12177_v4  ;;  %3848 = vadd.xlane.f32.xlu0 %v3847_v28  ;;  %v4210_v62 = vmul.f32 %v6223_v31, %v12178_v42  ;;  %v3524_v7 = vmul.f32 1.442695, %v3076_v6  ;;  %v12179_v42 = vld [vmem:[#allocation54_spill] sm:$0xff]  ;;  %v12182_v31 = vld [vmem:[#allocation49_spill] sm:$0xff] }
 0x49e   : > { %12176 = vst [vmem:[#allocation143_spill] sm:$0xff] %v9925_v10  ;;  %v3526_v14 = vmul.f32 1.442695, %v3077_v29  ;;  %6248 = vrcp.f32 %v3819_v44  ;;  %4787 = vmatprep.subr.mxu1 %v6558_v56  ;;  %v2883_v26 = vpop.xlane.xlu1 %2882  ;;  %v3865_v58 = vadd.f32 %v9891_v22, %v9883_v45  ;;  %4527 = vst [vmem:[%s8755_s23 + $0x358] sm:$0xff] %v9922_v46  ;;  %v9935_v53 = vpop.eup %6226  ;;  %v3132_v28 = vsub.f32 %v12179_v42, %v9804_v35  ;;  %v12180_v44 = vld [vmem:[#allocation270_spill] sm:$0xff]  ;;  %v12181_v29 = vld [vmem:[#allocation48_spill] sm:$0xff] }
 0x49f   : > { %3959 = vadd.xlane.f32.xlu1 %v3958_v32  ;;  %v2784_v1 = vpop.xlane.xlu0 %2783  ;;  %4526 = vst [vmem:[%s8755_s23 + $0x350] sm:$0xff] %v4270_v55  ;;  %6250 = vrcp.f32 %v3717_v52  ;;  %4467 = vst [vmem:[%s8755_s23 + $0x178] sm:$0xff] %v4211_v9  ;;  %4724 = vmatprep.subr.mxu0 %v4211_v9  ;;  %v3136_v4 = vsub.f32 %v12182_v31, %v9889_v5  ;;  %v6559_v55 = vld [vmem:[%s8755_s23 + $0x240] sm:$0xff]  ;;  %v12184_v42 = vld [vmem:[#allocation161_spill] sm:$0xff] }
 0x4a0   : > { %4466 = vst [vmem:[%s8755_s23 + $0x170] sm:$0xff] %v4210_v62  ;;  %v3072_v6 = vsub.f32 %v12180_v44, %v2784_v1  ;;  %v3073_v32 = vsub.f32 %v12181_v29, %v2784_v1  ;;  %6252 = vpow2.f32 %v3528_v25  ;;  %4725 = vmatpush2.xpose.msra.mxu0 %v4210_v62  ;;  %v3138_v52 = vsub.f32 %v12184_v42, %v2883_v26  ;;  %v6560_v9 = vld [vmem:[%s8755_s23 + $0x238] sm:$0xff]  ;;  %v12186_v25 = vld [vmem:[#allocation164_spill] sm:$0xff] }
 0x4a1   : > { %4788 = vmatpush1.xpose.msra.mxu1 %v6559_v55  ;;  %v9946_v56 = vpop.eup %6228  ;;  %6254 = vpow2.f32 %v3530_v3  ;;  %v3139_v1 = vsub.f32 %v12186_v25, %v2883_v26  ;;  %v12187_v31 = vld [vmem:[#allocation209_spill] sm:$0xff]  ;;  %v12188_v55 = vld [vmem:[#allocation98_spill] sm:$0xff]  ;;  %v3636_v3 = vmul.f32 1.442695, %v3132_v28  ;;  %v6561_v42 = vld [vmem:[%s8755_s23 + $0x230] sm:$0xff] }
 0x4a2   : > { %12183 = vst [vmem:[#allocation117_spill] sm:$0xff] %v9946_v56  ;;  %v3516_v45 = vmul.f32 1.442695, %v3072_v6  ;;  %v3518_v22 = vmul.f32 1.442695, %v3073_v32  ;;  %4789 = vmatprep.subr.mxu1 %v6560_v9  ;;  %v9950_v44 = vpop.eup %6230  ;;  %6256 = vpow2.f32 %v3524_v7  ;;  %v2740_v59 = vmax.f32 %v12188_v55, %v12187_v31  ;;  %v12189_v9 = vld [vmem:[#allocation40_spill] sm:$0xff] }
 0x4a3   : > { %3866 = vadd.xlane.f32.xlu1 %v3865_v58  ;;  %12185 = vst [vmem:[#allocation202_spill] sm:$0xff] %v9950_v44  ;;  %v3714_v29 = vpop.xlane.xlu0 %3713  ;;  %v6233_v62 = vpop.eup %6232  ;;  %6258 = vpow2.f32 %v3526_v14  ;;  %v3844_v6 = vadd.f32 %v9950_v44, %v9946_v56  ;;  %v3644_v58 = vmul.f32 1.442695, %v3136_v4  ;;  %v12190_v26 = vld [vmem:[#allocation175_spill] sm:$0xff]  ;;  %v3648_v14 = vmul.f32 1.442695, %v3138_v52 }
 0x4a4   : > { %v6235_v32 = vpop.eup %6234  ;;  %6260 = vpow2.f32 %v3516_v45  ;;  %v9959_v7 = vmul.f32 %v6233_v62, %v12189_v9  ;;  %v9962_v25 = vmul.f32 %v6233_v62, %v12190_v26  ;;  %v12192_v28 = vld [vmem:[#allocation53_spill] sm:$0xff]  ;;  %v12193_v45 = vld [vmem:[#allocation156_spill] sm:$0xff]  ;;  %v3650_v9 = vmul.f32 1.442695, %v3139_v1  ;;  %v6563_v26 = vld [vmem:[%s8755_s23 + $0x220] sm:$0xff] }
 0x4a5   : > { %4790 = vmatpush1.xpose.msra.mxu1 %v6561_v42  ;;  %v9964_v27 = vpop.eup %6236  ;;  %6262 = vpow2.f32 %v3518_v22  ;;  %v4209_v56 = vmul.f32 %v6235_v32, %v12192_v28  ;;  %3845 = vadd.xlane.f32.xlu0 %v3844_v6  ;;  %v4208_v4 = vmul.f32 %v6235_v32, %v12193_v45  ;;  %v6562_v42 = vld [vmem:[%s8755_s23 + $0x228] sm:$0xff] }
 0x4a6   : > { %12191 = vst [vmem:[#allocation235_spill] sm:$0xff] %v9964_v27  ;;  %4791 = vmatprep.subr.mxu1 %v6562_v42  ;;  %v9969_v44 = vpop.eup %6238  ;;  %6264 = vrcp.f32 %v3714_v29  ;;  %4529 = vst [vmem:[%s8755_s23 + $0x368] sm:$0xff] %v9959_v7  ;;  %v12196_v6 = vld [vmem:[#allocation55_spill] sm:$0xff] }
 0x4a7   : > { %12194 = vst [vmem:[#allocation234_spill] sm:$0xff] %v9969_v44  ;;  %2741 = vmax.xlane.f32.xlu1 %v2740_v59  ;;  %v2781_v62 = vpop.xlane.xlu0 %2780  ;;  %4528 = vst [vmem:[%s8755_s23 + $0x360] sm:$0xff] %v9962_v25  ;;  %v9975_v22 = vpop.eup %6240  ;;  %6266 = vpow2.f32 %v3636_v3  ;;  %4726 = vmatprep.subr.mxu0 %v4209_v56  ;;  %v12197_v59 = vld [vmem:[#allocation50_spill] sm:$0xff]  ;;  %v3952_v3 = vadd.f32 %v9935_v53, %v9925_v10  ;;  %v12201_v10 = vld [vmem:[#allocation183_spill] sm:$0xff] }
 0x4a8   : > { %12195 = vst [vmem:[#allocation96_spill] sm:$0xff] %v9975_v22  ;;  %4465 = vst [vmem:[%s8755_s23 + $0x168] sm:$0xff] %v4209_v56  ;;  %v3070_v52 = vsub.f32 %v9005_v57, %v2781_v62  ;;  %v3071_v32 = vsub.f32 %v12196_v6, %v2781_v62  ;;  %v9981_v1 = vpop.eup %6242  ;;  %v3137_v29 = vsub.f32 %v12197_v59, %v9889_v5  ;;  %6268 = vpow2.f32 %v3644_v58  ;;  %v12199_v56 = vld [vmem:[#allocation272_spill] sm:$0xff]  ;;  %v6564_v62 = vld [vmem:[%s8755_s23 + $0x218] sm:$0xff] }
 0x4a9   : > { %4464 = vst [vmem:[%s8755_s23 + $0x160] sm:$0xff] %v4208_v4  ;;  %4727 = vmatpush2.xpose.msra.mxu0 %v4208_v4  ;;  %4792 = vmatpush1.xpose.msra.mxu1 %v6563_v26  ;;  %v9988_v28 = vpop.eup %6244  ;;  %v3134_v45 = vsub.f32 %v12199_v56, %v9842_v11  ;;  %6270 = vpow2.f32 %v3648_v14  ;;  %v12200_v5 = vld [vmem:[#allocation52_spill] sm:$0xff] }
 0x4aa   : > { %12198 = vst [vmem:[#allocation119_spill] sm:$0xff] %v9988_v28  ;;  %v3512_v57 = vmul.f32 1.442695, %v3070_v52  ;;  %v3514_v42 = vmul.f32 1.442695, %v3071_v32  ;;  %4793 = vmatprep.subr.mxu1 %v6564_v62  ;;  %v9993_v6 = vpop.eup %6246  ;;  %v3135_v58 = vsub.f32 %v12200_v5, %v9842_v11  ;;  %6272 = vpow2.f32 %v3650_v9  ;;  %v3822_v4 = vpop.xlane.xlu1 %3821  ;;  %v6565_v62 = vld [vmem:[%s8755_s23 + $0x210] sm:$0xff] }
 0x4ab   : > { %3953 = vadd.xlane.f32.xlu1 %v3952_v3  ;;  %v3711_v59 = vpop.xlane.xlu0 %3710  ;;  %v6249_v26 = vpop.eup %6248  ;;  %v3937_v14 = vadd.f32 %v9993_v6, %v9988_v28  ;;  %v3949_v52 = vadd.f32 %v9969_v44, %v9964_v27  ;;  %v3646_v56 = vmul.f32 1.442695, %v3137_v29  ;;  %v12202_v9 = vld [vmem:[#allocation185_spill] sm:$0xff]  ;;  %v3640_v5 = vmul.f32 1.442695, %v3134_v45  ;;  %v12204_v27 = vld [vmem:[#allocation51_spill] sm:$0xff] }
 0x4ac   : > { %6274 = vpow2.f32 %v3512_v57  ;;  %v6251_v32 = vpop.eup %6250  ;;  %v10003_v11 = vmul.f32 %v6249_v26, %v12201_v10  ;;  %v10006_v3 = vmul.f32 %v6249_v26, %v12202_v9  ;;  %v3642_v28 = vmul.f32 1.442695, %v3135_v58 }
 0x4ad   : > { %6276 = vpow2.f32 %v3514_v42  ;;  %4794 = vmatpush1.xpose.msra.mxu1 %v6565_v62  ;;  %v10008_v57 = vpop.eup %6252  ;;  %3938 = vadd.xlane.f32.xlu0 %v3937_v14  ;;  %v4207_v29 = vmul.f32 %v6251_v32, %v12204_v27  ;;  %v12205_v42 = vld [vmem:[#allocation153_spill] sm:$0xff]  ;;  %v6566_v62 = vld [vmem:[%s8755_s23 + $0x208] sm:$0xff] }
 0x4ae   : > { %12203 = vst [vmem:[#allocation205_spill] sm:$0xff] %v10008_v57  ;;  %6278 = vrcp.f32 %v3822_v4  ;;  %v4206_v44 = vmul.f32 %v6251_v32, %v12205_v42  ;;  %4795 = vmatprep.subr.mxu1 %v6566_v62  ;;  %v10013_v10 = vpop.eup %6254  ;;  %v3825_v26 = vpop.xlane.xlu1 %3824  ;;  %4531 = vst [vmem:[%s8755_s23 + $0x378] sm:$0xff] %v10003_v11  ;;  %v3946_v32 = vadd.f32 %v9981_v1, %v9975_v22 }
 0x4af   : > { %12206 = vst [vmem:[#allocation207_spill] sm:$0xff] %v10013_v10  ;;  %6280 = vrcp.f32 %v3711_v59  ;;  %3950 = vadd.xlane.f32.xlu1 %v3949_v52  ;;  %v2778_v9 = vpop.xlane.xlu0 %2777  ;;  %4530 = vst [vmem:[%s8755_s23 + $0x370] sm:$0xff] %v10006_v3  ;;  %v10019_v45 = vpop.eup %6256  ;;  %4728 = vmatprep.subr.mxu0 %v4207_v29  ;;  %v12209_v59 = vld [vmem:[#allocation154_spill] sm:$0xff] }
 0x4b0   : > { %12207 = vst [vmem:[#allocation60_spill] sm:$0xff] %v10019_v45  ;;  %4463 = vst [vmem:[%s8755_s23 + $0x158] sm:$0xff] %v4207_v29  ;;  %6282 = vrcp.f32 %v3825_v26  ;;  %v3068_v27 = vsub.f32 %v8963_v17, %v2778_v9  ;;  %v3069_v4 = vsub.f32 %v8989_v43, %v2778_v9  ;;  %v10025_v58 = vpop.eup %6258  ;;  %v3133_v14 = vsub.f32 %v12209_v59, %v9804_v35  ;;  %v6567_v52 = vld [vmem:[%s8755_s23 + $0x200] sm:$0xff] }
 0x4b1   : > { %4462 = vst [vmem:[%s8755_s23 + $0x150] sm:$0xff] %v4206_v44  ;;  %12208 = vst [vmem:[#allocation113_spill] sm:$0xff] %v10025_v58  ;;  %6284 = vpow2.f32 %v3646_v56  ;;  %4729 = vmatpush2.xpose.msra.mxu0 %v4206_v44  ;;  %4796 = vmatpush1.xpose.msra.mxu1 %v6567_v52  ;;  %v10032_v42 = vpop.eup %6260  ;;  %v3943_v56 = vadd.f32 %v10013_v10, %v10008_v57 }
 0x4b2   : > { %12210 = vst [vmem:[#allocation211_spill] sm:$0xff] %v10032_v42  ;;  %6286 = vpow2.f32 %v3640_v5  ;;  %v3508_v29 = vmul.f32 1.442695, %v3068_v27  ;;  %v3510_v62 = vmul.f32 1.442695, %v3069_v4  ;;  %v10034_v17 = vpop.eup %6262  ;;  %v3828_v43 = vpop.xlane.xlu1 %3827  ;;  %v12213_v27 = vld [vmem:[#allocation158_spill] sm:$0xff] }
 0x4b3   : > { %12211 = vst [vmem:[#allocation237_spill] sm:$0xff] %v10034_v17  ;;  %6288 = vpow2.f32 %v3642_v28  ;;  %3947 = vadd.xlane.f32.xlu1 %v3946_v32  ;;  %v3708_v26 = vpop.xlane.xlu0 %3707  ;;  %v6265_v35 = vpop.eup %6264  ;;  %v3934_v44 = vadd.f32 %v10034_v17, %v10032_v42  ;;  %v3638_v5 = vmul.f32 1.442695, %v3133_v14  ;;  %v12214_v28 = vld [vmem:[#allocation157_spill] sm:$0xff] }
 0x4b4   : > { %6290 = vpow2.f32 %v3508_v29  ;;  %v10040_v9 = vpop.eup %6266  ;;  %v4205_v4 = vmul.f32 %v6265_v35, %v12213_v27  ;;  %v4204_v59 = vmul.f32 %v6265_v35, %v12214_v28 }
 0x4b5   : > { %12212 = vst [vmem:[#allocation124_spill] sm:$0xff] %v10040_v9  ;;  %6292 = vpow2.f32 %v3510_v62  ;;  %v10044_v52 = vpop.eup %6268  ;;  %3935 = vadd.xlane.f32.xlu0 %v3934_v44 }
 0x4b6   : > { %12215 = vst [vmem:[#allocation100_spill] sm:$0xff] %v10044_v52  ;;  %6294 = vrcp.f32 %v3828_v43  ;;  %v10046_v32 = vpop.eup %6270  ;;  %4461 = vst [vmem:[%s8755_s23 + $0x148] sm:$0xff] %v4205_v4  ;;  %4730 = vmatprep.subr.mxu0 %v4205_v4  ;;  %v3831_v29 = vpop.xlane.xlu1 %3830  ;;  %v3940_v43 = vadd.f32 %v10025_v58, %v10019_v45  ;;  %v12251_v58 = vld [vmem:[#allocation169_spill] sm:$0xff] }
 0x4b7   : > { %12216 = vst [vmem:[#allocation212_spill] sm:$0xff] %v10046_v32  ;;  %6296 = vrcp.f32 %v3708_v26  ;;  %4460 = vst [vmem:[%s8755_s23 + $0x140] sm:$0xff] %v4204_v59  ;;  %3944 = vadd.xlane.f32.xlu1 %v3943_v56  ;;  %v2775_v57 = vpop.xlane.xlu0 %2774  ;;  %v10050_v10 = vpop.eup %6272  ;;  %4731 = vmatpush2.xpose.msra.mxu0 %v4204_v59 }
 0x4b8   : > { %12217 = vst [vmem:[#allocation213_spill] sm:$0xff] %v10050_v10  ;;  %6298 = vrcp.f32 %v3831_v29  ;;  %v3066_v14 = vsub.f32 %v8923_v21, %v2775_v57  ;;  %v3067_v62 = vsub.f32 %v8945_v18, %v2775_v57 }
 0x4b9   : > { %v10054_v35 = vpop.eup %6274  ;;  %6300 = vpow2.f32 %v3638_v5 }
 0x4ba   : > { %12218 = vst [vmem:[#allocation115_spill] sm:$0xff] %v10054_v35  ;;  %v10058_v26 = vpop.eup %6276  ;;  %v3504_v44 = vmul.f32 1.442695, %v3066_v14  ;;  %v3506_v56 = vmul.f32 1.442695, %v3067_v62  ;;  %v3834_v4 = vpop.xlane.xlu1 %3833  ;;  %v12220_v14 = vld [vmem:[#allocation72_spill] sm:$0xff] }
 0x4bb   : > { %12219 = vst [vmem:[#allocation217_spill] sm:$0xff] %v10058_v26  ;;  %v6279_v27 = vpop.eup %6278  ;;  %3941 = vadd.xlane.f32.xlu1 %v3940_v43  ;;  %v3705_v28 = vpop.xlane.xlu0 %3704  ;;  %v3931_v21 = vadd.f32 %v10058_v26, %v10054_v35  ;;  %v4033_v43 = vadd.f32 %v10050_v10, %v10046_v32  ;;  %v12239_v32 = vld [vmem:[#allocation168_spill] sm:$0xff]  ;;  %v12241_v26 = vld [vmem:[#allocation47_spill] sm:$0xff] }
 0x4bc   : > { %v6281_v18 = vpop.eup %6280  ;;  %6302 = vpow2.f32 %v3504_v44  ;;  %v10063_v57 = vmul.f32 %v6279_v27, %v9251_v24  ;;  %v10066_v5 = vmul.f32 %v6279_v27, %v9249_v30 }
 0x4bd   : > { %v6283_v59 = vpop.eup %6282  ;;  %6304 = vpow2.f32 %v3506_v56  ;;  %3932 = vadd.xlane.f32.xlu0 %v3931_v21  ;;  %v4203_v29 = vmul.f32 %v6281_v18, %v9227_v15  ;;  %v4202_v62 = vmul.f32 %v6281_v18, %v12220_v14 }
 0x4be   : > { %v10072_v35 = vpop.eup %6284  ;;  %6306 = vrcp.f32 %v3834_v4  ;;  %v10075_v24 = vmul.f32 %v6283_v59, %v9241_v20  ;;  %v10078_v30 = vmul.f32 %v6283_v59, %v9231_v0  ;;  %4533 = vst [vmem:[%s8755_s23 + $0x388] sm:$0xff] %v10063_v57  ;;  %4532 = vst [vmem:[%s8755_s23 + $0x380] sm:$0xff] %v10066_v5  ;;  %v3837_v44 = vpop.xlane.xlu1 %3836 }
 0x4bf   : > { %12221 = vst [vmem:[#allocation243_spill] sm:$0xff] %v10072_v35  ;;  %v10084_v15 = vpop.eup %6286  ;;  %6308 = vrcp.f32 %v3705_v28  ;;  %4459 = vst [vmem:[%s8755_s23 + $0x138] sm:$0xff] %v4203_v29  ;;  %4732 = vmatprep.subr.mxu0 %v4203_v29  ;;  %4034 = vadd.xlane.f32.xlu1 %v4033_v43  ;;  %v2772_v56 = vpop.xlane.xlu0 %2771  ;;  %v4030_v28 = vadd.f32 %v10072_v35, %v10044_v52 }
 0x4c0   : > { %12222 = vst [vmem:[#allocation241_spill] sm:$0xff] %v10084_v15  ;;  %4458 = vst [vmem:[%s8755_s23 + $0x130] sm:$0xff] %v4202_v62  ;;  %v10088_v20 = vpop.eup %6288  ;;  %4733 = vmatpush2.xpose.msra.mxu0 %v4202_v62  ;;  %6310 = vrcp.f32 %v3837_v44  ;;  %v3064_v0 = vsub.f32 %v8881_v48, %v2772_v56  ;;  %v3065_v27 = vsub.f32 %v8906_v51, %v2772_v56 }
 0x4c1   : > { %12223 = vst [vmem:[#allocation104_spill] sm:$0xff] %v10088_v20  ;;  %4535 = vst [vmem:[%s8755_s23 + $0x398] sm:$0xff] %v10075_v24  ;;  %v10096_v4 = vpop.eup %6290 }
 0x4c2   : > { %4534 = vst [vmem:[%s8755_s23 + $0x390] sm:$0xff] %v10078_v30  ;;  %12224 = vst [vmem:[#allocation247_spill] sm:$0xff] %v10096_v4  ;;  %v10100_v21 = vpop.eup %6292  ;;  %v3500_v18 = vmul.f32 1.442695, %v3064_v0  ;;  %v3502_v59 = vmul.f32 1.442695, %v3065_v27  ;;  %v3840_v14 = vpop.xlane.xlu1 %3839 }
 0x4c3   : > { %12225 = vst [vmem:[#allocation245_spill] sm:$0xff] %v10100_v21  ;;  %v6295_v29 = vpop.eup %6294  ;;  %4031 = vadd.xlane.f32.xlu1 %v4030_v28  ;;  %v3702_v62 = vpop.xlane.xlu0 %3701  ;;  %v3928_v48 = vadd.f32 %v10100_v21, %v10096_v4  ;;  %v12226_v0 = vld [vmem:[#allocation166_spill] sm:$0xff]  ;;  %v12227_v28 = vld [vmem:[#allocation69_spill] sm:$0xff]  ;;  %v4027_v4 = vadd.f32 %v10088_v20, %v10084_v15  ;;  %v12236_v20 = vld [vmem:[#allocation151_spill] sm:$0xff] }
 0x4c4   : > { %v6297_v51 = vpop.eup %6296  ;;  %6312 = vpow2.f32 %v3500_v18  ;;  %v10105_v43 = vmul.f32 %v6295_v29, %v9274_v60  ;;  %v10108_v44 = vmul.f32 %v6295_v29, %v9245_v13  ;;  %v12229_v18 = vld [vmem:[#allocation167_spill] sm:$0xff]  ;;  %v12230_v13 = vld [vmem:[#allocation80_spill] sm:$0xff] }
 0x4c5   : > { %v6299_v56 = vpop.eup %6298  ;;  %6314 = vpow2.f32 %v3502_v59  ;;  %3929 = vadd.xlane.f32.xlu0 %v3928_v48  ;;  %v4201_v27 = vmul.f32 %v6297_v51, %v12226_v0  ;;  %v4200_v52 = vmul.f32 %v6297_v51, %v12227_v28  ;;  %v12232_v0 = vld [vmem:[#allocation142_spill] sm:$0xff] }
 0x4c6   : > { %v10114_v21 = vpop.eup %6300  ;;  %6316 = vrcp.f32 %v3840_v14  ;;  %v10117_v60 = vmul.f32 %v6299_v56, %v12229_v18  ;;  %v10120_v29 = vmul.f32 %v6299_v56, %v12230_v13  ;;  %4537 = vst [vmem:[%s8755_s23 + $0x3a8] sm:$0xff] %v10105_v43  ;;  %4536 = vst [vmem:[%s8755_s23 + $0x3a0] sm:$0xff] %v10108_v44  ;;  %v3843_v59 = vpop.xlane.xlu1 %3842  ;;  %v12231_v14 = vld [vmem:[#allocation257_spill] sm:$0xff] }
 0x4c7   : > { %12228 = vst [vmem:[#allocation218_spill] sm:$0xff] %v10114_v21  ;;  %6318 = vrcp.f32 %v3702_v62  ;;  %4457 = vst [vmem:[%s8755_s23 + $0x128] sm:$0xff] %v4201_v27  ;;  %4734 = vmatprep.subr.mxu0 %v4201_v27  ;;  %4028 = vadd.xlane.f32.xlu1 %v4027_v4  ;;  %v2769_v48 = vpop.xlane.xlu0 %2768  ;;  %v4024_v62 = vadd.f32 %v10114_v21, %v10040_v9  ;;  %v12237_v21 = vld [vmem:[#allocation147_spill] sm:$0xff] }
 0x4c8   : > { %4456 = vst [vmem:[%s8755_s23 + $0x120] sm:$0xff] %v4200_v52  ;;  %4735 = vmatpush2.xpose.msra.mxu0 %v4200_v52  ;;  %6320 = vrcp.f32 %v3843_v59  ;;  %v3062_v51 = vsub.f32 %v12231_v14, %v2769_v48  ;;  %v3063_v28 = vsub.f32 %v12232_v0, %v2769_v48  ;;  %4539 = vst [vmem:[%s8755_s23 + $0x3b8] sm:$0xff] %v10117_v60  ;;  %v12235_v0 = vld [vmem:[#allocation56_spill] sm:$0xff] }
 0x4c9   : > { %4538 = vst [vmem:[%s8755_s23 + $0x3b0] sm:$0xff] %v10120_v29  ;;  %v10134_v56 = vpop.eup %6302 }
 0x4ca   : > { %12233 = vst [vmem:[#allocation219_spill] sm:$0xff] %v10134_v56  ;;  %v10138_v27 = vpop.eup %6304  ;;  %v3496_v4 = vmul.f32 1.442695, %v3062_v51  ;;  %v3498_v18 = vmul.f32 1.442695, %v3063_v28  ;;  %v2871_v52 = vpop.xlane.xlu1 %2870  ;;  %v12238_v28 = vld [vmem:[#allocation75_spill] sm:$0xff] }
 0x4cb   : > { %12234 = vst [vmem:[#allocation58_spill] sm:$0xff] %v10138_v27  ;;  %v6307_v13 = vpop.eup %6306  ;;  %4025 = vadd.xlane.f32.xlu1 %v4024_v62  ;;  %v3891_v59 = vpop.xlane.xlu0 %3890  ;;  %v3925_v48 = vadd.f32 %v10138_v27, %v10134_v56  ;;  %v3130_v15 = vsub.f32 %v12235_v0, %v2871_v52  ;;  %v3131_v9 = vsub.f32 %v12236_v20, %v2871_v52  ;;  %v12240_v27 = vld [vmem:[#allocation84_spill] sm:$0xff]  ;;  %v12242_v52 = vld [vmem:[#allocation46_spill] sm:$0xff] }
 0x4cc   : > { %v6309_v14 = vpop.eup %6308  ;;  %6322 = vpow2.f32 %v3496_v4  ;;  %v10145_v35 = vmul.f32 %v6307_v13, %v12237_v21  ;;  %v10150_v10 = vmul.f32 %v6307_v13, %v12240_v27  ;;  %v12244_v27 = vld [vmem:[#allocation254_spill] sm:$0xff] }
 0x4cd   : > { %v6311_v51 = vpop.eup %6310  ;;  %6324 = vpow2.f32 %v3498_v18  ;;  %3926 = vadd.xlane.f32.xlu0 %v3925_v48  ;;  %v4199_v62 = vmul.f32 %v6309_v14, %v12238_v28  ;;  %v4198_v56 = vmul.f32 %v6309_v14, %v12239_v32  ;;  %v3632_v4 = vmul.f32 1.442695, %v3130_v15 }
 0x4ce   : > { %v3634_v0 = vmul.f32 1.442695, %v3131_v9  ;;  %6326 = vrcp.f32 %v3891_v59  ;;  %v10153_v20 = vmul.f32 %v6311_v51, %v12241_v26  ;;  %4541 = vst [vmem:[%s8755_s23 + $0x3c8] sm:$0xff] %v10145_v35  ;;  %v3801_v21 = vpop.xlane.xlu1 %3800  ;;  %v10160_v32 = vmul.f32 %v6311_v51, %v12242_v52  ;;  %4540 = vst [vmem:[%s8755_s23 + $0x3c0] sm:$0xff] %v10150_v10  ;;  %v12243_v9 = vld [vmem:[#allocation251_spill] sm:$0xff] }
 0x4cf   : > { %4455 = vst [vmem:[%s8755_s23 + $0x118] sm:$0xff] %v4199_v62  ;;  %4736 = vmatprep.subr.mxu0 %v4199_v62  ;;  %4454 = vst [vmem:[%s8755_s23 + $0x110] sm:$0xff] %v4198_v56  ;;  %v2766_v18 = vpop.xlane.xlu0 %2765  ;;  %6328 = vpow2.f32 %v3632_v4 }
 0x4d0   : > { %4737 = vmatpush2.xpose.msra.mxu0 %v4198_v56  ;;  %v3060_v15 = vsub.f32 %v12243_v9, %v2766_v18  ;;  %v3061_v26 = vsub.f32 %v12244_v27, %v2766_v18  ;;  %4543 = vst [vmem:[%s8755_s23 + $0x3d8] sm:$0xff] %v10153_v20  ;;  %6330 = vpow2.f32 %v3634_v0  ;;  %4542 = vst [vmem:[%s8755_s23 + $0x3d0] sm:$0xff] %v10160_v32  ;;  %v12247_v18 = vld [vmem:[#allocation265_spill] sm:$0xff]  ;;  %v12248_v0 = vld [vmem:[#allocation148_spill] sm:$0xff] }
 0x4d1   : > { %v10168_v13 = vpop.eup %6312  ;;  %6332 = vrcp.f32 %v3801_v21  ;;  %v12249_v27 = vld [vmem:[#allocation170_spill] sm:$0xff] }
 0x4d2   : > { %12245 = vst [vmem:[#allocation105_spill] sm:$0xff] %v10168_v13  ;;  %v10172_v59 = vpop.eup %6314  ;;  %v3492_v48 = vmul.f32 1.442695, %v3060_v15  ;;  %v3494_v14 = vmul.f32 1.442695, %v3061_v26  ;;  %v2868_v28 = vpop.xlane.xlu1 %2867  ;;  %v12250_v15 = vld [vmem:[#allocation189_spill] sm:$0xff] }
 0x4d3   : > { %12246 = vst [vmem:[#allocation250_spill] sm:$0xff] %v10172_v59  ;;  %v6317_v51 = vpop.eup %6316  ;;  %v3888_v62 = vpop.xlane.xlu0 %3887  ;;  %v3922_v56 = vadd.f32 %v10172_v59, %v10168_v13  ;;  %v3128_v52 = vsub.f32 %v12247_v18, %v2868_v28  ;;  %v3129_v9 = vsub.f32 %v12248_v0, %v2868_v28  ;;  %v12252_v13 = vld [vmem:[#allocation77_spill] sm:$0xff]  ;;  %v12253_v18 = vld [vmem:[#allocation144_spill] sm:$0xff] }
 0x4d4   : > { %v6319_v4 = vpop.eup %6318  ;;  %6334 = vpow2.f32 %v3492_v48  ;;  %v4289_v45 = vmul.f32 %v6317_v51, %v12249_v27  ;;  %v4288_v59 = vmul.f32 %v6317_v51, %v12252_v13  ;;  %v12256_v51 = vld [vmem:[#allocation66_spill] sm:$0xff] }
 0x4d5   : > { %v6321_v21 = vpop.eup %6320  ;;  %6336 = vpow2.f32 %v3494_v14  ;;  %3923 = vadd.xlane.f32.xlu0 %v3922_v56  ;;  %v4197_v26 = vmul.f32 %v6319_v4, %v12250_v15  ;;  %v4196_v42 = vmul.f32 %v6319_v4, %v12251_v58  ;;  %v3628_v17 = vmul.f32 1.442695, %v3128_v52  ;;  %v12254_v56 = vld [vmem:[#allocation171_spill] sm:$0xff]  ;;  %v12255_v58 = vld [vmem:[#allocation246_spill] sm:$0xff] }
 0x4d6   : > { %v3630_v48 = vmul.f32 1.442695, %v3129_v9  ;;  %6338 = vrcp.f32 %v3888_v62  ;;  %v4291_v22 = vmul.f32 %v6321_v21, %v12253_v18  ;;  %4545 = vst [vmem:[%s8755_s23 + $0x3e8] sm:$0xff] %v4289_v45  ;;  %v3798_v14 = vpop.xlane.xlu1 %3797  ;;  %v4290_v0 = vmul.f32 %v6321_v21, %v12254_v56  ;;  %4544 = vst [vmem:[%s8755_s23 + $0x3e0] sm:$0xff] %v4288_v59 }
 0x4d7   : > { %4453 = vst [vmem:[%s8755_s23 + $0x108] sm:$0xff] %v4197_v26  ;;  %4738 = vmatprep.subr.mxu0 %v4197_v26  ;;  %4452 = vst [vmem:[%s8755_s23 + $0x100] sm:$0xff] %v4196_v42  ;;  %v2763_v28 = vpop.xlane.xlu0 %2762  ;;  %6340 = vpow2.f32 %v3628_v17  ;;  %v12257_v17 = vld [vmem:[#allocation14_spill] sm:$0xff]  ;;  %v12258_v26 = vld [vmem:[#allocation16_spill] sm:$0xff] }
 0x4d8   : > { %4739 = vmatpush2.xpose.msra.mxu0 %v4196_v42  ;;  %v3058_v13 = vsub.f32 %v12255_v58, %v2763_v28  ;;  %v3059_v4 = vsub.f32 %v12256_v51, %v2763_v28  ;;  %4547 = vst [vmem:[%s8755_s23 + $0x3f8] sm:$0xff] %v4291_v22  ;;  %4797 = vmatprep.subr.mxu1 %v4291_v22  ;;  %6342 = vpow2.f32 %v3630_v48  ;;  %4546 = vst [vmem:[%s8755_s23 + $0x3f0] sm:$0xff] %v4290_v0  ;;  %v12259_v48 = vld [vmem:[#allocation263_spill] sm:$0xff]  ;;  %v12260_v28 = vld [vmem:[#allocation145_spill] sm:$0xff] }
 0x4d9   : > { %v10191_v62 = vpop.eup %6322  ;;  %4798 = vmatpush2.xpose.msra.mxu1 %v4290_v0  ;;  %6344 = vrcp.f32 %v3798_v14  ;;  %v12261_v14 = vld [vmem:[#allocation172_spill] sm:$0xff] }
 0x4da   : > { %v10194_v52 = vpop.eup %6324  ;;  %v3488_v9 = vmul.f32 1.442695, %v3058_v13  ;;  %v3490_v27 = vmul.f32 1.442695, %v3059_v4  ;;  %4799 = vmatprep.subr.mxu1 %v4289_v45  ;;  %v2865_v42 = vpop.xlane.xlu1 %2864  ;;  %v12262_v58 = vld [vmem:[#allocation44_spill] sm:$0xff] }
 0x4db   : > { %v6327_v21 = vpop.eup %6326  ;;  %4741 = vmatmul.mubr.f32.vlgmr.msra.gmra.mxu0 %v12257_v17  ;;  %v3885_v15 = vpop.xlane.xlu0 %3884  ;;  %v3919_v22 = vadd.f32 %v10194_v52, %v10191_v62  ;;  %v3126_v18 = vsub.f32 %v12259_v48, %v2865_v42  ;;  %v3127_v56 = vsub.f32 %v12260_v28, %v2865_v42  ;;  %v12263_v42 = vld [vmem:[#allocation15_spill] sm:$0xff] }
 0x4dc   : > { %6346 = vpow2.f32 %v3488_v9  ;;  %4746 = vmatprep.mubr.f32.mxu0 %v12258_v26  ;;  %v4323_v0 = vmul.f32 %v6327_v21, %v12261_v14  ;;  %v10203_v45 = vpop.eup %6328  ;;  %v4322_v13 = vmul.f32 %v6327_v21, %v12262_v58  ;;  %v12265_v21 = vld [vmem:[#allocation62_spill] sm:$0xff]  ;;  %v12267_v28 = vld [vmem:[#allocation239_spill] sm:$0xff]  ;;  %v12270_v58 = vld [vmem:[#allocation173_spill] sm:$0xff] }
 0x4dd   : > { %6348 = vpow2.f32 %v3490_v27  ;;  %3920 = vadd.xlane.f32.xlu0 %v3919_v22  ;;  %4800 = vmatpush2.xpose.msra.mxu1 %v4288_v59  ;;  %v10206_v51 = vpop.eup %6330  ;;  %v3624_v4 = vmul.f32 1.442695, %v3126_v18  ;;  %v3626_v9 = vmul.f32 1.442695, %v3127_v56  ;;  %v12264_v27 = vld [vmem:[#allocation18_spill] sm:$0xff] }
 0x4de   : > { %6350 = vrcp.f32 %v3885_v15  ;;  %4579 = vst [vmem:[%s8755_s23 + $0x4f8] sm:$0xff] %v4323_v0  ;;  %4854 = vmatprep.subr.mxu0 %v4323_v0  ;;  %4801 = vmatprep.subr.mxu1 %v10153_v20  ;;  %v6333_v17 = vpop.eup %6332  ;;  %4578 = vst [vmem:[%s8755_s23 + $0x4f0] sm:$0xff] %v4322_v13  ;;  %v2862_v26 = vpop.xlane.xlu1 %2861  ;;  %v4021_v59 = vadd.f32 %v10206_v51, %v10203_v45  ;;  %v12266_v15 = vld [vmem:[#allocation63_spill] sm:$0xff]  ;;  %v12269_v14 = vld [vmem:[#allocation242_spill] sm:$0xff] }
 0x4df   : > { %4747 = vmatmul.mubr.f32.gmra.mxu0 %v12263_v42  ;;  %v2760_v48 = vpop.xlane.xlu0 %2759  ;;  %6352 = vpow2.f32 %v3624_v4  ;;  %v3124_v22 = vsub.f32 %v12265_v21, %v2862_v26  ;;  %v3125_v18 = vsub.f32 %v12266_v15, %v2862_v26  ;;  %v10223_v4 = vmul.f32 %v6333_v17, %v12270_v58 }
 0x4e0   : > { %4752 = vmatprep.mubr.f32.mxu0 %v12264_v27  ;;  %4855 = vmatpush1.xpose.msra.mxu0 %v4322_v13  ;;  %v3056_v56 = vsub.f32 %v12267_v28, %v2760_v48  ;;  %6354 = vpow2.f32 %v3626_v9  ;;  %v3057_v0 = vsub.f32 %v12269_v14, %v2760_v48  ;;  %v12271_v13 = vld [vmem:[#allocation45_spill] sm:$0xff] }
 0x4e1   : > { %v10218_v20 = vpop.eup %6334  ;;  %4022 = vadd.xlane.f32.xlu1 %v4021_v59  ;;  %4802 = vmatpush2.xpose.msra.mxu1 %v10160_v32  ;;  %v10226_v42 = vmul.f32 %v6333_v17, %v12271_v13  ;;  %v3620_v26 = vmul.f32 1.442695, %v3124_v22  ;;  %v3622_v21 = vmul.f32 1.442695, %v3125_v18  ;;  %v12273_v28 = vld [vmem:[#allocation17_spill] sm:$0xff]  ;;  %4519 = vst [vmem:[%s8755_s23 + $0x318] sm:$0xff] %v10223_v4 }
 0x4e2   : > { %12268 = vst [vmem:[#allocation249_spill] sm:$0xff] %v10218_v20  ;;  %v10228_v27 = vpop.eup %6336  ;;  %v3484_v15 = vmul.f32 1.442695, %v3056_v56  ;;  %4803 = vmatprep.subr.mxu1 %v10145_v35  ;;  %v3486_v48 = vmul.f32 1.442695, %v3057_v0  ;;  %v2859_v59 = vpop.xlane.xlu1 %2858  ;;  %v12274_v17 = vld [vmem:[#allocation20_spill] sm:$0xff] }
 0x4e3   : > { %12272 = vst [vmem:[#allocation107_spill] sm:$0xff] %v10228_v27  ;;  %v6339_v9 = vpop.eup %6338  ;;  %4753 = vmatmul.mubr.f32.gmra.mxu0 %v12273_v28  ;;  %v3882_v14 = vpop.xlane.xlu0 %3881  ;;  %v3916_v32 = vadd.f32 %v10228_v27, %v10218_v20  ;;  %4518 = vst [vmem:[%s8755_s23 + $0x310] sm:$0xff] %v10226_v42  ;;  %6356 = vpow2.f32 %v3620_v26  ;;  %v12275_v22 = vld [vmem:[#allocation253_spill] sm:$0xff]  ;;  %v12277_v0 = vld [vmem:[#allocation195_spill] sm:$0xff] }
 0x4e4   : > { %4758 = vmatprep.mubr.f32.mxu0 %v12274_v17  ;;  %v3122_v18 = vsub.f32 %v12275_v22, %v2859_v59  ;;  %v12276_v35 = vld [vmem:[#allocation65_spill] sm:$0xff]  ;;  %v4321_v58 = vmul.f32 %v6339_v9, %v12277_v0  ;;  %v10242_v13 = vpop.eup %6340  ;;  %6358 = vpow2.f32 %v3622_v21  ;;  %v12278_v28 = vld [vmem:[#allocation174_spill] sm:$0xff]  ;;  %v12279_v22 = vld [vmem:[#allocation19_spill] sm:$0xff] }
 0x4e5   : > { %v3123_v56 = vsub.f32 %v12276_v35, %v2859_v59  ;;  %3917 = vadd.xlane.f32.xlu0 %v3916_v32  ;;  %4804 = vmatpush2.xpose.msra.mxu1 %v10150_v10  ;;  %v4320_v20 = vmul.f32 %v6339_v9, %v12278_v28  ;;  %v10246_v27 = vpop.eup %6342  ;;  %6360 = vpow2.f32 %v3484_v15  ;;  %v12280_v9 = vld [vmem:[#allocation29_spill] sm:$0xff]  ;;  %v12281_v15 = vld [vmem:[#allocation248_spill] sm:$0xff]  ;;  %v12282_v35 = vld [vmem:[#allocation67_spill] sm:$0xff] }
 0x4e6   : > { %v3616_v26 = vmul.f32 1.442695, %v3122_v18  ;;  %4577 = vst [vmem:[%s8755_s23 + $0x4e8] sm:$0xff] %v4321_v58  ;;  %4856 = vmatprep.subr.mxu0 %v4321_v58  ;;  %4805 = vmatprep.subr.mxu1 %v10117_v60  ;;  %v6345_v59 = vpop.eup %6344  ;;  %6362 = vpow2.f32 %v3486_v48  ;;  %v2856_v21 = vpop.xlane.xlu1 %2855  ;;  %v4018_v10 = vadd.f32 %v10246_v27, %v10242_v13  ;;  %v12283_v0 = vld [vmem:[#allocation120_spill] sm:$0xff]  ;;  %v12285_v48 = vld [vmem:[#allocation126_spill] sm:$0xff] }
 0x4e7   : > { %v3618_v17 = vmul.f32 1.442695, %v3123_v56  ;;  %4759 = vmatmul.mubr.f32.gmra.mxu0 %v12279_v22  ;;  %4576 = vst [vmem:[%s8755_s23 + $0x4e0] sm:$0xff] %v4320_v20  ;;  %v2757_v32 = vpop.xlane.xlu0 %2756  ;;  %v3120_v18 = vsub.f32 %v12281_v15, %v2856_v21  ;;  %v3121_v56 = vsub.f32 %v12282_v35, %v2856_v21  ;;  %v12287_v22 = vld [vmem:[#allocation193_spill] sm:$0xff] }
 0x4e8   : > { %6364 = vpow2.f32 %v3616_v26  ;;  %4857 = vmatpush1.xpose.msra.mxu0 %v4320_v20  ;;  %4918 = vmatprep.mubr.f32.mxu0 %v12280_v9  ;;  %v3054_v60 = vsub.f32 %v12283_v0, %v2757_v32  ;;  %v3055_v28 = vsub.f32 %v12285_v48, %v2757_v32  ;;  %v12286_v26 = vld [vmem:[#allocation192_spill] sm:$0xff]  ;;  %v10266_v9 = vmul.f32 %v6345_v59, %v12287_v22 }
 0x4e9   : > { %v10258_v58 = vpop.eup %6346  ;;  %6366 = vpow2.f32 %v3618_v17  ;;  %4019 = vadd.xlane.f32.xlu1 %v4018_v10  ;;  %4806 = vmatpush2.xpose.msra.mxu1 %v10120_v29  ;;  %v10263_v20 = vmul.f32 %v6345_v59, %v12286_v26  ;;  %v3612_v21 = vmul.f32 1.442695, %v3120_v18  ;;  %v3614_v35 = vmul.f32 1.442695, %v3121_v56  ;;  %v12289_v59 = vld [vmem:[#allocation240_spill] sm:$0xff] }
 0x4ea   : > { %12284 = vst [vmem:[#allocation177_spill] sm:$0xff] %v10258_v58  ;;  %v10268_v15 = vpop.eup %6348  ;;  %6368 = vrcp.f32 %v3882_v14  ;;  %v3480_v0 = vmul.f32 1.442695, %v3054_v60  ;;  %4807 = vmatprep.subr.mxu1 %v10105_v43  ;;  %v3482_v32 = vmul.f32 1.442695, %v3055_v28  ;;  %v2853_v10 = vpop.xlane.xlu1 %2852  ;;  %4516 = vst [vmem:[%s8755_s23 + $0x300] sm:$0xff] %v10266_v9 }
 0x4eb   : > { %12288 = vst [vmem:[#allocation86_spill] sm:$0xff] %v10268_v15  ;;  %v6351_v17 = vpop.eup %6350  ;;  %v3879_v48 = vpop.xlane.xlu0 %3878  ;;  %v3913_v29 = vadd.f32 %v10268_v15, %v10258_v58  ;;  %4517 = vst [vmem:[%s8755_s23 + $0x308] sm:$0xff] %v10263_v20  ;;  %6370 = vpow2.f32 %v3612_v21  ;;  %v3118_v14 = vsub.f32 %v12289_v59, %v2853_v10  ;;  %v12290_v18 = vld [vmem:[#allocation244_spill] sm:$0xff]  ;;  %v12292_v28 = vld [vmem:[#allocation190_spill] sm:$0xff] }
 0x4ec   : > { %v3119_v56 = vsub.f32 %v12290_v18, %v2853_v10  ;;  %v12291_v60 = vld [vmem:[#allocation176_spill] sm:$0xff]  ;;  %v10280_v26 = vpop.eup %6352  ;;  %6372 = vpow2.f32 %v3614_v35  ;;  %v4318_v22 = vmul.f32 %v6351_v17, %v12292_v28 }
 0x4ed   : > { %v4319_v43 = vmul.f32 %v6351_v17, %v12291_v60  ;;  %3914 = vadd.xlane.f32.xlu0 %v3913_v29  ;;  %4808 = vmatpush2.xpose.msra.mxu1 %v10108_v44  ;;  %v10284_v58 = vpop.eup %6354  ;;  %6374 = vpow2.f32 %v3480_v0  ;;  %v3608_v15 = vmul.f32 1.442695, %v3118_v14  ;;  %v12293_v44 = vld [vmem:[#allocation122_spill] sm:$0xff] }
 0x4ee   : > { %v3610_v21 = vmul.f32 1.442695, %v3119_v56  ;;  %4809 = vmatprep.subr.mxu1 %v10075_v24  ;;  %6376 = vpow2.f32 %v3482_v32  ;;  %4574 = vst [vmem:[%s8755_s23 + $0x4d0] sm:$0xff] %v4318_v22  ;;  %v4015_v35 = vadd.f32 %v10284_v58, %v10280_v26  ;;  %v12294_v29 = vld [vmem:[#allocation238_spill] sm:$0xff] }
 0x4ef   : > { %4575 = vst [vmem:[%s8755_s23 + $0x4d8] sm:$0xff] %v4319_v43  ;;  %4858 = vmatprep.subr.mxu0 %v4319_v43  ;;  %v2754_v59 = vpop.xlane.xlu0 %2753  ;;  %6378 = vpow2.f32 %v3608_v15  ;;  %v12295_v0 = vld [vmem:[#allocation114_spill] sm:$0xff] }
 0x4f0   : > { %4859 = vmatpush1.xpose.msra.mxu0 %v4318_v22  ;;  %v2850_v10 = vpop.xlane.xlu1 %2849  ;;  %v3052_v14 = vsub.f32 %v12295_v0, %v2754_v59  ;;  %v10294_v56 = vpop.eup %6356  ;;  %6380 = vpow2.f32 %v3610_v21  ;;  %v12296_v60 = vld [vmem:[#allocation118_spill] sm:$0xff]  ;;  %4016 = vadd.xlane.f32.xlu1 %v4015_v35 }
 0x4f1   : > { %v3116_v17 = vsub.f32 %v12293_v44, %v2850_v10  ;;  %v3117_v18 = vsub.f32 %v12294_v29, %v2850_v10  ;;  %v3053_v24 = vsub.f32 %v12296_v60, %v2754_v59  ;;  %4810 = vmatpush2.xpose.msra.mxu1 %v10078_v30  ;;  %v10298_v32 = vpop.eup %6358  ;;  %6382 = vrcp.f32 %v3879_v48 }
 0x4f2   : > { %v3476_v15 = vmul.f32 1.442695, %v3052_v14  ;;  %4811 = vmatprep.subr.mxu1 %v10063_v57  ;;  %v10301_v22 = vpop.eup %6360  ;;  %v4012_v21 = vadd.f32 %v10298_v32, %v10294_v56  ;;  %v12297_v14 = vld [vmem:[#allocation94_spill] sm:$0xff] }
 0x4f3   : > { %v3604_v43 = vmul.f32 1.442695, %v3116_v17  ;;  %v3606_v28 = vmul.f32 1.442695, %v3117_v18  ;;  %v3478_v10 = vmul.f32 1.442695, %v3053_v24  ;;  %v3876_v29 = vpop.xlane.xlu0 %3875  ;;  %v10305_v59 = vpop.eup %6362 }
 0x4f4   : > { %v3972_v44 = vpop.xlane.xlu1 %3971  ;;  %4013 = vadd.xlane.f32.xlu1 %v4012_v21  ;;  %v3910_v48 = vadd.f32 %v10305_v59, %v10301_v22  ;;  %v12298_v24 = vld [vmem:[#allocation197_spill] sm:$0xff] }
 0x4f5   : > { %6384 = vpow2.f32 %v3604_v43  ;;  %v10307_v30 = vpop.eup %6364  ;;  %4812 = vmatpush2.xpose.msra.mxu1 %v10066_v5  ;;  %v12299_v43 = vld [vmem:[#allocation225_spill] sm:$0xff] }
 0x4f6   : > { %6386 = vpow2.f32 %v3606_v28  ;;  %v10312_v57 = vpop.eup %6366  ;;  %4813 = vmatprep.subr.mxu1 %v10003_v11  ;;  %3911 = vadd.xlane.f32.xlu0 %v3910_v48  ;;  %v12301_v11 = vld [vmem:[#allocation230_spill] sm:$0xff] }
 0x4f7   : > { %6388 = vpow2.f32 %v3476_v15  ;;  %v6369_v35 = vpop.eup %6368  ;;  %v2751_v18 = vpop.xlane.xlu0 %2750  ;;  %v4009_v0 = vadd.f32 %v10312_v57, %v10307_v30 }
 0x4f8   : > { %6390 = vpow2.f32 %v3478_v10  ;;  %v3975_v17 = vpop.xlane.xlu1 %3974  ;;  %v4317_v60 = vmul.f32 %v6369_v35, %v12297_v14  ;;  %v4316_v5 = vmul.f32 %v6369_v35, %v12298_v24  ;;  %v3050_v28 = vsub.f32 %v12299_v43, %v2751_v18  ;;  %v10320_v15 = vpop.eup %6370 }
 0x4f9   : > { %6392 = vrcp.f32 %v3972_v44  ;;  %12300 = vst [vmem:[#allocation188_spill] sm:$0xff] %v10320_v15  ;;  %v3051_v21 = vsub.f32 %v12301_v11, %v2751_v18  ;;  %4010 = vadd.xlane.f32.xlu1 %v4009_v0  ;;  %4814 = vmatpush2.xpose.msra.mxu1 %v10006_v3  ;;  %v10324_v10 = vpop.eup %6372 }
 0x4fa   : > { %6394 = vrcp.f32 %v3876_v29  ;;  %4573 = vst [vmem:[%s8755_s23 + $0x4c8] sm:$0xff] %v4317_v60  ;;  %4860 = vmatprep.subr.mxu0 %v4317_v60  ;;  %4572 = vst [vmem:[%s8755_s23 + $0x4c0] sm:$0xff] %v4316_v5  ;;  %v3472_v44 = vmul.f32 1.442695, %v3050_v28  ;;  %4815 = vmatprep.subr.mxu1 %v9959_v7  ;;  %v10329_v48 = vpop.eup %6374  ;;  %v4006_v18 = vadd.f32 %v10324_v10, %v10320_v15  ;;  %v12306_v28 = vld [vmem:[#allocation134_spill] sm:$0xff] }
 0x4fb   : > { %6396 = vrcp.f32 %v3975_v17  ;;  %12302 = vst [vmem:[#allocation252_spill] sm:$0xff] %v10329_v48  ;;  %4861 = vmatpush1.xpose.msra.mxu0 %v4316_v5  ;;  %v3474_v35 = vmul.f32 1.442695, %v3051_v21  ;;  %v3873_v29 = vpop.xlane.xlu0 %3872  ;;  %v10333_v0 = vpop.eup %6376 }
 0x4fc   : > { %v3978_v14 = vpop.xlane.xlu1 %3977  ;;  %12303 = vst [vmem:[#allocation140_spill] sm:$0xff] %v10333_v0  ;;  %6398 = vpow2.f32 %v3472_v44  ;;  %v10335_v3 = vpop.eup %6378  ;;  %v3907_v17 = vadd.f32 %v10333_v0, %v10329_v48  ;;  %v6574_v48 = vld [vmem:[%s8755_s23 + $0x320] sm:$0xff]  ;;  %v12322_v0 = vld [vmem:[#allocation200_spill] sm:$0xff] }
 0x4fd   : > { %12304 = vst [vmem:[#allocation196_spill] sm:$0xff] %v10335_v3  ;;  %6400 = vpow2.f32 %v3474_v35  ;;  %4007 = vadd.xlane.f32.xlu1 %v4006_v18  ;;  %4816 = vmatpush2.xpose.msra.mxu1 %v9962_v25  ;;  %v10340_v7 = vpop.eup %6380  ;;  %v12307_v25 = vld [vmem:[#allocation178_spill] sm:$0xff] }
 0x4fe   : > { %12305 = vst [vmem:[#allocation199_spill] sm:$0xff] %v10340_v7  ;;  %6402 = vrcp.f32 %v3978_v14  ;;  %4817 = vmatprep.subr.mxu1 %v9922_v46  ;;  %v6383_v60 = vpop.eup %6382  ;;  %3908 = vadd.xlane.f32.xlu0 %v3907_v17  ;;  %v4003_v43 = vadd.f32 %v10340_v7, %v10335_v3  ;;  %v12309_v46 = vld [vmem:[#allocation222_spill] sm:$0xff] }
 0x4ff   : > { %6404 = vrcp.f32 %v3873_v29  ;;  %v2748_v5 = vpop.xlane.xlu0 %2747  ;;  %v4315_v11 = vmul.f32 %v6383_v60, %v12306_v28  ;;  %v4314_v21 = vmul.f32 %v6383_v60, %v12307_v25  ;;  %v6568_v29 = vld [vmem:[%s8755_s23 + $0x350] sm:$0xff]  ;;  %v6569_v28 = vld [vmem:[%s8755_s23 + $0x348] sm:$0xff] }
 0x500   : > { %v3981_v24 = vpop.xlane.xlu1 %3980  ;;  %v3048_v44 = vsub.f32 %v12098_v54, %v2748_v5  ;;  %v3049_v14 = vsub.f32 %v12309_v46, %v2748_v5 }
 0x501   : > { %6406 = vrcp.f32 %v3981_v24  ;;  %4004 = vadd.xlane.f32.xlu1 %v4003_v43  ;;  %4818 = vmatpush2.xpose.msra.mxu1 %v6568_v29  ;;  %4571 = vst [vmem:[%s8755_s23 + $0x4b8] sm:$0xff] %v4315_v11  ;;  %4570 = vst [vmem:[%s8755_s23 + $0x4b0] sm:$0xff] %v4314_v21 }
 0x502   : > { %v10348_v35 = vpop.eup %6384  ;;  %4862 = vmatprep.subr.mxu0 %v4315_v11  ;;  %v3468_v17 = vmul.f32 1.442695, %v3048_v44  ;;  %4819 = vmatprep.subr.mxu1 %v6569_v28  ;;  %v3470_v54 = vmul.f32 1.442695, %v3049_v14  ;;  %v6570_v44 = vld [vmem:[%s8755_s23 + $0x340] sm:$0xff] }
 0x503   : > { %12308 = vst [vmem:[#allocation160_spill] sm:$0xff] %v10348_v35  ;;  %v10352_v18 = vpop.eup %6386  ;;  %4863 = vmatpush1.xpose.msra.mxu0 %v4314_v21  ;;  %v3870_v25 = vpop.xlane.xlu0 %3869  ;;  %v6571_v21 = vld [vmem:[%s8755_s23 + $0x338] sm:$0xff]  ;;  %v12313_v14 = vld [vmem:[#allocation198_spill] sm:$0xff] }
 0x504   : > { %12310 = vst [vmem:[#allocation90_spill] sm:$0xff] %v10352_v18  ;;  %v10357_v60 = vpop.eup %6388  ;;  %v3984_v24 = vpop.xlane.xlu1 %3983  ;;  %v4000_v5 = vadd.f32 %v10352_v18, %v10348_v35  ;;  %6408 = vpow2.f32 %v3468_v17  ;;  %v12314_v17 = vld [vmem:[#allocation203_spill] sm:$0xff] }
 0x505   : > { %12311 = vst [vmem:[#allocation255_spill] sm:$0xff] %v10357_v60  ;;  %v10361_v43 = vpop.eup %6390  ;;  %6410 = vpow2.f32 %v3470_v54  ;;  %4820 = vmatpush2.xpose.msra.mxu1 %v6570_v44 }
 0x506   : > { %12312 = vst [vmem:[#allocation191_spill] sm:$0xff] %v10361_v43  ;;  %v6393_v46 = vpop.eup %6392  ;;  %4001 = vadd.xlane.f32.xlu1 %v4000_v5  ;;  %v3904_v11 = vadd.f32 %v10361_v43, %v10357_v60  ;;  %6412 = vrcp.f32 %v3984_v24  ;;  %4821 = vmatprep.subr.mxu1 %v6571_v21  ;;  %v12315_v5 = vld [vmem:[#allocation201_spill] sm:$0xff]  ;;  %v12316_v60 = vld [vmem:[#allocation135_spill] sm:$0xff]  ;;  %v12317_v24 = vld [vmem:[#allocation138_spill] sm:$0xff] }
 0x507   : > { %v6395_v29 = vpop.eup %6394  ;;  %v10368_v28 = vmul.f32 %v6393_v46, %v12313_v14  ;;  %v10371_v35 = vmul.f32 %v6393_v46, %v12314_v17  ;;  %6414 = vrcp.f32 %v3870_v25  ;;  %v12318_v14 = vld [vmem:[#allocation204_spill] sm:$0xff]  ;;  %v6573_v17 = vld [vmem:[%s8755_s23 + $0x328] sm:$0xff] }
 0x508   : > { %v6397_v54 = vpop.eup %6396  ;;  %3905 = vadd.xlane.f32.xlu0 %v3904_v11  ;;  %v4313_v44 = vmul.f32 %v6395_v29, %v12315_v5  ;;  %v4312_v43 = vmul.f32 %v6395_v29, %v12316_v60  ;;  %v3987_v18 = vpop.xlane.xlu1 %3986 }
 0x509   : > { %6416 = vrcp.f32 %v3987_v18  ;;  %v10376_v21 = vmul.f32 %v6397_v54, %v12317_v24  ;;  %v10379_v3 = vmul.f32 %v6397_v54, %v12318_v14  ;;  %4633 = vst [vmem:[%s8755_s23 + $0x6a8] sm:$0xff] %v10368_v28  ;;  %4632 = vst [vmem:[%s8755_s23 + $0x6a0] sm:$0xff] %v10371_v35  ;;  %v10385_v25 = vpop.eup %6398  ;;  %v2745_v60 = vpop.xlane.xlu0 %2744  ;;  %v6572_v18 = vld [vmem:[%s8755_s23 + $0x330] sm:$0xff] }
 0x50a   : > { %12319 = vst [vmem:[#allocation64_spill] sm:$0xff] %v10385_v25  ;;  %4569 = vst [vmem:[%s8755_s23 + $0x4a8] sm:$0xff] %v4313_v44  ;;  %4864 = vmatprep.subr.mxu0 %v4313_v44  ;;  %4822 = vmatpush2.xpose.msra.mxu1 %v6572_v18  ;;  %v10390_v46 = vpop.eup %6400  ;;  %v3046_v11 = vsub.f32 %v12116_v2, %v2745_v60  ;;  %v3047_v29 = vsub.f32 %v12115_v50, %v2745_v60 }
 0x50b   : > { %4568 = vst [vmem:[%s8755_s23 + $0x4a0] sm:$0xff] %v4312_v43  ;;  %12320 = vst [vmem:[#allocation187_spill] sm:$0xff] %v10390_v46  ;;  %4865 = vmatpush1.xpose.msra.mxu0 %v4312_v43  ;;  %4823 = vmatprep.subr.mxu1 %v6573_v17  ;;  %v6403_v54 = vpop.eup %6402  ;;  %v3901_v44 = vadd.f32 %v10390_v46, %v10385_v25  ;;  %v12321_v17 = vld [vmem:[#allocation206_spill] sm:$0xff]  ;;  %v12323_v25 = vld [vmem:[#allocation132_spill] sm:$0xff] }
 0x50c   : > { %4635 = vst [vmem:[%s8755_s23 + $0x6b8] sm:$0xff] %v10376_v21  ;;  %4634 = vst [vmem:[%s8755_s23 + $0x6b0] sm:$0xff] %v10379_v3  ;;  %v2847_v5 = vpop.xlane.xlu1 %2846  ;;  %v6405_v24 = vpop.eup %6404  ;;  %v3464_v14 = vmul.f32 1.442695, %v3046_v11  ;;  %v3466_v18 = vmul.f32 1.442695, %v3047_v29  ;;  %v10407_v46 = vmul.f32 %v6403_v54, %v12323_v25 }
 0x50d   : > { %v3114_v43 = vsub.f32 %v12119_v16, %v2847_v5  ;;  %v3115_v50 = vsub.f32 %v12118_v63, %v2847_v5  ;;  %v3957_v60 = vpop.xlane.xlu0 %3956  ;;  %3902 = vadd.xlane.f32.xlu0 %v3901_v44  ;;  %v4311_v7 = vmul.f32 %v6405_v24, %v12321_v17  ;;  %v4310_v15 = vmul.f32 %v6405_v24, %v12322_v0  ;;  %v12324_v0 = vld [vmem:[#allocation210_spill] sm:$0xff]  ;;  %v12325_v25 = vld [vmem:[#allocation229_spill] sm:$0xff]  ;;  %v12328_v17 = vld [vmem:[#allocation139_spill] sm:$0xff] }
 0x50e   : > { %v6407_v2 = vpop.eup %6406  ;;  %4824 = vmatpush2.xpose.msra.mxu1 %v6574_v48  ;;  %6418 = vpow2.f32 %v3464_v14  ;;  %4637 = vst [vmem:[%s8755_s23 + $0x6c8] sm:$0xff] %v10407_v46  ;;  %v10421_v5 = vmul.f32 %v6403_v54, %v12325_v25 }
 0x50f   : > { %v3600_v16 = vmul.f32 1.442695, %v3114_v43  ;;  %v3602_v11 = vmul.f32 1.442695, %v3115_v50  ;;  %4825 = vmatprep.subr.mxu1 %v10223_v4  ;;  %v10411_v63 = vmul.f32 %v6407_v2, %v9693_v33  ;;  %6420 = vpow2.f32 %v3466_v18  ;;  %4567 = vst [vmem:[%s8755_s23 + $0x498] sm:$0xff] %v4311_v7  ;;  %4866 = vmatprep.subr.mxu0 %v4311_v7  ;;  %4566 = vst [vmem:[%s8755_s23 + $0x490] sm:$0xff] %v4310_v15 }
 0x510   : > { %v3969_v48 = vpop.xlane.xlu1 %3968  ;;  %v10416_v29 = vmul.f32 %v6407_v2, %v12324_v0  ;;  %4867 = vmatpush1.xpose.msra.mxu0 %v4310_v15  ;;  %4636 = vst [vmem:[%s8755_s23 + $0x6c0] sm:$0xff] %v10421_v5  ;;  %v12326_v18 = vld [vmem:[#allocation116_spill] sm:$0xff] }
 0x511   : > { %6422 = vpow2.f32 %v3600_v16  ;;  %4639 = vst [vmem:[%s8755_s23 + $0x6d8] sm:$0xff] %v10411_v63  ;;  %v10425_v33 = vpop.eup %6408  ;;  %v3864_v4 = vpop.xlane.xlu0 %3863 }
 0x512   : > { %6424 = vpow2.f32 %v3602_v11  ;;  %4826 = vmatpush2.xpose.msra.mxu1 %v10226_v42  ;;  %4638 = vst [vmem:[%s8755_s23 + $0x6d0] sm:$0xff] %v10416_v29  ;;  %v10432_v7 = vpop.eup %6410  ;;  %v12329_v11 = vld [vmem:[#allocation133_spill] sm:$0xff] }
 0x513   : > { %6426 = vrcp.f32 %v3957_v60  ;;  %4827 = vmatprep.subr.mxu1 %v10263_v20  ;;  %v6413_v54 = vpop.eup %6412  ;;  %v3898_v44 = vadd.f32 %v10432_v7, %v10425_v33  ;;  %v12327_v20 = vld [vmem:[#allocation208_spill] sm:$0xff] }
 0x514   : > { %6428 = vrcp.f32 %v3969_v48  ;;  %v2844_v15 = vpop.xlane.xlu1 %2843  ;;  %v6415_v24 = vpop.eup %6414  ;;  %v4385_v43 = vmul.f32 %v6413_v54, %v12326_v18  ;;  %v4384_v48 = vmul.f32 %v6413_v54, %v12329_v11  ;;  %v12335_v11 = vld [vmem:[#allocation25_spill] sm:$0xff] }
 0x515   : > { %6430 = vrcp.f32 %v3864_v4  ;;  %v3112_v42 = vsub.f32 %v12135_v23, %v2844_v15  ;;  %v3113_v14 = vsub.f32 %v12134_v8, %v2844_v15  ;;  %v3861_v2 = vpop.xlane.xlu0 %3860  ;;  %3899 = vadd.xlane.f32.xlu0 %v3898_v44  ;;  %v4309_v60 = vmul.f32 %v6415_v24, %v12327_v20  ;;  %v12330_v8 = vld [vmem:[#allocation137_spill] sm:$0xff]  ;;  %v12331_v15 = vld [vmem:[#allocation136_spill] sm:$0xff]  ;;  %v12334_v20 = vld [vmem:[#allocation22_spill] sm:$0xff] }
 0x516   : > { %v6417_v50 = vpop.eup %6416  ;;  %4828 = vmatpush2.xpose.msra.mxu1 %v10266_v9  ;;  %v4308_v16 = vmul.f32 %v6415_v24, %v12328_v17  ;;  %6432 = vrcp.f32 %v3861_v2  ;;  %4641 = vst [vmem:[%s8755_s23 + $0x6e8] sm:$0xff] %v4385_v43  ;;  %4640 = vst [vmem:[%s8755_s23 + $0x6e0] sm:$0xff] %v4384_v48  ;;  %v12332_v9 = vld [vmem:[#allocation21_spill] sm:$0xff]  ;;  %v12333_v24 = vld [vmem:[#allocation23_spill] sm:$0xff] }
 0x517   : > { %v3596_v0 = vmul.f32 1.442695, %v3112_v42  ;;  %v3598_v23 = vmul.f32 1.442695, %v3113_v14  ;;  %v4387_v25 = vmul.f32 %v6417_v50, %v12330_v8  ;;  %4565 = vst [vmem:[%s8755_s23 + $0x488] sm:$0xff] %v4309_v60  ;;  %4868 = vmatprep.subr.mxu0 %v4309_v60  ;;  %v4386_v44 = vmul.f32 %v6417_v50, %v12331_v15  ;;  %v12337_v15 = vld [vmem:[#allocation216_spill] sm:$0xff] }
 0x518   : > { %4564 = vst [vmem:[%s8755_s23 + $0x480] sm:$0xff] %v4308_v16  ;;  %v3966_v4 = vpop.xlane.xlu1 %3965  ;;  %4869 = vmatpush1.xpose.msra.mxu0 %v4308_v16 }
 0x519   : > { %6434 = vpow2.f32 %v3596_v0  ;;  %4830 = vmatmul.mubr.f32.vlgmr.msra.gmra.mxu1 %v12332_v9  ;;  %4643 = vst [vmem:[%s8755_s23 + $0x6f8] sm:$0xff] %v4387_v25  ;;  %v3858_v54 = vpop.xlane.xlu0 %3857  ;;  %4943 = vmatprep.subr.mxu1 %v4387_v25  ;;  %4642 = vst [vmem:[%s8755_s23 + $0x6f0] sm:$0xff] %v4386_v44  ;;  %v12338_v9 = vld [vmem:[#allocation131_spill] sm:$0xff] }
 0x51a   : > { %6436 = vpow2.f32 %v3598_v23  ;;  %4835 = vmatprep.mubr.f32.mxu1 %v12333_v24  ;;  %4944 = vmatpush1.xpose.msra.mxu1 %v4386_v44  ;;  %v12339_v24 = vld [vmem:[#allocation27_spill] sm:$0xff] }
 0x51b   : > { %6438 = vrcp.f32 %v3966_v4  ;;  %v10454_v42 = vpop.eup %6418  ;;  %4945 = vmatprep.subr.mxu1 %v4385_v43  ;;  %v12336_v4 = vld [vmem:[#allocation24_spill] sm:$0xff] }
 0x51c   : > { %6440 = vrcp.f32 %v3858_v54  ;;  %v2841_v14 = vpop.xlane.xlu1 %2840  ;;  %v10456_v18 = vpop.eup %6420 }
 0x51d   : > { %v3110_v50 = vsub.f32 %v12148_v61, %v2841_v14  ;;  %v3111_v2 = vsub.f32 %v12147_v41, %v2841_v14  ;;  %4836 = vmatmul.mubr.f32.gmra.mxu1 %v12334_v20  ;;  %v3855_v17 = vpop.xlane.xlu0 %3854  ;;  %v3895_v16 = vadd.f32 %v10456_v18, %v10454_v42  ;;  %v12340_v14 = vld [vmem:[#allocation221_spill] sm:$0xff] }
 0x51e   : > { %v10461_v60 = vpop.eup %6422  ;;  %4841 = vmatprep.mubr.f32.mxu1 %v12335_v11  ;;  %6442 = vrcp.f32 %v3855_v17  ;;  %4946 = vmatpush1.xpose.msra.mxu1 %v4384_v48  ;;  %v12342_v17 = vld [vmem:[#allocation130_spill] sm:$0xff] }
 0x51f   : > { %v10466_v0 = vpop.eup %6424  ;;  %v3592_v43 = vmul.f32 1.442695, %v3110_v50  ;;  %v3594_v23 = vmul.f32 1.442695, %v3111_v2  ;;  %3896 = vadd.xlane.f32.xlu0 %v3895_v16  ;;  %4947 = vmatprep.subr.mxu1 %v10411_v63  ;;  %v12341_v2 = vld [vmem:[#allocation214_spill] sm:$0xff] }
 0x520   : > { %v6427_v8 = vpop.eup %6426  ;;  %v3963_v41 = vpop.xlane.xlu1 %3962  ;;  %v3997_v61 = vadd.f32 %v10466_v0, %v10461_v60  ;;  %v12343_v11 = vld [vmem:[#allocation110_spill] sm:$0xff] }
 0x521   : > { %v6429_v25 = vpop.eup %6428  ;;  %6444 = vpow2.f32 %v3592_v43  ;;  %4842 = vmatmul.mubr.f32.gmra.mxu1 %v12336_v4  ;;  %v10473_v44 = vmul.f32 %v6427_v8, %v12337_v15  ;;  %v10476_v54 = vmul.f32 %v6427_v8, %v12338_v9  ;;  %v3852_v63 = vpop.xlane.xlu0 %3851  ;;  %v12346_v9 = vld [vmem:[#allocation73_spill] sm:$0xff] }
 0x522   : > { %v6431_v48 = vpop.eup %6430  ;;  %6446 = vpow2.f32 %v3594_v23  ;;  %3998 = vadd.xlane.f32.xlu1 %v3997_v61  ;;  %4847 = vmatprep.mubr.f32.mxu1 %v12339_v24  ;;  %v4375_v50 = vmul.f32 %v6429_v25, %v12340_v14  ;;  %v10481_v20 = vmul.f32 %v6429_v25, %v12341_v2  ;;  %v12344_v61 = vld [vmem:[#allocation26_spill] sm:$0xff] }
 0x523   : > { %6448 = vrcp.f32 %v3963_v41  ;;  %4948 = vmatpush1.xpose.msra.mxu1 %v10416_v29  ;;  %v10485_v16 = vmul.f32 %v6431_v48, %v12342_v17  ;;  %4623 = vst [vmem:[%s8755_s23 + $0x658] sm:$0xff] %v10473_v44  ;;  %v10490_v43 = vmul.f32 %v6431_v48, %v12343_v11  ;;  %4622 = vst [vmem:[%s8755_s23 + $0x650] sm:$0xff] %v10476_v54  ;;  %v6433_v23 = vpop.eup %6432  ;;  %v12347_v17 = vld [vmem:[#allocation223_spill] sm:$0xff]  ;;  %v12348_v11 = vld [vmem:[#allocation128_spill] sm:$0xff] }
 0x524   : > { %6450 = vrcp.f32 %v3852_v63  ;;  %4949 = vmatprep.subr.mxu1 %v10407_v46  ;;  %v2838_v8 = vpop.xlane.xlu1 %2837  ;;  %4631 = vst [vmem:[%s8755_s23 + $0x698] sm:$0xff] %v4375_v50  ;;  %4630 = vst [vmem:[%s8755_s23 + $0x690] sm:$0xff] %v10481_v20  ;;  %v10506_v25 = vmul.f32 %v6433_v23, %v9806_v39  ;;  %v12345_v46 = vld [vmem:[#allocation129_spill] sm:$0xff] }
 0x525   : > { %v3108_v29 = vsub.f32 %v12164_v49, %v2838_v8  ;;  %v3109_v41 = vsub.f32 %v12163_v38, %v2838_v8  ;;  %4848 = vmatmul.mubr.f32.gmra.mxu1 %v12344_v61  ;;  %4561 = vst [vmem:[%s8755_s23 + $0x468] sm:$0xff] %v10485_v16  ;;  %4560 = vst [vmem:[%s8755_s23 + $0x460] sm:$0xff] %v10490_v43  ;;  %v10509_v4 = vmul.f32 %v6433_v23, %v12345_v46  ;;  %v12349_v8 = vld [vmem:[#allocation125_spill] sm:$0xff] }
 0x526   : > { %v10511_v15 = vpop.eup %6434  ;;  %5007 = vmatprep.mubr.f32.mxu1 %v12346_v9  ;;  %4559 = vst [vmem:[%s8755_s23 + $0x458] sm:$0xff] %v10506_v25  ;;  %v3849_v63 = vpop.xlane.xlu0 %3848 }
 0x527   : > { %v10514_v48 = vpop.eup %6436  ;;  %v3588_v49 = vmul.f32 1.442695, %v3108_v29  ;;  %v3590_v38 = vmul.f32 1.442695, %v3109_v41  ;;  %4950 = vmatpush1.xpose.msra.mxu1 %v10421_v5  ;;  %4558 = vst [vmem:[%s8755_s23 + $0x450] sm:$0xff] %v10509_v4  ;;  %v12350_v41 = vld [vmem:[#allocation220_spill] sm:$0xff] }
 0x528   : > { %v6439_v39 = vpop.eup %6438  ;;  %4951 = vmatprep.subr.mxu1 %v10376_v21  ;;  %v3960_v24 = vpop.xlane.xlu1 %3959  ;;  %v3994_v14 = vadd.f32 %v10514_v48, %v10511_v15 }
 0x529   : > { %v6441_v2 = vpop.eup %6440  ;;  %6452 = vpow2.f32 %v3588_v49  ;;  %v4373_v5 = vmul.f32 %v6439_v39, %v12347_v17  ;;  %v4372_v23 = vmul.f32 %v6439_v39, %v12348_v11 }
 0x52a   : > { %6454 = vpow2.f32 %v3590_v38  ;;  %3995 = vadd.xlane.f32.xlu1 %v3994_v14  ;;  %v10527_v29 = vmul.f32 %v6441_v2, %v12349_v8  ;;  %v10530_v61 = vmul.f32 %v6441_v2, %v12350_v41 }
 0x52b   : > { %6456 = vrcp.f32 %v3849_v63  ;;  %4952 = vmatpush1.xpose.msra.mxu1 %v10379_v3  ;;  %4629 = vst [vmem:[%s8755_s23 + $0x688] sm:$0xff] %v4373_v5  ;;  %4628 = vst [vmem:[%s8755_s23 + $0x680] sm:$0xff] %v4372_v23  ;;  %v6443_v21 = vpop.eup %6442 }
 0x52c   : > { %6458 = vrcp.f32 %v3960_v24  ;;  %4953 = vmatprep.subr.mxu1 %v10368_v28  ;;  %v3867_v46 = vpop.xlane.xlu1 %3866  ;;  %4557 = vst [vmem:[%s8755_s23 + $0x448] sm:$0xff] %v10527_v29  ;;  %4556 = vst [vmem:[%s8755_s23 + $0x440] sm:$0xff] %v10530_v61  ;;  %v10541_v9 = vmul.f32 %v6443_v21, %v9844_v40  ;;  %v10544_v49 = vmul.f32 %v6443_v21, %v9827_v12  ;;  %v12351_v21 = vld [vmem:[#allocation123_spill] sm:$0xff] }
 0x52d   : > { %6460 = vrcp.f32 %v3867_v46 }
 0x52e   : > { %v10546_v3 = vpop.eup %6444  ;;  %4555 = vst [vmem:[%s8755_s23 + $0x438] sm:$0xff] %v10541_v9  ;;  %4554 = vst [vmem:[%s8755_s23 + $0x430] sm:$0xff] %v10544_v49  ;;  %v3846_v39 = vpop.xlane.xlu0 %3845 }
 0x52f   : > { %v10548_v38 = vpop.eup %6446  ;;  %4954 = vmatpush1.xpose.msra.mxu1 %v10371_v35  ;;  %6462 = vrcp.f32 %v3846_v39 }
 0x530   : > { %v6449_v28 = vpop.eup %6448  ;;  %4955 = vmatprep.subr.mxu1 %v4375_v50  ;;  %v3991_v40 = vadd.f32 %v10548_v38, %v10546_v3  ;;  %v2742_v63 = vpop.xlane.xlu1 %2741 }
 0x531   : > { %v6451_v12 = vpop.eup %6450  ;;  %v4371_v24 = vmul.f32 %v6449_v28, %v9788_v19  ;;  %v4370_v35 = vmul.f32 %v6449_v28, %v9783_v34  ;;  %v3044_v14 = vsub.f32 %v12188_v55, %v2742_v63  ;;  %v3045_v2 = vsub.f32 %v12187_v31, %v2742_v63  ;;  %v12352_v28 = vld [vmem:[#allocation121_spill] sm:$0xff]  ;;  %v12354_v63 = vld [vmem:[#allocation228_spill] sm:$0xff] }
 0x532   : > { %3992 = vadd.xlane.f32.xlu1 %v3991_v40  ;;  %v10562_v17 = vmul.f32 %v6451_v12, %v9864_v37  ;;  %v10565_v50 = vmul.f32 %v6451_v12, %v9856_v47  ;;  %v12353_v40 = vld [vmem:[#allocation127_spill] sm:$0xff] }
 0x533   : > { %4956 = vmatpush1.xpose.msra.mxu1 %v10481_v20  ;;  %4627 = vst [vmem:[%s8755_s23 + $0x678] sm:$0xff] %v4371_v24  ;;  %4626 = vst [vmem:[%s8755_s23 + $0x670] sm:$0xff] %v4370_v35  ;;  %v3460_v11 = vmul.f32 1.442695, %v3044_v14  ;;  %v3462_v8 = vmul.f32 1.442695, %v3045_v2 }
 0x534   : > { %4957 = vmatprep.subr.mxu1 %v4373_v5  ;;  %4553 = vst [vmem:[%s8755_s23 + $0x428] sm:$0xff] %v10562_v17  ;;  %4552 = vst [vmem:[%s8755_s23 + $0x420] sm:$0xff] %v10565_v50  ;;  %v3954_v34 = vpop.xlane.xlu1 %3953  ;;  %v12355_v14 = vld [vmem:[#allocation231_spill] sm:$0xff] }
 0x535   : > { %6464 = vpow2.f32 %v3460_v11 }
 0x536   : > { %v10574_v19 = vpop.eup %6452  ;;  %6466 = vpow2.f32 %v3462_v8  ;;  %v3939_v31 = vpop.xlane.xlu0 %3938 }
 0x537   : > { %v10576_v37 = vpop.eup %6454  ;;  %4958 = vmatpush1.xpose.msra.mxu1 %v4372_v23  ;;  %6468 = vrcp.f32 %v3954_v34  ;;  %v12357_v34 = vld [vmem:[#allocation117_spill] sm:$0xff] }
 0x538   : > { %v6457_v47 = vpop.eup %6456  ;;  %4959 = vmatprep.subr.mxu1 %v4371_v24  ;;  %v3988_v55 = vadd.f32 %v10576_v37, %v10574_v19  ;;  %6470 = vrcp.f32 %v3939_v31  ;;  %v3951_v5 = vpop.xlane.xlu1 %3950 }
 0x539   : > { %v6459_v20 = vpop.eup %6458  ;;  %v10581_v41 = vmul.f32 %v6457_v47, %v9910_v36  ;;  %v10584_v23 = vmul.f32 %v6457_v47, %v12351_v21  ;;  %6472 = vrcp.f32 %v3951_v5 }
 0x53a   : > { %v6461_v46 = vpop.eup %6460  ;;  %3989 = vadd.xlane.f32.xlu1 %v3988_v55  ;;  %v4369_v39 = vmul.f32 %v6459_v20, %v12352_v28  ;;  %v4368_v12 = vmul.f32 %v6459_v20, %v12353_v40 }
 0x53b   : > { %4960 = vmatpush1.xpose.msra.mxu1 %v4370_v35  ;;  %v4307_v24 = vmul.f32 %v6461_v46, %v12354_v63  ;;  %v4306_v2 = vmul.f32 %v6461_v46, %v12355_v14  ;;  %4551 = vst [vmem:[%s8755_s23 + $0x418] sm:$0xff] %v10581_v41  ;;  %4550 = vst [vmem:[%s8755_s23 + $0x410] sm:$0xff] %v10584_v23  ;;  %v12356_v35 = vld [vmem:[#allocation202_spill] sm:$0xff] }
 0x53c   : > { %4625 = vst [vmem:[%s8755_s23 + $0x668] sm:$0xff] %v4369_v39  ;;  %4961 = vmatprep.subr.mxu1 %v4369_v39  ;;  %4624 = vst [vmem:[%s8755_s23 + $0x660] sm:$0xff] %v4368_v12  ;;  %v3948_v36 = vpop.xlane.xlu1 %3947  ;;  %v6463_v11 = vpop.eup %6462 }
 0x53d   : > { %4563 = vst [vmem:[%s8755_s23 + $0x478] sm:$0xff] %v4307_v24  ;;  %4870 = vmatprep.subr.mxu0 %v4307_v24  ;;  %4562 = vst [vmem:[%s8755_s23 + $0x470] sm:$0xff] %v4306_v2  ;;  %6474 = vrcp.f32 %v3948_v36  ;;  %v10600_v8 = vmul.f32 %v6463_v11, %v12356_v35  ;;  %v10603_v47 = vmul.f32 %v6463_v11, %v12357_v34  ;;  %v12361_v24 = vld [vmem:[#allocation235_spill] sm:$0xff]  ;;  %v12362_v36 = vld [vmem:[#allocation96_spill] sm:$0xff] }
 0x53e   : > { %4871 = vmatpush1.xpose.msra.mxu0 %v4306_v2  ;;  %v3936_v31 = vpop.xlane.xlu0 %3935 }
 0x53f   : > { %4962 = vmatpush1.xpose.msra.mxu1 %v4368_v12  ;;  %4872 = vmatprep.subr.mxu0 %v10485_v16  ;;  %6476 = vrcp.f32 %v3936_v31  ;;  %4549 = vst [vmem:[%s8755_s23 + $0x408] sm:$0xff] %v10600_v8  ;;  %4548 = vst [vmem:[%s8755_s23 + $0x400] sm:$0xff] %v10603_v47  ;;  %v12359_v12 = vld [vmem:[#allocation119_spill] sm:$0xff] }
 0x540   : > { %4963 = vmatprep.subr.mxu1 %v10473_v44  ;;  %v3945_v55 = vpop.xlane.xlu1 %3944 }
 0x541   : > { %6478 = vrcp.f32 %v3945_v55  ;;  %v12364_v55 = vld [vmem:[#allocation211_spill] sm:$0xff] }
 0x542   : > { %4873 = vmatpush1.xpose.msra.mxu0 %v10490_v43  ;;  %v10611_v20 = vpop.eup %6464  ;;  %v12358_v43 = vld [vmem:[#allocation143_spill] sm:$0xff] }
 0x543   : > { %4964 = vmatpush1.xpose.msra.mxu1 %v10476_v54  ;;  %4874 = vmatprep.subr.mxu0 %v10506_v25  ;;  %v10615_v16 = vpop.eup %6466 }
 0x544   : > { %v6469_v5 = vpop.eup %6468  ;;  %v3942_v44 = vpop.xlane.xlu1 %3941  ;;  %v3892_v21 = vadd.f32 %v10615_v16, %v10611_v20 }
 0x545   : > { %v6471_v46 = vpop.eup %6470  ;;  %6480 = vrcp.f32 %v3942_v44  ;;  %v4365_v28 = vmul.f32 %v6469_v5, %v9935_v53  ;;  %v4364_v54 = vmul.f32 %v6469_v5, %v12358_v43  ;;  %v12360_v53 = vld [vmem:[#allocation234_spill] sm:$0xff]  ;;  %v12365_v44 = vld [vmem:[#allocation207_spill] sm:$0xff] }
 0x546   : > { %4875 = vmatpush1.xpose.msra.mxu0 %v10509_v4  ;;  %v6473_v25 = vpop.eup %6472  ;;  %3893 = vadd.xlane.f32.xlu1 %v3892_v21  ;;  %v3933_v39 = vpop.xlane.xlu0 %3932  ;;  %v10624_v40 = vmul.f32 %v6471_v46, %v9993_v6  ;;  %v10627_v63 = vmul.f32 %v6471_v46, %v12359_v12  ;;  %v12366_v46 = vld [vmem:[#allocation205_spill] sm:$0xff] }
 0x547   : > { %4876 = vmatprep.subr.mxu0 %v10527_v29  ;;  %4621 = vst [vmem:[%s8755_s23 + $0x648] sm:$0xff] %v4365_v28  ;;  %4965 = vmatprep.subr.mxu1 %v4365_v28  ;;  %4620 = vst [vmem:[%s8755_s23 + $0x640] sm:$0xff] %v4364_v54  ;;  %6482 = vrcp.f32 %v3933_v39  ;;  %v4363_v4 = vmul.f32 %v6473_v25, %v12360_v53  ;;  %v4362_v14 = vmul.f32 %v6473_v25, %v12361_v24  ;;  %v12368_v25 = vld [vmem:[#allocation60_spill] sm:$0xff] }
 0x548   : > { %4966 = vmatpush1.xpose.msra.mxu1 %v4364_v54  ;;  %v4035_v2 = vpop.xlane.xlu1 %4034  ;;  %4611 = vst [vmem:[%s8755_s23 + $0x5f8] sm:$0xff] %v10624_v40  ;;  %4610 = vst [vmem:[%s8755_s23 + $0x5f0] sm:$0xff] %v10627_v63 }
 0x549   : > { %6484 = vrcp.f32 %v4035_v2  ;;  %4619 = vst [vmem:[%s8755_s23 + $0x638] sm:$0xff] %v4363_v4  ;;  %4967 = vmatprep.subr.mxu1 %v4363_v4  ;;  %4618 = vst [vmem:[%s8755_s23 + $0x630] sm:$0xff] %v4362_v14 }
 0x54a   : > { %4877 = vmatpush1.xpose.msra.mxu0 %v10530_v61  ;;  %v6475_v6 = vpop.eup %6474 }
 0x54b   : > { %4878 = vmatprep.subr.mxu0 %v10541_v9  ;;  %v4361_v29 = vmul.f32 %v6475_v6, %v9981_v1  ;;  %v4360_v11 = vmul.f32 %v6475_v6, %v12362_v36  ;;  %v12363_v1 = vld [vmem:[#allocation237_spill] sm:$0xff]  ;;  %v12372_v36 = vld [vmem:[#allocation212_spill] sm:$0xff] }
 0x54c   : > { %4968 = vmatpush1.xpose.msra.mxu1 %v4362_v14  ;;  %v4032_v35 = vpop.xlane.xlu1 %4031  ;;  %v6477_v34 = vpop.eup %6476  ;;  %v12371_v6 = vld [vmem:[#allocation213_spill] sm:$0xff] }
 0x54d   : > { %6486 = vrcp.f32 %v4032_v35  ;;  %4617 = vst [vmem:[%s8755_s23 + $0x628] sm:$0xff] %v4361_v29  ;;  %4969 = vmatprep.subr.mxu1 %v4361_v29  ;;  %4616 = vst [vmem:[%s8755_s23 + $0x620] sm:$0xff] %v4360_v11  ;;  %v4353_v9 = vmul.f32 %v6477_v34, %v12363_v1  ;;  %v4352_v5 = vmul.f32 %v6477_v34, %v12364_v55  ;;  %v12373_v35 = vld [vmem:[#allocation243_spill] sm:$0xff]  ;;  %v12374_v34 = vld [vmem:[#allocation100_spill] sm:$0xff] }
 0x54e   : > { %4879 = vmatpush1.xpose.msra.mxu0 %v10544_v49  ;;  %v6479_v61 = vpop.eup %6478  ;;  %v3930_v31 = vpop.xlane.xlu0 %3929  ;;  %v12376_v55 = vld [vmem:[#allocation247_spill] sm:$0xff] }
 0x54f   : > { %4880 = vmatprep.subr.mxu0 %v10562_v17  ;;  %6488 = vrcp.f32 %v3930_v31  ;;  %v4359_v21 = vmul.f32 %v6479_v61, %v12365_v44  ;;  %v4358_v28 = vmul.f32 %v6479_v61, %v12366_v46  ;;  %4609 = vst [vmem:[%s8755_s23 + $0x5e8] sm:$0xff] %v4353_v9  ;;  %4608 = vst [vmem:[%s8755_s23 + $0x5e0] sm:$0xff] %v4352_v5  ;;  %v12367_v17 = vld [vmem:[#allocation113_spill] sm:$0xff]  ;;  %v12377_v46 = vld [vmem:[#allocation104_spill] sm:$0xff] }
 0x550   : > { %4970 = vmatpush1.xpose.msra.mxu1 %v4360_v11  ;;  %v4029_v43 = vpop.xlane.xlu1 %4028 }
 0x551   : > { %6490 = vrcp.f32 %v4029_v43  ;;  %4615 = vst [vmem:[%s8755_s23 + $0x618] sm:$0xff] %v4359_v21  ;;  %4971 = vmatprep.subr.mxu1 %v4359_v21  ;;  %4614 = vst [vmem:[%s8755_s23 + $0x610] sm:$0xff] %v4358_v28  ;;  %v12378_v43 = vld [vmem:[#allocation241_spill] sm:$0xff] }
 0x552   : > { %4881 = vmatpush1.xpose.msra.mxu0 %v10565_v50  ;;  %v6481_v49 = vpop.eup %6480  ;;  %v12369_v50 = vld [vmem:[#allocation217_spill] sm:$0xff] }
 0x553   : > { %4882 = vmatprep.subr.mxu0 %v10581_v41  ;;  %v4357_v54 = vmul.f32 %v6481_v49, %v12367_v17  ;;  %v4356_v39 = vmul.f32 %v6481_v49, %v12368_v25  ;;  %v12370_v41 = vld [vmem:[#allocation115_spill] sm:$0xff]  ;;  %v12379_v17 = vld [vmem:[#allocation218_spill] sm:$0xff] }
 0x554   : > { %v6483_v12 = vpop.eup %6482  ;;  %4972 = vmatpush1.xpose.msra.mxu1 %v4358_v28  ;;  %v4026_v53 = vpop.xlane.xlu1 %4025 }
 0x555   : > { %6492 = vrcp.f32 %v4026_v53  ;;  %4613 = vst [vmem:[%s8755_s23 + $0x608] sm:$0xff] %v4357_v54  ;;  %4973 = vmatprep.subr.mxu1 %v4357_v54  ;;  %4612 = vst [vmem:[%s8755_s23 + $0x600] sm:$0xff] %v4356_v39  ;;  %v4351_v4 = vmul.f32 %v6483_v12, %v12369_v50  ;;  %v4350_v24 = vmul.f32 %v6483_v12, %v12370_v41  ;;  %v12380_v54 = vld [vmem:[#allocation124_spill] sm:$0xff]  ;;  %v12381_v12 = vld [vmem:[#allocation58_spill] sm:$0xff] }
 0x556   : > { %4883 = vmatpush1.xpose.msra.mxu0 %v10584_v23  ;;  %v6485_v14 = vpop.eup %6484  ;;  %v3927_v2 = vpop.xlane.xlu0 %3926  ;;  %v12382_v50 = vld [vmem:[#allocation219_spill] sm:$0xff] }
 0x557   : > { %4884 = vmatprep.subr.mxu0 %v10600_v8  ;;  %6494 = vrcp.f32 %v3927_v2  ;;  %v4419_v29 = vmul.f32 %v6485_v14, %v12371_v6  ;;  %v4418_v11 = vmul.f32 %v6485_v14, %v12372_v36  ;;  %4607 = vst [vmem:[%s8755_s23 + $0x5d8] sm:$0xff] %v4351_v4  ;;  %4606 = vst [vmem:[%s8755_s23 + $0x5d0] sm:$0xff] %v4350_v24  ;;  %v12384_v6 = vld [vmem:[#allocation105_spill] sm:$0xff] }
 0x558   : > { %4974 = vmatpush1.xpose.msra.mxu1 %v4356_v39 }
 0x559   : > { %4675 = vst [vmem:[%s8755_s23 + $0x7f8] sm:$0xff] %v4419_v29  ;;  %4975 = vmatprep.subr.mxu1 %v4419_v29  ;;  %4674 = vst [vmem:[%s8755_s23 + $0x7f0] sm:$0xff] %v4418_v11 }
 0x55a   : > { %4885 = vmatpush1.xpose.msra.mxu0 %v10603_v47  ;;  %v6487_v23 = vpop.eup %6486  ;;  %v12375_v47 = vld [vmem:[#allocation245_spill] sm:$0xff] }
 0x55b   : > { %4886 = vmatprep.subr.mxu0 %v10624_v40  ;;  %v4417_v8 = vmul.f32 %v6487_v23, %v12373_v35  ;;  %v4416_v61 = vmul.f32 %v6487_v23, %v12374_v34 }
 0x55c   : > { %v6489_v31 = vpop.eup %6488  ;;  %4976 = vmatpush2.xpose.msra.mxu1 %v4418_v11 }
 0x55d   : > { %4673 = vst [vmem:[%s8755_s23 + $0x7e8] sm:$0xff] %v4417_v8  ;;  %4977 = vmatprep.subr.mxu1 %v4417_v8  ;;  %4672 = vst [vmem:[%s8755_s23 + $0x7e0] sm:$0xff] %v4416_v61  ;;  %v4349_v1 = vmul.f32 %v6489_v31, %v12375_v47  ;;  %v4348_v44 = vmul.f32 %v6489_v31, %v12376_v55 }
 0x55e   : > { %4887 = vmatpush2.xpose.msra.mxu0 %v10627_v63  ;;  %v6491_v40 = vpop.eup %6490  ;;  %v3924_v21 = vpop.xlane.xlu0 %3923 }
 0x55f   : > { %4888 = vmatprep.subr.mxu0 %v4353_v9  ;;  %6496 = vrcp.f32 %v3924_v21  ;;  %v4415_v28 = vmul.f32 %v6491_v40, %v12377_v46  ;;  %v4414_v49 = vmul.f32 %v6491_v40, %v12378_v43  ;;  %4605 = vst [vmem:[%s8755_s23 + $0x5c8] sm:$0xff] %v4349_v1  ;;  %4604 = vst [vmem:[%s8755_s23 + $0x5c0] sm:$0xff] %v4348_v44 }
 0x560   : > { %4978 = vmatpush2.xpose.msra.mxu1 %v4416_v61 }
 0x561   : > { %4671 = vst [vmem:[%s8755_s23 + $0x7d8] sm:$0xff] %v4415_v28  ;;  %4979 = vmatprep.subr.mxu1 %v4415_v28  ;;  %4670 = vst [vmem:[%s8755_s23 + $0x7d0] sm:$0xff] %v4414_v49 }
 0x562   : > { %4889 = vmatpush2.xpose.msra.mxu0 %v4352_v5  ;;  %v6493_v63 = vpop.eup %6492 }
 0x563   : > { %4890 = vmatprep.subr.mxu0 %v4351_v4  ;;  %v4413_v9 = vmul.f32 %v6493_v63, %v12379_v17  ;;  %v4412_v25 = vmul.f32 %v6493_v63, %v12380_v54  ;;  %v12387_v63 = vld [vmem:[#allocation86_spill] sm:$0xff] }
 0x564   : > { %v6495_v39 = vpop.eup %6494  ;;  %4980 = vmatpush2.xpose.msra.mxu1 %v4414_v49 }
 0x565   : > { %4669 = vst [vmem:[%s8755_s23 + $0x7c8] sm:$0xff] %v4413_v9  ;;  %4981 = vmatprep.subr.mxu1 %v4413_v9  ;;  %4668 = vst [vmem:[%s8755_s23 + $0x7c0] sm:$0xff] %v4412_v25  ;;  %v4347_v53 = vmul.f32 %v6495_v39, %v12381_v12  ;;  %v4346_v41 = vmul.f32 %v6495_v39, %v12382_v50  ;;  %v12388_v9 = vld [vmem:[#allocation177_spill] sm:$0xff] }
 0x566   : > { %4891 = vmatpush2.xpose.msra.mxu0 %v4350_v24  ;;  %v3921_v5 = vpop.xlane.xlu0 %3920  ;;  %v12383_v24 = vld [vmem:[#allocation250_spill] sm:$0xff] }
 0x567   : > { %4892 = vmatprep.subr.mxu0 %v4349_v1  ;;  %6498 = vrcp.f32 %v3921_v5  ;;  %4603 = vst [vmem:[%s8755_s23 + $0x5b8] sm:$0xff] %v4347_v53  ;;  %4602 = vst [vmem:[%s8755_s23 + $0x5b0] sm:$0xff] %v4346_v41 }
 0x568   : > { %4982 = vmatpush2.xpose.msra.mxu1 %v4412_v25 }
 0x56a   : > { %4893 = vmatpush2.xpose.msra.mxu0 %v4348_v44  ;;  %v4023_v4 = vpop.xlane.xlu1 %4022  ;;  %v12386_v44 = vld [vmem:[#allocation249_spill] sm:$0xff] }
 0x56b   : > { %4894 = vmatprep.subr.mxu0 %v4347_v53  ;;  %6500 = vrcp.f32 %v4023_v4 }
 0x56c   : > { %v6497_v14 = vpop.eup %6496 }
 0x56d   : > { %v4345_v2 = vmul.f32 %v6497_v14, %v12383_v24  ;;  %v4344_v29 = vmul.f32 %v6497_v14, %v12384_v6  ;;  %v12389_v6 = vld [vmem:[#allocation188_spill] sm:$0xff] }
 0x56e   : > { %4895 = vmatpush2.xpose.msra.mxu0 %v4346_v41  ;;  %v3918_v36 = vpop.xlane.xlu0 %3917 }
 0x56f   : > { %6502 = vrcp.f32 %v3918_v36  ;;  %4601 = vst [vmem:[%s8755_s23 + $0x5a8] sm:$0xff] %v4345_v2  ;;  %4896 = vmatprep.subr.mxu0 %v4345_v2  ;;  %4600 = vst [vmem:[%s8755_s23 + $0x5a0] sm:$0xff] %v4344_v29 }
 0x572   : > { %4897 = vmatpush2.xpose.msra.mxu0 %v4344_v29  ;;  %v4020_v11 = vpop.xlane.xlu1 %4019 }
 0x573   : > { %6504 = vrcp.f32 %v4020_v11 }
 0x574   : > { %v6499_v23 = vpop.eup %6498 }
 0x575   : > { %v4343_v35 = vmul.f32 %v6499_v23, %v10194_v52  ;;  %v4342_v8 = vmul.f32 %v6499_v23, %v10191_v62  ;;  %v12385_v62 = vld [vmem:[#allocation107_spill] sm:$0xff]  ;;  %v12391_v23 = vld [vmem:[#allocation252_spill] sm:$0xff] }
 0x576   : > { %v3915_v34 = vpop.xlane.xlu0 %3914 }
 0x577   : > { %6506 = vrcp.f32 %v3915_v34  ;;  %4599 = vst [vmem:[%s8755_s23 + $0x598] sm:$0xff] %v4343_v35  ;;  %4898 = vmatprep.subr.mxu0 %v4343_v35  ;;  %4598 = vst [vmem:[%s8755_s23 + $0x590] sm:$0xff] %v4342_v8 }
 0x578   : > { %v6501_v61 = vpop.eup %6500  ;;  %4899 = vmatpush2.xpose.msra.mxu0 %v4342_v8 }
 0x579   : > { %v4411_v31 = vmul.f32 %v6501_v61, %v10206_v51  ;;  %v4410_v47 = vmul.f32 %v6501_v61, %v10203_v45  ;;  %v4017_v1 = vpop.xlane.xlu1 %4016  ;;  %v12393_v61 = vld [vmem:[#allocation196_spill] sm:$0xff] }
 0x57a   : > { %6508 = vrcp.f32 %v4017_v1  ;;  %v12394_v1 = vld [vmem:[#allocation90_spill] sm:$0xff] }
 0x57b   : > { %4667 = vst [vmem:[%s8755_s23 + $0x7b8] sm:$0xff] %v4411_v31  ;;  %4983 = vmatprep.subr.mxu1 %v4411_v31  ;;  %4666 = vst [vmem:[%s8755_s23 + $0x7b0] sm:$0xff] %v4410_v47 }
 0x57c   : > { %v6503_v52 = vpop.eup %6502  ;;  %4984 = vmatpush2.xpose.msra.mxu1 %v4410_v47 }
 0x57d   : > { %v4341_v55 = vmul.f32 %v6503_v52, %v12385_v62  ;;  %v4340_v40 = vmul.f32 %v6503_v52, %v12386_v44  ;;  %v4014_v21 = vpop.xlane.xlu1 %4013  ;;  %v12395_v62 = vld [vmem:[#allocation160_spill] sm:$0xff] }
 0x57e   : > { %6510 = vrcp.f32 %v4014_v21  ;;  %v12396_v21 = vld [vmem:[#allocation191_spill] sm:$0xff] }
 0x57f   : > { %4597 = vst [vmem:[%s8755_s23 + $0x588] sm:$0xff] %v4341_v55  ;;  %4900 = vmatprep.subr.mxu0 %v4341_v55  ;;  %4596 = vst [vmem:[%s8755_s23 + $0x580] sm:$0xff] %v4340_v40  ;;  %v3912_v45 = vpop.xlane.xlu0 %3911 }
 0x580   : > { %v6505_v51 = vpop.eup %6504  ;;  %4901 = vmatpush2.xpose.msra.mxu0 %v4340_v40  ;;  %6512 = vrcp.f32 %v3912_v45  ;;  %v12397_v45 = vld [vmem:[#allocation255_spill] sm:$0xff] }
 0x581   : > { %v4409_v46 = vmul.f32 %v6505_v51, %v10246_v27  ;;  %v4408_v28 = vmul.f32 %v6505_v51, %v10242_v13 }
 0x582   : > { %v4011_v43 = vpop.xlane.xlu1 %4010 }
 0x583   : > { %6514 = vrcp.f32 %v4011_v43  ;;  %4665 = vst [vmem:[%s8755_s23 + $0x7a8] sm:$0xff] %v4409_v46  ;;  %4985 = vmatprep.subr.mxu1 %v4409_v46  ;;  %4664 = vst [vmem:[%s8755_s23 + $0x7a0] sm:$0xff] %v4408_v28  ;;  %v12398_v43 = vld [vmem:[#allocation187_spill] sm:$0xff] }
 0x584   : > { %v6507_v49 = vpop.eup %6506  ;;  %4986 = vmatpush2.xpose.msra.mxu1 %v4408_v28 }
 0x585   : > { %v4339_v17 = vmul.f32 %v6507_v49, %v12387_v63  ;;  %v4338_v54 = vmul.f32 %v6507_v49, %v12388_v9  ;;  %v12399_v63 = vld [vmem:[#allocation64_spill] sm:$0xff] }
 0x586   : > { %v4008_v25 = vpop.xlane.xlu1 %4007 }
 0x587   : > { %6516 = vrcp.f32 %v4008_v25  ;;  %4595 = vst [vmem:[%s8755_s23 + $0x578] sm:$0xff] %v4339_v17  ;;  %4902 = vmatprep.subr.mxu0 %v4339_v17  ;;  %4594 = vst [vmem:[%s8755_s23 + $0x570] sm:$0xff] %v4338_v54  ;;  %v6509_v27 = vpop.eup %6508  ;;  %v3909_v13 = vpop.xlane.xlu0 %3908 }
 0x588   : > { %4903 = vmatpush2.xpose.msra.mxu0 %v4338_v54  ;;  %6518 = vrcp.f32 %v3909_v13  ;;  %v4407_v39 = vmul.f32 %v6509_v27, %v10284_v58  ;;  %v4406_v12 = vmul.f32 %v6509_v27, %v10280_v26 }
 0x58a   : > { %v4005_v53 = vpop.xlane.xlu1 %4004  ;;  %4663 = vst [vmem:[%s8755_s23 + $0x798] sm:$0xff] %v4407_v39  ;;  %4987 = vmatprep.subr.mxu1 %v4407_v39  ;;  %4662 = vst [vmem:[%s8755_s23 + $0x790] sm:$0xff] %v4406_v12 }
 0x58b   : > { %6520 = vrcp.f32 %v4005_v53  ;;  %v6511_v50 = vpop.eup %6510  ;;  %4988 = vmatpush2.xpose.msra.mxu1 %v4406_v12 }
 0x58c   : > { %v4405_v41 = vmul.f32 %v6511_v50, %v10298_v32  ;;  %v4404_v5 = vmul.f32 %v6511_v50, %v10294_v56 }
 0x58d   : > { %v6513_v4 = vpop.eup %6512 }
 0x58e   : > { %v4337_v58 = vmul.f32 %v6513_v4, %v10305_v59  ;;  %4661 = vst [vmem:[%s8755_s23 + $0x788] sm:$0xff] %v4405_v41  ;;  %4989 = vmatprep.subr.mxu1 %v4405_v41  ;;  %v4336_v26 = vmul.f32 %v6513_v4, %v10301_v22  ;;  %4660 = vst [vmem:[%s8755_s23 + $0x780] sm:$0xff] %v4404_v5 }
 0x58f   : > { %v4002_v14 = vpop.xlane.xlu1 %4001  ;;  %4990 = vmatpush2.xpose.msra.mxu1 %v4404_v5 }
 0x590   : > { %6522 = vrcp.f32 %v4002_v14  ;;  %v6515_v24 = vpop.eup %6514  ;;  %4593 = vst [vmem:[%s8755_s23 + $0x568] sm:$0xff] %v4337_v58  ;;  %4904 = vmatprep.subr.mxu0 %v4337_v58  ;;  %4592 = vst [vmem:[%s8755_s23 + $0x560] sm:$0xff] %v4336_v26 }
 0x591   : > { %v3906_v2 = vpop.xlane.xlu0 %3905  ;;  %v4403_v56 = vmul.f32 %v6515_v24, %v10312_v57  ;;  %v4402_v32 = vmul.f32 %v6515_v24, %v10307_v30  ;;  %4905 = vmatpush2.xpose.msra.mxu0 %v4336_v26  ;;  %v12390_v57 = vld [vmem:[#allocation140_spill] sm:$0xff] }
 0x592   : > { %6524 = vrcp.f32 %v3906_v2  ;;  %v12402_v2 = vld [vmem:[#allocation76_spill] sm:$0xff] }
 0x593   : > { %4659 = vst [vmem:[%s8755_s23 + $0x778] sm:$0xff] %v4403_v56  ;;  %4991 = vmatprep.subr.mxu1 %v4403_v56  ;;  %4658 = vst [vmem:[%s8755_s23 + $0x770] sm:$0xff] %v4402_v32  ;;  %v12403_v56 = vld [vmem:[#allocation37_spill] sm:$0xff] }
 0x594   : > { %v6517_v22 = vpop.eup %6516  ;;  %4992 = vmatpush2.xpose.msra.mxu1 %v4402_v32 }
 0x595   : > { %v4401_v59 = vmul.f32 %v6517_v22, %v10324_v10  ;;  %v4400_v29 = vmul.f32 %v6517_v22, %v12389_v6  ;;  %v6519_v36 = vpop.eup %6518  ;;  %v12392_v10 = vld [vmem:[#allocation199_spill] sm:$0xff]  ;;  %v12406_v6 = vld [vmem:[#allocation38_spill] sm:$0xff] }
 0x596   : > { %v3903_v11 = vpop.xlane.xlu0 %3902  ;;  %v4335_v30 = vmul.f32 %v6519_v36, %v12390_v57  ;;  %v4334_v35 = vmul.f32 %v6519_v36, %v12391_v23  ;;  %v12408_v36 = vld [vmem:[#allocation31_spill] sm:$0xff]  ;;  %v12410_v57 = vld [vmem:[#allocation33_spill] sm:$0xff]  ;;  %v12414_v23 = vmov 0.0  }
 0x597   : > { %6526 = vrcp.f32 %v3903_v11  ;;  %4657 = vst [vmem:[%s8755_s23 + $0x768] sm:$0xff] %v4401_v59  ;;  %4993 = vmatprep.subr.mxu1 %v4401_v59  ;;  %4656 = vst [vmem:[%s8755_s23 + $0x760] sm:$0xff] %v4400_v29  ;;  %v12404_v59 = vld [vmem:[#allocation36_spill] sm:$0xff]  ;;  %v12409_v11 = vld [vmem:[#allocation30_spill] sm:$0xff] }
 0x598   : > { %v6521_v8 = vpop.eup %6520  ;;  %4994 = vmatpush2.xpose.msra.mxu1 %v4400_v29  ;;  %4591 = vst [vmem:[%s8755_s23 + $0x558] sm:$0xff] %v4335_v30  ;;  %4906 = vmatprep.subr.mxu0 %v4335_v30  ;;  %4590 = vst [vmem:[%s8755_s23 + $0x550] sm:$0xff] %v4334_v35  ;;  %v12407_v29 = vld [vmem:[#allocation28_spill] sm:$0xff]  ;;  %v12413_v30 = vld [vmem:[#allocation34_spill] sm:$0xff] }
 0x599   : > { %v4399_v34 = vmul.f32 %v6521_v8, %v12392_v10  ;;  %v4398_v31 = vmul.f32 %v6521_v8, %v12393_v61  ;;  %4907 = vmatpush2.xpose.msra.mxu0 %v4334_v35  ;;  %v5049_v61 = vld [vmem:[%s11018_s3 + $0x8] sm:$0xff] }
 0x59b   : > { %4655 = vst [vmem:[%s8755_s23 + $0x758] sm:$0xff] %v4399_v34  ;;  %4995 = vmatprep.subr.mxu1 %v4399_v34  ;;  %4654 = vst [vmem:[%s8755_s23 + $0x750] sm:$0xff] %v4398_v31  ;;  %v6736_v34 = vmov 0  }
 0x59c   : > { %4996 = vmatpush2.xpose.msra.mxu1 %v4398_v31  ;;  %5773 = vset.pattern.permute.xlu1 %v6736_v34 }
 0x59d   : > { %v6523_v47 = vpop.eup %6522  ;;  %5772 = vset.pattern.permute.xlu0 %v6736_v34  ;;  %5071 = vperm.xlu1 %5773, %v5049_v61  }
 0x59e   : > { %v4397_v52 = vmul.f32 %v6523_v47, %v12394_v1  ;;  %v4396_v55 = vmul.f32 %v6523_v47, %v12395_v62  ;;  %v3900_v40 = vpop.xlane.xlu0 %3899  ;;  %v5050_v47 = vld [vmem:[%s11018_s3 + $0x10] sm:$0xff]  ;;  %v10815_v1 = vpop.f32.mrf.mxu0  ;;  %v5048_v62 = vld [vmem:[%s11018_s3] sm:$0xff] }
 0x59f   : > { %v6525_v44 = vpop.eup %6524  ;;  %6528 = vrcp.f32 %v3900_v40  ;;  %5066 = vperm.xlu0 %5772, %v5048_v62   ;;  %v5057_v40 = vld [vmem:[%s11018_s3 + $0x48] sm:$0xff] }
 0x5a0   : > { %v4333_v51 = vmul.f32 %v6525_v44, %v12396_v21  ;;  %4653 = vst [vmem:[%s8755_s23 + $0x748] sm:$0xff] %v4397_v52  ;;  %4997 = vmatprep.subr.mxu1 %v4397_v52  ;;  %v4332_v46 = vmul.f32 %v6525_v44, %v12397_v45  ;;  %4652 = vst [vmem:[%s8755_s23 + $0x740] sm:$0xff] %v4396_v55  ;;  %v5051_v52 = vld [vmem:[%s11018_s3 + $0x18] sm:$0xff]  ;;  %v10825_v44 = vpop.f32.mrf.mxu0  ;;  %v5052_v21 = vld [vmem:[%s11018_s3 + $0x20] sm:$0xff] }
 0x5a1   : > { %4998 = vmatpush2.xpose.msra.mxu1 %v4396_v55  ;;  %5076 = vperm.xlu1 %5773, %v5050_v47  }
 0x5a2   : > { %4589 = vst [vmem:[%s8755_s23 + $0x548] sm:$0xff] %v4333_v51  ;;  %4908 = vmatprep.subr.mxu0 %v4333_v51  ;;  %4588 = vst [vmem:[%s8755_s23 + $0x540] sm:$0xff] %v4332_v46  ;;  %v10835_v45 = vpop.f32.mrf.mxu0 }
 0x5a3   : > { %4909 = vmatpush2.xpose.msra.mxu0 %v4332_v46  ;;  %5111 = vperm.xlu0 %5772, %v5057_v40   ;;  %v5059_v46 = vld [vmem:[%s11018_s3 + $0x58] sm:$0xff] }
 0x5a4   : > { %v6527_v28 = vpop.eup %6526 }
 0x5a5   : > { %v4331_v49 = vmul.f32 %v6527_v28, %v12398_v43  ;;  %v4330_v17 = vmul.f32 %v6527_v28, %v12399_v63  ;;  %5081 = vperm.xlu1 %5773, %v5051_v52   ;;  %v5053_v28 = vld [vmem:[%s11018_s3 + $0x28] sm:$0xff] }
 0x5a6   : > { %v5061_v63 = vld [vmem:[%s11018_s3 + $0x68] sm:$0xff] }
 0x5a7   : > { %4587 = vst [vmem:[%s8755_s23 + $0x538] sm:$0xff] %v4331_v49  ;;  %4910 = vmatprep.subr.mxu0 %v4331_v49  ;;  %4586 = vst [vmem:[%s8755_s23 + $0x530] sm:$0xff] %v4330_v17  ;;  %5121 = vperm.xlu0 %5772, %v5059_v46   ;;  %v10843_v49 = vpop.f32.mrf.mxu0 }
 0x5a8   : > { %v3897_v9 = vpop.xlane.xlu0 %3896  ;;  %4911 = vmatpush2.xpose.msra.mxu0 %v4330_v17  ;;  %v5054_v17 = vld [vmem:[%s11018_s3 + $0x30] sm:$0xff] }
 0x5a9   : > { %6530 = vrcp.f32 %v3897_v9  ;;  %5086 = vperm.xlu1 %5773, %v5052_v21  }
 0x5ab   : > { %v3999_v54 = vpop.xlane.xlu1 %3998  ;;  %5131 = vperm.xlu0 %5772, %v5061_v63  }
 0x5ac   : > { %6532 = vrcp.f32 %v3999_v54  ;;  %v6529_v25 = vpop.eup %6528  ;;  %v4754_v54 = vpop.f32.mrf.mxu0 }
 0x5ad   : > { %v4329_v27 = vmul.f32 %v6529_v25, %v10432_v7  ;;  %v4328_v13 = vmul.f32 %v6529_v25, %v10425_v33  ;;  %5091 = vperm.xlu1 %5773, %v5053_v28   ;;  %v5063_v25 = vld [vmem:[%s11018_s3 + $0x78] sm:$0xff] }
 0x5af   : > { %4585 = vst [vmem:[%s8755_s23 + $0x528] sm:$0xff] %v4329_v27  ;;  %4912 = vmatprep.subr.mxu0 %v4329_v27  ;;  %4584 = vst [vmem:[%s8755_s23 + $0x520] sm:$0xff] %v4328_v13  ;;  %5141 = vperm.xlu0 %5772, %v5063_v25  }
 0x5b0   : > { %4913 = vmatpush2.xpose.msra.mxu0 %v4328_v13  ;;  %v5055_v13 = vld [vmem:[%s11018_s3 + $0x38] sm:$0xff] }
 0x5b1   : > { %5096 = vperm.xlu1 %5773, %v5054_v17  }
 0x5b3   : > { %v3996_v39 = vpop.xlane.xlu1 %3995 }
 0x5b4   : > { %6534 = vrcp.f32 %v3996_v39 }
 0x5b5   : > { %5101 = vperm.xlu1 %5773, %v5055_v13  }
 0x5b6   : > { %v6531_v12 = vpop.eup %6530 }
 0x5b7   : > { %v4327_v53 = vmul.f32 %v6531_v12, %v10456_v18  ;;  %v4326_v50 = vmul.f32 %v6531_v12, %v10454_v42  ;;  %v4756_v12 = vpop.f32.mrf.mxu0 }
 0x5b9   : > { %v6533_v41 = vpop.eup %6532  ;;  %4583 = vst [vmem:[%s8755_s23 + $0x518] sm:$0xff] %v4327_v53  ;;  %4914 = vmatprep.subr.mxu0 %v4327_v53  ;;  %4582 = vst [vmem:[%s8755_s23 + $0x510] sm:$0xff] %v4326_v50 }
 0x5ba   : > { %v4395_v33 = vmul.f32 %v6533_v41, %v10466_v0  ;;  %v4394_v7 = vmul.f32 %v6533_v41, %v10461_v60  ;;  %4915 = vmatpush2.xpose.msra.mxu0 %v4326_v50  ;;  %v5056_v50 = vld [vmem:[%s11018_s3 + $0x40] sm:$0xff] }
 0x5bb   : > { %v3993_v5 = vpop.xlane.xlu1 %3992  ;;  %5106 = vperm.xlu1 %5773, %v5056_v50  }
 0x5bc   : > { %6536 = vrcp.f32 %v3993_v5  ;;  %4651 = vst [vmem:[%s8755_s23 + $0x738] sm:$0xff] %v4395_v33  ;;  %4999 = vmatprep.subr.mxu1 %v4395_v33  ;;  %4650 = vst [vmem:[%s8755_s23 + $0x730] sm:$0xff] %v4394_v7  ;;  %v4760_v33 = vpop.f32.mrf.mxu0  ;;  %v5058_v5 = vld [vmem:[%s11018_s3 + $0x50] sm:$0xff] }
 0x5bd   : > { %5000 = vmatpush2.xpose.msra.mxu1 %v4394_v7 }
 0x5bf   : > { %5116 = vperm.xlu1 %5773, %v5058_v5  }
 0x5c1   : > { %v6535_v42 = vpop.eup %6534 }
 0x5c2   : > { %v4393_v18 = vmul.f32 %v6535_v42, %v10514_v48  ;;  %v4392_v4 = vmul.f32 %v6535_v42, %v10511_v15 }
 0x5c3   : > { %v3990_v14 = vpop.xlane.xlu1 %3989 }
 0x5c4   : > { %6538 = vrcp.f32 %v3990_v14  ;;  %4649 = vst [vmem:[%s8755_s23 + $0x728] sm:$0xff] %v4393_v18  ;;  %5001 = vmatprep.subr.mxu1 %v4393_v18  ;;  %4648 = vst [vmem:[%s8755_s23 + $0x720] sm:$0xff] %v4392_v4  ;;  %v4762_v18 = vpop.f32.mrf.mxu0  ;;  %v5060_v14 = vld [vmem:[%s11018_s3 + $0x60] sm:$0xff] }
 0x5c5   : > { %5002 = vmatpush2.xpose.msra.mxu1 %v4392_v4  ;;  %5126 = vperm.xlu1 %5773, %v5060_v14  }
 0x5c9   : > { %v6537_v60 = vpop.eup %6536 }
 0x5ca   : > { %v4391_v0 = vmul.f32 %v6537_v60, %v10548_v38  ;;  %v4390_v58 = vmul.f32 %v6537_v60, %v10546_v3  ;;  %v12400_v38 = vld [vmem:[#allocation70_spill] sm:$0xff]  ;;  %v12401_v3 = vld [vmem:[#allocation79_spill] sm:$0xff] }
 0x5cc   : > { %4647 = vst [vmem:[%s8755_s23 + $0x718] sm:$0xff] %v4391_v0  ;;  %5003 = vmatprep.subr.mxu1 %v4391_v0  ;;  %4646 = vst [vmem:[%s8755_s23 + $0x710] sm:$0xff] %v4390_v58 }
 0x5cd   : > { %5004 = vmatpush2.xpose.msra.mxu1 %v4390_v58 }
 0x5cf   : > { %v3894_v48 = vpop.xlane.xlu1 %3893 }
 0x5d0   : > { %6540 = vrcp.f32 %v3894_v48  ;;  %v5062_v48 = vld [vmem:[%s11018_s3 + $0x70] sm:$0xff] }
 0x5d1   : > { %v6539_v26 = vpop.eup %6538  ;;  %5136 = vperm.xlu1 %5773, %v5062_v48  }
 0x5d2   : > { %v4389_v15 = vmul.f32 %v6539_v26, %v10576_v37  ;;  %v4388_v24 = vmul.f32 %v6539_v26, %v10574_v19  ;;  %v12405_v19 = vld [vmem:[#allocation39_spill] sm:$0xff] }
 0x5d4   : > { %4645 = vst [vmem:[%s8755_s23 + $0x708] sm:$0xff] %v4389_v15  ;;  %5005 = vmatprep.subr.mxu1 %v4389_v15  ;;  %4644 = vst [vmem:[%s8755_s23 + $0x700] sm:$0xff] %v4388_v24 }
 0x5d5   : > { %5006 = vmatpush2.xpose.msra.mxu1 %v4388_v24 }
 0x5d8   : > { %5008 = vmatmul.mubr.f32.vlgmr.msra.gmra.mxu1 %v12400_v38 }
 0x5d9   : > { %5013 = vmatprep.mubr.f32.mxu1 %v12401_v3  ;;  %v10801_v35 = vpop.f32.mrf.mxu1 }
 0x5db   : > { %v10803_v8 = vpop.f32.mrf.mxu1 }
 0x5dc   : > { %5014 = vmatmul.mubr.f32.gmra.mxu1 %v12402_v2 }
 0x5dd   : > { %5019 = vmatprep.mubr.f32.mxu1 %v12403_v56  ;;  %v6541_v32 = vpop.eup %6540  ;;  %v10805_v10 = vpop.f32.mrf.mxu1  ;;  %v5032_v56 = vld [vmem:[#allocation5] sm:$0xff] }
 0x5de   : > { %v4325_v22 = vmul.f32 %v6541_v32, %v10615_v16  ;;  %v4324_v37 = vmul.f32 %v6541_v32, %v10611_v20  ;;  %v12411_v16 = vld [vmem:[#allocation32_spill] sm:$0xff]  ;;  %v12412_v20 = vld [vmem:[#allocation35_spill] sm:$0xff] }
 0x5df   : > { %v10810_v31 = vpop.f32.mrf.mxu1  ;;  %v5033_v32 = vld [vmem:[#allocation5 + $0x8] sm:$0xff] }
 0x5e0   : > { %5020 = vmatmul.mubr.f32.gmra.mxu1 %v12404_v59  ;;  %4581 = vst [vmem:[%s8755_s23 + $0x508] sm:$0xff] %v4325_v22  ;;  %4916 = vmatprep.subr.mxu0 %v4325_v22  ;;  %4580 = vst [vmem:[%s8755_s23 + $0x500] sm:$0xff] %v4324_v37  ;;  %v5034_v22 = vld [vmem:[#allocation5 + $0x10] sm:$0xff]  ;;  %v5036_v59 = vld [vmem:[#allocation5 + $0x20] sm:$0xff]  ;;  %s6635_s23 = scalar_lea.vmem %s6634_s8, 65536 }
 0x5e1   : > { %5025 = vmatprep.mubr.f32.mxu1 %v12405_v19  ;;  %4917 = vmatpush2.xpose.msra.mxu0 %v4324_v37  ;;  %v10823_v55 = vpop.f32.mrf.mxu1  ;;  %v5035_v37 = vld [vmem:[#allocation5 + $0x18] sm:$0xff]  ;;  %v5037_v19 = vld [vmem:[#allocation5 + $0x28] sm:$0xff]  ;;  %p6637_p2 = scmp.lt.s32.totalorder %s6635_s23, %s6629_s6 }
 0x5e3   : > { %v10833_v51 = vpop.f32.mrf.mxu1  ;;  %p6638_p13 = por %p6637_p2, %p6636_p10 }
 0x5e4   : > { %5026 = vmatmul.mubr.f32.gmra.mxu1 %v12406_v6  ;;  %4919 = vmatmul.mubr.f32.vlgmr.msra.gmra.mxu0 %v12407_v29  ;;  %v5038_v6 = vld [vmem:[#allocation5 + $0x30] sm:$0xff]  ;;  %v5039_v29 = vld [vmem:[#allocation5 + $0x38] sm:$0xff] }
 0x5e5   : > { %4924 = vmatprep.mubr.f32.mxu0 %v12408_v36  ;;  %v4849_v43 = vpop.f32.mrf.mxu1  ;;  %v5040_v36 = vld [vmem:[#allocation5 + $0x40] sm:$0xff]  ;;  %p6639_p0 = pnand %p6638_p13, %p6632_p12 }
 0x5e7   : > { %v4851_v9 = vpop.f32.mrf.mxu1 }
 0x5e8   : > { %4925 = vmatmul.mubr.f32.gmra.mxu0 %v12409_v11  ;;  %v5041_v11 = vld [vmem:[#allocation5 + $0x48] sm:$0xff] }
 0x5e9   : > { %4930 = vmatprep.mubr.f32.mxu0 %v12410_v57  ;;  %v5042_v57 = vld [vmem:[#allocation5 + $0x50] sm:$0xff] }
 0x5ec   : > { %4931 = vmatmul.mubr.f32.gmra.mxu0 %v12411_v16  ;;  %v5043_v16 = vld [vmem:[#allocation5 + $0x58] sm:$0xff] }
 0x5ed   : > { %4936 = vmatprep.mubr.f32.mxu0 %v12412_v20  ;;  %v5044_v20 = vld [vmem:[#allocation5 + $0x60] sm:$0xff] }
 0x5f0   : > { %4937 = vmatmul.mubr.f32.gmra.mxu0 %v12413_v30  ;;  %v5045_v30 = vld [vmem:[#allocation5 + $0x68] sm:$0xff] }
 0x5f1   : > { %5208 = vmatprep.mubr.f32.mxu0 %v12414_v23 }
 0x698   : > { %v5009_v27 = vpop.f32.mrf.mxu1 }
 0x69a   : > { %v5011_v39 = vpop.f32.mrf.mxu1 }
 0x69c   : > { %v5015_v53 = vpop.f32.mrf.mxu1 }
 0x69e   : > { %v5017_v41 = vpop.f32.mrf.mxu1 }
 0x6a0   : > { %v5021_v7 = vpop.f32.mrf.mxu1 }
 0x6a2   : > { %v5023_v42 = vpop.f32.mrf.mxu1 }
 0x6a4   : > { %v5027_v4 = vpop.f32.mrf.mxu1  ;;  %v4920_v60 = vpop.f32.mrf.mxu0 }
 0x6a6   : > { %v5029_v0 = vpop.f32.mrf.mxu1  ;;  %v4922_v58 = vpop.f32.mrf.mxu0 }
 0x6a7   : > { %5144 = vmatprep.subr.mxu0 %v5029_v0 }
 0x6a8   : > { %5145 = vmatpush1.msra.mxu0 %v5027_v4  ;;  %v4926_v26 = vpop.f32.mrf.mxu0 }
 0x6a9   : > { %5146 = vmatprep.subr.mxu0 %v5023_v42 }
 0x6aa   : > { %5147 = vmatpush1.msra.mxu0 %v5021_v7  ;;  %v4928_v15 = vpop.f32.mrf.mxu0 }
 0x6ab   : > { %5148 = vmatprep.subr.mxu0 %v5017_v41 }
 0x6ac   : > { %5149 = vmatpush1.msra.mxu0 %v5015_v53  ;;  %v4932_v24 = vpop.f32.mrf.mxu0 }
 0x6ad   : > { %5150 = vmatprep.subr.mxu0 %v5011_v39 }
 0x6ae   : > { %5151 = vmatpush1.msra.mxu0 %v5009_v27  ;;  %v4934_v38 = vpop.f32.mrf.mxu0 }
 0x6b0   : > { %v4938_v3 = vpop.f32.mrf.mxu0 }
 0x6b2   : > { %v4940_v2 = vpop.f32.mrf.mxu0 }
 0x6b3   : > { %5152 = vmatprep.subr.mxu0 %v4940_v2 }
 0x6b4   : > { %5153 = vmatpush1.msra.mxu0 %v4938_v3 }
 0x6b5   : > { %5154 = vmatprep.subr.mxu0 %v4934_v38 }
 0x6b6   : > { %5155 = vmatpush1.msra.mxu0 %v4932_v24 }
 0x6b7   : > { %5156 = vmatprep.subr.mxu0 %v4928_v15 }
 0x6b8   : > { %5157 = vmatpush1.msra.mxu0 %v4926_v26 }
 0x6b9   : > { %5158 = vmatprep.subr.mxu0 %v4922_v58 }
 0x6ba   : > { %5159 = vmatpush1.msra.mxu0 %v4920_v60 }
 0x6bb   : > { %5160 = vmatprep.subr.mxu0 %v4851_v9 }
 0x6bc   : > { %5161 = vmatpush1.msra.mxu0 %v4849_v43 }
 0x6bd   : > { %5162 = vmatprep.subr.mxu0 %v10833_v51 }
 0x6be   : > { %5163 = vmatpush1.msra.mxu0 %v10823_v55 }
 0x6bf   : > { %5164 = vmatprep.subr.mxu0 %v10810_v31 }
 0x6c0   : > { %5165 = vmatpush1.msra.mxu0 %v10805_v10 }
 0x6c1   : > { %5166 = vmatprep.subr.mxu0 %v10803_v8  ;;  %v5047_v8 = vld [vmem:[#allocation5 + $0x78] sm:$0xff] }
 0x6c2   : > { %5167 = vmatpush1.msra.mxu0 %v10801_v35  ;;  %v5046_v35 = vld [vmem:[#allocation5 + $0x70] sm:$0xff] }
 0x6c3   : > { %5168 = vmatprep.subr.mxu0 %v4762_v18 }
 0x6c4   : > { %5169 = vmatpush1.msra.mxu0 %v4760_v33 }
 0x6c5   : > { %5170 = vmatprep.subr.mxu0 %v4756_v12 }
 0x6c6   : > { %5171 = vmatpush1.msra.mxu0 %v4754_v54 }
 0x6c7   : > { %5172 = vmatprep.subr.mxu0 %v10843_v49 }
 0x6c8   : > { %5173 = vmatpush1.msra.mxu0 %v10835_v45 }
 0x6c9   : > { %5174 = vmatprep.subr.mxu0 %v10825_v44 }
 0x6ca   : > { %5175 = vmatpush1.msra.mxu0 %v10815_v1 }
 0x6cb   : > { %5209 = vmatmul.mubr.f32.vlgmr.msra.gmra.mxu0 %v5032_v56 }
 0x6cc   : > { %5214 = vmatprep.mubr.f32.mxu0 %v12414_v23 }
 0x6cf   : > { %5215 = vmatmul.mubr.f32.gmra.mxu0 %v5033_v32 }
 0x6d0   : > { %5220 = vmatprep.mubr.f32.mxu0 %v12414_v23 }
 0x6d3   : > { %5221 = vmatmul.mubr.f32.gmra.mxu0 %v5034_v22 }
 0x6d4   : > { %5226 = vmatprep.mubr.f32.mxu0 %v12414_v23 }
 0x6d7   : > { %5227 = vmatmul.mubr.f32.gmra.mxu0 %v5035_v37 }
 0x6d8   : > { %5232 = vmatprep.mubr.f32.mxu0 %v12414_v23 }
 0x6db   : > { %5233 = vmatmul.mubr.f32.gmra.mxu0 %v5036_v59 }
 0x6dc   : > { %5238 = vmatprep.mubr.f32.mxu0 %v12414_v23 }
 0x6df   : > { %5239 = vmatmul.mubr.f32.gmra.mxu0 %v5037_v19 }
 0x6e0   : > { %5244 = vmatprep.mubr.f32.mxu0 %v12414_v23 }
 0x6e3   : > { %5245 = vmatmul.mubr.f32.gmra.mxu0 %v5038_v6 }
 0x6e4   : > { %5250 = vmatprep.mubr.f32.mxu0 %v12414_v23 }
 0x6e7   : > { %5251 = vmatmul.mubr.f32.gmra.mxu0 %v5039_v29 }
 0x6e8   : > { %5256 = vmatprep.mubr.f32.mxu0 %v12414_v23 }
 0x6eb   : > { %5257 = vmatmul.mubr.f32.gmra.mxu0 %v5040_v36 }
 0x6ec   : > { %5262 = vmatprep.mubr.f32.mxu0 %v12414_v23 }
 0x6ef   : > { %5263 = vmatmul.mubr.f32.gmra.mxu0 %v5041_v11 }
 0x6f0   : > { %5268 = vmatprep.mubr.f32.mxu0 %v12414_v23 }
 0x6f3   : > { %5269 = vmatmul.mubr.f32.gmra.mxu0 %v5042_v57 }
 0x6f4   : > { %5274 = vmatprep.mubr.f32.mxu0 %v12414_v23 }
 0x6f7   : > { %5275 = vmatmul.mubr.f32.gmra.mxu0 %v5043_v16 }
 0x6f8   : > { %5280 = vmatprep.mubr.f32.mxu0 %v12414_v23 }
 0x6fb   : > { %5281 = vmatmul.mubr.f32.gmra.mxu0 %v5044_v20 }
 0x6fc   : > { %5286 = vmatprep.mubr.f32.mxu0 %v12414_v23 }
 0x6ff   : > { %5287 = vmatmul.mubr.f32.gmra.mxu0 %v5045_v30 }
 0x700   : > { %5292 = vmatprep.mubr.f32.mxu0 %v12414_v23 }
 0x703   : > { %5293 = vmatmul.mubr.f32.gmra.mxu0 %v5046_v35 }
 0x704   : > { %5298 = vmatprep.mubr.f32.mxu0 %v12414_v23 }
 0x707   : > { %5299 = vmatmul.mubr.f32.gmra.mxu0 %v5047_v8 }
 0x708   : > { %6642 = shalt.err (!%p6639_p0)
}
 0x709   : > { %s6643_s15 = scalar_lea.hbm %s10899_s26, 32768  ;;  %s6647_s9 = scalar_lea.hbm %s11020_s5, 65536 }
 0x70a   : > { %p6644_p5 = scmp.ne.s32.totalorder %s10899_s26, %s6643_s15  ;;  %p6648_p4 = scmp.lt.s32.totalorder %s10899_s26, %s11020_s5 }
 0x70b   : > { %p6649_p6 = scmp.lt.s32.totalorder %s6647_s9, %s6643_s15 }
 0x70c   : > { %p6645_p9 = pnand %p6644_p5, %p12415_p11 }
 0x70d   : > { %p6650_p8 = por %p6649_p6, %p6648_p4 }
 0x70e   : > { %p6646_p1 = pneg %p6645_p9 }
 0x710   : > { %p6651_p3 = pnand %p6650_p8, %p6646_p1 }
 0x712   : > { %6654 = shalt.err (!%p6651_p3)
}
 0x713   : > { %s6738_s17 = smov 256   ;;  %s6739_s24 = smov 16   ;;  %v5072_v23 = vpop.permute.xlu1 %5071  ;;  %v5067_v34 = vpop.permute.xlu0 %5066 }
 0x714   : > { %5709 = dma.vmem_to_hbm [thread:$0]  (%p12415_p11), %s10901_s16, 32768, %s10899_s26, %s5343_s29, %s6738_s17, %s6738_s17, %s6739_s24  }
 0x715   : > { %s5497_s6 = sshll.u32 %s6887_s11, 8  ;;  %s5684_s16 = sshll.u32 %s6792_s22, 12 }
 0x716   : > { %s10930_s7 = scalar_lea.vmem [#allocation7], %s5497_s6  ;;  %s10968_s23 = scalar_lea.hbm %s11019_s4, %s5684_s16 }
 0x717   : > { %v5077_v10 = vpop.permute.xlu1 %5076  ;;  %v5112_v3 = vpop.permute.xlu0 %5111  ;;  %s5356_s26 = sshll.u32 %s10930_s7, 4  ;;  %s5338_s15 = scalar_lea.sflag [#allocation4], %s6887_s11  ;;  %s10970_s26 = int_to_ptr.vmem [resolvable:$true] %s5356_s26 }
 0x718   : > { %s6655_s27 = scalar_lea.vmem %s10970_s26, 4096  ;;  %s6740_s22 = smov [#allocation7]  }
 0x719   : > { %p6656_p7 = scmp.ne.s32.totalorder %s10970_s26, %s6655_s27  ;;  %s6659_s28 = sshll.u32 %s6740_s22, 4  ;;  %s6660_s28 = int_to_ptr.vmem [resolvable:$false] %s6659_s28 }
 0x71a   : > { %s6661_s9 = scalar_lea.vmem %s6660_s28, 8192  ;;  %p6662_p2 = scmp.lt.s32.totalorder %s10970_s26, %s6660_s28 }
 0x71b   : > { %v5082_v1 = vpop.permute.xlu1 %5081  ;;  %v5122_v36 = vpop.permute.xlu0 %5121  ;;  %p6657_p12 = pnand %p6656_p7, %p12415_p11  ;;  %p6663_p13 = scmp.lt.s32.totalorder %s6661_s9, %s6655_s27 }
 0x71d   : > { %p6658_p10 = pneg %p6657_p12  ;;  %p6664_p0 = por %p6663_p13, %p6662_p2 }
 0x71f   : > { %v5087_v51 = vpop.permute.xlu1 %5086  ;;  %p6665_p5 = pnand %p6664_p0, %p6658_p10 }
 0x723   : > { %v5092_v17 = vpop.permute.xlu1 %5091 }
 0x727   : > { %v5097_v12 = vpop.permute.xlu1 %5096 }
 0x72b   : > { %v5102_v42 = vpop.permute.xlu1 %5101 }
 0x72f   : > { %v5107_v48 = vpop.permute.xlu1 %5106 }
 0x733   : > { %v5117_v37 = vpop.permute.xlu1 %5116 }
 0x737   : > { %v5127_v30 = vpop.permute.xlu1 %5126 }
 0x78b   : > { %v5210_v61 = vpop.f32.mrf.mxu0 }
 0x78c   : > { %v5211_v31 = vadd.f32 %v5210_v61, %v5067_v34 }
 0x78d   : > { %v5212_v47 = vpop.f32.mrf.mxu0 }
 0x78e   : > { %v5213_v52 = vadd.f32 %v5212_v47, %v5067_v34  ;;  %5305 = vst [vmem:[%s10930_s7] sm:$0xff] %v5211_v31  ;;  %v5132_v34 = vpop.permute.xlu0 %5131 }
 0x78f   : > { %v5216_v62 = vpop.f32.mrf.mxu0 }
 0x790   : > { %v5217_v55 = vadd.f32 %v5216_v62, %v5072_v23  ;;  %5306 = vst [vmem:[%s10930_s7 + $0x8] sm:$0xff] %v5213_v52  ;;  %v5137_v52 = vpop.permute.xlu1 %5136 }
 0x791   : > { %v5218_v44 = vpop.f32.mrf.mxu0 }
 0x792   : > { %v5219_v40 = vadd.f32 %v5218_v44, %v5072_v23  ;;  %5307 = vst [vmem:[%s10930_s7 + $0x10] sm:$0xff] %v5217_v55 }
 0x793   : > { %v5222_v21 = vpop.f32.mrf.mxu0 }
 0x794   : > { %5308 = vst [vmem:[%s10930_s7 + $0x18] sm:$0xff] %v5219_v40  ;;  %v5223_v45 = vadd.f32 %v5222_v21, %v5077_v10  ;;  %v5142_v21 = vpop.permute.xlu0 %5141 }
 0x795   : > { %v5224_v46 = vpop.f32.mrf.mxu0 }
 0x796   : > { %v5225_v28 = vadd.f32 %v5224_v46, %v5077_v10  ;;  %5309 = vst [vmem:[%s10930_s7 + $0x20] sm:$0xff] %v5223_v45 }
 0x797   : > { %v5228_v43 = vpop.f32.mrf.mxu0 }
 0x798   : > { %5310 = vst [vmem:[%s10930_s7 + $0x28] sm:$0xff] %v5225_v28  ;;  %v5229_v49 = vadd.f32 %v5228_v43, %v5082_v1 }
 0x799   : > { %v5230_v63 = vpop.f32.mrf.mxu0 }
 0x79a   : > { %v5231_v9 = vadd.f32 %v5230_v63, %v5082_v1  ;;  %5311 = vst [vmem:[%s10930_s7 + $0x30] sm:$0xff] %v5229_v49 }
 0x79b   : > { %v5234_v54 = vpop.f32.mrf.mxu0 }
 0x79c   : > { %5312 = vst [vmem:[%s10930_s7 + $0x38] sm:$0xff] %v5231_v9  ;;  %v5235_v25 = vadd.f32 %v5234_v54, %v5087_v51 }
 0x79d   : > { %v5236_v27 = vpop.f32.mrf.mxu0 }
 0x79e   : > { %v5237_v13 = vadd.f32 %v5236_v27, %v5087_v51  ;;  %5313 = vst [vmem:[%s10930_s7 + $0x40] sm:$0xff] %v5235_v25 }
 0x79f   : > { %v5240_v39 = vpop.f32.mrf.mxu0 }
 0x7a0   : > { %5314 = vst [vmem:[%s10930_s7 + $0x48] sm:$0xff] %v5237_v13  ;;  %v5241_v53 = vadd.f32 %v5240_v39, %v5092_v17 }
 0x7a1   : > { %v5242_v50 = vpop.f32.mrf.mxu0 }
 0x7a2   : > { %v5243_v41 = vadd.f32 %v5242_v50, %v5092_v17  ;;  %5315 = vst [vmem:[%s10930_s7 + $0x50] sm:$0xff] %v5241_v53 }
 0x7a3   : > { %v5246_v33 = vpop.f32.mrf.mxu0 }
 0x7a4   : > { %5316 = vst [vmem:[%s10930_s7 + $0x58] sm:$0xff] %v5243_v41  ;;  %v5247_v7 = vadd.f32 %v5246_v33, %v5097_v12 }
 0x7a5   : > { %v5248_v5 = vpop.f32.mrf.mxu0 }
 0x7a6   : > { %v5249_v18 = vadd.f32 %v5248_v5, %v5097_v12  ;;  %5317 = vst [vmem:[%s10930_s7 + $0x60] sm:$0xff] %v5247_v7 }
 0x7a7   : > { %v5252_v4 = vpop.f32.mrf.mxu0 }
 0x7a8   : > { %5318 = vst [vmem:[%s10930_s7 + $0x68] sm:$0xff] %v5249_v18  ;;  %v5253_v14 = vadd.f32 %v5252_v4, %v5102_v42 }
 0x7a9   : > { %v5254_v60 = vpop.f32.mrf.mxu0 }
 0x7aa   : > { %v5255_v0 = vadd.f32 %v5254_v60, %v5102_v42  ;;  %5319 = vst [vmem:[%s10930_s7 + $0x70] sm:$0xff] %v5253_v14 }
 0x7ab   : > { %v5258_v58 = vpop.f32.mrf.mxu0 }
 0x7ac   : > { %5320 = vst [vmem:[%s10930_s7 + $0x78] sm:$0xff] %v5255_v0  ;;  %v5259_v26 = vadd.f32 %v5258_v58, %v5107_v48 }
 0x7ad   : > { %v5260_v15 = vpop.f32.mrf.mxu0 }
 0x7ae   : > { %v5261_v24 = vadd.f32 %v5260_v15, %v5107_v48  ;;  %5321 = vst [vmem:[%s10930_s7 + $0x80] sm:$0xff] %v5259_v26 }
 0x7af   : > { %v5264_v38 = vpop.f32.mrf.mxu0 }
 0x7b0   : > { %5322 = vst [vmem:[%s10930_s7 + $0x88] sm:$0xff] %v5261_v24  ;;  %v5265_v2 = vadd.f32 %v5264_v38, %v5112_v3 }
 0x7b1   : > { %v5266_v56 = vpop.f32.mrf.mxu0 }
 0x7b2   : > { %v5267_v32 = vadd.f32 %v5266_v56, %v5112_v3  ;;  %5323 = vst [vmem:[%s10930_s7 + $0x90] sm:$0xff] %v5265_v2 }
 0x7b3   : > { %v5270_v22 = vpop.f32.mrf.mxu0 }
 0x7b4   : > { %v5271_v59 = vadd.f32 %v5270_v22, %v5117_v37  ;;  %5324 = vst [vmem:[%s10930_s7 + $0x98] sm:$0xff] %v5267_v32 }
 0x7b5   : > { %v5272_v19 = vpop.f32.mrf.mxu0 }
 0x7b6   : > { %v5273_v6 = vadd.f32 %v5272_v19, %v5117_v37  ;;  %5325 = vst [vmem:[%s10930_s7 + $0xa0] sm:$0xff] %v5271_v59 }
 0x7b7   : > { %v5276_v29 = vpop.f32.mrf.mxu0 }
 0x7b8   : > { %5326 = vst [vmem:[%s10930_s7 + $0xa8] sm:$0xff] %v5273_v6  ;;  %v5277_v11 = vadd.f32 %v5276_v29, %v5122_v36 }
 0x7b9   : > { %v5278_v57 = vpop.f32.mrf.mxu0 }
 0x7ba   : > { %v5279_v16 = vadd.f32 %v5278_v57, %v5122_v36  ;;  %5327 = vst [vmem:[%s10930_s7 + $0xb0] sm:$0xff] %v5277_v11 }
 0x7bb   : > { %v5282_v20 = vpop.f32.mrf.mxu0 }
 0x7bc   : > { %v5283_v35 = vadd.f32 %v5282_v20, %v5127_v30  ;;  %5328 = vst [vmem:[%s10930_s7 + $0xb8] sm:$0xff] %v5279_v16 }
 0x7bd   : > { %v5284_v8 = vpop.f32.mrf.mxu0 }
 0x7be   : > { %v5285_v23 = vadd.f32 %v5284_v8, %v5127_v30  ;;  %5329 = vst [vmem:[%s10930_s7 + $0xc0] sm:$0xff] %v5283_v35 }
 0x7bf   : > { %v5288_v10 = vpop.f32.mrf.mxu0 }
 0x7c0   : > { %5330 = vst [vmem:[%s10930_s7 + $0xc8] sm:$0xff] %v5285_v23  ;;  %v5289_v61 = vadd.f32 %v5288_v10, %v5132_v34 }
 0x7c1   : > { %v5290_v31 = vpop.f32.mrf.mxu0 }
 0x7c2   : > { %v5291_v47 = vadd.f32 %v5290_v31, %v5132_v34  ;;  %5331 = vst [vmem:[%s10930_s7 + $0xd0] sm:$0xff] %v5289_v61 }
 0x7c3   : > { %v5294_v1 = vpop.f32.mrf.mxu0 }
 0x7c4   : > { %v5295_v62 = vadd.f32 %v5294_v1, %v5137_v52  ;;  %5332 = vst [vmem:[%s10930_s7 + $0xd8] sm:$0xff] %v5291_v47 }
 0x7c5   : > { %v5296_v55 = vpop.f32.mrf.mxu0 }
 0x7c6   : > { %5333 = vst [vmem:[%s10930_s7 + $0xe0] sm:$0xff] %v5295_v62  ;;  %v5297_v44 = vadd.f32 %v5296_v55, %v5137_v52 }
 0x7c7   : > { %v5300_v40 = vpop.f32.mrf.mxu0 }
 0x7c8   : > { %5334 = vst [vmem:[%s10930_s7 + $0xe8] sm:$0xff] %v5297_v44  ;;  %v5301_v51 = vadd.f32 %v5300_v40, %v5142_v21 }
 0x7c9   : > { %v5302_v45 = vpop.f32.mrf.mxu0 }
 0x7ca   : > { %v5303_v46 = vadd.f32 %v5302_v45, %v5142_v21  ;;  %5335 = vst [vmem:[%s10930_s7 + $0xf0] sm:$0xff] %v5301_v51 }
 0x7cc   : > { %5336 = vst [vmem:[%s10930_s7 + $0xf8] sm:$0xff] %v5303_v46 }
 0x7cd   : > { %6668 = shalt.err (!%p6665_p5)
}
 0x7ce   : > { %s6669_s10 = scalar_lea.hbm %s10968_s23, 4096  ;;  %s6673_s6 = scalar_lea.hbm %s11019_s4, 8192 }
 0x7cf   : > { %p6670_p9 = scmp.ne.s32.totalorder %s10968_s23, %s6669_s10  ;;  %p6674_p6 = scmp.lt.s32.totalorder %s10968_s23, %s11019_s4 }
 0x7d0   : > { %p6675_p8 = scmp.lt.s32.totalorder %s6673_s6, %s6669_s10 }
 0x7d1   : > { %p6671_p1 = pnand %p6670_p9, %p12415_p11 }
 0x7d2   : > { %p6676_p3 = por %p6675_p8, %p6674_p6 }
 0x7d3   : > { %p6672_p4 = pneg %p6671_p1 }
 0x7d5   : > { %p6677_p7 = pnand %p6676_p3, %p6672_p4 }
 0x7d7   : > { %6680 = shalt.err (!%p6677_p7)
}
 0x7d8   : > { %5708 = dma.vmem_to_hbm [thread:$0]  (%p12415_p11), %s10970_s26, 4096, %s10968_s23, %s5338_s15, %s6738_s17, %s6738_s17, %s6739_s24  }
 0x7d9 PF: > { %s5387_s29 = sand.u32 1, %s6715_s18   ;;  %p12416_p12 = scmp.ne.s32.totalorder %s11456_s25, 0 }
 0x7da   : > { %p12417_p10 = scmp.ge.s32.totalorder %s6727_s21, 2  ;;  %s5388_s8 = scalar_lea.sflag [#allocation4], %s5387_s29 }
 0x7dc   : > { %p5721_p2 = pnand %p12417_p10, %p12416_p12 }
 0x7de   : > { %p5722_p13 = pneg %p5721_p2 }
 0x7e0   : > { %6706 = dma.done.wait (%p5722_p13), %s5388_s8, 4096  }
 0x7e1   : > { %6708 = vsyncadd (%p5722_p13), %s5388_s8, 4294963200  ;;  %s5397_s27 = scalar_lea.sflag [#allocation9], %s5387_s29 }
 0x7e2   : > { %6710 = dma.done.wait (%p5722_p13), %s5397_s27, 32768  }
 0x7e3   : > { %6712 = vsyncadd (%p5722_p13), %s5397_s27, 4294934528  ;;  %p23_p11 = scmp.ge.s32.totalorder %s6825_s30, 4   ;;  %s12418_s18 = smov %s6719_s19 }
 0x7e4   : > { %s12419_s19 = smov %s6723_s20  ;;  %s12420_s20 = smov %s6842_s13 }
 0x7e5   : > { %s12421_s21 = smov %s6825_s30  ;;  %25 = sbr.rel (!%p23_p11) target bundleno = 8 (0x8), region = 102 }
 0x7ea   :  { %5402 = vsyncpa [#allocation3], 1 }
 0x7eb   :  { %5404 = vsyncpa [#allocation3 + $0x1], 1 }
 0x7ec   :  { %5405 = vsyncpa [#allocation6], 1 }
 0x7ed   :  { %5406 = vsyncpa [#allocation4], 1 }
 0x7ee   :  { %5408 = vsyncpa [#allocation4 + $0x1], 1 }
 0x7ef   :  { %5409 = vsyncpa [#allocation9], 1 }
 0x7f0   :  { %5411 = vsyncpa [#allocation9 + $0x1], 1 }

</bundles_post_ra>
